<compile_context>
chip_gen: v5e
topology: v5e:2x2
jax: 0.10.0
libtpu: 0.0.40
codegen_flags: <defaults>
</compile_context>

<pallas_src>
import jax
import jax.numpy as jnp
from jax.experimental import pallas as pl
from jax.experimental.pallas import tpu as pltpu

# ----------------------- small synthetic wav2vec2 config -----------------------
# (structure of facebook/wav2vec2-base-960h, scaled down; weights are synthetic)
CONV_DIM = 32                       # wav2vec2: 512
CONV_KERNELS = (10, 3, 3, 3, 3, 2, 2)
CONV_STRIDES = (5, 2, 2, 2, 2, 2, 2)
HIDDEN = 64                         # wav2vec2: 768
NUM_HEADS = 4                       # wav2vec2: 12
HEAD_DIM = HIDDEN // NUM_HEADS
FFN = 128                           # wav2vec2: 3072
NUM_LAYERS = 2                      # wav2vec2: 12
VOCAB = 32                          # wav2vec2-base-960h vocab = 32
POS_CONV_KERNEL = 4                 # wav2vec2: 128
POS_CONV_GROUPS = 4                 # wav2vec2: 16
LN_EPS = 1e-5


def _gelu(x):
    # TODO(synk): HF wav2vec2 uses erf-exact GELU; tanh-approx used for a guaranteed Mosaic lowering.
    return jax.nn.gelu(x, approximate=True)


def _layernorm(x, g, b, eps):
    mean = jnp.mean(x, axis=-1, keepdims=True)
    var = jnp.mean((x - mean) ** 2, axis=-1, keepdims=True)
    return (x - mean) * jax.lax.rsqrt(var + eps) * g + b


# ----------------------------- Pallas kernels -----------------------------------
def pallas_linear(x, w, b=None, *, act=None, resid=None, pre_ln=None, post_ln=None, tm=512):
    """Fused  y = post_LN( act( pre_LN(x) @ w + b ) + resid ).

    x:(M,K)  w:(K,N)  b:(N,)  resid:(M,N)  pre_ln=(g,b) over K  post_ln=(g,b) over N.
    Matmul runs in bf16 with f32 accumulation; all LN / epilogue math stays f32.
    Grid is over rows only; W / bias / LN params have constant block indices and stay
    VMEM-resident across the grid (no re-streaming).  Ragged final row block is left
    to Pallas (no wrapper-side padding / slicing)."""
    M, K = x.shape
    K2, N = w.shape
    assert K == K2
    w = w.astype(jnp.bfloat16)
    # pre-LN needs f32 stats over K, so feed f32 rows; otherwise feed bf16 straight to MXU.
    x = x.astype(jnp.float32) if pre_ln is not None else x.astype(jnp.bfloat16)

    bm = M if M <= tm else tm                      # full-dim block when small (no pad)
    grid = (pl.cdiv(M, bm),)

    has_bias = b is not None
    has_resid = resid is not None
    has_pre = pre_ln is not None
    has_post = post_ln is not None

    args = [x, w]
    in_specs = [pl.BlockSpec((bm, K), lambda i: (i, 0)),
                pl.BlockSpec((K, N), lambda i: (0, 0))]       # weight resident
    if has_bias:
        args.append(b.reshape(1, N).astype(jnp.float32))
        in_specs.append(pl.BlockSpec((1, N), lambda i: (0, 0)))
    if has_resid:
        args.append(resid.astype(jnp.float32))
        in_specs.append(pl.BlockSpec((bm, N), lambda i: (i, 0)))
    if has_pre:
        g, be = pre_ln
        args += [g.reshape(1, K).astype(jnp.float32), be.reshape(1, K).astype(jnp.float32)]
        in_specs += [pl.BlockSpec((1, K), lambda i: (0, 0)),
                     pl.BlockSpec((1, K), lambda i: (0, 0))]
    if has_post:
        g, be = post_ln
        args += [g.reshape(1, N).astype(jnp.float32), be.reshape(1, N).astype(jnp.float32)]
        in_specs += [pl.BlockSpec((1, N), lambda i: (0, 0)),
                     pl.BlockSpec((1, N), lambda i: (0, 0))]

    def kern(*refs):
        it = iter(refs)
        x_ref = next(it)
        w_ref = next(it)
        b_ref = next(it) if has_bias else None
        r_ref = next(it) if has_resid else None
        pg_ref = next(it) if has_pre else None
        pb_ref = next(it) if has_pre else None
        qg_ref = next(it) if has_post else None
        qb_ref = next(it) if has_post else None
        o_ref = next(it)

        xv = x_ref[...]
        if has_pre:                                   # LayerNorm prologue (f32 stats)
            xv = _layernorm(xv.astype(jnp.float32), pg_ref[...], pb_ref[...], LN_EPS)
            xv = xv.astype(jnp.bfloat16)
        acc = jnp.dot(xv, w_ref[...], preferred_element_type=jnp.float32)
        if has_bias:
            acc = acc + b_ref[...]
        if act == "gelu":
            acc = _gelu(acc)
        if has_resid:
            acc = acc + r_ref[...]
        if has_post:                                  # LayerNorm epilogue (f32 stats)
            acc = _layernorm(acc, qg_ref[...], qb_ref[...], LN_EPS)
        o_ref[...] = acc.astype(o_ref.dtype)

    return pl.pallas_call(
        kern,
        out_shape=jax.ShapeDtypeStruct((M, N), jnp.float32),
        grid=grid,
        in_specs=in_specs,
        out_specs=pl.BlockSpec((bm, N), lambda i: (i, 0)),
        compiler_params=pltpu.CompilerParams(dimension_semantics=("parallel",)),
    )(*args)


def pallas_normalize(x, gamma, beta, *, eps=LN_EPS, act=None, resid=None, tm=512):
    """Row-wise normalization over the last axis with affine params, optional fused
    residual-add (y = norm(x + resid)) and GELU.  gamma/beta are either (1, D)
    (LayerNorm) or (M, 1) (per-channel GroupNorm rows).  Gridded over rows."""
    M, D = x.shape
    x = x.astype(jnp.float32)
    gamma = gamma.astype(jnp.float32)
    beta = beta.astype(jnp.float32)
    per_row = gamma.shape == (M, 1)

    bm = M if M <= tm else tm
    grid = (pl.cdiv(M, bm),)
    has_resid = resid is not None

    gspec = (pl.BlockSpec((bm, 1), lambda i: (i, 0)) if per_row
             else pl.BlockSpec((1, D), lambda i: (0, 0)))
    args = [x, gamma, beta]
    in_specs = [pl.BlockSpec((bm, D), lambda i: (i, 0)), gspec, gspec]
    if has_resid:
        args.append(resid.astype(jnp.float32))
        in_specs.append(pl.BlockSpec((bm, D), lambda i: (i, 0)))

    def kern(*refs):
        if has_resid:
            x_ref, g_ref, b_ref, r_ref, o_ref = refs
        else:
            x_ref, g_ref, b_ref, o_ref = refs
            r_ref = None
        xv = x_ref[...]
        if r_ref is not None:
            xv = xv + r_ref[...]
        y = _layernorm(xv, g_ref[...], b_ref[...], eps)
        if act == "gelu":
            y = _gelu(y)
        o_ref[...] = y

    return pl.pallas_call(
        kern,
        out_shape=jax.ShapeDtypeStruct((M, D), jnp.float32),
        grid=grid,
        in_specs=in_specs,
        out_specs=pl.BlockSpec((bm, D), lambda i: (i, 0)),
        compiler_params=pltpu.CompilerParams(dimension_semantics=("parallel",)),
    )(*args)


def pallas_attention(q, k, v, scale, *, bh_tile=8):
    """Fused softmax(q*scale @ k^T) @ v, gridded over the (batch*heads) axis.
    q,k,v: (BH, T, Dh).  Matmuls in bf16 / f32 accumulation; softmax stats in f32;
    the divide goes to the EUP via pl.reciprocal(approx=True).  At small BH the whole
    group is processed in one grid step (minimizes per-step overhead)."""
    BH, T, Dh = q.shape
    bh_tile = min(bh_tile, BH)
    while BH % bh_tile:                # largest divisor of BH not exceeding bh_tile
        bh_tile -= 1
    grid = (BH // bh_tile,)
    q = q.astype(jnp.bfloat16)
    k = k.astype(jnp.bfloat16)
    v = v.astype(jnp.bfloat16)

    # TODO(synk): for real wav2vec2 T (thousands of frames) switch to a flash-style
    # online-softmax with a KV-tile grid axis to avoid the O(T^2) score block in VMEM.
    def kern(q_ref, k_ref, v_ref, o_ref):
        s = jnp.einsum("bqd,bkd->bqk", q_ref[...], k_ref[...],
                       preferred_element_type=jnp.float32) * scale
        m = jnp.max(s, axis=-1, keepdims=True)
        p = jnp.exp(s - m)
        l = jnp.sum(p, axis=-1, keepdims=True)
        p = p * pl.reciprocal(l, approx=True)
        o_ref[...] = jnp.einsum("bqk,bkd->bqd", p.astype(jnp.bfloat16), v_ref[...],
                                preferred_element_type=jnp.float32)

    in_spec = pl.BlockSpec((bh_tile, T, Dh), lambda i: (i, 0, 0))
    return pl.pallas_call(
        kern,
        out_shape=jax.ShapeDtypeStruct((BH, T, Dh), jnp.float32),
        grid=grid,
        in_specs=[in_spec, in_spec, in_spec],
        out_specs=pl.BlockSpec((bh_tile, T, Dh), lambda i: (i, 0, 0)),
        compiler_params=pltpu.CompilerParams(dimension_semantics=("parallel",)),
    )(q, k, v)


# ------------------------------- JAX glue ----------------------------------------
def im2col_1d(x, k, s):
    """x: (B, C, L) -> patches (B*L_out, C*k); column order matches
    PyTorch conv weight.reshape(C_out, C_in*k)."""
    # TODO(synk): im2col gather stays in XLA glue; a strided-BlockSpec conv kernel would
    # avoid materializing duplicated patches in HBM.
    B, C, L = x.shape
    l_out = (L - k) // s + 1
    cols = jnp.arange(l_out)[:, None] * s + jnp.arange(k)[None, :]   # (l_out, k)
    patches = x[:, :, cols]                                          # (B, C, l_out, k)
    patches = jnp.transpose(patches, (0, 2, 1, 3)).reshape(B * l_out, C * k)
    return patches, l_out


def expand_grouped(w, groups):
    """Grouped conv weight (C_out, C_in//g, K) -> block-diagonal full (C_out, C_in, K)."""
    c_out, cpg_in, k = w.shape
    c_in = cpg_in * groups
    cpo = c_out // groups
    w_full = jnp.zeros((c_out, c_in, k), jnp.float32)
    for g in range(groups):
        w_full = w_full.at[g * cpo:(g + 1) * cpo,
                           g * cpg_in:(g + 1) * cpg_in, :].set(w[g * cpo:(g + 1) * cpo])
    return w_full


def init_params(key):
    keys = iter(jax.random.split(key, 128))

    def nrm(shape, scale=0.02):
        return (scale * jax.random.normal(next(keys), shape)).astype(jnp.float32)

    p = {}
    # feature extractor (conv_bias=False, group-norm only on layer 0, like wav2vec2-base)
    conv_w, in_c = [], 1
    for k in CONV_KERNELS:
        conv_w.append(nrm((CONV_DIM, in_c, k)))
        in_c = CONV_DIM
    p["conv_w"] = conv_w
    p["gn_g"] = jnp.ones((CONV_DIM,), jnp.float32)
    p["gn_b"] = jnp.zeros((CONV_DIM,), jnp.float32)
    # feature projection: LayerNorm + Linear
    p["fp_ln_g"] = jnp.ones((CONV_DIM,), jnp.float32)
    p["fp_ln_b"] = jnp.zeros((CONV_DIM,), jnp.float32)
    p["fp_w"] = nrm((CONV_DIM, HIDDEN))
    p["fp_b"] = nrm((HIDDEN,))
    # grouped convolutional positional embedding (with bias)
    p["pos_w"] = nrm((HIDDEN, HIDDEN // POS_CONV_GROUPS, POS_CONV_KERNEL))
    p["pos_b"] = nrm((HIDDEN,))
    p["enc_ln_g"] = jnp.ones((HIDDEN,), jnp.float32)
    p["enc_ln_b"] = jnp.zeros((HIDDEN,), jnp.float32)
    layers = []
    for _ in range(NUM_LAYERS):
        q_w, k_w, v_w = nrm((HIDDEN, HIDDEN)), nrm((HIDDEN, HIDDEN)), nrm((HIDDEN, HIDDEN))
        q_b, k_b, v_b = nrm((HIDDEN,)), jnp.zeros((HIDDEN,), jnp.float32), nrm((HIDDEN,))
        layers.append(dict(
            # Q/K/V fused into one (H, 3H) weight -> single matmul per layer
            qkv_w=jnp.concatenate([q_w, k_w, v_w], axis=1),
            qkv_b=jnp.concatenate([q_b, k_b, v_b]),
            o_w=nrm((HIDDEN, HIDDEN)), o_b=nrm((HIDDEN,)),
            ln1_g=jnp.ones((HIDDEN,), jnp.float32), ln1_b=jnp.zeros((HIDDEN,), jnp.float32),
            ff_i_w=nrm((HIDDEN, FFN)), ff_i_b=nrm((FFN,)),
            ff_o_w=nrm((FFN, HIDDEN)), ff_o_b=nrm((HIDDEN,)),
            ln2_g=jnp.ones((HIDDEN,), jnp.float32), ln2_b=jnp.zeros((HIDDEN,), jnp.float32),
        ))
    p["layers"] = layers
    # CTC head
    p["lm_w"] = nrm((HIDDEN, VOCAB))
    p["lm_b"] = nrm((VOCAB,))
    return p


def forward(params, speech):
    """ASRModel.forward: speech (B, S) -> logits (B, T, VOCAB). Inference mode (dropout=identity)."""
    B, S = speech.shape
    x = speech[:, None, :].astype(jnp.float32)                        # (B, 1, S), NCL

    # ---- feature extractor: 7 strided conv1d layers (im2col -> fused matmul kernels) ----
    for i, (w, k, s) in enumerate(zip(params["conv_w"], CONV_KERNELS, CONV_STRIDES)):
        patches, l_out = im2col_1d(x, k, s)                           # (B*l_out, C_in*k)
        c_out = w.shape[0]
        wm = w.reshape(c_out, -1).T                                   # (C_in*k, C_out)
        if i == 0:
            y = pallas_linear(patches, wm)                            # conv (no bias / act)
            y = y.reshape(B, l_out, c_out)
            # GroupNorm(num_groups=C): per-channel norm over time, affine, then GELU (fused)
            yc = jnp.transpose(y, (0, 2, 1)).reshape(B * c_out, l_out)
            g = jnp.tile(params["gn_g"], B)[:, None]
            bb = jnp.tile(params["gn_b"], B)[:, None]
            yc = pallas_normalize(yc, g, bb, act="gelu")
            x = yc.reshape(B, c_out, l_out)
        else:
            y = pallas_linear(patches, wm, act="gelu")                # conv + GELU fused
            x = jnp.transpose(y.reshape(B, l_out, c_out), (0, 2, 1))
    T = x.shape[-1]
    feats = jnp.transpose(x, (0, 2, 1)).reshape(B * T, CONV_DIM)      # (B*T, C)

    # ---- feature projection: LayerNorm fused as prologue of the projection matmul ----
    h = pallas_linear(feats, params["fp_w"], params["fp_b"],
                      pre_ln=(params["fp_ln_g"], params["fp_ln_b"]))  # (B*T, H)

    # ---- encoder: grouped conv positional embedding + residual + LayerNorm ----
    hc = jnp.transpose(h.reshape(B, T, HIDDEN), (0, 2, 1))            # (B, H, T)
    pad = POS_CONV_KERNEL // 2
    hc = jnp.pad(hc, ((0, 0), (0, 0), (pad, pad)))
    patches, l_out = im2col_1d(hc, POS_CONV_KERNEL, 1)                # l_out = T + 1
    wp = expand_grouped(params["pos_w"], POS_CONV_GROUPS)
    pos = pallas_linear(patches, wp.reshape(HIDDEN, -1).T, params["pos_b"], act="gelu")
    pos = pos.reshape(B, l_out, HIDDEN)[:, :T, :].reshape(B * T, HIDDEN)  # drop last (even kernel)
    # residual add fused into the encoder LayerNorm kernel
    h = pallas_normalize(h, params["enc_ln_g"][None, :], params["enc_ln_b"][None, :], resid=pos)

    # ---- transformer encoder layers (post-LayerNorm, wav2vec2-base style) ----
    scale = HEAD_DIM ** -0.5
    for lp in params["layers"]:
        resid = h
        qkv = pallas_linear(h, lp["qkv_w"], lp["qkv_b"])              # fused Q/K/V: (B*T, 3H)
        qkv = qkv.reshape(B, T, 3, NUM_HEADS, HEAD_DIM)
        qkv = jnp.transpose(qkv, (2, 0, 3, 1, 4)).reshape(3, B * NUM_HEADS, T, HEAD_DIM)
        attn = pallas_attention(qkv[0], qkv[1], qkv[2], scale)        # (BH, T, Dh)
        attn = jnp.transpose(attn.reshape(B, NUM_HEADS, T, HEAD_DIM),
                             (0, 2, 1, 3)).reshape(B * T, HIDDEN)
        # o-projection + residual + LayerNorm fused in one kernel
        h = pallas_linear(attn, lp["o_w"], lp["o_b"], resid=resid,
                          post_ln=(lp["ln1_g"], lp["ln1_b"]))
        ff = pallas_linear(h, lp["ff_i_w"], lp["ff_i_b"], act="gelu")
        # ffn output + residual + LayerNorm fused in one kernel
        h = pallas_linear(ff, lp["ff_o_w"], lp["ff_o_b"], resid=h,
                          post_ln=(lp["ln2_g"], lp["ln2_b"]))

    # ---- CTC head ----
    logits = pallas_linear(h, params["lm_w"], params["lm_b"])
    return logits.reshape(B, T, VOCAB)


if __name__ == "__main__":
    key = jax.random.PRNGKey(0)
    pkey, dkey = jax.random.split(key)
    params = init_params(pkey)
    # speech: batch=2, 3200 raw samples (downsamples to T=9 frames through the conv stack)
    speech = jax.random.normal(dkey, (2, 3200), dtype=jnp.float32)

    logits = jax.jit(forward)(params, speech)
    logits = jax.block_until_ready(logits)

    t = speech.shape[1]
    for k, s in zip(CONV_KERNELS, CONV_STRIDES):
        t = (t - k) // s + 1
    assert logits.shape == (speech.shape[0], t, VOCAB), logits.shape
    assert bool(jnp.all(jnp.isfinite(logits)))
    print("KERNEL_OK")
</pallas_src>

<mosaic_0001>
module attributes {stable_mosaic.version = 11 : i64} {
  func.func @kern(%arg0: i32, %arg1: memref<512x10xbf16, #tpu.memory_space<vmem>>, %arg2: memref<10x32xbf16, #tpu.memory_space<vmem>>, %arg3: memref<512x32xf32, #tpu.memory_space<vmem>>) attributes {dimension_semantics = [#tpu.dimension_semantics<parallel>], iteration_bounds = array<i64: 3>, scalar_prefetch = 0 : i64, scratch_operands = 0 : i64, tpu.core_type = #tpu.core_type<tc>, window_params = [{transform_indices = @transform_0, window_bounds = array<i64: 512, 10>}, {pipeline_mode = #tpu.pipeline_mode<synchronous>, transform_indices = @transform_1, window_bounds = array<i64: 10, 32>}, {transform_indices = @transform_2, window_bounds = array<i64: 512, 32>}]} {
    %c0 = arith.constant 0 : index
    %c0_0 = arith.constant 0 : index
    %0 = vector.load %arg1[%c0, %c0_0] : memref<512x10xbf16, #tpu.memory_space<vmem>>, vector<512x10xbf16>
    %c0_1 = arith.constant 0 : index
    %c0_2 = arith.constant 0 : index
    %1 = vector.load %arg2[%c0_1, %c0_2] : memref<10x32xbf16, #tpu.memory_space<vmem>>, vector<10x32xbf16>
    %cst = arith.constant dense<0.000000e+00> : vector<512x32xf32>
    %2 = tpu.matmul %0, %1, %cst {dimension_numbers = #tpu.dot_dimension_numbers<[1], [0], [0], [1], [0, 0, 1, 1], [], []>} : vector<512x10xbf16>, vector<10x32xbf16>, vector<512x32xf32> -> vector<512x32xf32>
    %c0_3 = arith.constant 0 : index
    %c0_4 = arith.constant 0 : index
    %3 = vector.load %arg3[%c0_3, %c0_4] : memref<512x32xf32, #tpu.memory_space<vmem>>, vector<512x32xf32>
    tpu.vector_store %arg3[%c0_3, %c0_4], %2 {strides = array<i32>} : memref<512x32xf32, #tpu.memory_space<vmem>>, vector<512x32xf32>,
    return
  }
  func.func @transform_0(%arg0: i32) -> (i32, i32) {
    %c0_i32 = arith.constant 0 : i32
    %c0_i32_0 = arith.constant 0 : i32
    return %arg0, %c0_i32 : i32, i32
  }
  func.func @transform_1(%arg0: i32) -> (i32, i32) {
    %c0_i32 = arith.constant 0 : i32
    %c0_i32_0 = arith.constant 0 : i32
    %c0_i32_1 = arith.constant 0 : i32
    return %c0_i32, %c0_i32_0 : i32, i32
  }
  func.func @transform_2(%arg0: i32) -> (i32, i32) {
    %c0_i32 = arith.constant 0 : i32
    %c0_i32_0 = arith.constant 0 : i32
    return %arg0, %c0_i32 : i32, i32
  }
}

module attributes {stable_mosaic.version = 11 : i64} {
  func.func @kern(%arg0: i32, %arg1: memref<64x639xf32, #tpu.memory_space<vmem>>, %arg2: memref<64x1xf32, #tpu.memory_space<vmem>>, %arg3: memref<64x1xf32, #tpu.memory_space<vmem>>, %arg4: memref<64x639xf32, #tpu.memory_space<vmem>>) attributes {dimension_semantics = [#tpu.dimension_semantics<parallel>], iteration_bounds = array<i64: 1>, scalar_prefetch = 0 : i64, scratch_operands = 0 : i64, tpu.core_type = #tpu.core_type<tc>, window_params = [{transform_indices = @transform_0, window_bounds = array<i64: 64, 639>}, {transform_indices = @transform_1, window_bounds = array<i64: 64, 1>}, {transform_indices = @transform_2, window_bounds = array<i64: 64, 1>}, {transform_indices = @transform_3, window_bounds = array<i64: 64, 639>}]} {
    %c0 = arith.constant 0 : index
    %c0_0 = arith.constant 0 : index
    %0 = vector.load %arg1[%c0, %c0_0] : memref<64x639xf32, #tpu.memory_space<vmem>>, vector<64x639xf32>
    %c0_1 = arith.constant 0 : index
    %c0_2 = arith.constant 0 : index
    %1 = vector.load %arg2[%c0_1, %c0_2] : memref<64x1xf32, #tpu.memory_space<vmem>>, vector<64x1xf32>
    %c0_3 = arith.constant 0 : index
    %c0_4 = arith.constant 0 : index
    %2 = vector.load %arg3[%c0_3, %c0_4] : memref<64x1xf32, #tpu.memory_space<vmem>>, vector<64x1xf32>
    %cst = arith.constant dense<0.000000e+00> : vector<64xf32>
    %3 = vector.multi_reduction <add>, %0, %cst [1] : vector<64x639xf32> to vector<64xf32>
    %4 = vector.shape_cast %3 : vector<64xf32> to vector<64x1xf32>
    %cst_5 = arith.constant 6.390000e+02 : f32
    %5 = vector.broadcast %cst_5 : f32 to vector<64x1xf32>
    %6 = arith.divf %4, %5 : vector<64x1xf32>
    %7 = vector.broadcast %6 : vector<64x1xf32> to vector<64x639xf32>
    %8 = arith.subf %0, %7 : vector<64x639xf32>
    %9 = arith.mulf %8, %8 : vector<64x639xf32>
    %cst_6 = arith.constant dense<0.000000e+00> : vector<64xf32>
    %10 = vector.multi_reduction <add>, %9, %cst_6 [1] : vector<64x639xf32> to vector<64xf32>
    %11 = vector.shape_cast %10 : vector<64xf32> to vector<64x1xf32>
    %cst_7 = arith.constant 6.390000e+02 : f32
    %12 = vector.broadcast %cst_7 : f32 to vector<64x1xf32>
    %13 = arith.divf %11, %12 : vector<64x1xf32>
    %14 = vector.broadcast %6 : vector<64x1xf32> to vector<64x639xf32>
    %15 = arith.subf %0, %14 : vector<64x639xf32>
    %cst_8 = arith.constant 9.99999974E-6 : f32
    %16 = vector.broadcast %cst_8 : f32 to vector<64x1xf32>
    %17 = arith.addf %13, %16 : vector<64x1xf32>
    %18 = math.rsqrt %17 : vector<64x1xf32>
    %19 = vector.broadcast %18 : vector<64x1xf32> to vector<64x639xf32>
    %20 = arith.mulf %15, %19 : vector<64x639xf32>
    %21 = vector.broadcast %1 : vector<64x1xf32> to vector<64x639xf32>
    %22 = arith.mulf %20, %21 : vector<64x639xf32>
    %23 = vector.broadcast %2 : vector<64x1xf32> to vector<64x639xf32>
    %24 = arith.addf %22, %23 : vector<64x639xf32>
    %25 = arith.mulf %24, %24 : vector<64x639xf32>
    %26 = arith.mulf %24, %25 : vector<64x639xf32>
    %cst_9 = arith.constant 4.471500e-02 : f32
    %27 = vector.broadcast %cst_9 : f32 to vector<64x639xf32>
    %28 = arith.mulf %27, %26 : vector<64x639xf32>
    %29 = arith.addf %24, %28 : vector<64x639xf32>
    %cst_10 = arith.constant 0.797884583 : f32
    %30 = vector.broadcast %cst_10 : f32 to vector<64x639xf32>
    %31 = arith.mulf %30, %29 : vector<64x639xf32>
    %32 = math.tanh %31 : vector<64x639xf32>
    %cst_11 = arith.constant 1.000000e+00 : f32
    %33 = vector.broadcast %cst_11 : f32 to vector<64x639xf32>
    %34 = arith.addf %33, %32 : vector<64x639xf32>
    %cst_12 = arith.constant 5.000000e-01 : f32
    %35 = vector.broadcast %cst_12 : f32 to vector<64x639xf32>
    %36 = arith.mulf %35, %34 : vector<64x639xf32>
    %37 = arith.mulf %24, %36 : vector<64x639xf32>
    %c0_13 = arith.constant 0 : index
    %c0_14 = arith.constant 0 : index
    %38 = vector.load %arg4[%c0_13, %c0_14] : memref<64x639xf32, #tpu.memory_space<vmem>>, vector<64x639xf32>
    tpu.vector_store %arg4[%c0_13, %c0_14], %37 {strides = array<i32>} : memref<64x639xf32, #tpu.memory_space<vmem>>, vector<64x639xf32>,
    return
  }
  func.func @transform_0(%arg0: i32) -> (i32, i32) {
    %c0_i32 = arith.constant 0 : i32
    %c0_i32_0 = arith.constant 0 : i32
    return %arg0, %c0_i32 : i32, i32
  }
  func.func @transform_1(%arg0: i32) -> (i32, i32) {
    %c0_i32 = arith.constant 0 : i32
    %c0_i32_0 = arith.constant 0 : i32
    return %arg0, %c0_i32 : i32, i32
  }
  func.func @transform_2(%arg0: i32) -> (i32, i32) {
    %c0_i32 = arith.constant 0 : i32
    %c0_i32_0 = arith.constant 0 : i32
    return %arg0, %c0_i32 : i32, i32
  }
  func.func @transform_3(%arg0: i32) -> (i32, i32) {
    %c0_i32 = arith.constant 0 : i32
    %c0_i32_0 = arith.constant 0 : i32
    return %arg0, %c0_i32 : i32, i32
  }
}

module attributes {stable_mosaic.version = 11 : i64} {
  func.func @kern(%arg0: i32, %arg1: memref<512x96xbf16, #tpu.memory_space<vmem>>, %arg2: memref<96x32xbf16, #tpu.memory_space<vmem>>, %arg3: memref<512x32xf32, #tpu.memory_space<vmem>>) attributes {dimension_semantics = [#tpu.dimension_semantics<parallel>], iteration_bounds = array<i64: 2>, scalar_prefetch = 0 : i64, scratch_operands = 0 : i64, tpu.core_type = #tpu.core_type<tc>, window_params = [{transform_indices = @transform_0, window_bounds = array<i64: 512, 96>}, {pipeline_mode = #tpu.pipeline_mode<synchronous>, transform_indices = @transform_1, window_bounds = array<i64: 96, 32>}, {transform_indices = @transform_2, window_bounds = array<i64: 512, 32>}]} {
    %c0 = arith.constant 0 : index
    %c0_0 = arith.constant 0 : index
    %0 = vector.load %arg1[%c0, %c0_0] : memref<512x96xbf16, #tpu.memory_space<vmem>>, vector<512x96xbf16>
    %c0_1 = arith.constant 0 : index
    %c0_2 = arith.constant 0 : index
    %1 = vector.load %arg2[%c0_1, %c0_2] : memref<96x32xbf16, #tpu.memory_space<vmem>>, vector<96x32xbf16>
    %cst = arith.constant dense<0.000000e+00> : vector<512x32xf32>
    %2 = tpu.matmul %0, %1, %cst {dimension_numbers = #tpu.dot_dimension_numbers<[1], [0], [0], [1], [0, 0, 1, 1], [], []>} : vector<512x96xbf16>, vector<96x32xbf16>, vector<512x32xf32> -> vector<512x32xf32>
    %3 = arith.mulf %2, %2 : vector<512x32xf32>
    %4 = arith.mulf %2, %3 : vector<512x32xf32>
    %cst_3 = arith.constant 4.471500e-02 : f32
    %5 = vector.broadcast %cst_3 : f32 to vector<512x32xf32>
    %6 = arith.mulf %5, %4 : vector<512x32xf32>
    %7 = arith.addf %2, %6 : vector<512x32xf32>
    %cst_4 = arith.constant 0.797884583 : f32
    %8 = vector.broadcast %cst_4 : f32 to vector<512x32xf32>
    %9 = arith.mulf %8, %7 : vector<512x32xf32>
    %10 = math.tanh %9 : vector<512x32xf32>
    %cst_5 = arith.constant 1.000000e+00 : f32
    %11 = vector.broadcast %cst_5 : f32 to vector<512x32xf32>
    %12 = arith.addf %11, %10 : vector<512x32xf32>
    %cst_6 = arith.constant 5.000000e-01 : f32
    %13 = vector.broadcast %cst_6 : f32 to vector<512x32xf32>
    %14 = arith.mulf %13, %12 : vector<512x32xf32>
    %15 = arith.mulf %2, %14 : vector<512x32xf32>
    %c0_7 = arith.constant 0 : index
    %c0_8 = arith.constant 0 : index
    %16 = vector.load %arg3[%c0_7, %c0_8] : memref<512x32xf32, #tpu.memory_space<vmem>>, vector<512x32xf32>
    tpu.vector_store %arg3[%c0_7, %c0_8], %15 {strides = array<i32>} : memref<512x32xf32, #tpu.memory_space<vmem>>, vector<512x32xf32>,
    return
  }
  func.func @transform_0(%arg0: i32) -> (i32, i32) {
    %c0_i32 = arith.constant 0 : i32
    %c0_i32_0 = arith.constant 0 : i32
    return %arg0, %c0_i32 : i32, i32
  }
  func.func @transform_1(%arg0: i32) -> (i32, i32) {
    %c0_i32 = arith.constant 0 : i32
    %c0_i32_0 = arith.constant 0 : i32
    %c0_i32_1 = arith.constant 0 : i32
    return %c0_i32, %c0_i32_0 : i32, i32
  }
  func.func @transform_2(%arg0: i32) -> (i32, i32) {
    %c0_i32 = arith.constant 0 : i32
    %c0_i32_0 = arith.constant 0 : i32
    return %arg0, %c0_i32 : i32, i32
  }
}

module attributes {stable_mosaic.version = 11 : i64} {
  func.func @kern(%arg0: i32, %arg1: memref<318x96xbf16, #tpu.memory_space<vmem>>, %arg2: memref<96x32xbf16, #tpu.memory_space<vmem>>, %arg3: memref<318x32xf32, #tpu.memory_space<vmem>>) attributes {dimension_semantics = [#tpu.dimension_semantics<parallel>], iteration_bounds = array<i64: 1>, scalar_prefetch = 0 : i64, scratch_operands = 0 : i64, tpu.core_type = #tpu.core_type<tc>, window_params = [{transform_indices = @transform_0, window_bounds = array<i64: 318, 96>}, {pipeline_mode = #tpu.pipeline_mode<synchronous>, transform_indices = @transform_1, window_bounds = array<i64: 96, 32>}, {transform_indices = @transform_2, window_bounds = array<i64: 318, 32>}]} {
    %c0 = arith.constant 0 : index
    %c0_0 = arith.constant 0 : index
    %0 = vector.load %arg1[%c0, %c0_0] : memref<318x96xbf16, #tpu.memory_space<vmem>>, vector<318x96xbf16>
    %c0_1 = arith.constant 0 : index
    %c0_2 = arith.constant 0 : index
    %1 = vector.load %arg2[%c0_1, %c0_2] : memref<96x32xbf16, #tpu.memory_space<vmem>>, vector<96x32xbf16>
    %cst = arith.constant dense<0.000000e+00> : vector<318x32xf32>
    %2 = tpu.matmul %0, %1, %cst {dimension_numbers = #tpu.dot_dimension_numbers<[1], [0], [0], [1], [0, 0, 1, 1], [], []>} : vector<318x96xbf16>, vector<96x32xbf16>, vector<318x32xf32> -> vector<318x32xf32>
    %3 = arith.mulf %2, %2 : vector<318x32xf32>
    %4 = arith.mulf %2, %3 : vector<318x32xf32>
    %cst_3 = arith.constant 4.471500e-02 : f32
    %5 = vector.broadcast %cst_3 : f32 to vector<318x32xf32>
    %6 = arith.mulf %5, %4 : vector<318x32xf32>
    %7 = arith.addf %2, %6 : vector<318x32xf32>
    %cst_4 = arith.constant 0.797884583 : f32
    %8 = vector.broadcast %cst_4 : f32 to vector<318x32xf32>
    %9 = arith.mulf %8, %7 : vector<318x32xf32>
    %10 = math.tanh %9 : vector<318x32xf32>
    %cst_5 = arith.constant 1.000000e+00 : f32
    %11 = vector.broadcast %cst_5 : f32 to vector<318x32xf32>
    %12 = arith.addf %11, %10 : vector<318x32xf32>
    %cst_6 = arith.constant 5.000000e-01 : f32
    %13 = vector.broadcast %cst_6 : f32 to vector<318x32xf32>
    %14 = arith.mulf %13, %12 : vector<318x32xf32>
    %15 = arith.mulf %2, %14 : vector<318x32xf32>
    %c0_7 = arith.constant 0 : index
    %c0_8 = arith.constant 0 : index
    %16 = vector.load %arg3[%c0_7, %c0_8] : memref<318x32xf32, #tpu.memory_space<vmem>>, vector<318x32xf32>
    tpu.vector_store %arg3[%c0_7, %c0_8], %15 {strides = array<i32>} : memref<318x32xf32, #tpu.memory_space<vmem>>, vector<318x32xf32>,
    return
  }
  func.func @transform_0(%arg0: i32) -> (i32, i32) {
    %c0_i32 = arith.constant 0 : i32
    %c0_i32_0 = arith.constant 0 : i32
    return %arg0, %c0_i32 : i32, i32
  }
  func.func @transform_1(%arg0: i32) -> (i32, i32) {
    %c0_i32 = arith.constant 0 : i32
    %c0_i32_0 = arith.constant 0 : i32
    %c0_i32_1 = arith.constant 0 : i32
    return %c0_i32, %c0_i32_0 : i32, i32
  }
  func.func @transform_2(%arg0: i32) -> (i32, i32) {
    %c0_i32 = arith.constant 0 : i32
    %c0_i32_0 = arith.constant 0 : i32
    return %arg0, %c0_i32 : i32, i32
  }
}

module attributes {stable_mosaic.version = 11 : i64} {
  func.func @kern(%arg0: i32, %arg1: memref<158x96xbf16, #tpu.memory_space<vmem>>, %arg2: memref<96x32xbf16, #tpu.memory_space<vmem>>, %arg3: memref<158x32xf32, #tpu.memory_space<vmem>>) attributes {dimension_semantics = [#tpu.dimension_semantics<parallel>], iteration_bounds = array<i64: 1>, scalar_prefetch = 0 : i64, scratch_operands = 0 : i64, tpu.core_type = #tpu.core_type<tc>, window_params = [{transform_indices = @transform_0, window_bounds = array<i64: 158, 96>}, {pipeline_mode = #tpu.pipeline_mode<synchronous>, transform_indices = @transform_1, window_bounds = array<i64: 96, 32>}, {transform_indices = @transform_2, window_bounds = array<i64: 158, 32>}]} {
    %c0 = arith.constant 0 : index
    %c0_0 = arith.constant 0 : index
    %0 = vector.load %arg1[%c0, %c0_0] : memref<158x96xbf16, #tpu.memory_space<vmem>>, vector<158x96xbf16>
    %c0_1 = arith.constant 0 : index
    %c0_2 = arith.constant 0 : index
    %1 = vector.load %arg2[%c0_1, %c0_2] : memref<96x32xbf16, #tpu.memory_space<vmem>>, vector<96x32xbf16>
    %cst = arith.constant dense<0.000000e+00> : vector<158x32xf32>
    %2 = tpu.matmul %0, %1, %cst {dimension_numbers = #tpu.dot_dimension_numbers<[1], [0], [0], [1], [0, 0, 1, 1], [], []>} : vector<158x96xbf16>, vector<96x32xbf16>, vector<158x32xf32> -> vector<158x32xf32>
    %3 = arith.mulf %2, %2 : vector<158x32xf32>
    %4 = arith.mulf %2, %3 : vector<158x32xf32>
    %cst_3 = arith.constant 4.471500e-02 : f32
    %5 = vector.broadcast %cst_3 : f32 to vector<158x32xf32>
    %6 = arith.mulf %5, %4 : vector<158x32xf32>
    %7 = arith.addf %2, %6 : vector<158x32xf32>
    %cst_4 = arith.constant 0.797884583 : f32
    %8 = vector.broadcast %cst_4 : f32 to vector<158x32xf32>
    %9 = arith.mulf %8, %7 : vector<158x32xf32>
    %10 = math.tanh %9 : vector<158x32xf32>
    %cst_5 = arith.constant 1.000000e+00 : f32
    %11 = vector.broadcast %cst_5 : f32 to vector<158x32xf32>
    %12 = arith.addf %11, %10 : vector<158x32xf32>
    %cst_6 = arith.constant 5.000000e-01 : f32
    %13 = vector.broadcast %cst_6 : f32 to vector<158x32xf32>
    %14 = arith.mulf %13, %12 : vector<158x32xf32>
    %15 = arith.mulf %2, %14 : vector<158x32xf32>
    %c0_7 = arith.constant 0 : index
    %c0_8 = arith.constant 0 : index
    %16 = vector.load %arg3[%c0_7, %c0_8] : memref<158x32xf32, #tpu.memory_space<vmem>>, vector<158x32xf32>
    tpu.vector_store %arg3[%c0_7, %c0_8], %15 {strides = array<i32>} : memref<158x32xf32, #tpu.memory_space<vmem>>, vector<158x32xf32>,
    return
  }
  func.func @transform_0(%arg0: i32) -> (i32, i32) {
    %c0_i32 = arith.constant 0 : i32
    %c0_i32_0 = arith.constant 0 : i32
    return %arg0, %c0_i32 : i32, i32
  }
  func.func @transform_1(%arg0: i32) -> (i32, i32) {
    %c0_i32 = arith.constant 0 : i32
    %c0_i32_0 = arith.constant 0 : i32
    %c0_i32_1 = arith.constant 0 : i32
    return %c0_i32, %c0_i32_0 : i32, i32
  }
  func.func @transform_2(%arg0: i32) -> (i32, i32) {
    %c0_i32 = arith.constant 0 : i32
    %c0_i32_0 = arith.constant 0 : i32
    return %arg0, %c0_i32 : i32, i32
  }
}

module attributes {stable_mosaic.version = 11 : i64} {
  func.func @kern(%arg0: i32, %arg1: memref<78x96xbf16, #tpu.memory_space<vmem>>, %arg2: memref<96x32xbf16, #tpu.memory_space<vmem>>, %arg3: memref<78x32xf32, #tpu.memory_space<vmem>>) attributes {dimension_semantics = [#tpu.dimension_semantics<parallel>], iteration_bounds = array<i64: 1>, scalar_prefetch = 0 : i64, scratch_operands = 0 : i64, tpu.core_type = #tpu.core_type<tc>, window_params = [{transform_indices = @transform_0, window_bounds = array<i64: 78, 96>}, {pipeline_mode = #tpu.pipeline_mode<synchronous>, transform_indices = @transform_1, window_bounds = array<i64: 96, 32>}, {transform_indices = @transform_2, window_bounds = array<i64: 78, 32>}]} {
    %c0 = arith.constant 0 : index
    %c0_0 = arith.constant 0 : index
    %0 = vector.load %arg1[%c0, %c0_0] : memref<78x96xbf16, #tpu.memory_space<vmem>>, vector<78x96xbf16>
    %c0_1 = arith.constant 0 : index
    %c0_2 = arith.constant 0 : index
    %1 = vector.load %arg2[%c0_1, %c0_2] : memref<96x32xbf16, #tpu.memory_space<vmem>>, vector<96x32xbf16>
    %cst = arith.constant dense<0.000000e+00> : vector<78x32xf32>
    %2 = tpu.matmul %0, %1, %cst {dimension_numbers = #tpu.dot_dimension_numbers<[1], [0], [0], [1], [0, 0, 1, 1], [], []>} : vector<78x96xbf16>, vector<96x32xbf16>, vector<78x32xf32> -> vector<78x32xf32>
    %3 = arith.mulf %2, %2 : vector<78x32xf32>
    %4 = arith.mulf %2, %3 : vector<78x32xf32>
    %cst_3 = arith.constant 4.471500e-02 : f32
    %5 = vector.broadcast %cst_3 : f32 to vector<78x32xf32>
    %6 = arith.mulf %5, %4 : vector<78x32xf32>
    %7 = arith.addf %2, %6 : vector<78x32xf32>
    %cst_4 = arith.constant 0.797884583 : f32
    %8 = vector.broadcast %cst_4 : f32 to vector<78x32xf32>
    %9 = arith.mulf %8, %7 : vector<78x32xf32>
    %10 = math.tanh %9 : vector<78x32xf32>
    %cst_5 = arith.constant 1.000000e+00 : f32
    %11 = vector.broadcast %cst_5 : f32 to vector<78x32xf32>
    %12 = arith.addf %11, %10 : vector<78x32xf32>
    %cst_6 = arith.constant 5.000000e-01 : f32
    %13 = vector.broadcast %cst_6 : f32 to vector<78x32xf32>
    %14 = arith.mulf %13, %12 : vector<78x32xf32>
    %15 = arith.mulf %2, %14 : vector<78x32xf32>
    %c0_7 = arith.constant 0 : index
    %c0_8 = arith.constant 0 : index
    %16 = vector.load %arg3[%c0_7, %c0_8] : memref<78x32xf32, #tpu.memory_space<vmem>>, vector<78x32xf32>
    tpu.vector_store %arg3[%c0_7, %c0_8], %15 {strides = array<i32>} : memref<78x32xf32, #tpu.memory_space<vmem>>, vector<78x32xf32>,
    return
  }
  func.func @transform_0(%arg0: i32) -> (i32, i32) {
    %c0_i32 = arith.constant 0 : i32
    %c0_i32_0 = arith.constant 0 : i32
    return %arg0, %c0_i32 : i32, i32
  }
  func.func @transform_1(%arg0: i32) -> (i32, i32) {
    %c0_i32 = arith.constant 0 : i32
    %c0_i32_0 = arith.constant 0 : i32
    %c0_i32_1 = arith.constant 0 : i32
    return %c0_i32, %c0_i32_0 : i32, i32
  }
  func.func @transform_2(%arg0: i32) -> (i32, i32) {
    %c0_i32 = arith.constant 0 : i32
    %c0_i32_0 = arith.constant 0 : i32
    return %arg0, %c0_i32 : i32, i32
  }
}

module attributes {stable_mosaic.version = 11 : i64} {
  func.func @kern(%arg0: i32, %arg1: memref<38x64xbf16, #tpu.memory_space<vmem>>, %arg2: memref<64x32xbf16, #tpu.memory_space<vmem>>, %arg3: memref<38x32xf32, #tpu.memory_space<vmem>>) attributes {dimension_semantics = [#tpu.dimension_semantics<parallel>], iteration_bounds = array<i64: 1>, scalar_prefetch = 0 : i64, scratch_operands = 0 : i64, tpu.core_type = #tpu.core_type<tc>, window_params = [{transform_indices = @transform_0, window_bounds = array<i64: 38, 64>}, {pipeline_mode = #tpu.pipeline_mode<synchronous>, transform_indices = @transform_1, window_bounds = array<i64: 64, 32>}, {transform_indices = @transform_2, window_bounds = array<i64: 38, 32>}]} {
    %c0 = arith.constant 0 : index
    %c0_0 = arith.constant 0 : index
    %0 = vector.load %arg1[%c0, %c0_0] : memref<38x64xbf16, #tpu.memory_space<vmem>>, vector<38x64xbf16>
    %c0_1 = arith.constant 0 : index
    %c0_2 = arith.constant 0 : index
    %1 = vector.load %arg2[%c0_1, %c0_2] : memref<64x32xbf16, #tpu.memory_space<vmem>>, vector<64x32xbf16>
    %cst = arith.constant dense<0.000000e+00> : vector<38x32xf32>
    %2 = tpu.matmul %0, %1, %cst {dimension_numbers = #tpu.dot_dimension_numbers<[1], [0], [0], [1], [0, 0, 1, 1], [], []>} : vector<38x64xbf16>, vector<64x32xbf16>, vector<38x32xf32> -> vector<38x32xf32>
    %3 = arith.mulf %2, %2 : vector<38x32xf32>
    %4 = arith.mulf %2, %3 : vector<38x32xf32>
    %cst_3 = arith.constant 4.471500e-02 : f32
    %5 = vector.broadcast %cst_3 : f32 to vector<38x32xf32>
    %6 = arith.mulf %5, %4 : vector<38x32xf32>
    %7 = arith.addf %2, %6 : vector<38x32xf32>
    %cst_4 = arith.constant 0.797884583 : f32
    %8 = vector.broadcast %cst_4 : f32 to vector<38x32xf32>
    %9 = arith.mulf %8, %7 : vector<38x32xf32>
    %10 = math.tanh %9 : vector<38x32xf32>
    %cst_5 = arith.constant 1.000000e+00 : f32
    %11 = vector.broadcast %cst_5 : f32 to vector<38x32xf32>
    %12 = arith.addf %11, %10 : vector<38x32xf32>
    %cst_6 = arith.constant 5.000000e-01 : f32
    %13 = vector.broadcast %cst_6 : f32 to vector<38x32xf32>
    %14 = arith.mulf %13, %12 : vector<38x32xf32>
    %15 = arith.mulf %2, %14 : vector<38x32xf32>
    %c0_7 = arith.constant 0 : index
    %c0_8 = arith.constant 0 : index
    %16 = vector.load %arg3[%c0_7, %c0_8] : memref<38x32xf32, #tpu.memory_space<vmem>>, vector<38x32xf32>
    tpu.vector_store %arg3[%c0_7, %c0_8], %15 {strides = array<i32>} : memref<38x32xf32, #tpu.memory_space<vmem>>, vector<38x32xf32>,
    return
  }
  func.func @transform_0(%arg0: i32) -> (i32, i32) {
    %c0_i32 = arith.constant 0 : i32
    %c0_i32_0 = arith.constant 0 : i32
    return %arg0, %c0_i32 : i32, i32
  }
  func.func @transform_1(%arg0: i32) -> (i32, i32) {
    %c0_i32 = arith.constant 0 : i32
    %c0_i32_0 = arith.constant 0 : i32
    %c0_i32_1 = arith.constant 0 : i32
    return %c0_i32, %c0_i32_0 : i32, i32
  }
  func.func @transform_2(%arg0: i32) -> (i32, i32) {
    %c0_i32 = arith.constant 0 : i32
    %c0_i32_0 = arith.constant 0 : i32
    return %arg0, %c0_i32 : i32, i32
  }
}

module attributes {stable_mosaic.version = 11 : i64} {
  func.func @kern(%arg0: i32, %arg1: memref<18x64xbf16, #tpu.memory_space<vmem>>, %arg2: memref<64x32xbf16, #tpu.memory_space<vmem>>, %arg3: memref<18x32xf32, #tpu.memory_space<vmem>>) attributes {dimension_semantics = [#tpu.dimension_semantics<parallel>], iteration_bounds = array<i64: 1>, scalar_prefetch = 0 : i64, scratch_operands = 0 : i64, tpu.core_type = #tpu.core_type<tc>, window_params = [{transform_indices = @transform_0, window_bounds = array<i64: 18, 64>}, {pipeline_mode = #tpu.pipeline_mode<synchronous>, transform_indices = @transform_1, window_bounds = array<i64: 64, 32>}, {transform_indices = @transform_2, window_bounds = array<i64: 18, 32>}]} {
    %c0 = arith.constant 0 : index
    %c0_0 = arith.constant 0 : index
    %0 = vector.load %arg1[%c0, %c0_0] : memref<18x64xbf16, #tpu.memory_space<vmem>>, vector<18x64xbf16>
    %c0_1 = arith.constant 0 : index
    %c0_2 = arith.constant 0 : index
    %1 = vector.load %arg2[%c0_1, %c0_2] : memref<64x32xbf16, #tpu.memory_space<vmem>>, vector<64x32xbf16>
    %cst = arith.constant dense<0.000000e+00> : vector<18x32xf32>
    %2 = tpu.matmul %0, %1, %cst {dimension_numbers = #tpu.dot_dimension_numbers<[1], [0], [0], [1], [0, 0, 1, 1], [], []>} : vector<18x64xbf16>, vector<64x32xbf16>, vector<18x32xf32> -> vector<18x32xf32>
    %3 = arith.mulf %2, %2 : vector<18x32xf32>
    %4 = arith.mulf %2, %3 : vector<18x32xf32>
    %cst_3 = arith.constant 4.471500e-02 : f32
    %5 = vector.broadcast %cst_3 : f32 to vector<18x32xf32>
    %6 = arith.mulf %5, %4 : vector<18x32xf32>
    %7 = arith.addf %2, %6 : vector<18x32xf32>
    %cst_4 = arith.constant 0.797884583 : f32
    %8 = vector.broadcast %cst_4 : f32 to vector<18x32xf32>
    %9 = arith.mulf %8, %7 : vector<18x32xf32>
    %10 = math.tanh %9 : vector<18x32xf32>
    %cst_5 = arith.constant 1.000000e+00 : f32
    %11 = vector.broadcast %cst_5 : f32 to vector<18x32xf32>
    %12 = arith.addf %11, %10 : vector<18x32xf32>
    %cst_6 = arith.constant 5.000000e-01 : f32
    %13 = vector.broadcast %cst_6 : f32 to vector<18x32xf32>
    %14 = arith.mulf %13, %12 : vector<18x32xf32>
    %15 = arith.mulf %2, %14 : vector<18x32xf32>
    %c0_7 = arith.constant 0 : index
    %c0_8 = arith.constant 0 : index
    %16 = vector.load %arg3[%c0_7, %c0_8] : memref<18x32xf32, #tpu.memory_space<vmem>>, vector<18x32xf32>
    tpu.vector_store %arg3[%c0_7, %c0_8], %15 {strides = array<i32>} : memref<18x32xf32, #tpu.memory_space<vmem>>, vector<18x32xf32>,
    return
  }
  func.func @transform_0(%arg0: i32) -> (i32, i32) {
    %c0_i32 = arith.constant 0 : i32
    %c0_i32_0 = arith.constant 0 : i32
    return %arg0, %c0_i32 : i32, i32
  }
  func.func @transform_1(%arg0: i32) -> (i32, i32) {
    %c0_i32 = arith.constant 0 : i32
    %c0_i32_0 = arith.constant 0 : i32
    %c0_i32_1 = arith.constant 0 : i32
    return %c0_i32, %c0_i32_0 : i32, i32
  }
  func.func @transform_2(%arg0: i32) -> (i32, i32) {
    %c0_i32 = arith.constant 0 : i32
    %c0_i32_0 = arith.constant 0 : i32
    return %arg0, %c0_i32 : i32, i32
  }
}

module attributes {stable_mosaic.version = 11 : i64} {
  func.func @kern(%arg0: i32, %arg1: memref<18x32xf32, #tpu.memory_space<vmem>>, %arg2: memref<32x64xbf16, #tpu.memory_space<vmem>>, %arg3: memref<1x64xf32, #tpu.memory_space<vmem>>, %arg4: memref<1x32xf32, #tpu.memory_space<vmem>>, %arg5: memref<1x32xf32, #tpu.memory_space<vmem>>, %arg6: memref<18x64xf32, #tpu.memory_space<vmem>>) attributes {dimension_semantics = [#tpu.dimension_semantics<parallel>], iteration_bounds = array<i64: 1>, scalar_prefetch = 0 : i64, scratch_operands = 0 : i64, tpu.core_type = #tpu.core_type<tc>, window_params = [{transform_indices = @transform_0, window_bounds = array<i64: 18, 32>}, {pipeline_mode = #tpu.pipeline_mode<synchronous>, transform_indices = @transform_1, window_bounds = array<i64: 32, 64>}, {pipeline_mode = #tpu.pipeline_mode<synchronous>, transform_indices = @transform_2, window_bounds = array<i64: 1, 64>}, {pipeline_mode = #tpu.pipeline_mode<synchronous>, transform_indices = @transform_3, window_bounds = array<i64: 1, 32>}, {pipeline_mode = #tpu.pipeline_mode<synchronous>, transform_indices = @transform_4, window_bounds = array<i64: 1, 32>}, {transform_indices = @transform_5, window_bounds = array<i64: 18, 64>}]} {
    %c0 = arith.constant 0 : index
    %c0_0 = arith.constant 0 : index
    %0 = vector.load %arg1[%c0, %c0_0] : memref<18x32xf32, #tpu.memory_space<vmem>>, vector<18x32xf32>
    %c0_1 = arith.constant 0 : index
    %c0_2 = arith.constant 0 : index
    %1 = vector.load %arg4[%c0_1, %c0_2] : memref<1x32xf32, #tpu.memory_space<vmem>>, vector<1x32xf32>
    %c0_3 = arith.constant 0 : index
    %c0_4 = arith.constant 0 : index
    %2 = vector.load %arg5[%c0_3, %c0_4] : memref<1x32xf32, #tpu.memory_space<vmem>>, vector<1x32xf32>
    %cst = arith.constant dense<0.000000e+00> : vector<18xf32>
    %3 = vector.multi_reduction <add>, %0, %cst [1] : vector<18x32xf32> to vector<18xf32>
    %4 = vector.shape_cast %3 : vector<18xf32> to vector<18x1xf32>
    %cst_5 = arith.constant 3.200000e+01 : f32
    %5 = vector.broadcast %cst_5 : f32 to vector<18x1xf32>
    %6 = arith.divf %4, %5 : vector<18x1xf32>
    %7 = vector.broadcast %6 : vector<18x1xf32> to vector<18x32xf32>
    %8 = arith.subf %0, %7 : vector<18x32xf32>
    %9 = arith.mulf %8, %8 : vector<18x32xf32>
    %cst_6 = arith.constant dense<0.000000e+00> : vector<18xf32>
    %10 = vector.multi_reduction <add>, %9, %cst_6 [1] : vector<18x32xf32> to vector<18xf32>
    %11 = vector.shape_cast %10 : vector<18xf32> to vector<18x1xf32>
    %cst_7 = arith.constant 3.200000e+01 : f32
    %12 = vector.broadcast %cst_7 : f32 to vector<18x1xf32>
    %13 = arith.divf %11, %12 : vector<18x1xf32>
    %14 = vector.broadcast %6 : vector<18x1xf32> to vector<18x32xf32>
    %15 = arith.subf %0, %14 : vector<18x32xf32>
    %cst_8 = arith.constant 9.99999974E-6 : f32
    %16 = vector.broadcast %cst_8 : f32 to vector<18x1xf32>
    %17 = arith.addf %13, %16 : vector<18x1xf32>
    %18 = math.rsqrt %17 : vector<18x1xf32>
    %19 = vector.broadcast %18 : vector<18x1xf32> to vector<18x32xf32>
    %20 = arith.mulf %15, %19 : vector<18x32xf32>
    %21 = vector.broadcast %1 : vector<1x32xf32> to vector<18x32xf32>
    %22 = arith.mulf %20, %21 : vector<18x32xf32>
    %23 = vector.broadcast %2 : vector<1x32xf32> to vector<18x32xf32>
    %24 = arith.addf %22, %23 : vector<18x32xf32>
    %25 = arith.truncf %24 : vector<18x32xf32> to vector<18x32xbf16>
    %c0_9 = arith.constant 0 : index
    %c0_10 = arith.constant 0 : index
    %26 = vector.load %arg2[%c0_9, %c0_10] : memref<32x64xbf16, #tpu.memory_space<vmem>>, vector<32x64xbf16>
    %cst_11 = arith.constant dense<0.000000e+00> : vector<18x64xf32>
    %27 = tpu.matmul %25, %26, %cst_11 {dimension_numbers = #tpu.dot_dimension_numbers<[1], [0], [0], [1], [0, 0, 1, 1], [], []>} : vector<18x32xbf16>, vector<32x64xbf16>, vector<18x64xf32> -> vector<18x64xf32>
    %c0_12 = arith.constant 0 : index
    %c0_13 = arith.constant 0 : index
    %28 = vector.load %arg3[%c0_12, %c0_13] : memref<1x64xf32, #tpu.memory_space<vmem>>, vector<1x64xf32>
    %29 = vector.broadcast %28 : vector<1x64xf32> to vector<18x64xf32>
    %30 = arith.addf %27, %29 : vector<18x64xf32>
    %c0_14 = arith.constant 0 : index
    %c0_15 = arith.constant 0 : index
    %31 = vector.load %arg6[%c0_14, %c0_15] : memref<18x64xf32, #tpu.memory_space<vmem>>, vector<18x64xf32>
    tpu.vector_store %arg6[%c0_14, %c0_15], %30 {strides = array<i32>} : memref<18x64xf32, #tpu.memory_space<vmem>>, vector<18x64xf32>,
    return
  }
  func.func @transform_0(%arg0: i32) -> (i32, i32) {
    %c0_i32 = arith.constant 0 : i32
    %c0_i32_0 = arith.constant 0 : i32
    return %arg0, %c0_i32 : i32, i32
  }
  func.func @transform_1(%arg0: i32) -> (i32, i32) {
    %c0_i32 = arith.constant 0 : i32
    %c0_i32_0 = arith.constant 0 : i32
    %c0_i32_1 = arith.constant 0 : i32
    return %c0_i32, %c0_i32_0 : i32, i32
  }
  func.func @transform_2(%arg0: i32) -> (i32, i32) {
    %c0_i32 = arith.constant 0 : i32
    %c0_i32_0 = arith.constant 0 : i32
    %c0_i32_1 = arith.constant 0 : i32
    return %c0_i32, %c0_i32_0 : i32, i32
  }
  func.func @transform_3(%arg0: i32) -> (i32, i32) {
    %c0_i32 = arith.constant 0 : i32
    %c0_i32_0 = arith.constant 0 : i32
    %c0_i32_1 = arith.constant 0 : i32
    return %c0_i32, %c0_i32_0 : i32, i32
  }
  func.func @transform_4(%arg0: i32) -> (i32, i32) {
    %c0_i32 = arith.constant 0 : i32
    %c0_i32_0 = arith.constant 0 : i32
    %c0_i32_1 = arith.constant 0 : i32
    return %c0_i32, %c0_i32_0 : i32, i32
  }
  func.func @transform_5(%arg0: i32) -> (i32, i32) {
    %c0_i32 = arith.constant 0 : i32
    %c0_i32_0 = arith.constant 0 : i32
    return %arg0, %c0_i32 : i32, i32
  }
}

module attributes {stable_mosaic.version = 11 : i64} {
  func.func @kern(%arg0: i32, %arg1: memref<20x256xbf16, #tpu.memory_space<vmem>>, %arg2: memref<256x64xbf16, #tpu.memory_space<vmem>>, %arg3: memref<1x64xf32, #tpu.memory_space<vmem>>, %arg4: memref<20x64xf32, #tpu.memory_space<vmem>>) attributes {dimension_semantics = [#tpu.dimension_semantics<parallel>], iteration_bounds = array<i64: 1>, scalar_prefetch = 0 : i64, scratch_operands = 0 : i64, tpu.core_type = #tpu.core_type<tc>, window_params = [{transform_indices = @transform_0, window_bounds = array<i64: 20, 256>}, {pipeline_mode = #tpu.pipeline_mode<synchronous>, transform_indices = @transform_1, window_bounds = array<i64: 256, 64>}, {pipeline_mode = #tpu.pipeline_mode<synchronous>, transform_indices = @transform_2, window_bounds = array<i64: 1, 64>}, {transform_indices = @transform_3, window_bounds = array<i64: 20, 64>}]} {
    %c0 = arith.constant 0 : index
    %c0_0 = arith.constant 0 : index
    %0 = vector.load %arg1[%c0, %c0_0] : memref<20x256xbf16, #tpu.memory_space<vmem>>, vector<20x256xbf16>
    %c0_1 = arith.constant 0 : index
    %c0_2 = arith.constant 0 : index
    %1 = vector.load %arg2[%c0_1, %c0_2] : memref<256x64xbf16, #tpu.memory_space<vmem>>, vector<256x64xbf16>
    %cst = arith.constant dense<0.000000e+00> : vector<20x64xf32>
    %2 = tpu.matmul %0, %1, %cst {dimension_numbers = #tpu.dot_dimension_numbers<[1], [0], [0], [1], [0, 0, 1, 1], [], []>} : vector<20x256xbf16>, vector<256x64xbf16>, vector<20x64xf32> -> vector<20x64xf32>
    %c0_3 = arith.constant 0 : index
    %c0_4 = arith.constant 0 : index
    %3 = vector.load %arg3[%c0_3, %c0_4] : memref<1x64xf32, #tpu.memory_space<vmem>>, vector<1x64xf32>
    %4 = vector.broadcast %3 : vector<1x64xf32> to vector<20x64xf32>
    %5 = arith.addf %2, %4 : vector<20x64xf32>
    %6 = arith.mulf %5, %5 : vector<20x64xf32>
    %7 = arith.mulf %5, %6 : vector<20x64xf32>
    %cst_5 = arith.constant 4.471500e-02 : f32
    %8 = vector.broadcast %cst_5 : f32 to vector<20x64xf32>
    %9 = arith.mulf %8, %7 : vector<20x64xf32>
    %10 = arith.addf %5, %9 : vector<20x64xf32>
    %cst_6 = arith.constant 0.797884583 : f32
    %11 = vector.broadcast %cst_6 : f32 to vector<20x64xf32>
    %12 = arith.mulf %11, %10 : vector<20x64xf32>
    %13 = math.tanh %12 : vector<20x64xf32>
    %cst_7 = arith.constant 1.000000e+00 : f32
    %14 = vector.broadcast %cst_7 : f32 to vector<20x64xf32>
    %15 = arith.addf %14, %13 : vector<20x64xf32>
    %cst_8 = arith.constant 5.000000e-01 : f32
    %16 = vector.broadcast %cst_8 : f32 to vector<20x64xf32>
    %17 = arith.mulf %16, %15 : vector<20x64xf32>
    %18 = arith.mulf %5, %17 : vector<20x64xf32>
    %c0_9 = arith.constant 0 : index
    %c0_10 = arith.constant 0 : index
    %19 = vector.load %arg4[%c0_9, %c0_10] : memref<20x64xf32, #tpu.memory_space<vmem>>, vector<20x64xf32>
    tpu.vector_store %arg4[%c0_9, %c0_10], %18 {strides = array<i32>} : memref<20x64xf32, #tpu.memory_space<vmem>>, vector<20x64xf32>,
    return
  }
  func.func @transform_0(%arg0: i32) -> (i32, i32) {
    %c0_i32 = arith.constant 0 : i32
    %c0_i32_0 = arith.constant 0 : i32
    return %arg0, %c0_i32 : i32, i32
  }
  func.func @transform_1(%arg0: i32) -> (i32, i32) {
    %c0_i32 = arith.constant 0 : i32
    %c0_i32_0 = arith.constant 0 : i32
    %c0_i32_1 = arith.constant 0 : i32
    return %c0_i32, %c0_i32_0 : i32, i32
  }
  func.func @transform_2(%arg0: i32) -> (i32, i32) {
    %c0_i32 = arith.constant 0 : i32
    %c0_i32_0 = arith.constant 0 : i32
    %c0_i32_1 = arith.constant 0 : i32
    return %c0_i32, %c0_i32_0 : i32, i32
  }
  func.func @transform_3(%arg0: i32) -> (i32, i32) {
    %c0_i32 = arith.constant 0 : i32
    %c0_i32_0 = arith.constant 0 : i32
    return %arg0, %c0_i32 : i32, i32
  }
}

module attributes {stable_mosaic.version = 11 : i64} {
  func.func @kern(%arg0: i32, %arg1: memref<18x64xf32, #tpu.memory_space<vmem>>, %arg2: memref<1x64xf32, #tpu.memory_space<vmem>>, %arg3: memref<1x64xf32, #tpu.memory_space<vmem>>, %arg4: memref<18x64xf32, #tpu.memory_space<vmem>>, %arg5: memref<18x64xf32, #tpu.memory_space<vmem>>) attributes {dimension_semantics = [#tpu.dimension_semantics<parallel>], iteration_bounds = array<i64: 1>, scalar_prefetch = 0 : i64, scratch_operands = 0 : i64, tpu.core_type = #tpu.core_type<tc>, window_params = [{transform_indices = @transform_0, window_bounds = array<i64: 18, 64>}, {pipeline_mode = #tpu.pipeline_mode<synchronous>, transform_indices = @transform_1, window_bounds = array<i64: 1, 64>}, {pipeline_mode = #tpu.pipeline_mode<synchronous>, transform_indices = @transform_2, window_bounds = array<i64: 1, 64>}, {transform_indices = @transform_3, window_bounds = array<i64: 18, 64>}, {transform_indices = @transform_4, window_bounds = array<i64: 18, 64>}]} {
    %c0 = arith.constant 0 : index
    %c0_0 = arith.constant 0 : index
    %0 = vector.load %arg1[%c0, %c0_0] : memref<18x64xf32, #tpu.memory_space<vmem>>, vector<18x64xf32>
    %c0_1 = arith.constant 0 : index
    %c0_2 = arith.constant 0 : index
    %1 = vector.load %arg4[%c0_1, %c0_2] : memref<18x64xf32, #tpu.memory_space<vmem>>, vector<18x64xf32>
    %2 = arith.addf %0, %1 : vector<18x64xf32>
    %c0_3 = arith.constant 0 : index
    %c0_4 = arith.constant 0 : index
    %3 = vector.load %arg2[%c0_3, %c0_4] : memref<1x64xf32, #tpu.memory_space<vmem>>, vector<1x64xf32>
    %c0_5 = arith.constant 0 : index
    %c0_6 = arith.constant 0 : index
    %4 = vector.load %arg3[%c0_5, %c0_6] : memref<1x64xf32, #tpu.memory_space<vmem>>, vector<1x64xf32>
    %cst = arith.constant dense<0.000000e+00> : vector<18xf32>
    %5 = vector.multi_reduction <add>, %2, %cst [1] : vector<18x64xf32> to vector<18xf32>
    %6 = vector.shape_cast %5 : vector<18xf32> to vector<18x1xf32>
    %cst_7 = arith.constant 6.400000e+01 : f32
    %7 = vector.broadcast %cst_7 : f32 to vector<18x1xf32>
    %8 = arith.divf %6, %7 : vector<18x1xf32>
    %9 = vector.broadcast %8 : vector<18x1xf32> to vector<18x64xf32>
    %10 = arith.subf %2, %9 : vector<18x64xf32>
    %11 = arith.mulf %10, %10 : vector<18x64xf32>
    %cst_8 = arith.constant dense<0.000000e+00> : vector<18xf32>
    %12 = vector.multi_reduction <add>, %11, %cst_8 [1] : vector<18x64xf32> to vector<18xf32>
    %13 = vector.shape_cast %12 : vector<18xf32> to vector<18x1xf32>
    %cst_9 = arith.constant 6.400000e+01 : f32
    %14 = vector.broadcast %cst_9 : f32 to vector<18x1xf32>
    %15 = arith.divf %13, %14 : vector<18x1xf32>
    %16 = vector.broadcast %8 : vector<18x1xf32> to vector<18x64xf32>
    %17 = arith.subf %2, %16 : vector<18x64xf32>
    %cst_10 = arith.constant 9.99999974E-6 : f32
    %18 = vector.broadcast %cst_10 : f32 to vector<18x1xf32>
    %19 = arith.addf %15, %18 : vector<18x1xf32>
    %20 = math.rsqrt %19 : vector<18x1xf32>
    %21 = vector.broadcast %20 : vector<18x1xf32> to vector<18x64xf32>
    %22 = arith.mulf %17, %21 : vector<18x64xf32>
    %23 = vector.broadcast %3 : vector<1x64xf32> to vector<18x64xf32>
    %24 = arith.mulf %22, %23 : vector<18x64xf32>
    %25 = vector.broadcast %4 : vector<1x64xf32> to vector<18x64xf32>
    %26 = arith.addf %24, %25 : vector<18x64xf32>
    %c0_11 = arith.constant 0 : index
    %c0_12 = arith.constant 0 : index
    %27 = vector.load %arg5[%c0_11, %c0_12] : memref<18x64xf32, #tpu.memory_space<vmem>>, vector<18x64xf32>
    tpu.vector_store %arg5[%c0_11, %c0_12], %26 {strides = array<i32>} : memref<18x64xf32, #tpu.memory_space<vmem>>, vector<18x64xf32>,
    return
  }
  func.func @transform_0(%arg0: i32) -> (i32, i32) {
    %c0_i32 = arith.constant 0 : i32
    %c0_i32_0 = arith.constant 0 : i32
    return %arg0, %c0_i32 : i32, i32
  }
  func.func @transform_1(%arg0: i32) -> (i32, i32) {
    %c0_i32 = arith.constant 0 : i32
    %c0_i32_0 = arith.constant 0 : i32
    %c0_i32_1 = arith.constant 0 : i32
    return %c0_i32, %c0_i32_0 : i32, i32
  }
  func.func @transform_2(%arg0: i32) -> (i32, i32) {
    %c0_i32 = arith.constant 0 : i32
    %c0_i32_0 = arith.constant 0 : i32
    %c0_i32_1 = arith.constant 0 : i32
    return %c0_i32, %c0_i32_0 : i32, i32
  }
  func.func @transform_3(%arg0: i32) -> (i32, i32) {
    %c0_i32 = arith.constant 0 : i32
    %c0_i32_0 = arith.constant 0 : i32
    return %arg0, %c0_i32 : i32, i32
  }
  func.func @transform_4(%arg0: i32) -> (i32, i32) {
    %c0_i32 = arith.constant 0 : i32
    %c0_i32_0 = arith.constant 0 : i32
    return %arg0, %c0_i32 : i32, i32
  }
}

module attributes {stable_mosaic.version = 11 : i64} {
  func.func @kern(%arg0: i32, %arg1: memref<18x64xbf16, #tpu.memory_space<vmem>>, %arg2: memref<64x192xbf16, #tpu.memory_space<vmem>>, %arg3: memref<1x192xf32, #tpu.memory_space<vmem>>, %arg4: memref<18x192xf32, #tpu.memory_space<vmem>>) attributes {dimension_semantics = [#tpu.dimension_semantics<parallel>], iteration_bounds = array<i64: 1>, scalar_prefetch = 0 : i64, scratch_operands = 0 : i64, tpu.core_type = #tpu.core_type<tc>, window_params = [{transform_indices = @transform_0, window_bounds = array<i64: 18, 64>}, {pipeline_mode = #tpu.pipeline_mode<synchronous>, transform_indices = @transform_1, window_bounds = array<i64: 64, 192>}, {pipeline_mode = #tpu.pipeline_mode<synchronous>, transform_indices = @transform_2, window_bounds = array<i64: 1, 192>}, {transform_indices = @transform_3, window_bounds = array<i64: 18, 192>}]} {
    %c0 = arith.constant 0 : index
    %c0_0 = arith.constant 0 : index
    %0 = vector.load %arg1[%c0, %c0_0] : memref<18x64xbf16, #tpu.memory_space<vmem>>, vector<18x64xbf16>
    %c0_1 = arith.constant 0 : index
    %c0_2 = arith.constant 0 : index
    %1 = vector.load %arg2[%c0_1, %c0_2] : memref<64x192xbf16, #tpu.memory_space<vmem>>, vector<64x192xbf16>
    %cst = arith.constant dense<0.000000e+00> : vector<18x192xf32>
    %2 = tpu.matmul %0, %1, %cst {dimension_numbers = #tpu.dot_dimension_numbers<[1], [0], [0], [1], [0, 0, 1, 1], [], []>} : vector<18x64xbf16>, vector<64x192xbf16>, vector<18x192xf32> -> vector<18x192xf32>
    %c0_3 = arith.constant 0 : index
    %c0_4 = arith.constant 0 : index
    %3 = vector.load %arg3[%c0_3, %c0_4] : memref<1x192xf32, #tpu.memory_space<vmem>>, vector<1x192xf32>
    %4 = vector.broadcast %3 : vector<1x192xf32> to vector<18x192xf32>
    %5 = arith.addf %2, %4 : vector<18x192xf32>
    %c0_5 = arith.constant 0 : index
    %c0_6 = arith.constant 0 : index
    %6 = vector.load %arg4[%c0_5, %c0_6] : memref<18x192xf32, #tpu.memory_space<vmem>>, vector<18x192xf32>
    tpu.vector_store %arg4[%c0_5, %c0_6], %5 {strides = array<i32>} : memref<18x192xf32, #tpu.memory_space<vmem>>, vector<18x192xf32>,
    return
  }
  func.func @transform_0(%arg0: i32) -> (i32, i32) {
    %c0_i32 = arith.constant 0 : i32
    %c0_i32_0 = arith.constant 0 : i32
    return %arg0, %c0_i32 : i32, i32
  }
  func.func @transform_1(%arg0: i32) -> (i32, i32) {
    %c0_i32 = arith.constant 0 : i32
    %c0_i32_0 = arith.constant 0 : i32
    %c0_i32_1 = arith.constant 0 : i32
    return %c0_i32, %c0_i32_0 : i32, i32
  }
  func.func @transform_2(%arg0: i32) -> (i32, i32) {
    %c0_i32 = arith.constant 0 : i32
    %c0_i32_0 = arith.constant 0 : i32
    %c0_i32_1 = arith.constant 0 : i32
    return %c0_i32, %c0_i32_0 : i32, i32
  }
  func.func @transform_3(%arg0: i32) -> (i32, i32) {
    %c0_i32 = arith.constant 0 : i32
    %c0_i32_0 = arith.constant 0 : i32
    return %arg0, %c0_i32 : i32, i32
  }
}

module attributes {stable_mosaic.version = 11 : i64} {
  func.func @kern(%arg0: i32, %arg1: memref<8x9x16xbf16, #tpu.memory_space<vmem>>, %arg2: memref<8x9x16xbf16, #tpu.memory_space<vmem>>, %arg3: memref<8x9x16xbf16, #tpu.memory_space<vmem>>, %arg4: memref<8x9x16xf32, #tpu.memory_space<vmem>>) attributes {dimension_semantics = [#tpu.dimension_semantics<parallel>], iteration_bounds = array<i64: 1>, scalar_prefetch = 0 : i64, scratch_operands = 0 : i64, tpu.core_type = #tpu.core_type<tc>, window_params = [{transform_indices = @transform_0, window_bounds = array<i64: 8, 9, 16>}, {transform_indices = @transform_1, window_bounds = array<i64: 8, 9, 16>}, {transform_indices = @transform_2, window_bounds = array<i64: 8, 9, 16>}, {transform_indices = @transform_3, window_bounds = array<i64: 8, 9, 16>}]} {
    %c0 = arith.constant 0 : index
    %c0_0 = arith.constant 0 : index
    %c0_1 = arith.constant 0 : index
    %0 = vector.load %arg1[%c0, %c0_0, %c0_1] : memref<8x9x16xbf16, #tpu.memory_space<vmem>>, vector<8x9x16xbf16>
    %c0_2 = arith.constant 0 : index
    %c0_3 = arith.constant 0 : index
    %c0_4 = arith.constant 0 : index
    %1 = vector.load %arg2[%c0_2, %c0_3, %c0_4] : memref<8x9x16xbf16, #tpu.memory_space<vmem>>, vector<8x9x16xbf16>
    "tpu.trace_start"() <{level = 10 : i32, message = "bqd,bkd->bqk"}> : () -> ()
    %cst = arith.constant dense<0.000000e+00> : vector<8x9x9xf32>
    %2 = tpu.matmul %0, %1, %cst {dimension_numbers = #tpu.dot_dimension_numbers<[2], [2], [1], [1], [0, 0, 0, 1, 1, 1], [0], [0]>} : vector<8x9x16xbf16>, vector<8x9x16xbf16>, vector<8x9x9xf32> -> vector<8x9x9xf32>
    "tpu.trace_stop"() : () -> ()
    %cst_5 = arith.constant 2.500000e-01 : f32
    %3 = vector.broadcast %cst_5 : f32 to vector<8x9x9xf32>
    %4 = arith.mulf %2, %3 : vector<8x9x9xf32>
    %cst_6 = arith.constant dense<0xFF800000> : vector<8x9xf32>
    %5 = vector.multi_reduction <maximumf>, %4, %cst_6 [2] : vector<8x9x9xf32> to vector<8x9xf32>
    %6 = vector.shape_cast %5 : vector<8x9xf32> to vector<8x9x1xf32>
    %7 = vector.broadcast %6 : vector<8x9x1xf32> to vector<8x9x9xf32>
    %8 = arith.subf %4, %7 : vector<8x9x9xf32>
    %9 = math.exp %8 : vector<8x9x9xf32>
    %cst_7 = arith.constant dense<0.000000e+00> : vector<8x9xf32>
    %10 = vector.multi_reduction <add>, %9, %cst_7 [2] : vector<8x9x9xf32> to vector<8x9xf32>
    %11 = vector.shape_cast %10 : vector<8x9xf32> to vector<8x9x1xf32>
    %12 = tpu.reciprocal %11 {approx = true} : vector<8x9x1xf32> -> vector<8x9x1xf32>
    %13 = vector.broadcast %12 : vector<8x9x1xf32> to vector<8x9x9xf32>
    %14 = arith.mulf %9, %13 : vector<8x9x9xf32>
    %15 = arith.truncf %14 : vector<8x9x9xf32> to vector<8x9x9xbf16>
    %c0_8 = arith.constant 0 : index
    %c0_9 = arith.constant 0 : index
    %c0_10 = arith.constant 0 : index
    %16 = vector.load %arg3[%c0_8, %c0_9, %c0_10] : memref<8x9x16xbf16, #tpu.memory_space<vmem>>, vector<8x9x16xbf16>
    "tpu.trace_start"() <{level = 10 : i32, message = "bqk,bkd->bqd"}> : () -> ()
    %cst_11 = arith.constant dense<0.000000e+00> : vector<8x9x16xf32>
    %17 = tpu.matmul %15, %16, %cst_11 {dimension_numbers = #tpu.dot_dimension_numbers<[2], [1], [1], [2], [0, 0, 0, 1, 1, 2], [0], [0]>} : vector<8x9x9xbf16>, vector<8x9x16xbf16>, vector<8x9x16xf32> -> vector<8x9x16xf32>
    "tpu.trace_stop"() : () -> ()
    %c0_12 = arith.constant 0 : index
    %c0_13 = arith.constant 0 : index
    %c0_14 = arith.constant 0 : index
    %18 = vector.load %arg4[%c0_12, %c0_13, %c0_14] : memref<8x9x16xf32, #tpu.memory_space<vmem>>, vector<8x9x16xf32>
    tpu.vector_store %arg4[%c0_12, %c0_13, %c0_14], %17 {strides = array<i32>} : memref<8x9x16xf32, #tpu.memory_space<vmem>>, vector<8x9x16xf32>,
    return
  }
  func.func @transform_0(%arg0: i32) -> (i32, i32, i32) {
    %c0_i32 = arith.constant 0 : i32
    %c0_i32_0 = arith.constant 0 : i32
    %c0_i32_1 = arith.constant 0 : i32
    return %arg0, %c0_i32, %c0_i32_0 : i32, i32, i32
  }
  func.func @transform_1(%arg0: i32) -> (i32, i32, i32) {
    %c0_i32 = arith.constant 0 : i32
    %c0_i32_0 = arith.constant 0 : i32
    %c0_i32_1 = arith.constant 0 : i32
    return %arg0, %c0_i32, %c0_i32_0 : i32, i32, i32
  }
  func.func @transform_2(%arg0: i32) -> (i32, i32, i32) {
    %c0_i32 = arith.constant 0 : i32
    %c0_i32_0 = arith.constant 0 : i32
    %c0_i32_1 = arith.constant 0 : i32
    return %arg0, %c0_i32, %c0_i32_0 : i32, i32, i32
  }
  func.func @transform_3(%arg0: i32) -> (i32, i32, i32) {
    %c0_i32 = arith.constant 0 : i32
    %c0_i32_0 = arith.constant 0 : i32
    %c0_i32_1 = arith.constant 0 : i32
    return %arg0, %c0_i32, %c0_i32_0 : i32, i32, i32
  }
}

module attributes {stable_mosaic.version = 11 : i64} {
  func.func @kern(%arg0: i32, %arg1: memref<18x64xbf16, #tpu.memory_space<vmem>>, %arg2: memref<64x128xbf16, #tpu.memory_space<vmem>>, %arg3: memref<1x128xf32, #tpu.memory_space<vmem>>, %arg4: memref<18x128xf32, #tpu.memory_space<vmem>>) attributes {dimension_semantics = [#tpu.dimension_semantics<parallel>], iteration_bounds = array<i64: 1>, scalar_prefetch = 0 : i64, scratch_operands = 0 : i64, tpu.core_type = #tpu.core_type<tc>, window_params = [{transform_indices = @transform_0, window_bounds = array<i64: 18, 64>}, {pipeline_mode = #tpu.pipeline_mode<synchronous>, transform_indices = @transform_1, window_bounds = array<i64: 64, 128>}, {pipeline_mode = #tpu.pipeline_mode<synchronous>, transform_indices = @transform_2, window_bounds = array<i64: 1, 128>}, {transform_indices = @transform_3, window_bounds = array<i64: 18, 128>}]} {
    %c0 = arith.constant 0 : index
    %c0_0 = arith.constant 0 : index
    %0 = vector.load %arg1[%c0, %c0_0] : memref<18x64xbf16, #tpu.memory_space<vmem>>, vector<18x64xbf16>
    %c0_1 = arith.constant 0 : index
    %c0_2 = arith.constant 0 : index
    %1 = vector.load %arg2[%c0_1, %c0_2] : memref<64x128xbf16, #tpu.memory_space<vmem>>, vector<64x128xbf16>
    %cst = arith.constant dense<0.000000e+00> : vector<18x128xf32>
    %2 = tpu.matmul %0, %1, %cst {dimension_numbers = #tpu.dot_dimension_numbers<[1], [0], [0], [1], [0, 0, 1, 1], [], []>} : vector<18x64xbf16>, vector<64x128xbf16>, vector<18x128xf32> -> vector<18x128xf32>
    %c0_3 = arith.constant 0 : index
    %c0_4 = arith.constant 0 : index
    %3 = vector.load %arg3[%c0_3, %c0_4] : memref<1x128xf32, #tpu.memory_space<vmem>>, vector<1x128xf32>
    %4 = vector.broadcast %3 : vector<1x128xf32> to vector<18x128xf32>
    %5 = arith.addf %2, %4 : vector<18x128xf32>
    %6 = arith.mulf %5, %5 : vector<18x128xf32>
    %7 = arith.mulf %5, %6 : vector<18x128xf32>
    %cst_5 = arith.constant 4.471500e-02 : f32
    %8 = vector.broadcast %cst_5 : f32 to vector<18x128xf32>
    %9 = arith.mulf %8, %7 : vector<18x128xf32>
    %10 = arith.addf %5, %9 : vector<18x128xf32>
    %cst_6 = arith.constant 0.797884583 : f32
    %11 = vector.broadcast %cst_6 : f32 to vector<18x128xf32>
    %12 = arith.mulf %11, %10 : vector<18x128xf32>
    %13 = math.tanh %12 : vector<18x128xf32>
    %cst_7 = arith.constant 1.000000e+00 : f32
    %14 = vector.broadcast %cst_7 : f32 to vector<18x128xf32>
    %15 = arith.addf %14, %13 : vector<18x128xf32>
    %cst_8 = arith.constant 5.000000e-01 : f32
    %16 = vector.broadcast %cst_8 : f32 to vector<18x128xf32>
    %17 = arith.mulf %16, %15 : vector<18x128xf32>
    %18 = arith.mulf %5, %17 : vector<18x128xf32>
    %c0_9 = arith.constant 0 : index
    %c0_10 = arith.constant 0 : index
    %19 = vector.load %arg4[%c0_9, %c0_10] : memref<18x128xf32, #tpu.memory_space<vmem>>, vector<18x128xf32>
    tpu.vector_store %arg4[%c0_9, %c0_10], %18 {strides = array<i32>} : memref<18x128xf32, #tpu.memory_space<vmem>>, vector<18x128xf32>,
    return
  }
  func.func @transform_0(%arg0: i32) -> (i32, i32) {
    %c0_i32 = arith.constant 0 : i32
    %c0_i32_0 = arith.constant 0 : i32
    return %arg0, %c0_i32 : i32, i32
  }
  func.func @transform_1(%arg0: i32) -> (i32, i32) {
    %c0_i32 = arith.constant 0 : i32
    %c0_i32_0 = arith.constant 0 : i32
    %c0_i32_1 = arith.constant 0 : i32
    return %c0_i32, %c0_i32_0 : i32, i32
  }
  func.func @transform_2(%arg0: i32) -> (i32, i32) {
    %c0_i32 = arith.constant 0 : i32
    %c0_i32_0 = arith.constant 0 : i32
    %c0_i32_1 = arith.constant 0 : i32
    return %c0_i32, %c0_i32_0 : i32, i32
  }
  func.func @transform_3(%arg0: i32) -> (i32, i32) {
    %c0_i32 = arith.constant 0 : i32
    %c0_i32_0 = arith.constant 0 : i32
    return %arg0, %c0_i32 : i32, i32
  }
}

module attributes {stable_mosaic.version = 11 : i64} {
  func.func @kern(%arg0: i32, %arg1: memref<18x64xbf16, #tpu.memory_space<vmem>>, %arg2: memref<64x64xbf16, #tpu.memory_space<vmem>>, %arg3: memref<1x64xf32, #tpu.memory_space<vmem>>, %arg4: memref<18x64xf32, #tpu.memory_space<vmem>>, %arg5: memref<1x64xf32, #tpu.memory_space<vmem>>, %arg6: memref<1x64xf32, #tpu.memory_space<vmem>>, %arg7: memref<18x64xf32, #tpu.memory_space<vmem>>) attributes {dimension_semantics = [#tpu.dimension_semantics<parallel>], iteration_bounds = array<i64: 1>, scalar_prefetch = 0 : i64, scratch_operands = 0 : i64, tpu.core_type = #tpu.core_type<tc>, window_params = [{transform_indices = @transform_0, window_bounds = array<i64: 18, 64>}, {pipeline_mode = #tpu.pipeline_mode<synchronous>, transform_indices = @transform_1, window_bounds = array<i64: 64, 64>}, {pipeline_mode = #tpu.pipeline_mode<synchronous>, transform_indices = @transform_2, window_bounds = array<i64: 1, 64>}, {transform_indices = @transform_3, window_bounds = array<i64: 18, 64>}, {pipeline_mode = #tpu.pipeline_mode<synchronous>, transform_indices = @transform_4, window_bounds = array<i64: 1, 64>}, {pipeline_mode = #tpu.pipeline_mode<synchronous>, transform_indices = @transform_5, window_bounds = array<i64: 1, 64>}, {transform_indices = @transform_6, window_bounds = array<i64: 18, 64>}]} {
    %c0 = arith.constant 0 : index
    %c0_0 = arith.constant 0 : index
    %0 = vector.load %arg1[%c0, %c0_0] : memref<18x64xbf16, #tpu.memory_space<vmem>>, vector<18x64xbf16>
    %c0_1 = arith.constant 0 : index
    %c0_2 = arith.constant 0 : index
    %1 = vector.load %arg2[%c0_1, %c0_2] : memref<64x64xbf16, #tpu.memory_space<vmem>>, vector<64x64xbf16>
    %cst = arith.constant dense<0.000000e+00> : vector<18x64xf32>
    %2 = tpu.matmul %0, %1, %cst {dimension_numbers = #tpu.dot_dimension_numbers<[1], [0], [0], [1], [0, 0, 1, 1], [], []>} : vector<18x64xbf16>, vector<64x64xbf16>, vector<18x64xf32> -> vector<18x64xf32>
    %c0_3 = arith.constant 0 : index
    %c0_4 = arith.constant 0 : index
    %3 = vector.load %arg3[%c0_3, %c0_4] : memref<1x64xf32, #tpu.memory_space<vmem>>, vector<1x64xf32>
    %4 = vector.broadcast %3 : vector<1x64xf32> to vector<18x64xf32>
    %5 = arith.addf %2, %4 : vector<18x64xf32>
    %c0_5 = arith.constant 0 : index
    %c0_6 = arith.constant 0 : index
    %6 = vector.load %arg4[%c0_5, %c0_6] : memref<18x64xf32, #tpu.memory_space<vmem>>, vector<18x64xf32>
    %7 = arith.addf %5, %6 : vector<18x64xf32>
    %c0_7 = arith.constant 0 : index
    %c0_8 = arith.constant 0 : index
    %8 = vector.load %arg5[%c0_7, %c0_8] : memref<1x64xf32, #tpu.memory_space<vmem>>, vector<1x64xf32>
    %c0_9 = arith.constant 0 : index
    %c0_10 = arith.constant 0 : index
    %9 = vector.load %arg6[%c0_9, %c0_10] : memref<1x64xf32, #tpu.memory_space<vmem>>, vector<1x64xf32>
    %cst_11 = arith.constant dense<0.000000e+00> : vector<18xf32>
    %10 = vector.multi_reduction <add>, %7, %cst_11 [1] : vector<18x64xf32> to vector<18xf32>
    %11 = vector.shape_cast %10 : vector<18xf32> to vector<18x1xf32>
    %cst_12 = arith.constant 6.400000e+01 : f32
    %12 = vector.broadcast %cst_12 : f32 to vector<18x1xf32>
    %13 = arith.divf %11, %12 : vector<18x1xf32>
    %14 = vector.broadcast %13 : vector<18x1xf32> to vector<18x64xf32>
    %15 = arith.subf %7, %14 : vector<18x64xf32>
    %16 = arith.mulf %15, %15 : vector<18x64xf32>
    %cst_13 = arith.constant dense<0.000000e+00> : vector<18xf32>
    %17 = vector.multi_reduction <add>, %16, %cst_13 [1] : vector<18x64xf32> to vector<18xf32>
    %18 = vector.shape_cast %17 : vector<18xf32> to vector<18x1xf32>
    %cst_14 = arith.constant 6.400000e+01 : f32
    %19 = vector.broadcast %cst_14 : f32 to vector<18x1xf32>
    %20 = arith.divf %18, %19 : vector<18x1xf32>
    %21 = vector.broadcast %13 : vector<18x1xf32> to vector<18x64xf32>
    %22 = arith.subf %7, %21 : vector<18x64xf32>
    %cst_15 = arith.constant 9.99999974E-6 : f32
    %23 = vector.broadcast %cst_15 : f32 to vector<18x1xf32>
    %24 = arith.addf %20, %23 : vector<18x1xf32>
    %25 = math.rsqrt %24 : vector<18x1xf32>
    %26 = vector.broadcast %25 : vector<18x1xf32> to vector<18x64xf32>
    %27 = arith.mulf %22, %26 : vector<18x64xf32>
    %28 = vector.broadcast %8 : vector<1x64xf32> to vector<18x64xf32>
    %29 = arith.mulf %27, %28 : vector<18x64xf32>
    %30 = vector.broadcast %9 : vector<1x64xf32> to vector<18x64xf32>
    %31 = arith.addf %29, %30 : vector<18x64xf32>
    %c0_16 = arith.constant 0 : index
    %c0_17 = arith.constant 0 : index
    %32 = vector.load %arg7[%c0_16, %c0_17] : memref<18x64xf32, #tpu.memory_space<vmem>>, vector<18x64xf32>
    tpu.vector_store %arg7[%c0_16, %c0_17], %31 {strides = array<i32>} : memref<18x64xf32, #tpu.memory_space<vmem>>, vector<18x64xf32>,
    return
  }
  func.func @transform_0(%arg0: i32) -> (i32, i32) {
    %c0_i32 = arith.constant 0 : i32
    %c0_i32_0 = arith.constant 0 : i32
    return %arg0, %c0_i32 : i32, i32
  }
  func.func @transform_1(%arg0: i32) -> (i32, i32) {
    %c0_i32 = arith.constant 0 : i32
    %c0_i32_0 = arith.constant 0 : i32
    %c0_i32_1 = arith.constant 0 : i32
    return %c0_i32, %c0_i32_0 : i32, i32
  }
  func.func @transform_2(%arg0: i32) -> (i32, i32) {
    %c0_i32 = arith.constant 0 : i32
    %c0_i32_0 = arith.constant 0 : i32
    %c0_i32_1 = arith.constant 0 : i32
    return %c0_i32, %c0_i32_0 : i32, i32
  }
  func.func @transform_3(%arg0: i32) -> (i32, i32) {
    %c0_i32 = arith.constant 0 : i32
    %c0_i32_0 = arith.constant 0 : i32
    return %arg0, %c0_i32 : i32, i32
  }
  func.func @transform_4(%arg0: i32) -> (i32, i32) {
    %c0_i32 = arith.constant 0 : i32
    %c0_i32_0 = arith.constant 0 : i32
    %c0_i32_1 = arith.constant 0 : i32
    return %c0_i32, %c0_i32_0 : i32, i32
  }
  func.func @transform_5(%arg0: i32) -> (i32, i32) {
    %c0_i32 = arith.constant 0 : i32
    %c0_i32_0 = arith.constant 0 : i32
    %c0_i32_1 = arith.constant 0 : i32
    return %c0_i32, %c0_i32_0 : i32, i32
  }
  func.func @transform_6(%arg0: i32) -> (i32, i32) {
    %c0_i32 = arith.constant 0 : i32
    %c0_i32_0 = arith.constant 0 : i32
    return %arg0, %c0_i32 : i32, i32
  }
}

module attributes {stable_mosaic.version = 11 : i64} {
  func.func @kern(%arg0: i32, %arg1: memref<18x128xbf16, #tpu.memory_space<vmem>>, %arg2: memref<128x64xbf16, #tpu.memory_space<vmem>>, %arg3: memref<1x64xf32, #tpu.memory_space<vmem>>, %arg4: memref<18x64xf32, #tpu.memory_space<vmem>>, %arg5: memref<1x64xf32, #tpu.memory_space<vmem>>, %arg6: memref<1x64xf32, #tpu.memory_space<vmem>>, %arg7: memref<18x64xf32, #tpu.memory_space<vmem>>) attributes {dimension_semantics = [#tpu.dimension_semantics<parallel>], iteration_bounds = array<i64: 1>, scalar_prefetch = 0 : i64, scratch_operands = 0 : i64, tpu.core_type = #tpu.core_type<tc>, window_params = [{transform_indices = @transform_0, window_bounds = array<i64: 18, 128>}, {pipeline_mode = #tpu.pipeline_mode<synchronous>, transform_indices = @transform_1, window_bounds = array<i64: 128, 64>}, {pipeline_mode = #tpu.pipeline_mode<synchronous>, transform_indices = @transform_2, window_bounds = array<i64: 1, 64>}, {transform_indices = @transform_3, window_bounds = array<i64: 18, 64>}, {pipeline_mode = #tpu.pipeline_mode<synchronous>, transform_indices = @transform_4, window_bounds = array<i64: 1, 64>}, {pipeline_mode = #tpu.pipeline_mode<synchronous>, transform_indices = @transform_5, window_bounds = array<i64: 1, 64>}, {transform_indices = @transform_6, window_bounds = array<i64: 18, 64>}]} {
    %c0 = arith.constant 0 : index
    %c0_0 = arith.constant 0 : index
    %0 = vector.load %arg1[%c0, %c0_0] : memref<18x128xbf16, #tpu.memory_space<vmem>>, vector<18x128xbf16>
    %c0_1 = arith.constant 0 : index
    %c0_2 = arith.constant 0 : index
    %1 = vector.load %arg2[%c0_1, %c0_2] : memref<128x64xbf16, #tpu.memory_space<vmem>>, vector<128x64xbf16>
    %cst = arith.constant dense<0.000000e+00> : vector<18x64xf32>
    %2 = tpu.matmul %0, %1, %cst {dimension_numbers = #tpu.dot_dimension_numbers<[1], [0], [0], [1], [0, 0, 1, 1], [], []>} : vector<18x128xbf16>, vector<128x64xbf16>, vector<18x64xf32> -> vector<18x64xf32>
    %c0_3 = arith.constant 0 : index
    %c0_4 = arith.constant 0 : index
    %3 = vector.load %arg3[%c0_3, %c0_4] : memref<1x64xf32, #tpu.memory_space<vmem>>, vector<1x64xf32>
    %4 = vector.broadcast %3 : vector<1x64xf32> to vector<18x64xf32>
    %5 = arith.addf %2, %4 : vector<18x64xf32>
    %c0_5 = arith.constant 0 : index
    %c0_6 = arith.constant 0 : index
    %6 = vector.load %arg4[%c0_5, %c0_6] : memref<18x64xf32, #tpu.memory_space<vmem>>, vector<18x64xf32>
    %7 = arith.addf %5, %6 : vector<18x64xf32>
    %c0_7 = arith.constant 0 : index
    %c0_8 = arith.constant 0 : index
    %8 = vector.load %arg5[%c0_7, %c0_8] : memref<1x64xf32, #tpu.memory_space<vmem>>, vector<1x64xf32>
    %c0_9 = arith.constant 0 : index
    %c0_10 = arith.constant 0 : index
    %9 = vector.load %arg6[%c0_9, %c0_10] : memref<1x64xf32, #tpu.memory_space<vmem>>, vector<1x64xf32>
    %cst_11 = arith.constant dense<0.000000e+00> : vector<18xf32>
    %10 = vector.multi_reduction <add>, %7, %cst_11 [1] : vector<18x64xf32> to vector<18xf32>
    %11 = vector.shape_cast %10 : vector<18xf32> to vector<18x1xf32>
    %cst_12 = arith.constant 6.400000e+01 : f32
    %12 = vector.broadcast %cst_12 : f32 to vector<18x1xf32>
    %13 = arith.divf %11, %12 : vector<18x1xf32>
    %14 = vector.broadcast %13 : vector<18x1xf32> to vector<18x64xf32>
    %15 = arith.subf %7, %14 : vector<18x64xf32>
    %16 = arith.mulf %15, %15 : vector<18x64xf32>
    %cst_13 = arith.constant dense<0.000000e+00> : vector<18xf32>
    %17 = vector.multi_reduction <add>, %16, %cst_13 [1] : vector<18x64xf32> to vector<18xf32>
    %18 = vector.shape_cast %17 : vector<18xf32> to vector<18x1xf32>
    %cst_14 = arith.constant 6.400000e+01 : f32
    %19 = vector.broadcast %cst_14 : f32 to vector<18x1xf32>
    %20 = arith.divf %18, %19 : vector<18x1xf32>
    %21 = vector.broadcast %13 : vector<18x1xf32> to vector<18x64xf32>
    %22 = arith.subf %7, %21 : vector<18x64xf32>
    %cst_15 = arith.constant 9.99999974E-6 : f32
    %23 = vector.broadcast %cst_15 : f32 to vector<18x1xf32>
    %24 = arith.addf %20, %23 : vector<18x1xf32>
    %25 = math.rsqrt %24 : vector<18x1xf32>
    %26 = vector.broadcast %25 : vector<18x1xf32> to vector<18x64xf32>
    %27 = arith.mulf %22, %26 : vector<18x64xf32>
    %28 = vector.broadcast %8 : vector<1x64xf32> to vector<18x64xf32>
    %29 = arith.mulf %27, %28 : vector<18x64xf32>
    %30 = vector.broadcast %9 : vector<1x64xf32> to vector<18x64xf32>
    %31 = arith.addf %29, %30 : vector<18x64xf32>
    %c0_16 = arith.constant 0 : index
    %c0_17 = arith.constant 0 : index
    %32 = vector.load %arg7[%c0_16, %c0_17] : memref<18x64xf32, #tpu.memory_space<vmem>>, vector<18x64xf32>
    tpu.vector_store %arg7[%c0_16, %c0_17], %31 {strides = array<i32>} : memref<18x64xf32, #tpu.memory_space<vmem>>, vector<18x64xf32>,
    return
  }
  func.func @transform_0(%arg0: i32) -> (i32, i32) {
    %c0_i32 = arith.constant 0 : i32
    %c0_i32_0 = arith.constant 0 : i32
    return %arg0, %c0_i32 : i32, i32
  }
  func.func @transform_1(%arg0: i32) -> (i32, i32) {
    %c0_i32 = arith.constant 0 : i32
    %c0_i32_0 = arith.constant 0 : i32
    %c0_i32_1 = arith.constant 0 : i32
    return %c0_i32, %c0_i32_0 : i32, i32
  }
  func.func @transform_2(%arg0: i32) -> (i32, i32) {
    %c0_i32 = arith.constant 0 : i32
    %c0_i32_0 = arith.constant 0 : i32
    %c0_i32_1 = arith.constant 0 : i32
    return %c0_i32, %c0_i32_0 : i32, i32
  }
  func.func @transform_3(%arg0: i32) -> (i32, i32) {
    %c0_i32 = arith.constant 0 : i32
    %c0_i32_0 = arith.constant 0 : i32
    return %arg0, %c0_i32 : i32, i32
  }
  func.func @transform_4(%arg0: i32) -> (i32, i32) {
    %c0_i32 = arith.constant 0 : i32
    %c0_i32_0 = arith.constant 0 : i32
    %c0_i32_1 = arith.constant 0 : i32
    return %c0_i32, %c0_i32_0 : i32, i32
  }
  func.func @transform_5(%arg0: i32) -> (i32, i32) {
    %c0_i32 = arith.constant 0 : i32
    %c0_i32_0 = arith.constant 0 : i32
    %c0_i32_1 = arith.constant 0 : i32
    return %c0_i32, %c0_i32_0 : i32, i32
  }
  func.func @transform_6(%arg0: i32) -> (i32, i32) {
    %c0_i32 = arith.constant 0 : i32
    %c0_i32_0 = arith.constant 0 : i32
    return %arg0, %c0_i32 : i32, i32
  }
}

module attributes {stable_mosaic.version = 11 : i64} {
  func.func @kern(%arg0: i32, %arg1: memref<18x64xbf16, #tpu.memory_space<vmem>>, %arg2: memref<64x32xbf16, #tpu.memory_space<vmem>>, %arg3: memref<1x32xf32, #tpu.memory_space<vmem>>, %arg4: memref<18x32xf32, #tpu.memory_space<vmem>>) attributes {dimension_semantics = [#tpu.dimension_semantics<parallel>], iteration_bounds = array<i64: 1>, scalar_prefetch = 0 : i64, scratch_operands = 0 : i64, tpu.core_type = #tpu.core_type<tc>, window_params = [{transform_indices = @transform_0, window_bounds = array<i64: 18, 64>}, {pipeline_mode = #tpu.pipeline_mode<synchronous>, transform_indices = @transform_1, window_bounds = array<i64: 64, 32>}, {pipeline_mode = #tpu.pipeline_mode<synchronous>, transform_indices = @transform_2, window_bounds = array<i64: 1, 32>}, {transform_indices = @transform_3, window_bounds = array<i64: 18, 32>}]} {
    %c0 = arith.constant 0 : index
    %c0_0 = arith.constant 0 : index
    %0 = vector.load %arg1[%c0, %c0_0] : memref<18x64xbf16, #tpu.memory_space<vmem>>, vector<18x64xbf16>
    %c0_1 = arith.constant 0 : index
    %c0_2 = arith.constant 0 : index
    %1 = vector.load %arg2[%c0_1, %c0_2] : memref<64x32xbf16, #tpu.memory_space<vmem>>, vector<64x32xbf16>
    %cst = arith.constant dense<0.000000e+00> : vector<18x32xf32>
    %2 = tpu.matmul %0, %1, %cst {dimension_numbers = #tpu.dot_dimension_numbers<[1], [0], [0], [1], [0, 0, 1, 1], [], []>} : vector<18x64xbf16>, vector<64x32xbf16>, vector<18x32xf32> -> vector<18x32xf32>
    %c0_3 = arith.constant 0 : index
    %c0_4 = arith.constant 0 : index
    %3 = vector.load %arg3[%c0_3, %c0_4] : memref<1x32xf32, #tpu.memory_space<vmem>>, vector<1x32xf32>
    %4 = vector.broadcast %3 : vector<1x32xf32> to vector<18x32xf32>
    %5 = arith.addf %2, %4 : vector<18x32xf32>
    %c0_5 = arith.constant 0 : index
    %c0_6 = arith.constant 0 : index
    %6 = vector.load %arg4[%c0_5, %c0_6] : memref<18x32xf32, #tpu.memory_space<vmem>>, vector<18x32xf32>
    tpu.vector_store %arg4[%c0_5, %c0_6], %5 {strides = array<i32>} : memref<18x32xf32, #tpu.memory_space<vmem>>, vector<18x32xf32>,
    return
  }
  func.func @transform_0(%arg0: i32) -> (i32, i32) {
    %c0_i32 = arith.constant 0 : i32
    %c0_i32_0 = arith.constant 0 : i32
    return %arg0, %c0_i32 : i32, i32
  }
  func.func @transform_1(%arg0: i32) -> (i32, i32) {
    %c0_i32 = arith.constant 0 : i32
    %c0_i32_0 = arith.constant 0 : i32
    %c0_i32_1 = arith.constant 0 : i32
    return %c0_i32, %c0_i32_0 : i32, i32
  }
  func.func @transform_2(%arg0: i32) -> (i32, i32) {
    %c0_i32 = arith.constant 0 : i32
    %c0_i32_0 = arith.constant 0 : i32
    %c0_i32_1 = arith.constant 0 : i32
    return %c0_i32, %c0_i32_0 : i32, i32
  }
  func.func @transform_3(%arg0: i32) -> (i32, i32) {
    %c0_i32 = arith.constant 0 : i32
    %c0_i32_0 = arith.constant 0 : i32
    return %arg0, %c0_i32 : i32, i32
  }
}

</mosaic_0001>

<bundles_post_ra>
// kernel: tile.13
= control target key start
LH: loop header
LB: loop body
LE: loop exit
PB: predicated region body
PF: predicated region fallthrough
CT: control target
= control target key end

     0   :  { %s22_s0 = inlined_call_operand.vmem [shape: f32[32], index: 0, kind: input, shape index: {}]   ;;  %s23_s1 = inlined_call_operand.vmem [shape: f32[2,32], index: 1, kind: output, shape index: {}]  }
   0x1   :  { %v4_v0 = vld [vmem:[%s22_s0] ss:$0 sm:$0xff] }
   0x2   :  { %5 = vst [vmem:[%s23_s1] sm:$0x3] %v4_v0 }

// kernel: tile.0
= control target key start
LH: loop header
LB: loop body
LE: loop exit
PB: predicated region body
PF: predicated region fallthrough
CT: control target
= control target key end

     0   :  { %s354_s8 = smov 125   ;;  %s355_s9 = smov 123   ;;  %vm7_vm0 = vcmask 7168   ;;  %s653_s0 = inlined_call_operand.vmem [shape: f32[2,32], index: 0, kind: input, shape index: {}]   ;;  %s654_s1 = inlined_call_operand.vmem [shape: f32[64,1], index: 1, kind: output, shape index: {}]  }
   0x1   :  { %v4_v0 = vld [vmem:[%s653_s0] sm:$0x3]  ;;  %s353_s0 = smov 127   ;;  %s356_s10 = smov 126  }
   0x2   :  { %5 = vst [vmem:[#allocation0] sm:$0x3] %v4_v0  ;;  %s357_s11 = smov 124   ;;  %s358_s12 = smov 122  }
   0x3   :  { %s359_s13 = smov 121   ;;  %s360_s14 = smov 120  }
   0x4   :  { %s361_s15 = smov 119   ;;  %s362_s16 = smov 118  }
   0x5   :  { %s363_s17 = smov 117   ;;  %s364_s18 = smov 116  }
   0x6   :  { %s365_s19 = smov 115   ;;  %s366_s20 = smov 114  }
   0x7   :  { %s367_s21 = smov 113   ;;  %s368_s22 = smov 112  }
   0x8   :  { %s369_s23 = smov 111   ;;  %s370_s24 = smov 110  }
   0x9   :  { %v11_v1 = vld [vmem:[#allocation0] sm:$0x3]   ;;  %s371_s25 = smov 109   ;;  %s372_s26 = smov 108  }
   0xa   :  { %v27_v2 = vld [vmem:[#allocation0] sm:$0x3]   ;;  %12 = vrot.lane.b32.xlu0 %v11_v1, %s353_s0  ;;  %s373_s27 = smov 107   ;;  %s374_s28 = smov 106  }
   0xb   :  { %28 = vrot.lane.b32.xlu1 %v27_v2, %s354_s8  ;;  %v43_v3 = vld [vmem:[#allocation0] sm:$0x3]   ;;  %s375_s29 = smov 105   ;;  %s376_s30 = smov 104  }
   0xc   :  { %44 = vrot.lane.b32.xlu2 %v43_v3, %s355_s9  ;;  %v19_v4 = vld [vmem:[#allocation0] sm:$0x3]   ;;  %s377_s2 = smov 103   ;;  %s378_s3 = smov 102  }
   0xd   :  { %v35_v5 = vld [vmem:[#allocation0] sm:$0x3]   ;;  %s379_s4 = smov 101   ;;  %s380_s5 = smov 100  }
   0xe   :  { %v51_v6 = vld [vmem:[#allocation0] sm:$0x3]   ;;  %s381_s6 = smov 99   ;;  %s382_s7 = smov 98  }
   0xf   :  { %v59_v7 = vld [vmem:[#allocation0] sm:$0x3]   ;;  %s383_s0 = smov 97  }
  0x10   :  { %v67_v8 = vld [vmem:[#allocation0] sm:$0x3]  }
  0x11   :  { %v75_v9 = vld [vmem:[#allocation0] sm:$0x3]  }
  0x12   :  { %20 = vrot.lane.b32.xlu0 %v19_v4, %s356_s10  ;;  %v83_v10 = vld [vmem:[#allocation0] sm:$0x3]  }
  0x13   :  { %36 = vrot.lane.b32.xlu1 %v35_v5, %s357_s11  ;;  %v91_v11 = vld [vmem:[#allocation0] sm:$0x3]  }
  0x14   :  { %52 = vrot.lane.b32.xlu2 %v51_v6, %s358_s12  ;;  %v99_v12 = vld [vmem:[#allocation0] sm:$0x3]  }
  0x15   :  { %v107_v13 = vld [vmem:[#allocation0] sm:$0x3]  }
  0x16   :  { %v115_v14 = vld [vmem:[#allocation0] sm:$0x3]  }
  0x17   :  { %v123_v15 = vld [vmem:[#allocation0] sm:$0x3]  }
  0x18   :  { %v131_v16 = vld [vmem:[#allocation0] sm:$0x3]  }
  0x19   :  { %v139_v17 = vld [vmem:[#allocation0] sm:$0x3]  }
  0x1a   :  { %60 = vrot.lane.b32.xlu0 %v59_v7, %s359_s13  ;;  %v147_v18 = vld [vmem:[#allocation0] sm:$0x3]  }
  0x1b   :  { %68 = vrot.lane.b32.xlu1 %v67_v8, %s360_s14  ;;  %v155_v19 = vld [vmem:[#allocation0] sm:$0x3]  }
  0x1c   :  { %76 = vrot.lane.b32.xlu2 %v75_v9, %s361_s15  ;;  %v163_v20 = vld [vmem:[#allocation0] sm:$0x3]  }
  0x1d   :  { %v171_v21 = vld [vmem:[#allocation0] sm:$0x3]  }
  0x1e   :  { %v179_v22 = vld [vmem:[#allocation0] sm:$0x3]  }
  0x1f   :  { %v187_v23 = vld [vmem:[#allocation0] sm:$0x3]  }
  0x20   :  { %v195_v24 = vld [vmem:[#allocation0] sm:$0x3]  }
  0x21   :  { %v203_v25 = vld [vmem:[#allocation0] sm:$0x3]  }
  0x22   :  { %84 = vrot.lane.b32.xlu0 %v83_v10, %s362_s16  ;;  %v211_v26 = vld [vmem:[#allocation0] sm:$0x3]  }
  0x23   :  { %92 = vrot.lane.b32.xlu1 %v91_v11, %s363_s17  ;;  %v219_v27 = vld [vmem:[#allocation0] sm:$0x3]  }
  0x24   :  { %100 = vrot.lane.b32.xlu2 %v99_v12, %s364_s18  ;;  %v227_v28 = vld [vmem:[#allocation0] sm:$0x3]  }
  0x25   :  { %v235_v29 = vld [vmem:[#allocation0] sm:$0x3]  }
  0x26   :  { %v243_v30 = vld [vmem:[#allocation0] sm:$0x3]  }
  0x27   :  { %v251_v31 = vld [vmem:[#allocation0] sm:$0x3]  }
  0x28   :  { %v6_v56 = vld [vmem:[#allocation0] sm:$0x3]  }
  0x29   :  { %8 = vst.msk [vmem:[%s654_s1] sm:$0x1] %vm7_vm0, %v6_v56  }
  0x2a   :  { %108 = vrot.lane.b32.xlu0 %v107_v13, %s365_s19  ;;  %259 = vst.msk [vmem:[%s654_s1 + $0x1f] sm:$0x2] %vm7_vm0, %v6_v56  }
  0x2b   :  { %116 = vrot.lane.b32.xlu1 %v115_v14, %s366_s20 }
  0x2c   :  { %124 = vrot.lane.b32.xlu2 %v123_v15, %s367_s21 }
  0x32   :  { %132 = vrot.lane.b32.xlu0 %v131_v16, %s368_s22 }
  0x33   :  { %140 = vrot.lane.b32.xlu1 %v139_v17, %s369_s23 }
  0x34   :  { %148 = vrot.lane.b32.xlu2 %v147_v18, %s370_s24 }
  0x3a   :  { %156 = vrot.lane.b32.xlu0 %v155_v19, %s371_s25 }
  0x3b   :  { %164 = vrot.lane.b32.xlu1 %v163_v20, %s372_s26 }
  0x3c   :  { %172 = vrot.lane.b32.xlu2 %v171_v21, %s373_s27 }
  0x42   :  { %180 = vrot.lane.b32.xlu0 %v179_v22, %s374_s28 }
  0x43   :  { %188 = vrot.lane.b32.xlu1 %v187_v23, %s375_s29 }
  0x44   :  { %196 = vrot.lane.b32.xlu2 %v195_v24, %s376_s30 }
  0x4a   :  { %204 = vrot.lane.b32.xlu0 %v203_v25, %s377_s2 }
  0x4b   :  { %212 = vrot.lane.b32.xlu1 %v211_v26, %s378_s3 }
  0x4c   :  { %220 = vrot.lane.b32.xlu2 %v219_v27, %s379_s4 }
  0x52   :  { %228 = vrot.lane.b32.xlu0 %v227_v28, %s380_s5 }
  0x53   :  { %236 = vrot.lane.b32.xlu1 %v235_v29, %s381_s6 }
  0x54   :  { %244 = vrot.lane.b32.xlu2 %v243_v30, %s382_s7 }
  0x5a   :  { %252 = vrot.lane.b32.xlu0 %v251_v31, %s383_s0 }
  0x66   :  { %v45_v32 = vpop.permute.xlu2 %44  }
  0x67   :  { %268 = vst.msk [vmem:[%s654_s1 + $0x5] sm:$0x1] %vm7_vm0, %v45_v32  }
  0x68   :  { %269 = vst.msk [vmem:[%s654_s1 + $0x24] sm:$0x2] %vm7_vm0, %v45_v32  }
  0x6e   :  { %v53_v33 = vpop.permute.xlu2 %52  }
  0x6f   :  { %270 = vst.msk [vmem:[%s654_s1 + $0x6] sm:$0x1] %vm7_vm0, %v53_v33  }
  0x70   :  { %271 = vst.msk [vmem:[%s654_s1 + $0x25] sm:$0x2] %vm7_vm0, %v53_v33  }
  0x76   :  { %v77_v34 = vpop.permute.xlu2 %76  }
  0x77   :  { %276 = vst.msk [vmem:[%s654_s1 + $0x9] sm:$0x1] %vm7_vm0, %v77_v34  }
  0x78   :  { %277 = vst.msk [vmem:[%s654_s1 + $0x28] sm:$0x2] %vm7_vm0, %v77_v34  }
  0x7c   :  { %v13_v35 = vpop.permute.xlu0 %12  }
  0x7d   :  { %v29_v36 = vpop.permute.xlu1 %28   ;;  %260 = vst.msk [vmem:[%s654_s1 + $0x1] sm:$0x1] %vm7_vm0, %v13_v35  }
  0x7e   :  { %261 = vst.msk [vmem:[%s654_s1 + $0x20] sm:$0x2] %vm7_vm0, %v13_v35   ;;  %v101_v37 = vpop.permute.xlu2 %100  }
  0x7f   :  { %264 = vst.msk [vmem:[%s654_s1 + $0x3] sm:$0x1] %vm7_vm0, %v29_v36  }
  0x80   :  { %265 = vst.msk [vmem:[%s654_s1 + $0x22] sm:$0x2] %vm7_vm0, %v29_v36  }
  0x81   :  { %282 = vst.msk [vmem:[%s654_s1 + $0xc] sm:$0x1] %vm7_vm0, %v101_v37  }
  0x82   :  { %283 = vst.msk [vmem:[%s654_s1 + $0x2b] sm:$0x2] %vm7_vm0, %v101_v37  }
  0x84   :  { %v21_v38 = vpop.permute.xlu0 %20  }
  0x85   :  { %v37_v39 = vpop.permute.xlu1 %36   ;;  %262 = vst.msk [vmem:[%s654_s1 + $0x2] sm:$0x1] %vm7_vm0, %v21_v38  }
  0x86   :  { %263 = vst.msk [vmem:[%s654_s1 + $0x21] sm:$0x2] %vm7_vm0, %v21_v38   ;;  %v125_v40 = vpop.permute.xlu2 %124  }
  0x87   :  { %266 = vst.msk [vmem:[%s654_s1 + $0x4] sm:$0x1] %vm7_vm0, %v37_v39  }
  0x88   :  { %267 = vst.msk [vmem:[%s654_s1 + $0x23] sm:$0x2] %vm7_vm0, %v37_v39  }
  0x89   :  { %288 = vst.msk [vmem:[%s654_s1 + $0xf] sm:$0x1] %vm7_vm0, %v125_v40  }
  0x8a   :  { %289 = vst.msk [vmem:[%s654_s1 + $0x2e] sm:$0x2] %vm7_vm0, %v125_v40  }
  0x8c   :  { %v61_v41 = vpop.permute.xlu0 %60  }
  0x8d   :  { %v69_v42 = vpop.permute.xlu1 %68   ;;  %272 = vst.msk [vmem:[%s654_s1 + $0x7] sm:$0x1] %vm7_vm0, %v61_v41  }
  0x8e   :  { %273 = vst.msk [vmem:[%s654_s1 + $0x26] sm:$0x2] %vm7_vm0, %v61_v41   ;;  %v149_v43 = vpop.permute.xlu2 %148  }
  0x8f   :  { %274 = vst.msk [vmem:[%s654_s1 + $0x8] sm:$0x1] %vm7_vm0, %v69_v42  }
  0x90   :  { %275 = vst.msk [vmem:[%s654_s1 + $0x27] sm:$0x2] %vm7_vm0, %v69_v42  }
  0x91   :  { %294 = vst.msk [vmem:[%s654_s1 + $0x12] sm:$0x1] %vm7_vm0, %v149_v43  }
  0x92   :  { %295 = vst.msk [vmem:[%s654_s1 + $0x31] sm:$0x2] %vm7_vm0, %v149_v43  }
  0x94   :  { %v85_v44 = vpop.permute.xlu0 %84  }
  0x95   :  { %v93_v45 = vpop.permute.xlu1 %92   ;;  %278 = vst.msk [vmem:[%s654_s1 + $0xa] sm:$0x1] %vm7_vm0, %v85_v44  }
  0x96   :  { %279 = vst.msk [vmem:[%s654_s1 + $0x29] sm:$0x2] %vm7_vm0, %v85_v44   ;;  %v173_v46 = vpop.permute.xlu2 %172  }
  0x97   :  { %280 = vst.msk [vmem:[%s654_s1 + $0xb] sm:$0x1] %vm7_vm0, %v93_v45  }
  0x98   :  { %281 = vst.msk [vmem:[%s654_s1 + $0x2a] sm:$0x2] %vm7_vm0, %v93_v45  }
  0x99   :  { %300 = vst.msk [vmem:[%s654_s1 + $0x15] sm:$0x1] %vm7_vm0, %v173_v46  }
  0x9a   :  { %301 = vst.msk [vmem:[%s654_s1 + $0x34] sm:$0x2] %vm7_vm0, %v173_v46  }
  0x9c   :  { %v109_v47 = vpop.permute.xlu0 %108  }
  0x9d   :  { %v117_v48 = vpop.permute.xlu1 %116   ;;  %284 = vst.msk [vmem:[%s654_s1 + $0xd] sm:$0x1] %vm7_vm0, %v109_v47  }
  0x9e   :  { %285 = vst.msk [vmem:[%s654_s1 + $0x2c] sm:$0x2] %vm7_vm0, %v109_v47   ;;  %v197_v49 = vpop.permute.xlu2 %196  }
  0x9f   :  { %286 = vst.msk [vmem:[%s654_s1 + $0xe] sm:$0x1] %vm7_vm0, %v117_v48  }
  0xa0   :  { %287 = vst.msk [vmem:[%s654_s1 + $0x2d] sm:$0x2] %vm7_vm0, %v117_v48  }
  0xa1   :  { %306 = vst.msk [vmem:[%s654_s1 + $0x18] sm:$0x1] %vm7_vm0, %v197_v49  }
  0xa2   :  { %307 = vst.msk [vmem:[%s654_s1 + $0x37] sm:$0x2] %vm7_vm0, %v197_v49  }
  0xa4   :  { %v133_v50 = vpop.permute.xlu0 %132  }
  0xa5   :  { %v141_v51 = vpop.permute.xlu1 %140   ;;  %290 = vst.msk [vmem:[%s654_s1 + $0x10] sm:$0x1] %vm7_vm0, %v133_v50  }
  0xa6   :  { %291 = vst.msk [vmem:[%s654_s1 + $0x2f] sm:$0x2] %vm7_vm0, %v133_v50   ;;  %v221_v52 = vpop.permute.xlu2 %220  }
  0xa7   :  { %292 = vst.msk [vmem:[%s654_s1 + $0x11] sm:$0x1] %vm7_vm0, %v141_v51  }
  0xa8   :  { %293 = vst.msk [vmem:[%s654_s1 + $0x30] sm:$0x2] %vm7_vm0, %v141_v51  }
  0xa9   :  { %312 = vst.msk [vmem:[%s654_s1 + $0x1b] sm:$0x1] %vm7_vm0, %v221_v52  }
  0xaa   :  { %313 = vst.msk [vmem:[%s654_s1 + $0x3a] sm:$0x2] %vm7_vm0, %v221_v52  }
  0xac   :  { %v157_v53 = vpop.permute.xlu0 %156  }
  0xad   :  { %v165_v54 = vpop.permute.xlu1 %164   ;;  %296 = vst.msk [vmem:[%s654_s1 + $0x13] sm:$0x1] %vm7_vm0, %v157_v53  }
  0xae   :  { %297 = vst.msk [vmem:[%s654_s1 + $0x32] sm:$0x2] %vm7_vm0, %v157_v53   ;;  %v245_v55 = vpop.permute.xlu2 %244  }
  0xaf   :  { %298 = vst.msk [vmem:[%s654_s1 + $0x14] sm:$0x1] %vm7_vm0, %v165_v54  }
  0xb0   :  { %299 = vst.msk [vmem:[%s654_s1 + $0x33] sm:$0x2] %vm7_vm0, %v165_v54  }
  0xb1   :  { %318 = vst.msk [vmem:[%s654_s1 + $0x1e] sm:$0x1] %vm7_vm0, %v245_v55  }
  0xb2   :  { %319 = vst.msk [vmem:[%s654_s1 + $0x3d] sm:$0x2] %vm7_vm0, %v245_v55  }
  0xb4   :  { %v181_v57 = vpop.permute.xlu0 %180  }
  0xb5   :  { %v189_v58 = vpop.permute.xlu1 %188   ;;  %302 = vst.msk [vmem:[%s654_s1 + $0x16] sm:$0x1] %vm7_vm0, %v181_v57  }
  0xb6   :  { %303 = vst.msk [vmem:[%s654_s1 + $0x35] sm:$0x2] %vm7_vm0, %v181_v57  }
  0xb7   :  { %304 = vst.msk [vmem:[%s654_s1 + $0x17] sm:$0x1] %vm7_vm0, %v189_v58  }
  0xb8   :  { %305 = vst.msk [vmem:[%s654_s1 + $0x36] sm:$0x2] %vm7_vm0, %v189_v58  }
  0xbc   :  { %v205_v59 = vpop.permute.xlu0 %204  }
  0xbd   :  { %v213_v60 = vpop.permute.xlu1 %212   ;;  %308 = vst.msk [vmem:[%s654_s1 + $0x19] sm:$0x1] %vm7_vm0, %v205_v59  }
  0xbe   :  { %309 = vst.msk [vmem:[%s654_s1 + $0x38] sm:$0x2] %vm7_vm0, %v205_v59  }
  0xbf   :  { %310 = vst.msk [vmem:[%s654_s1 + $0x1a] sm:$0x1] %vm7_vm0, %v213_v60  }
  0xc0   :  { %311 = vst.msk [vmem:[%s654_s1 + $0x39] sm:$0x2] %vm7_vm0, %v213_v60  }
  0xc4   :  { %v229_v61 = vpop.permute.xlu0 %228  }
  0xc5   :  { %v237_v62 = vpop.permute.xlu1 %236   ;;  %314 = vst.msk [vmem:[%s654_s1 + $0x1c] sm:$0x1] %vm7_vm0, %v229_v61  }
  0xc6   :  { %315 = vst.msk [vmem:[%s654_s1 + $0x3b] sm:$0x2] %vm7_vm0, %v229_v61  }
  0xc7   :  { %316 = vst.msk [vmem:[%s654_s1 + $0x1d] sm:$0x1] %vm7_vm0, %v237_v62  }
  0xc8   :  { %317 = vst.msk [vmem:[%s654_s1 + $0x3c] sm:$0x2] %vm7_vm0, %v237_v62  }
  0xcc   :  { %v253_v63 = vpop.permute.xlu0 %252  }
  0xcd   :  { %320 = vst.msk [vmem:[%s654_s1 + $0x1f] sm:$0x1] %vm7_vm0, %v253_v63  }
  0xce   :  { %321 = vst.msk [vmem:[%s654_s1 + $0x3e] sm:$0x2] %vm7_vm0, %v253_v63  }

// kernel: forward.22
= control target key start
LH: loop header
LB: loop body
LE: loop exit
PB: predicated region body
PF: predicated region fallthrough
CT: control target
= control target key end

     0   :  { %s1490_s9 = smov 0   ;;  %s1492_s10 = smov 0   ;;  %s1872_s0 = inlined_call_operand.vmem [shape: bf16[1278,10], index: 0, kind: input, shape index: {}]   ;;  %s1873_s1 = inlined_call_operand.vmem [shape: bf16[10,32], index: 1, kind: input, shape index: {}]   ;;  %s1874_s2 = inlined_call_operand.vmem [shape: f32[1278,32], index: 2, kind: output, shape index: {}]  }
   0x1   :  { %s1494_s11 = smov 0  }
   0x2 LB: > { %s1503_s12 = sadd.s32 4294967295, %s1441_s11   ;;  %s1505_s13 = sadd.s32 1, %s1441_s11   ;;  %s1441_s11 = sphi %s1494_s11, %s1883_s11   ;;  %s1437_s10 = sphi %s1492_s10, %s1882_s10   ;;  %s1433_s9 = sphi %s1490_s9, %s1881_s9  }
   0x3   : > { %s63_s14 = ssub.s32 %s1441_s11, %s1505_s13  ;;  %s66_s15 = sadd.s32 1, %s1437_s10 }
   0x4   : > { %p64_p0 = scmp.eq.s32.totalorder %s63_s14, 0  ;;  %p76_p1 = scmp.ne.s32.totalorder %s1437_s10, %s1433_s9 }
   0x5   : > { %p77_p2 = scmp.eq.s32.totalorder %s1503_s12, 2  ;;  %p1075_p3 = scmp.ge.s32.totalorder %s1441_s11, 1 }
   0x6   : > { %s1513_s16 = scalar_select %p64_p0, %s1437_s10, %s66_s15  }
   0x7   : > { %p1515_p4 = por %p77_p2, %p76_p1  ;;  %p121_p5 = scmp.lt.s32.totalorder %s1441_s11, 4 }
   0x9   : > { %p122_p6 = pnand %p1075_p3, %p121_p5 }
   0xa   : > { %s1526_s22 = sshll.u32 (!%p122_p6), %s1503_s12, 6  ;;  %s143_s28 = sand.u32 (!%p122_p6), 1, %s1433_s9  }
   0xb   : > { %125 = sbr.rel (%p122_p6) target bundleno = 342 (0x156), region = 28  ;;  %p151_p7 = scmp.lt.s32.totalorder (!%p122_p6), %s1526_s22, 159 }
   0xc   : > { %s1076_s29 = sshll.u32 (!%p122_p6), %s143_s28, 9 }
   0xd   : > { %s1600_s30 = scalar_lea.vmem (!%p122_p6), [#allocation2], %s1076_s29  }
  0x10   : > { %v1209_v0 = vld [vmem:[%s1873_s1] sm:$0xf]  ;;  %v1292_v1 = vld [vmem:[%s1873_s1] sm:$0x10]  ;;  %vm494_vm0 = vcmask 1044480   ;;  %s152_s23 = scalar_select %p151_p7, %s1526_s22, 159 }
  0x11   : > { %v1210_v2 = vor.u32 %v1292_v1, %v1209_v0  ;;  %vm397_vm1 = vcmask 80896   ;;  %vm667_vm2 = vcmask 261120   ;;  %s740_s3 = ssub.s32 (%p1515_p4), 160, %s1526_s22  ;;  %s1293_s4 = sshll.u32 (%p1515_p4), %s1503_s12, 9 }
  0x12   : > { %s1078_s24 = sshll.u32 %s152_s23, 2  ;;  %p741_p8 = scmp.lt.s32.totalorder (%p1515_p4), %s740_s3, 64 }
  0x13   : > { %v496_v3 = vsel %vm494_vm0, %v1210_v2, 0  ;;  %s1533_s27 = scalar_lea.vmem %s1872_s0, %s1078_s24  ;;  %s1737_s7 = scalar_lea.vmem (%p1515_p4), %s1874_s2, %s1293_s4  }
  0x14   : > { %505 = vmatpush.bf16.msra.mxu0 %v496_v3  ;;  %1296 = vmatpush.bf16.msra.mxu1 %v496_v3  ;;  %v1260_v4 = vld [vmem:[%s1533_s27] sm:$0xff]  ;;  %v1261_v8 = vld [vmem:[%s1533_s27 + $0x8] sm:$0xff]  ;;  %v1262_v12 = vld [vmem:[%s1533_s27 + $0x10] sm:$0xff] }
  0x15   : > { %1297 = vmatpush.bf16.msra.mxu2 %v496_v3  ;;  %1298 = vmatpush.bf16.msra.mxu3 %v496_v3  ;;  %v1268_v5 = vld [vmem:[%s1533_s27 + $0x40] sm:$0xff]  ;;  %v1269_v9 = vld [vmem:[%s1533_s27 + $0x48] sm:$0xff]  ;;  %v1270_v13 = vld [vmem:[%s1533_s27 + $0x50] sm:$0xff] }
  0x16   : > { %v1276_v6 = vld [vmem:[%s1533_s27 + $0x80] sm:$0xff]  ;;  %v1277_v10 = vld [vmem:[%s1533_s27 + $0x88] sm:$0xff]  ;;  %v1278_v14 = vld [vmem:[%s1533_s27 + $0x90] sm:$0xff] }
  0x17   : > { %v1284_v7 = vld [vmem:[%s1533_s27 + $0xc0] sm:$0xff]  ;;  %1211 = vmatmul.msk.bf16.vlgmr.msra.gmra.mxu0 %vm397_vm1, %v1260_v4  ;;  %1219 = vmatmul.msk.bf16.vlgmr.msra.gmra.mxu1 %vm397_vm1, %v1268_v5  ;;  %v1285_v11 = vld [vmem:[%s1533_s27 + $0xc8] sm:$0xff]  ;;  %v1286_v15 = vld [vmem:[%s1533_s27 + $0xd0] sm:$0xff] }
  0x18   : > { %1227 = vmatmul.msk.bf16.vlgmr.msra.gmra.mxu2 %vm397_vm1, %v1276_v6  ;;  %1235 = vmatmul.msk.bf16.vlgmr.msra.gmra.mxu3 %vm397_vm1, %v1284_v7  ;;  %v1263_v16 = vld [vmem:[%s1533_s27 + $0x18] sm:$0xff]  ;;  %v1264_v20 = vld [vmem:[%s1533_s27 + $0x20] sm:$0xff]  ;;  %v1265_v24 = vld [vmem:[%s1533_s27 + $0x28] sm:$0xff] }
  0x19   : > { %v1271_v17 = vld [vmem:[%s1533_s27 + $0x58] sm:$0xff]  ;;  %v1272_v21 = vld [vmem:[%s1533_s27 + $0x60] sm:$0xff]  ;;  %v1273_v25 = vld [vmem:[%s1533_s27 + $0x68] sm:$0xff] }
  0x1a   : > { %v1279_v18 = vld [vmem:[%s1533_s27 + $0x98] sm:$0xff]  ;;  %v1280_v22 = vld [vmem:[%s1533_s27 + $0xa0] sm:$0xff]  ;;  %v1281_v26 = vld [vmem:[%s1533_s27 + $0xa8] sm:$0xff] }
  0x1b   : > { %v1287_v19 = vld [vmem:[%s1533_s27 + $0xd8] sm:$0xff]  ;;  %v1288_v23 = vld [vmem:[%s1533_s27 + $0xe0] sm:$0xff]  ;;  %v1289_v27 = vld [vmem:[%s1533_s27 + $0xe8] sm:$0xff] }
  0x1c   : > { %v1266_v28 = vld [vmem:[%s1533_s27 + $0x30] sm:$0xff]  ;;  %v1267_v32 = vld [vmem:[%s1533_s27 + $0x38] sm:$0xff] }
  0x1d   : > { %v1274_v29 = vld [vmem:[%s1533_s27 + $0x70] sm:$0xff]  ;;  %v1275_v33 = vld [vmem:[%s1533_s27 + $0x78] sm:$0xff] }
  0x1e   : > { %v1282_v30 = vld [vmem:[%s1533_s27 + $0xb0] sm:$0xff]  ;;  %v1283_v34 = vld [vmem:[%s1533_s27 + $0xb8] sm:$0xff] }
  0x1f   : > { %v1290_v31 = vld [vmem:[%s1533_s27 + $0xf0] sm:$0xff]  ;;  %v1291_v35 = vld [vmem:[%s1533_s27 + $0xf8] sm:$0xff] }
  0x27   : > { %1212 = vmatmul.msk.bf16.gmra.mxu0 %vm397_vm1, %v1261_v8  ;;  %1220 = vmatmul.msk.bf16.gmra.mxu1 %vm397_vm1, %v1269_v9 }
  0x28   : > { %1228 = vmatmul.msk.bf16.gmra.mxu2 %vm397_vm1, %v1277_v10  ;;  %1236 = vmatmul.msk.bf16.gmra.mxu3 %vm397_vm1, %v1285_v11 }
  0x37   : > { %1213 = vmatmul.msk.bf16.gmra.mxu0 %vm397_vm1, %v1262_v12  ;;  %1221 = vmatmul.msk.bf16.gmra.mxu1 %vm397_vm1, %v1270_v13 }
  0x38   : > { %1229 = vmatmul.msk.bf16.gmra.mxu2 %vm397_vm1, %v1278_v14  ;;  %1237 = vmatmul.msk.bf16.gmra.mxu3 %vm397_vm1, %v1286_v15 }
  0x47   : > { %1214 = vmatmul.msk.bf16.gmra.mxu0 %vm397_vm1, %v1263_v16  ;;  %1222 = vmatmul.msk.bf16.gmra.mxu1 %vm397_vm1, %v1271_v17 }
  0x48   : > { %1230 = vmatmul.msk.bf16.gmra.mxu2 %vm397_vm1, %v1279_v18  ;;  %1238 = vmatmul.msk.bf16.gmra.mxu3 %vm397_vm1, %v1287_v19 }
  0x57   : > { %1215 = vmatmul.msk.bf16.gmra.mxu0 %vm397_vm1, %v1264_v20  ;;  %1223 = vmatmul.msk.bf16.gmra.mxu1 %vm397_vm1, %v1272_v21 }
  0x58   : > { %1231 = vmatmul.msk.bf16.gmra.mxu2 %vm397_vm1, %v1280_v22  ;;  %1239 = vmatmul.msk.bf16.gmra.mxu3 %vm397_vm1, %v1288_v23 }
  0x67   : > { %1216 = vmatmul.msk.bf16.gmra.mxu0 %vm397_vm1, %v1265_v24  ;;  %1224 = vmatmul.msk.bf16.gmra.mxu1 %vm397_vm1, %v1273_v25 }
  0x68   : > { %1232 = vmatmul.msk.bf16.gmra.mxu2 %vm397_vm1, %v1281_v26  ;;  %1240 = vmatmul.msk.bf16.gmra.mxu3 %vm397_vm1, %v1289_v27 }
  0x77   : > { %1217 = vmatmul.msk.bf16.gmra.mxu0 %vm397_vm1, %v1266_v28  ;;  %1225 = vmatmul.msk.bf16.gmra.mxu1 %vm397_vm1, %v1274_v29 }
  0x78   : > { %1233 = vmatmul.msk.bf16.gmra.mxu2 %vm397_vm1, %v1282_v30  ;;  %1241 = vmatmul.msk.bf16.gmra.mxu3 %vm397_vm1, %v1290_v31 }
  0x87   : > { %1218 = vmatmul.msk.bf16.gmra.mxu0 %vm397_vm1, %v1267_v32  ;;  %1226 = vmatmul.msk.bf16.gmra.mxu1 %vm397_vm1, %v1275_v33 }
  0x88   : > { %1234 = vmatmul.msk.bf16.gmra.mxu2 %vm397_vm1, %v1283_v34  ;;  %1242 = vmatmul.msk.bf16.gmra.mxu3 %vm397_vm1, %v1291_v35 }
  0x94   : > { %v507_v36 = vpop.f32.mrf.mxu0  ;;  %v547_v37 = vpop.f32.mrf.mxu1 }
  0x95   : > { %668 = vst.msk [vmem:[%s1600_s30] sm:$0xff] %vm667_vm2, %v507_v36 }
  0x96   : > { %684 = vst.msk [vmem:[%s1600_s30 + $0x80] sm:$0xff] %vm667_vm2, %v547_v37 }
  0x9b   : > { %v587_v38 = vpop.f32.mrf.mxu2  ;;  %v627_v39 = vpop.f32.mrf.mxu3 }
  0x9c   : > { %700 = vst.msk [vmem:[%s1600_s30 + $0x100] sm:$0xff] %vm667_vm2, %v587_v38  ;;  %v509_v40 = vpop.f32.mrf.mxu0  ;;  %v549_v41 = vpop.f32.mrf.mxu1 }
  0x9d   : > { %716 = vst.msk [vmem:[%s1600_s30 + $0x180] sm:$0xff] %vm667_vm2, %v627_v39 }
  0x9e   : > { %669 = vst.msk [vmem:[%s1600_s30 + $0x8] sm:$0xff] %vm667_vm2, %v509_v40 }
  0x9f   : > { %685 = vst.msk [vmem:[%s1600_s30 + $0x88] sm:$0xff] %vm667_vm2, %v549_v41 }
  0xa3   : > { %v589_v42 = vpop.f32.mrf.mxu2  ;;  %v629_v43 = vpop.f32.mrf.mxu3 }
  0xa4   : > { %701 = vst.msk [vmem:[%s1600_s30 + $0x108] sm:$0xff] %vm667_vm2, %v589_v42  ;;  %v512_v44 = vpop.f32.mrf.mxu0  ;;  %v552_v45 = vpop.f32.mrf.mxu1 }
  0xa5   : > { %717 = vst.msk [vmem:[%s1600_s30 + $0x188] sm:$0xff] %vm667_vm2, %v629_v43 }
  0xa6   : > { %670 = vst.msk [vmem:[%s1600_s30 + $0x10] sm:$0xff] %vm667_vm2, %v512_v44 }
  0xa7   : > { %686 = vst.msk [vmem:[%s1600_s30 + $0x90] sm:$0xff] %vm667_vm2, %v552_v45 }
  0xab   : > { %v592_v46 = vpop.f32.mrf.mxu2  ;;  %v632_v47 = vpop.f32.mrf.mxu3 }
  0xac   : > { %702 = vst.msk [vmem:[%s1600_s30 + $0x110] sm:$0xff] %vm667_vm2, %v592_v46  ;;  %v514_v48 = vpop.f32.mrf.mxu0  ;;  %v554_v49 = vpop.f32.mrf.mxu1 }
  0xad   : > { %718 = vst.msk [vmem:[%s1600_s30 + $0x190] sm:$0xff] %vm667_vm2, %v632_v47 }
  0xae   : > { %671 = vst.msk [vmem:[%s1600_s30 + $0x18] sm:$0xff] %vm667_vm2, %v514_v48 }
  0xaf   : > { %687 = vst.msk [vmem:[%s1600_s30 + $0x98] sm:$0xff] %vm667_vm2, %v554_v49 }
  0xb3   : > { %v594_v50 = vpop.f32.mrf.mxu2  ;;  %v634_v51 = vpop.f32.mrf.mxu3 }
  0xb4   : > { %703 = vst.msk [vmem:[%s1600_s30 + $0x118] sm:$0xff] %vm667_vm2, %v594_v50  ;;  %v517_v52 = vpop.f32.mrf.mxu0  ;;  %v557_v53 = vpop.f32.mrf.mxu1 }
  0xb5   : > { %719 = vst.msk [vmem:[%s1600_s30 + $0x198] sm:$0xff] %vm667_vm2, %v634_v51 }
  0xb6   : > { %672 = vst.msk [vmem:[%s1600_s30 + $0x20] sm:$0xff] %vm667_vm2, %v517_v52 }
  0xb7   : > { %688 = vst.msk [vmem:[%s1600_s30 + $0xa0] sm:$0xff] %vm667_vm2, %v557_v53 }
  0xbb   : > { %v597_v54 = vpop.f32.mrf.mxu2  ;;  %v637_v55 = vpop.f32.mrf.mxu3 }
  0xbc   : > { %704 = vst.msk [vmem:[%s1600_s30 + $0x120] sm:$0xff] %vm667_vm2, %v597_v54  ;;  %v519_v56 = vpop.f32.mrf.mxu0  ;;  %v559_v57 = vpop.f32.mrf.mxu1 }
  0xbd   : > { %720 = vst.msk [vmem:[%s1600_s30 + $0x1a0] sm:$0xff] %vm667_vm2, %v637_v55 }
  0xbe   : > { %673 = vst.msk [vmem:[%s1600_s30 + $0x28] sm:$0xff] %vm667_vm2, %v519_v56 }
  0xbf   : > { %689 = vst.msk [vmem:[%s1600_s30 + $0xa8] sm:$0xff] %vm667_vm2, %v559_v57 }
  0xc3   : > { %v599_v58 = vpop.f32.mrf.mxu2  ;;  %v639_v59 = vpop.f32.mrf.mxu3 }
  0xc4   : > { %705 = vst.msk [vmem:[%s1600_s30 + $0x128] sm:$0xff] %vm667_vm2, %v599_v58  ;;  %v522_v60 = vpop.f32.mrf.mxu0  ;;  %v562_v61 = vpop.f32.mrf.mxu1 }
  0xc5   : > { %721 = vst.msk [vmem:[%s1600_s30 + $0x1a8] sm:$0xff] %vm667_vm2, %v639_v59 }
  0xc6   : > { %674 = vst.msk [vmem:[%s1600_s30 + $0x30] sm:$0xff] %vm667_vm2, %v522_v60 }
  0xc7   : > { %690 = vst.msk [vmem:[%s1600_s30 + $0xb0] sm:$0xff] %vm667_vm2, %v562_v61 }
  0xcb   : > { %v602_v62 = vpop.f32.mrf.mxu2  ;;  %v642_v63 = vpop.f32.mrf.mxu3 }
  0xcc   : > { %706 = vst.msk [vmem:[%s1600_s30 + $0x130] sm:$0xff] %vm667_vm2, %v602_v62  ;;  %v524_v0 = vpop.f32.mrf.mxu0  ;;  %v564_v1 = vpop.f32.mrf.mxu1 }
  0xcd   : > { %722 = vst.msk [vmem:[%s1600_s30 + $0x1b0] sm:$0xff] %vm667_vm2, %v642_v63 }
  0xce   : > { %675 = vst.msk [vmem:[%s1600_s30 + $0x38] sm:$0xff] %vm667_vm2, %v524_v0 }
  0xcf   : > { %691 = vst.msk [vmem:[%s1600_s30 + $0xb8] sm:$0xff] %vm667_vm2, %v564_v1 }
  0xd3   : > { %v604_v2 = vpop.f32.mrf.mxu2  ;;  %v644_v3 = vpop.f32.mrf.mxu3 }
  0xd4   : > { %707 = vst.msk [vmem:[%s1600_s30 + $0x138] sm:$0xff] %vm667_vm2, %v604_v2  ;;  %v527_v4 = vpop.f32.mrf.mxu0  ;;  %v567_v5 = vpop.f32.mrf.mxu1 }
  0xd5   : > { %723 = vst.msk [vmem:[%s1600_s30 + $0x1b8] sm:$0xff] %vm667_vm2, %v644_v3 }
  0xd6   : > { %676 = vst.msk [vmem:[%s1600_s30 + $0x40] sm:$0xff] %vm667_vm2, %v527_v4 }
  0xd7   : > { %692 = vst.msk [vmem:[%s1600_s30 + $0xc0] sm:$0xff] %vm667_vm2, %v567_v5 }
  0xdb   : > { %v607_v6 = vpop.f32.mrf.mxu2  ;;  %v647_v7 = vpop.f32.mrf.mxu3 }
  0xdc   : > { %708 = vst.msk [vmem:[%s1600_s30 + $0x140] sm:$0xff] %vm667_vm2, %v607_v6  ;;  %v529_v8 = vpop.f32.mrf.mxu0  ;;  %v569_v9 = vpop.f32.mrf.mxu1 }
  0xdd   : > { %724 = vst.msk [vmem:[%s1600_s30 + $0x1c0] sm:$0xff] %vm667_vm2, %v647_v7 }
  0xde   : > { %677 = vst.msk [vmem:[%s1600_s30 + $0x48] sm:$0xff] %vm667_vm2, %v529_v8 }
  0xdf   : > { %693 = vst.msk [vmem:[%s1600_s30 + $0xc8] sm:$0xff] %vm667_vm2, %v569_v9 }
  0xe3   : > { %v609_v10 = vpop.f32.mrf.mxu2  ;;  %v649_v11 = vpop.f32.mrf.mxu3 }
  0xe4   : > { %709 = vst.msk [vmem:[%s1600_s30 + $0x148] sm:$0xff] %vm667_vm2, %v609_v10  ;;  %v532_v12 = vpop.f32.mrf.mxu0  ;;  %v572_v13 = vpop.f32.mrf.mxu1 }
  0xe5   : > { %725 = vst.msk [vmem:[%s1600_s30 + $0x1c8] sm:$0xff] %vm667_vm2, %v649_v11 }
  0xe6   : > { %678 = vst.msk [vmem:[%s1600_s30 + $0x50] sm:$0xff] %vm667_vm2, %v532_v12 }
  0xe7   : > { %694 = vst.msk [vmem:[%s1600_s30 + $0xd0] sm:$0xff] %vm667_vm2, %v572_v13 }
  0xeb   : > { %v612_v14 = vpop.f32.mrf.mxu2  ;;  %v652_v15 = vpop.f32.mrf.mxu3 }
  0xec   : > { %710 = vst.msk [vmem:[%s1600_s30 + $0x150] sm:$0xff] %vm667_vm2, %v612_v14  ;;  %v534_v16 = vpop.f32.mrf.mxu0  ;;  %v574_v17 = vpop.f32.mrf.mxu1 }
  0xed   : > { %726 = vst.msk [vmem:[%s1600_s30 + $0x1d0] sm:$0xff] %vm667_vm2, %v652_v15 }
  0xee   : > { %679 = vst.msk [vmem:[%s1600_s30 + $0x58] sm:$0xff] %vm667_vm2, %v534_v16 }
  0xef   : > { %695 = vst.msk [vmem:[%s1600_s30 + $0xd8] sm:$0xff] %vm667_vm2, %v574_v17 }
  0xf3   : > { %v614_v18 = vpop.f32.mrf.mxu2  ;;  %v654_v19 = vpop.f32.mrf.mxu3 }
  0xf4   : > { %711 = vst.msk [vmem:[%s1600_s30 + $0x158] sm:$0xff] %vm667_vm2, %v614_v18  ;;  %v537_v20 = vpop.f32.mrf.mxu0  ;;  %v577_v21 = vpop.f32.mrf.mxu1 }
  0xf5   : > { %727 = vst.msk [vmem:[%s1600_s30 + $0x1d8] sm:$0xff] %vm667_vm2, %v654_v19 }
  0xf6   : > { %680 = vst.msk [vmem:[%s1600_s30 + $0x60] sm:$0xff] %vm667_vm2, %v537_v20 }
  0xf7   : > { %696 = vst.msk [vmem:[%s1600_s30 + $0xe0] sm:$0xff] %vm667_vm2, %v577_v21 }
  0xfb   : > { %v617_v22 = vpop.f32.mrf.mxu2  ;;  %v657_v23 = vpop.f32.mrf.mxu3 }
  0xfc   : > { %712 = vst.msk [vmem:[%s1600_s30 + $0x160] sm:$0xff] %vm667_vm2, %v617_v22  ;;  %v539_v24 = vpop.f32.mrf.mxu0  ;;  %v579_v25 = vpop.f32.mrf.mxu1 }
  0xfd   : > { %728 = vst.msk [vmem:[%s1600_s30 + $0x1e0] sm:$0xff] %vm667_vm2, %v657_v23 }
  0xfe   : > { %681 = vst.msk [vmem:[%s1600_s30 + $0x68] sm:$0xff] %vm667_vm2, %v539_v24 }
  0xff   : > { %697 = vst.msk [vmem:[%s1600_s30 + $0xe8] sm:$0xff] %vm667_vm2, %v579_v25 }
 0x103   : > { %v619_v26 = vpop.f32.mrf.mxu2  ;;  %v659_v27 = vpop.f32.mrf.mxu3 }
 0x104   : > { %713 = vst.msk [vmem:[%s1600_s30 + $0x168] sm:$0xff] %vm667_vm2, %v619_v26  ;;  %v542_v28 = vpop.f32.mrf.mxu0  ;;  %v582_v29 = vpop.f32.mrf.mxu1 }
 0x105   : > { %729 = vst.msk [vmem:[%s1600_s30 + $0x1e8] sm:$0xff] %vm667_vm2, %v659_v27 }
 0x106   : > { %682 = vst.msk [vmem:[%s1600_s30 + $0x70] sm:$0xff] %vm667_vm2, %v542_v28 }
 0x107   : > { %698 = vst.msk [vmem:[%s1600_s30 + $0xf0] sm:$0xff] %vm667_vm2, %v582_v29 }
 0x10b   : > { %v622_v30 = vpop.f32.mrf.mxu2  ;;  %v662_v31 = vpop.f32.mrf.mxu3 }
 0x10c   : > { %714 = vst.msk [vmem:[%s1600_s30 + $0x170] sm:$0xff] %vm667_vm2, %v622_v30  ;;  %v544_v32 = vpop.f32.mrf.mxu0  ;;  %v584_v33 = vpop.f32.mrf.mxu1 }
 0x10d   : > { %730 = vst.msk [vmem:[%s1600_s30 + $0x1f0] sm:$0xff] %vm667_vm2, %v662_v31 }
 0x10e   : > { %683 = vst.msk [vmem:[%s1600_s30 + $0x78] sm:$0xff] %vm667_vm2, %v544_v32 }
 0x10f   : > { %699 = vst.msk [vmem:[%s1600_s30 + $0xf8] sm:$0xff] %vm667_vm2, %v584_v33 }
 0x111   : > { %738 = sbr.rel (!%p1515_p4) target bundleno = 342 (0x156), region = 32 }
 0x113   : > { %v624_v34 = vpop.f32.mrf.mxu2  ;;  %v664_v35 = vpop.f32.mrf.mxu3 }
 0x114   : > { %715 = vst.msk [vmem:[%s1600_s30 + $0x178] sm:$0xff] %vm667_vm2, %v624_v34 }
 0x115   : > { %731 = vst.msk [vmem:[%s1600_s30 + $0x1f8] sm:$0xff] %vm667_vm2, %v664_v35 }
 0x116   : > { %s1885_s3 = smov (!%p741_p8, %s740_s3), 64 }
 0x117   : > { %s1245_s8 = sshll.u32 %s1885_s3, 3 }
 0x118   : > { %p1248_p9 = scmp.eq.s32.totalorder %s1245_s8, 0 }
 0x119   : > { %s1743_s9 = sshrl.u32 (!%p1248_p9), %s1885_s3, 5 }
 0x11a   : > { %749 = sbr.rel (%p1248_p9) target bundleno = 342 (0x156), region = 36  ;;  %p1249_p10 = scmp.le.s32.totalorder (!%p1248_p9), %s1743_s9, 0 }
 0x11f   : > { %1028 = sbr.rel (%p1249_p10) target bundleno = 325 (0x145), region = 112  ;;  %s1876_s11 = smov (!%p1249_p10), %s1737_s7 }
 0x120   : > { %s1877_s12 = smov (!%p1249_p10), %s1600_s30  ;;  %s1752_s14 = smov (!%p1249_p10), 0  }
 0x121   : > { %s1754_s15 = smov (!%p1249_p10), 0  }
 0x124 LB: >> { %v874_v36 = vld [vmem:[%s1449_s12] sm:$0xff]  ;;  %v876_v37 = vld [vmem:[%s1449_s12 + $0x8] sm:$0xff]  ;;  %v878_v38 = vld [vmem:[%s1449_s12 + $0x10] sm:$0xff]  ;;  %s938_s17 = sadd.s32 1, %s1453_s14  ;;  %s868_s15 = sadd.s32 1, %s1457_s15   ;;  %s1457_s15 = sphi %s1754_s15, %s868_s15   ;;  %s1453_s14 = sphi %s1752_s14, %s1880_s14   ;;  %s1449_s12 = sphi %s1877_s12, %s1879_s12   ;;  %s1445_s11 = sphi %s1876_s11, %s1878_s11  }
 0x125   : >> { %875 = vst [vmem:[%s1445_s11] sm:$0xff] %v874_v36  ;;  %v880_v39 = vld [vmem:[%s1449_s12 + $0x18] sm:$0xff]  ;;  %p939_p11 = scmp.ge.s32.totalorder %s938_s17, %s1743_s9  ;;  %v882_v40 = vld [vmem:[%s1449_s12 + $0x20] sm:$0xff]  ;;  %v884_v41 = vld [vmem:[%s1449_s12 + $0x28] sm:$0xff]  ;;  %p867_p12 = scmp.ge.s32.totalorder %s868_s15, %s1743_s9 }
 0x126   : >> { %877 = vst [vmem:[%s1445_s11 + $0x8] sm:$0xff] %v876_v37  ;;  %v886_v42 = vld [vmem:[%s1449_s12 + $0x30] sm:$0xff]  ;;  %v888_v43 = vld [vmem:[%s1449_s12 + $0x38] sm:$0xff]  ;;  %v890_v44 = vld [vmem:[%s1449_s12 + $0x40] sm:$0xff] }
 0x127   : >> { %879 = vst [vmem:[%s1445_s11 + $0x10] sm:$0xff] %v878_v38  ;;  %s1887_s17 = smov (%p939_p11, %s938_s17), 0  ;;  %v892_v45 = vld [vmem:[%s1449_s12 + $0x48] sm:$0xff]  ;;  %v894_v46 = vld [vmem:[%s1449_s12 + $0x50] sm:$0xff]  ;;  %v896_v47 = vld [vmem:[%s1449_s12 + $0x58] sm:$0xff] }
 0x128   : >> { %881 = vst [vmem:[%s1445_s11 + $0x18] sm:$0xff] %v880_v39  ;;  %s1250_s18 = sshll.u32 %s1887_s17, 8  ;;  %v898_v48 = vld [vmem:[%s1449_s12 + $0x60] sm:$0xff]  ;;  %v900_v49 = vld [vmem:[%s1449_s12 + $0x68] sm:$0xff]  ;;  %v902_v50 = vld [vmem:[%s1449_s12 + $0x70] sm:$0xff]  ;;  %s1880_s14 = smov %s1887_s17 }
 0x129   : >> { %883 = vst [vmem:[%s1445_s11 + $0x20] sm:$0xff] %v882_v40  ;;  %s1786_s19 = scalar_lea.vmem %s1600_s30, %s1250_s18 [#allocation2]   ;;  %s1789_s20 = scalar_lea.vmem %s1737_s7, %s1250_s18   ;;  %v904_v51 = vld [vmem:[%s1449_s12 + $0x78] sm:$0xff]  ;;  %v906_v52 = vld [vmem:[%s1449_s12 + $0x80] sm:$0xff]  ;;  %v908_v53 = vld [vmem:[%s1449_s12 + $0x88] sm:$0xff] }
 0x12a   : >> { %885 = vst [vmem:[%s1445_s11 + $0x28] sm:$0xff] %v884_v41  ;;  %v910_v54 = vld [vmem:[%s1449_s12 + $0x90] sm:$0xff]  ;;  %v912_v55 = vld [vmem:[%s1449_s12 + $0x98] sm:$0xff]  ;;  %v914_v56 = vld [vmem:[%s1449_s12 + $0xa0] sm:$0xff] }
 0x12b   : >> { %887 = vst [vmem:[%s1445_s11 + $0x30] sm:$0xff] %v886_v42  ;;  %v916_v57 = vld [vmem:[%s1449_s12 + $0xa8] sm:$0xff]  ;;  %v918_v58 = vld [vmem:[%s1449_s12 + $0xb0] sm:$0xff]  ;;  %v920_v59 = vld [vmem:[%s1449_s12 + $0xb8] sm:$0xff] }
 0x12c   : >> { %889 = vst [vmem:[%s1445_s11 + $0x38] sm:$0xff] %v888_v43  ;;  %v922_v60 = vld [vmem:[%s1449_s12 + $0xc0] sm:$0xff]  ;;  %v924_v61 = vld [vmem:[%s1449_s12 + $0xc8] sm:$0xff]  ;;  %v926_v62 = vld [vmem:[%s1449_s12 + $0xd0] sm:$0xff] }
 0x12d   : >> { %891 = vst [vmem:[%s1445_s11 + $0x40] sm:$0xff] %v890_v44  ;;  %v928_v63 = vld [vmem:[%s1449_s12 + $0xd8] sm:$0xff]  ;;  %v930_v0 = vld [vmem:[%s1449_s12 + $0xe0] sm:$0xff]  ;;  %v932_v1 = vld [vmem:[%s1449_s12 + $0xe8] sm:$0xff] }
 0x12e   : >> { %893 = vst [vmem:[%s1445_s11 + $0x48] sm:$0xff] %v892_v45  ;;  %v934_v2 = vld [vmem:[%s1449_s12 + $0xf0] sm:$0xff]  ;;  %v936_v3 = vld [vmem:[%s1449_s12 + $0xf8] sm:$0xff]  ;;  %s1879_s12 = smov %s1786_s19 }
 0x12f   : >> { %895 = vst [vmem:[%s1445_s11 + $0x50] sm:$0xff] %v894_v46 }
 0x130   : >> { %897 = vst [vmem:[%s1445_s11 + $0x58] sm:$0xff] %v896_v47 }
 0x131   : >> { %899 = vst [vmem:[%s1445_s11 + $0x60] sm:$0xff] %v898_v48 }
 0x132   : >> { %901 = vst [vmem:[%s1445_s11 + $0x68] sm:$0xff] %v900_v49 }
 0x133   : >> { %903 = vst [vmem:[%s1445_s11 + $0x70] sm:$0xff] %v902_v50 }
 0x134   : >> { %905 = vst [vmem:[%s1445_s11 + $0x78] sm:$0xff] %v904_v51 }
 0x135   : >> { %907 = vst [vmem:[%s1445_s11 + $0x80] sm:$0xff] %v906_v52 }
 0x136   : >> { %909 = vst [vmem:[%s1445_s11 + $0x88] sm:$0xff] %v908_v53 }
 0x137   : >> { %911 = vst [vmem:[%s1445_s11 + $0x90] sm:$0xff] %v910_v54 }
 0x138   : >> { %913 = vst [vmem:[%s1445_s11 + $0x98] sm:$0xff] %v912_v55 }
 0x139   : >> { %915 = vst [vmem:[%s1445_s11 + $0xa0] sm:$0xff] %v914_v56 }
 0x13a   : >> { %917 = vst [vmem:[%s1445_s11 + $0xa8] sm:$0xff] %v916_v57 }
 0x13b   : >> { %919 = vst [vmem:[%s1445_s11 + $0xb0] sm:$0xff] %v918_v58 }
 0x13c   : >> { %921 = vst [vmem:[%s1445_s11 + $0xb8] sm:$0xff] %v920_v59 }
 0x13d   : >> { %923 = vst [vmem:[%s1445_s11 + $0xc0] sm:$0xff] %v922_v60 }
 0x13e   : >> { %925 = vst [vmem:[%s1445_s11 + $0xc8] sm:$0xff] %v924_v61 }
 0x13f   : >> { %927 = vst [vmem:[%s1445_s11 + $0xd0] sm:$0xff] %v926_v62 }
 0x140   : >> { %929 = vst [vmem:[%s1445_s11 + $0xd8] sm:$0xff] %v928_v63  ;;  %870 = sbr.rel (!%p867_p12) target bundleno = 292 (0x124), region = 118 }
 0x141   : >> { %931 = vst [vmem:[%s1445_s11 + $0xe0] sm:$0xff] %v930_v0 }
 0x142   : >> { %933 = vst [vmem:[%s1445_s11 + $0xe8] sm:$0xff] %v932_v1 }
 0x143   : >> { %935 = vst [vmem:[%s1445_s11 + $0xf0] sm:$0xff] %v934_v2 }
 0x144   : >> { %937 = vst [vmem:[%s1445_s11 + $0xf8] sm:$0xff] %v936_v3  ;;  %s1878_s11 = smov %s1789_s20 }
 0x145 PF: > { %s1854_s21 = sand.u32 31, %s1885_s3   ;;  %s1294_s22 = sshll.u32 %s1743_s9, 8 }
 0x146   : > { %s949_s23 = scalar_lea.vmem %s1600_s30, %s1294_s22 [#allocation2]   ;;  %s951_s24 = scalar_lea.vmem %s1737_s7, %s1294_s22  }
 0x147   : > { %p1255_p13 = scmp.le.s32.totalorder %s1854_s21, 0 }
 0x148   : > { %s1459_s25 = smov (!%p1255_p13), %s951_s24   ;;  %s1463_s26 = smov (!%p1255_p13), %s949_s23  }
 0x149   : > { %1042 = sbr.rel (%p1255_p13) target bundleno = 342 (0x156), region = 123  ;;  %s1467_s27 = smov (!%p1255_p13), 0  }
 0x14a   : > { %s1471_s28 = smov (!%p1255_p13), 0  }
 0x14e LB: >> { %v961_v4 = vld [vmem:[%s1465_s26] sm:$0xff]  ;;  %s963_s29 = sadd.s32 1, %s1469_s27  ;;  %s955_s28 = sadd.s32 1, %s1473_s28   ;;  %s1473_s28 = sphi %s1471_s28, %s955_s28   ;;  %s1469_s27 = sphi %s1467_s27, %s1468_s27   ;;  %s1465_s26 = sphi %s1463_s26, %s968_s26   ;;  %s1461_s25 = sphi %s1459_s25, %s969_s25  }
 0x14f   : >> { %962 = vst [vmem:[%s1461_s25] sm:$0xff] %v961_v4  ;;  %p964_p0 = scmp.ge.s32.totalorder %s963_s29, %s1854_s21  ;;  %p954_p1 = scmp.ge.s32.totalorder %s955_s28, %s1854_s21 }
 0x151   : >> { %s1889_s29 = smov (%p964_p0, %s963_s29), 0  ;;  %957 = sbr.rel (!%p954_p1) target bundleno = 334 (0x14e), region = 129 }
 0x152   : >> { %s1256_s30 = sshll.u32 %s1889_s29, 3  ;;  %s1468_s27 = smov %s1889_s29  }
 0x153   : >> { %s968_s26 = scalar_lea.vmem %s949_s23, %s1256_s30 [#allocation2]   ;;  %s969_s25 = scalar_lea.vmem %s951_s24, %s1256_s30  }
 0x156 PF: > { %p9_p2 = scmp.ge.s32.totalorder %s1505_s13, 5   ;;  %s1881_s9 = smov %s1437_s10 }
 0x157   : > { %s1882_s10 = smov %s1513_s16  ;;  %s1883_s11 = smov %s1505_s13 }
 0x158   :  { %11 = sbr.rel (!%p9_p2) target bundleno = 2 (0x2), region = 140 }

// kernel: forward.23
= control target key start
LH: loop header
LB: loop body
LE: loop exit
PB: predicated region body
PF: predicated region fallthrough
CT: control target
= control target key end

     0   :  { %v1081_v3 = vmov 0   ;;  %vm73_vm0 = vcmask 1039360   ;;  %s2271_s0 = inlined_call_operand.vmem [shape: f32[64,639], index: 0, kind: input, shape index: {}]   ;;  %s2272_s1 = inlined_call_operand.vmem [shape: f32[64,1], index: 1, kind: input, shape index: {}]   ;;  %s2273_s2 = inlined_call_operand.vmem [shape: f32[64,1], index: 2, kind: input, shape index: {}]   ;;  %s2274_s3 = inlined_call_operand.vmem [shape: f32[64,639], index: 3, kind: output, shape index: {}]  }
   0x1   :  { %v1106_v0 = vld [vmem:[%s2271_s0 + $0xa0] sm:$0xff]  ;;  %v1111_v1 = vld [vmem:[%s2271_s0 + $0xa8] sm:$0xff]  ;;  %v1116_v2 = vld [vmem:[%s2271_s0 + $0xb0] sm:$0xff]  ;;  %981 = vset.pattern.permute.xlu2 %v1081_v3  ;;  %980 = vset.pattern.permute.xlu1 %v1081_v3 }
   0x2   :  { %v1121_v4 = vld [vmem:[%s2271_s0 + $0xb8] sm:$0xff]  ;;  %v1126_v5 = vld [vmem:[%s2271_s0 + $0xc0] sm:$0xff]  ;;  %v99_v6 = vadd.f32 %v1111_v1, %v1106_v0  ;;  %v1133_v7 = vld [vmem:[%s2271_s0 + $0x50] sm:$0xff]  ;;  %982 = vset.pattern.permute.xlu0 %v1081_v3 }
   0x3   :  { %v1138_v8 = vld [vmem:[%s2271_s0 + $0x58] sm:$0xff]  ;;  %v1143_v9 = vld [vmem:[%s2271_s0 + $0x60] sm:$0xff]  ;;  %v1148_v10 = vld [vmem:[%s2271_s0 + $0x68] sm:$0xff]  ;;  %v102_v16 = vsel %vm73_vm0, %v1126_v5, 0.0 }
   0x4   :  { %v100_v11 = vadd.f32 %v99_v6, %v1116_v2  ;;  %v1154_v12 = vld [vmem:[%s2271_s0 + $0x70] sm:$0xff]  ;;  %v85_v13 = vadd.f32 %v1138_v8, %v1133_v7  ;;  %v1161_v14 = vld [vmem:[%s2271_s0] sm:$0xff]  ;;  %v1166_v15 = vld [vmem:[%s2271_s0 + $0x8] sm:$0xff] }
   0x5   :  { %v1173_v17 = vld [vmem:[%s2271_s0 + $0x10] sm:$0xff]  ;;  %v1178_v18 = vld [vmem:[%s2271_s0 + $0x18] sm:$0xff]  ;;  %v1183_v19 = vld [vmem:[%s2271_s0 + $0x20] sm:$0xff]  ;;  %v70_v20 = vadd.f32 %v1166_v15, %v1161_v14  ;;  %v88_v26 = vsel %vm73_vm0, %v1154_v12, 0.0 }
   0x6   :  { %v101_v21 = vadd.f32 %v100_v11, %v1121_v4  ;;  %v86_v22 = vadd.f32 %v85_v13, %v1143_v9  ;;  %v1192_v23 = vld [vmem:[%s2271_s0 + $0xc8] sm:$0xff]  ;;  %v1197_v24 = vld [vmem:[%s2271_s0 + $0xd0] sm:$0xff]  ;;  %v1202_v25 = vld [vmem:[%s2271_s0 + $0xd8] sm:$0xff]  ;;  %v74_v33 = vsel %vm73_vm0, %v1183_v19, 0.0 }
   0x7   :  { %v71_v27 = vadd.f32 %v70_v20, %v1173_v17  ;;  %v1210_v28 = vld [vmem:[%s2271_s0 + $0xe0] sm:$0xff]  ;;  %v106_v29 = vadd.f32 %v1197_v24, %v1192_v23  ;;  %v1217_v30 = vld [vmem:[%s2271_s0 + $0x78] sm:$0xff]  ;;  %v1225_v34 = vld [vmem:[%s2271_s0 + $0xe8] sm:$0xff] }
   0x8   :  { %v103_v31 = vadd.f32 %v102_v16, %v101_v21  ;;  %v87_v32 = vadd.f32 %v86_v22, %v1148_v10  ;;  %v1230_v35 = vld [vmem:[%s2271_s0 + $0x80] sm:$0xff]  ;;  %v1235_v36 = vld [vmem:[%s2271_s0 + $0x88] sm:$0xff]  ;;  %v1242_v39 = vld [vmem:[%s2271_s0 + $0x90] sm:$0xff]  ;;  %v109_v50 = vsel %vm73_vm0, %v1225_v34, 0.0 }
   0x9   :  { %v72_v37 = vadd.f32 %v71_v27, %v1178_v18  ;;  %v107_v38 = vadd.f32 %v106_v29, %v1202_v25  ;;  %v92_v40 = vadd.f32 %v1230_v35, %v1217_v30  ;;  %v1249_v41 = vld [vmem:[%s2271_s0 + $0x28] sm:$0xff]  ;;  %v1254_v42 = vld [vmem:[%s2271_s0 + $0x30] sm:$0xff]  ;;  %v1259_v44 = vld [vmem:[%s2271_s0 + $0x98] sm:$0xff] }
   0xa   :  { %104 = vadd.xlane.f32.xlu2 %v103_v31  ;;  %v89_v43 = vadd.f32 %v88_v26, %v87_v32  ;;  %v1264_v45 = vld [vmem:[%s2271_s0 + $0x38] sm:$0xff]  ;;  %v1269_v46 = vld [vmem:[%s2271_s0 + $0x40] sm:$0xff]  ;;  %v78_v47 = vadd.f32 %v1254_v42, %v1249_v41  ;;  %v1280_v52 = vld [vmem:[%s2271_s0 + $0x48] sm:$0xff]  ;;  %v95_v59 = vsel %vm73_vm0, %v1259_v44, 0.0 }
   0xb   :  { %v75_v48 = vadd.f32 %v74_v33, %v72_v37  ;;  %v108_v49 = vadd.f32 %v107_v38, %v1210_v28  ;;  %v93_v51 = vadd.f32 %v92_v40, %v1235_v36  ;;  %v1285_v53 = vld [vmem:[%s2271_s0 + $0x118] sm:$0xff]  ;;  %v1290_v54 = vld [vmem:[%s2271_s0 + $0x120] sm:$0xff]  ;;  %v1298_v57 = vld [vmem:[%s2271_s0 + $0xf0] sm:$0xff]  ;;  %v81_v3 = vsel %vm73_vm0, %v1280_v52, 0.0 }
   0xc   :  { %90 = vadd.xlane.f32.xlu1 %v89_v43  ;;  %v79_v55 = vadd.f32 %v78_v47, %v1264_v45  ;;  %v120_v56 = vadd.f32 %v1290_v54, %v1285_v53  ;;  %v1306_v60 = vld [vmem:[%s2271_s0 + $0x128] sm:$0xff]  ;;  %v1311_v61 = vld [vmem:[%s2271_s0 + $0xf8] sm:$0xff]  ;;  %v1319_v6 = vld [vmem:[%s2271_s0 + $0x100] sm:$0xff] }
   0xd   :  { %76 = vadd.xlane.f32.xlu0 %v75_v48  ;;  %v94_v58 = vadd.f32 %v93_v51, %v1242_v39  ;;  %v110_v62 = vadd.f32 %v109_v50, %v108_v49  ;;  %v113_v11 = vadd.f32 %v1311_v61, %v1298_v57  ;;  %v1327_v21 = vld [vmem:[%s2271_s0 + $0x130] sm:$0xff]  ;;  %v1333_v26 = vld [vmem:[%s2271_s0 + $0x138] sm:$0xff]  ;;  %v1338_v27 = vld [vmem:[%s2271_s0 + $0x108] sm:$0xff] }
   0xe   :  { %v80_v63 = vadd.f32 %v79_v55, %v1269_v46  ;;  %v121_v16 = vadd.f32 %v120_v56, %v1306_v60  ;;  %v1343_v29 = vld [vmem:[%s2271_s0 + $0x110] sm:$0xff]  ;;  %v123_v32 = vsel %vm73_vm0, %v1333_v26, 0.0  ;;  %v55_v43 = vld [vmem:[%s2272_s1 + $0x8] sm:$0xff]  ;;  %v57_v48 = vld [vmem:[%s2272_s1 + $0x18] sm:$0xff] }
   0xf   :  { %v96_v13 = vadd.f32 %v95_v59, %v94_v58  ;;  %v114_v22 = vadd.f32 %v113_v11, %v1319_v6  ;;  %v116_v37 = vsel %vm73_vm0, %v1343_v29, 0.0  ;;  %v56_v47 = vld [vmem:[%s2272_s1 + $0x10] sm:$0xff]  ;;  %v54_v49 = vld [vmem:[%s2272_s1] sm:$0xff]  ;;  %v63_v50 = vld [vmem:[%s2273_s2 + $0x8] sm:$0xff]  ;;  %v1082_v11 = vmov 639.0  }
  0x10   :  { %v82_v20 = vadd.f32 %v81_v3, %v80_v63  ;;  %v122_v31 = vadd.f32 %v121_v16, %v1327_v21  ;;  %v59_v51 = vld [vmem:[%s2272_s1 + $0x28] sm:$0xff]  ;;  %v58_v55 = vld [vmem:[%s2272_s1 + $0x20] sm:$0xff]  ;;  %v61_v58 = vld [vmem:[%s2272_s1 + $0x38] sm:$0xff]  ;;  %983 = vrcp.f32 %v1082_v11 }
  0x11   :  { %v115_v33 = vadd.f32 %v114_v22, %v1338_v27  ;;  %v66_v56 = vld [vmem:[%s2273_s2 + $0x20] sm:$0xff]  ;;  %v60_v59 = vld [vmem:[%s2272_s1 + $0x30] sm:$0xff]  ;;  %v65_v3 = vld [vmem:[%s2273_s2 + $0x18] sm:$0xff] }
  0x12   :  { %111 = vadd.xlane.f32.xlu2 %v110_v62  ;;  %v124_v38 = vadd.f32 %v123_v32, %v122_v31  ;;  %v64_v62 = vld [vmem:[%s2273_s2 + $0x10] sm:$0xff]  ;;  %v62_v63 = vld [vmem:[%s2273_s2] sm:$0xff] }
  0x13   :  { %v117_v40 = vadd.f32 %v116_v37, %v115_v33 }
  0x14   :  { %97 = vadd.xlane.f32.xlu1 %v96_v13 }
  0x15   :  { %83 = vadd.xlane.f32.xlu0 %v82_v20 }
  0x16   :  { %v984_v13 = vpop.eup %983 }
  0x17   :  { %v128_v16 = vmul.f32 639.0, %v984_v13  ;;  %vm132_vm1 = vweird.f32 %v984_v13 }
  0x19   :  { %v129_v20 = vsub.f32 1.0, %v128_v16 }
  0x1b   :  { %v130_v22 = vmul.f32 %v984_v13, %v129_v20 }
  0x1c   :  { %125 = vadd.xlane.f32.xlu1 %v124_v38 }
  0x1d   :  { %118 = vadd.xlane.f32.xlu0 %v117_v40  ;;  %v131_v31 = vadd.f32 %v984_v13, %v130_v22 }
  0x1f   :  { %v1390_v32 = vsel %vm132_vm1, %v984_v13, %v131_v31 }
  0x2a   :  { %421 = vperm.xlu2 %981, %v55_v43  }
  0x31   :  { %426 = vperm.xlu0 %982, %v56_v47  }
  0x32   :  { %431 = vperm.xlu2 %981, %v57_v48  }
  0x35   :  { %416 = vperm.xlu1 %980, %v54_v49  }
  0x39   :  { %501 = vperm.xlu0 %982, %v63_v50  }
  0x3a   :  { %441 = vperm.xlu2 %981, %v59_v51  }
  0x3d   :  { %436 = vperm.xlu1 %980, %v58_v55  }
  0x41   :  { %516 = vperm.xlu0 %982, %v66_v56  }
  0x42   :  { %451 = vperm.xlu2 %981, %v61_v58  }
  0x45   :  { %446 = vperm.xlu1 %980, %v60_v59  }
  0x4a   :  { %506 = vperm.xlu2 %981, %v64_v62  }
  0x4d   :  { %496 = vperm.xlu1 %980, %v62_v63  }
  0x55   :  { %511 = vperm.xlu1 %980, %v65_v3  }
  0x7d   :  { %v105_v33 = vpop.xlane.xlu2 %104 }
  0x7e   :  { %v1393_v37 = vmul.f32 %v1390_v32, %v105_v33 }
  0x7f   :  { %v91_v38 = vpop.xlane.xlu1 %90 }
  0x80   :  { %v136_v40 = vmul.f32 %v1390_v32, %v91_v38  ;;  %v77_v43 = vpop.xlane.xlu0 %76  ;;  %v1399_v48 = vsub.f32 %v1106_v0, %v1393_v37 }
  0x81   :  { %v134_v47 = vmul.f32 %v1390_v32, %v77_v43 }
  0x82   :  { %v1402_v49 = vsub.f32 %v1133_v7, %v136_v40  ;;  %v1405_v50 = vsub.f32 %v1138_v8, %v136_v40  ;;  %v1408_v51 = vsub.f32 %v1143_v9, %v136_v40  ;;  %v1411_v55 = vsub.f32 %v1148_v10, %v136_v40 }
  0x83   :  { %v1414_v56 = vsub.f32 %v1154_v12, %v136_v40  ;;  %v1417_v58 = vsub.f32 %v1161_v14, %v134_v47  ;;  %v1420_v0 = vsub.f32 %v1166_v15, %v134_v47  ;;  %v1423_v7 = vsub.f32 %v1173_v17, %v134_v47 }
  0x84   :  { %v192_v8 = vmul.f32 %v1402_v49, %v1402_v49  ;;  %v193_v9 = vmul.f32 %v1405_v50, %v1405_v50  ;;  %v194_v10 = vmul.f32 %v1408_v51, %v1408_v51  ;;  %v1433_v12 = vsub.f32 %v1111_v1, %v1393_v37 }
  0x85   :  { %v112_v14 = vpop.xlane.xlu2 %111  ;;  %v196_v15 = vmul.f32 %v1414_v56, %v1414_v56  ;;  %v1438_v17 = vsub.f32 %v1178_v18, %v134_v47  ;;  %v1441_v59 = vsub.f32 %v1183_v19, %v134_v47  ;;  %v182_v62 = vmul.f32 %v1417_v58, %v1417_v58 }
  0x86   :  { %v139_v63 = vmul.f32 %v1390_v32, %v112_v14  ;;  %v195_v3 = vmul.f32 %v1411_v55, %v1411_v55  ;;  %v236_v1 = vadd.f32 %v193_v9, %v192_v8  ;;  %v183_v11 = vmul.f32 %v1420_v0, %v1420_v0 }
  0x87   :  { %v98_v13 = vpop.xlane.xlu1 %97  ;;  %v239_v16 = vsel %vm73_vm0, %v196_v15, 0.0  ;;  %v184_v18 = vmul.f32 %v1423_v7, %v1423_v7  ;;  %v185_v19 = vmul.f32 %v1438_v17, %v1438_v17  ;;  %v186_v20 = vmul.f32 %v1441_v59, %v1441_v59 }
  0x88   :  { %v137_v22 = vmul.f32 %v1390_v32, %v98_v13  ;;  %v84_v31 = vpop.xlane.xlu0 %83  ;;  %v237_v33 = vadd.f32 %v236_v1, %v194_v10  ;;  %v222_v38 = vadd.f32 %v183_v11, %v182_v62  ;;  %v1459_v40 = vsub.f32 %v1192_v23, %v139_v63 }
  0x89   :  { %v135_v43 = vmul.f32 %v1390_v32, %v84_v31  ;;  %v225_v47 = vsel %vm73_vm0, %v186_v20, 0.0  ;;  %v1464_v8 = vsub.f32 %v1197_v24, %v139_v63  ;;  %v1467_v9 = vsub.f32 %v1202_v25, %v139_v63 }
  0x8a   :  { %v238_v14 = vadd.f32 %v237_v33, %v195_v3  ;;  %v223_v15 = vadd.f32 %v222_v38, %v184_v18  ;;  %v1470_v13 = vsub.f32 %v1210_v28, %v139_v63  ;;  %v1473_v10 = vsub.f32 %v1225_v34, %v139_v63 }
  0x8b   :  { %v207_v23 = vmul.f32 %v1459_v40, %v1459_v40  ;;  %v208_v62 = vmul.f32 %v1464_v8, %v1464_v8  ;;  %v209_v24 = vmul.f32 %v1467_v9, %v1467_v9  ;;  %v1482_v25 = vsub.f32 %v1217_v30, %v137_v22 }
  0x8c   :  { %v240_v3 = vadd.f32 %v239_v16, %v238_v14  ;;  %v224_v1 = vadd.f32 %v223_v15, %v185_v19  ;;  %v210_v28 = vmul.f32 %v1470_v13, %v1470_v13  ;;  %v211_v34 = vmul.f32 %v1473_v10, %v1473_v10 }
  0x8d   :  { %v257_v63 = vadd.f32 %v208_v62, %v207_v23  ;;  %v1489_v11 = vsub.f32 %v1230_v35, %v137_v22  ;;  %v1492_v18 = vsub.f32 %v1235_v36, %v137_v22  ;;  %v1495_v20 = vsub.f32 %v1242_v39, %v137_v22 }
  0x8e   :  { %241 = vadd.xlane.f32.xlu1 %v240_v3  ;;  %v226_v30 = vadd.f32 %v225_v47, %v224_v1  ;;  %v1498_v16 = vsub.f32 %v1259_v44, %v137_v22  ;;  %v197_v19 = vmul.f32 %v1482_v25, %v1482_v25  ;;  %v1504_v31 = vsub.f32 %v1116_v2, %v1393_v37 }
  0x8f   :  { %v258_v35 = vadd.f32 %v257_v63, %v209_v24  ;;  %v198_v36 = vmul.f32 %v1489_v11, %v1489_v11  ;;  %v199_v39 = vmul.f32 %v1492_v18, %v1492_v18  ;;  %v1512_v33 = vsub.f32 %v1121_v4, %v1393_v37  ;;  %v126_v14 = vpop.xlane.xlu1 %125 }
  0x90   :  { %227 = vadd.xlane.f32.xlu2 %v226_v30  ;;  %v119_v44 = vpop.xlane.xlu0 %118  ;;  %v260_v22 = vsel %vm73_vm0, %v211_v34, 0.0  ;;  %v201_v38 = vmul.f32 %v1498_v16, %v1498_v16  ;;  %v1518_v2 = vsub.f32 %v1249_v41, %v135_v43  ;;  %v1521_v47 = vsub.f32 %v1254_v42, %v135_v43 }
  0x91   :  { %v259_v15 = vadd.f32 %v258_v35, %v210_v28  ;;  %v200_v23 = vmul.f32 %v1495_v20, %v1495_v20  ;;  %v243_v4 = vadd.f32 %v198_v36, %v197_v19  ;;  %v1526_v62 = vsub.f32 %v1264_v45, %v135_v43 }
  0x92   :  { %v140_v24 = vmul.f32 %v1390_v32, %v119_v44  ;;  %v1530_v3 = vsub.f32 %v1280_v52, %v135_v43  ;;  %v187_v41 = vmul.f32 %v1518_v2, %v1518_v2  ;;  %v202_v42 = vmul.f32 %v1399_v48, %v1399_v48 }
  0x93   :  { %v261_v1 = vadd.f32 %v260_v22, %v259_v15  ;;  %v244_v28 = vadd.f32 %v243_v4, %v199_v39  ;;  %v1537_v34 = vsub.f32 %v1269_v46, %v135_v43  ;;  %v188_v45 = vmul.f32 %v1521_v47, %v1521_v47 }
  0x94   :  { %v141_v63 = vmul.f32 %v1390_v32, %v126_v14  ;;  %v246_v30 = vsel %vm73_vm0, %v201_v38, 0.0  ;;  %v1545_v52 = vsub.f32 %v1126_v5, %v1393_v37  ;;  %v203_v19 = vmul.f32 %v1433_v12, %v1433_v12 }
  0x95   :  { %v245_v35 = vadd.f32 %v244_v28, %v200_v23  ;;  %v189_v36 = vmul.f32 %v1526_v62, %v1526_v62  ;;  %v191_v46 = vmul.f32 %v1530_v3, %v1530_v3  ;;  %v229_v43 = vadd.f32 %v188_v45, %v187_v41 }
  0x96   :  { %2290 = vst [vmem:[#allocation2_spill] sm:$0xff] %v1545_v52  ;;  %262 = vadd.xlane.f32.xlu1 %v261_v1  ;;  %v204_v39 = vmul.f32 %v1504_v31, %v1504_v31  ;;  %v250_v44 = vadd.f32 %v203_v19, %v202_v42  ;;  %v1556_v22 = vsub.f32 %v1298_v57, %v140_v24 }
  0x97   :  { %v1559_v5 = vsub.f32 %v1311_v61, %v140_v24  ;;  %v247_v37 = vadd.f32 %v246_v30, %v245_v35  ;;  %v190_v38 = vmul.f32 %v1537_v34, %v1537_v34  ;;  %v230_v14 = vadd.f32 %v229_v43, %v189_v36 }
  0x98   :  { %2291 = vst [vmem:[#allocation3_spill] sm:$0xff] %v1556_v22  ;;  %v1564_v15 = vsub.f32 %v1319_v6, %v140_v24  ;;  %v205_v23 = vmul.f32 %v1512_v33, %v1512_v33  ;;  %v1569_v4 = vsub.f32 %v1338_v27, %v140_v24  ;;  %v1572_v57 = vsub.f32 %v1343_v29, %v140_v24 }
  0x99   :  { %2292 = vst [vmem:[#allocation4_spill] sm:$0xff] %v1559_v5  ;;  %v212_v61 = vmul.f32 %v1556_v22, %v1556_v22  ;;  %248 = vadd.xlane.f32.xlu2 %v247_v37  ;;  %v231_v41 = vadd.f32 %v230_v14, %v190_v38  ;;  %v213_v42 = vmul.f32 %v1559_v5, %v1559_v5  ;;  %v232_v27 = vsel %vm73_vm0, %v191_v46, 0.0 }
  0x9a   :  { %2293 = vst [vmem:[#allocation5_spill] sm:$0xff] %v1564_v15  ;;  %v214_v6 = vmul.f32 %v1564_v15, %v1564_v15  ;;  %v1581_v1 = vsub.f32 %v1285_v53, %v141_v63  ;;  %v251_v28 = vadd.f32 %v250_v44, %v204_v39  ;;  %v216_v29 = vmul.f32 %v1572_v57, %v1572_v57 }
  0x9b   :  { %2294 = vst [vmem:[#allocation6_spill] sm:$0xff] %v1569_v4  ;;  %v1587_v24 = vsub.f32 %v1290_v54, %v141_v63  ;;  %v233_v45 = vadd.f32 %v232_v27, %v231_v41  ;;  %v215_v30 = vmul.f32 %v1569_v4, %v1569_v4  ;;  %v264_v19 = vadd.f32 %v213_v42, %v212_v61 }
  0x9c   :  { %2295 = vst [vmem:[#allocation7_spill] sm:$0xff] %v1572_v57  ;;  %v1592_v35 = vsub.f32 %v1306_v60, %v141_v63  ;;  %v206_v53 = vmul.f32 %v1545_v52, %v1545_v52  ;;  %v217_v36 = vmul.f32 %v1581_v1, %v1581_v1  ;;  %v252_v43 = vadd.f32 %v251_v28, %v205_v23 }
  0x9d   :  { %2296 = vst [vmem:[#allocation8_spill] sm:$0xff] %v1581_v1  ;;  %234 = vadd.xlane.f32.xlu0 %v233_v45  ;;  %v265_v46 = vadd.f32 %v264_v19, %v214_v6  ;;  %v218_v54 = vmul.f32 %v1587_v24, %v1587_v24  ;;  %v267_v39 = vsel %vm73_vm0, %v216_v29, 0.0  ;;  %v1602_v37 = vsub.f32 %v1327_v21, %v141_v63  ;;  %v69_v45 = vld [vmem:[%s2273_s2 + $0x38] sm:$0xff]  ;;  %v1626_v19 = vpop.permute.xlu2 %421 }
  0x9e   :  { %2297 = vst [vmem:[#allocation9_spill] sm:$0xff] %v1587_v24  ;;  %v219_v60 = vmul.f32 %v1592_v35, %v1592_v35  ;;  %v253_v14 = vsel %vm73_vm0, %v206_v53, 0.0  ;;  %v1608_v61 = vsub.f32 %v1333_v26, %v141_v63  ;;  %v68_v26 = vld [vmem:[%s2273_s2 + $0x30] sm:$0xff]  ;;  %v67_v63 = vld [vmem:[%s2273_s2 + $0x28] sm:$0xff] }
  0x9f   :  { %2298 = vst [vmem:[#allocation10_spill] sm:$0xff] %v1592_v35  ;;  %v266_v44 = vadd.f32 %v265_v46, %v215_v30  ;;  %v271_v38 = vadd.f32 %v218_v54, %v217_v36  ;;  %v254_v42 = vadd.f32 %v253_v14, %v252_v43  ;;  %v220_v23 = vmul.f32 %v1602_v37, %v1602_v37 }
  0xa0   :  { %2299 = vst [vmem:[#allocation11_spill] sm:$0xff] %v1602_v37  ;;  %v221_v21 = vmul.f32 %v1608_v61, %v1608_v61 }
  0xa1   :  { %2300 = vst [vmem:[#allocation12_spill] sm:$0xff] %v1608_v61  ;;  %v268_v41 = vadd.f32 %v267_v39, %v266_v44  ;;  %v272_v6 = vadd.f32 %v271_v38, %v219_v60 }
  0xa2   :  { %v274_v28 = vsel %vm73_vm0, %v221_v21, 0.0 }
  0xa3   :  { %269 = vadd.xlane.f32.xlu2 %v268_v41  ;;  %v273_v27 = vadd.f32 %v272_v6, %v220_v23  ;;  %v427_v44 = vpop.permute.xlu0 %426 }
  0xa5   :  { %255 = vadd.xlane.f32.xlu0 %v254_v42  ;;  %v275_v29 = vadd.f32 %v274_v28, %v273_v27  ;;  %v1630_v36 = vpop.permute.xlu2 %431 }
  0xa7   :  { %v1624_v30 = vpop.permute.xlu1 %416 }
  0xab   :  { %v1644_v14 = vpop.permute.xlu0 %501 }
  0xad   :  { %276 = vadd.xlane.f32.xlu0 %v275_v29  ;;  %v1634_v54 = vpop.permute.xlu2 %441 }
  0xaf   :  { %526 = vperm.xlu1 %980, %v68_v26   ;;  %v1628_v53 = vpop.permute.xlu1 %436 }
  0xb0   :  { %2301 = vst [vmem:[#allocation13_spill] sm:$0xff] %v1628_v53 }
  0xb3   :  { %v1648_v28 = vpop.permute.xlu0 %516 }
  0xb4   :  { %2304 = vst [vmem:[#allocation16_spill] sm:$0xff] %v1648_v28 }
  0xb5   :  { %v1638_v39 = vpop.permute.xlu2 %451 }
  0xb6   :  { %2303 = vst [vmem:[#allocation15_spill] sm:$0xff] %v1638_v39 }
  0xb7   :  { %v1632_v46 = vpop.permute.xlu1 %446 }
  0xb8   :  { %2302 = vst [vmem:[#allocation14_spill] sm:$0xff] %v1632_v46 }
  0xbb   :  { %521 = vperm.xlu2 %981, %v67_v63  }
  0xbd   :  { %v1642_v38 = vpop.permute.xlu2 %506 }
  0xbf   :  { %v1636_v43 = vpop.permute.xlu1 %496 }
  0xc1   :  { %531 = vperm.xlu0 %982, %v69_v45  }
  0xc7   :  { %v1640_v60 = vpop.permute.xlu1 %511 }
 0x101   :  { %v242_v41 = vpop.xlane.xlu1 %241 }
 0x102   :  { %v280_v42 = vmul.f32 %v242_v41, %v1390_v32 }
 0x103   :  { %v228_v23 = vpop.xlane.xlu2 %227 }
 0x104   :  { %v288_v6 = vadd.f32 1e-05, %v280_v42  ;;  %v278_v21 = vmul.f32 %v228_v23, %v1390_v32 }
 0x106   :  { %985 = vrsqrt.f32 %v288_v6  ;;  %v286_v27 = vadd.f32 1e-05, %v278_v21  ;;  %vm320_vm3 = vweird.f32 %v288_v6 }
 0x108   :  { %987 = vrsqrt.f32 %v286_v27  ;;  %vm300_vm6 = vweird.f32 %v286_v27 }
 0x109   :  { %v263_v29 = vpop.xlane.xlu1 %262 }
 0x10a   :  { %v283_v26 = vmul.f32 %v263_v29, %v1390_v32 }
 0x10c   :  { %v986_v63 = vpop.eup %985  ;;  %v1651_v45 = vadd.f32 1e-05, %v283_v26  ;;  %v249_v39 = vpop.xlane.xlu2 %248 }
 0x10d   :  { %v315_v61 = vmul.f32 %v986_v63, %v288_v6  ;;  %v281_v37 = vmul.f32 %v249_v39, %v1390_v32  ;;  %vm321_vm2 = vweird.f32 %v986_v63 }
 0x10e   :  { %v988_v41 = vpop.eup %987  ;;  %989 = vrsqrt.f32 %v1651_v45  ;;  %vm322_vm5 = vmor %vm320_vm3, %vm321_vm2  ;;  %vm350_vm14 = vweird.f32 %v1651_v45 }
 0x10f   :  { %v316_v42 = vmul.f32 %v986_v63, %v315_v61  ;;  %v295_v23 = vmul.f32 %v988_v41, %v286_v27  ;;  %v1655_v35 = vadd.f32 1e-05, %v281_v37  ;;  %vm301_vm4 = vweird.f32 %v988_v41 }
 0x110   :  { %v235_v21 = vpop.xlane.xlu0 %234  ;;  %vm302_vm7 = vmor %vm300_vm6, %vm301_vm4 }
 0x111   :  { %v317_v24 = vmul.f32 0.5, %v316_v42  ;;  %v296_v1 = vmul.f32 %v988_v41, %v295_v23  ;;  %991 = vrsqrt.f32 %v1655_v35  ;;  %v279_v29 = vmul.f32 %v235_v21, %v1390_v32 }
 0x112   :  { %vm330_vm8 = vweird.f32 %v1655_v35 }
 0x113   :  { %v318_v26 = vsub.f32 1.5, %v317_v24  ;;  %v297_v46 = vmul.f32 0.5, %v296_v1  ;;  %v1661_v39 = vadd.f32 1e-05, %v279_v29 }
 0x114   :  { %v1659_v57 = vpop.eup %989 }
 0x115   :  { %v319_v4 = vmul.f32 %v986_v63, %v318_v26  ;;  %v298_v61 = vsub.f32 1.5, %v297_v46  ;;  %v345_v37 = vmul.f32 %v1659_v57, %v1651_v45  ;;  %993 = vrsqrt.f32 %v1661_v39 }
 0x116   :  { %vm310_vm12 = vweird.f32 %v1661_v39  ;;  %vm351_vm15 = vweird.f32 %v1659_v57 }
 0x117   :  { %v1665_v42 = vpop.eup %991  ;;  %v323_v23 = vsel %vm322_vm5, %v986_v63, %v319_v4  ;;  %v299_v21 = vmul.f32 %v988_v41, %v298_v61  ;;  %v346_v24 = vmul.f32 %v1659_v57, %v345_v37  ;;  %vm352_vm1 = vmor %vm350_vm14, %vm351_vm15 }
 0x118   :  { %v384_v1 = vmul.f32 %v323_v23, %v1402_v49  ;;  %v385_v6 = vmul.f32 %v323_v23, %v1405_v50  ;;  %v386_v46 = vmul.f32 %v323_v23, %v1408_v51  ;;  %v387_v29 = vmul.f32 %v323_v23, %v1411_v55 }
 0x119   :  { %v388_v26 = vmul.f32 %v323_v23, %v1414_v56  ;;  %v303_v27 = vsel %vm302_vm7, %v988_v41, %v299_v21  ;;  %v1674_v15 = vmul.f32 0.5, %v346_v24  ;;  %v1678_v4 = vmul.f32 %v1665_v42, %v1655_v35 }
 0x11a   :  { %v464_v63 = vmul.f32 %v427_v44, %v384_v1  ;;  %v465_v61 = vmul.f32 %v427_v44, %v385_v6  ;;  %v466_v37 = vmul.f32 %v427_v44, %v386_v46  ;;  %v467_v49 = vmul.f32 %v427_v44, %v387_v29 }
 0x11b   :  { %v468_v5 = vmul.f32 %v427_v44, %v388_v26  ;;  %v374_v50 = vmul.f32 %v303_v27, %v1417_v58  ;;  %v375_v51 = vmul.f32 %v303_v27, %v1420_v0  ;;  %v376_v55 = vmul.f32 %v303_v27, %v1423_v7  ;;  %v1695_v24 = vpop.eup %993 }
 0x11c   :  { %v1684_v56 = vadd.f32 %v1642_v38, %v464_v63  ;;  %v1687_v41 = vadd.f32 %v1642_v38, %v465_v61  ;;  %v1690_v23 = vadd.f32 %v1642_v38, %v466_v37  ;;  %v1693_v21 = vadd.f32 %v1642_v38, %v467_v49 }
 0x11d   :  { %v1698_v58 = vadd.f32 %v1642_v38, %v468_v5  ;;  %v377_v0 = vmul.f32 %v303_v27, %v1438_v17  ;;  %v378_v7 = vmul.f32 %v303_v27, %v1441_v59  ;;  %v454_v44 = vmul.f32 %v1624_v30, %v374_v50 }
 0x11e   :  { %v584_v1 = vmul.f32 %v1684_v56, %v1684_v56  ;;  %v585_v6 = vmul.f32 %v1687_v41, %v1687_v41  ;;  %v586_v46 = vmul.f32 %v1690_v23, %v1690_v23  ;;  %v587_v29 = vmul.f32 %v1693_v21, %v1693_v21 }
 0x11f   :  { %v588_v5 = vmul.f32 %v1698_v58, %v1698_v58  ;;  %v455_v17 = vmul.f32 %v1624_v30, %v375_v51  ;;  %v456_v59 = vmul.f32 %v1624_v30, %v376_v55  ;;  %v457_v38 = vmul.f32 %v1624_v30, %v377_v0 }
 0x120   :  { %v624_v26 = vmul.f32 %v584_v1, %v1684_v56  ;;  %v625_v27 = vmul.f32 %v585_v6, %v1687_v41  ;;  %v626_v63 = vmul.f32 %v586_v46, %v1690_v23  ;;  %v627_v61 = vmul.f32 %v587_v29, %v1693_v21 }
 0x121   :  { %v628_v37 = vmul.f32 %v588_v5, %v1698_v58  ;;  %v458_v49 = vmul.f32 %v1624_v30, %v378_v7  ;;  %v1723_v50 = vadd.f32 %v1636_v43, %v454_v44  ;;  %v1726_v51 = vadd.f32 %v1636_v43, %v455_v17 }
 0x122   :  { %v664_v55 = vmul.f32 0.044715, %v624_v26  ;;  %v665_v0 = vmul.f32 0.044715, %v625_v27  ;;  %v666_v22 = vmul.f32 0.044715, %v626_v63  ;;  %v1729_v1 = vadd.f32 %v1636_v43, %v456_v59 }
 0x123   :  { %v667_v6 = vmul.f32 0.044715, %v627_v61  ;;  %v668_v46 = vmul.f32 0.044715, %v628_v37  ;;  %v1732_v29 = vadd.f32 %v1636_v43, %v457_v38  ;;  %v1735_v5 = vadd.f32 %v1636_v43, %v458_v49 }
 0x124   :  { %v704_v30 = vadd.f32 %v664_v55, %v1684_v56  ;;  %v705_v7 = vadd.f32 %v665_v0, %v1687_v41  ;;  %v706_v44 = vadd.f32 %v666_v22, %v1690_v23  ;;  %v574_v17 = vmul.f32 %v1723_v50, %v1723_v50 }
 0x125   :  { %v707_v59 = vadd.f32 %v667_v6, %v1693_v21  ;;  %v708_v26 = vadd.f32 %v668_v46, %v1698_v58  ;;  %v575_v38 = vmul.f32 %v1726_v51, %v1726_v51  ;;  %v576_v43 = vmul.f32 %v1729_v1, %v1729_v1 }
 0x126   :  { %v744_v27 = vmul.f32 0.7978846, %v704_v30  ;;  %v745_v63 = vmul.f32 0.7978846, %v705_v7  ;;  %v746_v61 = vmul.f32 0.7978846, %v706_v44  ;;  %v577_v37 = vmul.f32 %v1732_v29, %v1732_v29 }
 0x127   :  { %v747_v22 = vmul.f32 0.7978846, %v707_v59  ;;  %v748_v49 = vmul.f32 0.7978846, %v708_v26  ;;  %v578_v55 = vmul.f32 %v1735_v5, %v1735_v5  ;;  %v614_v0 = vmul.f32 %v574_v17, %v1723_v50 }
 0x128   :  { %995 = vtanh.f32 %v744_v27  ;;  %v615_v6 = vmul.f32 %v575_v38, %v1726_v51  ;;  %v616_v46 = vmul.f32 %v576_v43, %v1729_v1  ;;  %v617_v28 = vmul.f32 %v577_v37, %v1732_v29 }
 0x129   :  { %997 = vtanh.f32 %v745_v63  ;;  %v618_v30 = vmul.f32 %v578_v55, %v1735_v5  ;;  %v654_v7 = vmul.f32 0.044715, %v614_v0  ;;  %v348_v44 = vsub.f32 1.5, %v1674_v15 }
 0x12a   :  { %999 = vtanh.f32 %v746_v61  ;;  %v655_v59 = vmul.f32 0.044715, %v615_v6  ;;  %v656_v26 = vmul.f32 0.044715, %v616_v46  ;;  %v657_v53 = vmul.f32 0.044715, %v617_v28 }
 0x12b   :  { %1001 = vtanh.f32 %v747_v22  ;;  %v658_v52 = vmul.f32 0.044715, %v618_v30  ;;  %v694_v17 = vadd.f32 %v654_v7, %v1723_v50  ;;  %v326_v15 = vmul.f32 %v1665_v42, %v1678_v4 }
 0x12c   :  { %1003 = vtanh.f32 %v748_v49  ;;  %v695_v38 = vadd.f32 %v655_v59, %v1726_v51  ;;  %v696_v43 = vadd.f32 %v656_v26, %v1729_v1  ;;  %v697_v27 = vadd.f32 %v657_v53, %v1732_v29 }
 0x12d   :  { %v698_v63 = vadd.f32 %v658_v52, %v1735_v5  ;;  %v734_v37 = vmul.f32 0.7978846, %v694_v17  ;;  %v1767_v49 = vmul.f32 %v1659_v57, %v348_v44  ;;  %v327_v53 = vmul.f32 0.5, %v326_v15 }
 0x12e   :  { %v996_v28 = vpop.eup %995  ;;  %v735_v61 = vmul.f32 0.7978846, %v695_v38  ;;  %v736_v22 = vmul.f32 0.7978846, %v696_v43  ;;  %v737_v55 = vmul.f32 0.7978846, %v697_v27  ;;  %vm331_vm9 = vweird.f32 %v1665_v42 }
 0x12f   :  { %v998_v0 = vpop.eup %997  ;;  %v824_v6 = vadd.f32 1.0, %v996_v28  ;;  %v738_v46 = vmul.f32 0.7978846, %v698_v63  ;;  %1005 = vtanh.f32 %v734_v37  ;;  %v305_v4 = vmul.f32 %v1695_v24, %v1661_v39  ;;  %v270_v63 = vpop.xlane.xlu2 %269  ;;  %vm332_vm10 = vmor %vm330_vm8, %vm331_vm9 }
 0x130   :  { %v1000_v30 = vpop.eup %999  ;;  %v825_v52 = vadd.f32 1.0, %v998_v0  ;;  %1007 = vtanh.f32 %v735_v61  ;;  %v328_v17 = vsub.f32 1.5, %v327_v53  ;;  %vm311_vm11 = vweird.f32 %v1695_v24 }
 0x131   :  { %v1002_v7 = vpop.eup %1001  ;;  %v826_v59 = vadd.f32 1.0, %v1000_v30  ;;  %v864_v26 = vmul.f32 0.5, %v824_v6  ;;  %1009 = vtanh.f32 %v736_v22  ;;  %v306_v27 = vmul.f32 %v1695_v24, %v305_v4  ;;  %vm312_vm13 = vmor %vm310_vm12, %vm311_vm11 }
 0x132   :  { %v1004_v44 = vpop.eup %1003  ;;  %v827_v38 = vadd.f32 1.0, %v1002_v7  ;;  %v865_v43 = vmul.f32 0.5, %v825_v52  ;;  %1011 = vtanh.f32 %v737_v55  ;;  %v329_v30 = vmul.f32 %v1665_v42, %v328_v17 }
 0x133   :  { %v828_v37 = vadd.f32 1.0, %v1004_v44  ;;  %v866_v15 = vmul.f32 0.5, %v826_v59  ;;  %v904_v28 = vmul.f32 %v864_v26, %v1684_v56  ;;  %1013 = vtanh.f32 %v738_v46 }
 0x134   :  { %v867_v61 = vmul.f32 0.5, %v827_v38  ;;  %v905_v0 = vmul.f32 %v865_v43, %v1687_v41  ;;  %v307_v6 = vmul.f32 0.5, %v306_v27  ;;  %v1786_v56 = vmul.f32 %v270_v63, %v1390_v32 }
 0x135   :  { %v1006_v22 = vpop.eup %1005  ;;  %v868_v53 = vmul.f32 0.5, %v828_v37  ;;  %v906_v7 = vmul.f32 %v866_v15, %v1690_v23  ;;  %944 = vst [vmem:[%s2274_s3 + $0x50] sm:$0xff] %v904_v28  ;;  %v333_v46 = vsel %vm332_vm10, %v1665_v42, %v329_v30 }
 0x136   :  { %v1008_v41 = vpop.eup %1007  ;;  %v907_v55 = vmul.f32 %v867_v61, %v1693_v21  ;;  %945 = vst [vmem:[%s2274_s3 + $0x58] sm:$0xff] %v905_v0  ;;  %v814_v23 = vadd.f32 1.0, %v1006_v22  ;;  %v308_v52 = vsub.f32 1.5, %v307_v6  ;;  %v389_v21 = vmul.f32 %v333_v46, %v1482_v25 }
 0x137   :  { %v1010_v35 = vpop.eup %1009  ;;  %v908_v4 = vmul.f32 %v868_v53, %v1698_v58  ;;  %946 = vst [vmem:[%s2274_s3 + $0x60] sm:$0xff] %v906_v7  ;;  %v815_v59 = vadd.f32 1.0, %v1008_v41  ;;  %v390_v26 = vmul.f32 %v333_v46, %v1489_v11  ;;  %v391_v38 = vmul.f32 %v333_v46, %v1492_v18  ;;  %v256_v53 = vpop.xlane.xlu0 %255 }
 0x138   :  { %v1012_v17 = vpop.eup %1011  ;;  %947 = vst [vmem:[%s2274_s3 + $0x68] sm:$0xff] %v907_v55  ;;  %v816_v42 = vadd.f32 1.0, %v1010_v35  ;;  %v854_v44 = vmul.f32 0.5, %v814_v23  ;;  %v392_v58 = vmul.f32 %v333_v46, %v1495_v20  ;;  %v393_v11 = vmul.f32 %v333_v46, %v1498_v16 }
 0x139   :  { %v1014_v43 = vpop.eup %1013  ;;  %948 = vst.msk [vmem:[%s2274_s3 + $0x70] sm:$0xff] %vm73_vm0, %v908_v4  ;;  %v817_v25 = vadd.f32 1.0, %v1012_v17  ;;  %v855_v27 = vmul.f32 0.5, %v815_v59  ;;  %v469_v63 = vmul.f32 %v1630_v36, %v389_v21  ;;  %v470_v18 = vmul.f32 %v1630_v36, %v390_v26 }
 0x13a   :  { %v818_v37 = vadd.f32 1.0, %v1014_v43  ;;  %v856_v15 = vmul.f32 0.5, %v816_v42  ;;  %v894_v28 = vmul.f32 %v854_v44, %v1723_v50  ;;  %v471_v0 = vmul.f32 %v1630_v36, %v391_v38 }
 0x13b   :  { %v857_v61 = vmul.f32 0.5, %v817_v25  ;;  %v895_v20 = vmul.f32 %v855_v27, %v1726_v51  ;;  %v472_v30 = vmul.f32 %v1630_v36, %v392_v58  ;;  %v473_v16 = vmul.f32 %v1630_v36, %v393_v11 }
 0x13c   :  { %v858_v6 = vmul.f32 0.5, %v818_v37  ;;  %v896_v22 = vmul.f32 %v856_v15, %v1729_v1  ;;  %934 = vst [vmem:[%s2274_s3] sm:$0xff] %v894_v28  ;;  %v1822_v50 = vadd.f32 %v1640_v60, %v469_v63  ;;  %v1829_v51 = vadd.f32 %v1640_v60, %v470_v18 }
 0x13d   :  { %v897_v7 = vmul.f32 %v857_v61, %v1732_v29  ;;  %935 = vst [vmem:[%s2274_s3 + $0x8] sm:$0xff] %v895_v20  ;;  %v1832_v1 = vadd.f32 %v1640_v60, %v471_v0  ;;  %v1835_v41 = vadd.f32 %v1640_v60, %v472_v30  ;;  %v1842_v29 = vadd.f32 %v1640_v60, %v473_v16 }
 0x13e   :  { %v898_v36 = vmul.f32 %v858_v6, %v1735_v5  ;;  %936 = vst [vmem:[%s2274_s3 + $0x10] sm:$0xff] %v896_v22  ;;  %v589_v55 = vmul.f32 %v1822_v50, %v1822_v50  ;;  %v309_v23 = vmul.f32 %v1695_v24, %v308_v52  ;;  %v590_v46 = vmul.f32 %v1829_v51, %v1829_v51 }
 0x13f   :  { %937 = vst [vmem:[%s2274_s3 + $0x18] sm:$0xff] %v897_v7  ;;  %v591_v5 = vmul.f32 %v1832_v1, %v1832_v1  ;;  %v592_v35 = vmul.f32 %v1835_v41, %v1835_v41  ;;  %v282_v60 = vmul.f32 %v256_v53, %v1390_v32  ;;  %v593_v52 = vmul.f32 %v1842_v29, %v1842_v29 }
 0x140   :  { %938 = vst.msk [vmem:[%s2274_s3 + $0x20] sm:$0xff] %vm73_vm0, %v898_v36  ;;  %v629_v4 = vmul.f32 %v589_v55, %v1822_v50  ;;  %v313_v59 = vsel %vm312_vm13, %v1695_v24, %v309_v23  ;;  %v1872_v39 = vadd.f32 1e-05, %v1786_v56  ;;  %v630_v21 = vmul.f32 %v590_v46, %v1829_v51 }
 0x141   :  { %v631_v26 = vmul.f32 %v591_v5, %v1832_v1  ;;  %v632_v17 = vmul.f32 %v592_v35, %v1835_v41  ;;  %v379_v42 = vmul.f32 %v313_v59, %v1518_v2  ;;  %v633_v44 = vmul.f32 %v593_v52, %v1842_v29 }
 0x142   :  { %v669_v38 = vmul.f32 0.044715, %v629_v4  ;;  %v380_v58 = vmul.f32 %v313_v59, %v1521_v47  ;;  %v381_v43 = vmul.f32 %v313_v59, %v1526_v62  ;;  %v670_v25 = vmul.f32 0.044715, %v630_v21 }
 0x143   :  { %v671_v24 = vmul.f32 0.044715, %v631_v26  ;;  %v672_v27 = vmul.f32 0.044715, %v632_v17  ;;  %v382_v56 = vmul.f32 %v313_v59, %v1537_v34  ;;  %v673_v11 = vmul.f32 0.044715, %v633_v44 }
 0x144   :  { %v709_v63 = vadd.f32 %v669_v38, %v1822_v50  ;;  %v383_v37 = vmul.f32 %v313_v59, %v1530_v3  ;;  %v459_v15 = vmul.f32 %v1626_v19, %v379_v42  ;;  %v710_v2 = vadd.f32 %v670_v25, %v1829_v51 }
 0x145   :  { %v711_v28 = vadd.f32 %v671_v24, %v1832_v1  ;;  %v712_v47 = vadd.f32 %v672_v27, %v1835_v41  ;;  %v460_v62 = vmul.f32 %v1626_v19, %v380_v58  ;;  %v713_v18 = vadd.f32 %v673_v11, %v1842_v29 }
 0x146   :  { %v749_v61 = vmul.f32 0.7978846, %v709_v63  ;;  %v461_v34 = vmul.f32 %v1626_v19, %v381_v43  ;;  %v462_v20 = vmul.f32 %v1626_v19, %v382_v56  ;;  %v750_v0 = vmul.f32 0.7978846, %v710_v2 }
 0x147   :  { %v751_v30 = vmul.f32 0.7978846, %v711_v28  ;;  %v752_v3 = vmul.f32 0.7978846, %v712_v47  ;;  %v463_v6 = vmul.f32 %v1626_v19, %v383_v37  ;;  %v753_v22 = vmul.f32 0.7978846, %v713_v18 }
 0x148   :  { %1015 = vtanh.f32 %v749_v61  ;;  %v1894_v16 = vadd.f32 %v1644_v14, %v459_v15  ;;  %v1897_v53 = vadd.f32 %v1644_v14, %v460_v62  ;;  %v1900_v7 = vadd.f32 %v1644_v14, %v461_v34 }
 0x149   :  { %1017 = vtanh.f32 %v750_v0  ;;  %v1903_v36 = vadd.f32 %v1644_v14, %v462_v20  ;;  %v1906_v55 = vadd.f32 %v1644_v14, %v463_v6  ;;  %v1912_v46 = vadd.f32 1e-05, %v282_v60 }
 0x14a   :  { %1019 = vtanh.f32 %v751_v30  ;;  %v579_v19 = vmul.f32 %v1894_v16, %v1894_v16  ;;  %v580_v23 = vmul.f32 %v1897_v53, %v1897_v53  ;;  %v581_v5 = vmul.f32 %v1900_v7, %v1900_v7 }
 0x14b   :  { %1021 = vtanh.f32 %v752_v3  ;;  %v582_v14 = vmul.f32 %v1903_v36, %v1903_v36  ;;  %v583_v35 = vmul.f32 %v1906_v55, %v1906_v55  ;;  %v1926_v52 = vsel %vm352_vm1, %v1659_v57, %v1767_v49 }
 0x14c   :  { %1023 = vtanh.f32 %v753_v22  ;;  %v619_v60 = vmul.f32 %v579_v19, %v1894_v16  ;;  %v620_v45 = vmul.f32 %v580_v23, %v1897_v53  ;;  %v621_v4 = vmul.f32 %v581_v5, %v1900_v7 }
 0x14d   :  { %v622_v59 = vmul.f32 %v582_v14, %v1903_v36  ;;  %v623_v21 = vmul.f32 %v583_v35, %v1906_v55  ;;  %1025 = vrsqrt.f32 %v1872_v39  ;;  %v399_v58 = vmul.f32 %v1926_v52, %v1459_v40 }
 0x14e   :  { %v1016_v26 = vpop.eup %1015  ;;  %v659_v17 = vmul.f32 0.044715, %v619_v60  ;;  %v660_v42 = vmul.f32 0.044715, %v620_v45  ;;  %1027 = vrsqrt.f32 %v1912_v46  ;;  %v661_v44 = vmul.f32 0.044715, %v621_v4 }
 0x14f   :  { %v1018_v57 = vpop.eup %1017  ;;  %v829_v49 = vadd.f32 1.0, %v1016_v26  ;;  %v662_v38 = vmul.f32 0.044715, %v622_v59  ;;  %v663_v24 = vmul.f32 0.044715, %v623_v21  ;;  %v403_v59 = vmul.f32 %v1926_v52, %v1473_v10 }
 0x150   :  { %v1020_v43 = vpop.eup %1019  ;;  %v830_v25 = vadd.f32 1.0, %v1018_v57  ;;  %v699_v27 = vadd.f32 %v659_v17, %v1894_v16  ;;  %v700_v56 = vadd.f32 %v660_v42, %v1897_v53  ;;  %v701_v15 = vadd.f32 %v661_v44, %v1900_v7  ;;  %v522_v42 = vpop.permute.xlu2 %521 }
 0x151   :  { %v1022_v11 = vpop.eup %1021  ;;  %v831_v63 = vadd.f32 1.0, %v1020_v43  ;;  %v869_v37 = vmul.f32 0.5, %v829_v49  ;;  %v702_v2 = vadd.f32 %v662_v38, %v1903_v36  ;;  %v703_v18 = vadd.f32 %v663_v24, %v1906_v55 }
 0x152   :  { %v1024_v28 = vpop.eup %1023  ;;  %v832_v47 = vadd.f32 1.0, %v1022_v11  ;;  %v870_v62 = vmul.f32 0.5, %v830_v25  ;;  %v739_v40 = vmul.f32 0.7978846, %v699_v27  ;;  %v740_v30 = vmul.f32 0.7978846, %v700_v56 }
 0x153   :  { %v1942_v61 = vpop.eup %1025  ;;  %v833_v34 = vadd.f32 1.0, %v1024_v28  ;;  %v871_v20 = vmul.f32 0.5, %v831_v63  ;;  %v909_v0 = vmul.f32 %v869_v37, %v1822_v50  ;;  %v741_v19 = vmul.f32 0.7978846, %v701_v15 }
 0x154   :  { %v1945_v3 = vpop.eup %1027  ;;  %v872_v6 = vmul.f32 0.5, %v832_v47  ;;  %v910_v22 = vmul.f32 %v870_v62, %v1829_v51  ;;  %v742_v23 = vmul.f32 0.7978846, %v702_v2  ;;  %v743_v35 = vmul.f32 0.7978846, %v703_v18 }
 0x155   :  { %v873_v5 = vmul.f32 0.5, %v833_v34  ;;  %v911_v14 = vmul.f32 %v871_v20, %v1832_v1  ;;  %949 = vst [vmem:[%s2274_s3 + $0x78] sm:$0xff] %v909_v0  ;;  %1029 = vtanh.f32 %v739_v40  ;;  %v355_v50 = vmul.f32 %v1942_v61, %v1872_v39 }
 0x156   :  { %v912_v60 = vmul.f32 %v872_v6, %v1835_v41  ;;  %950 = vst [vmem:[%s2274_s3 + $0x80] sm:$0xff] %v910_v22  ;;  %1031 = vtanh.f32 %v740_v30  ;;  %v400_v51 = vmul.f32 %v1926_v52, %v1464_v8  ;;  %v335_v41 = vmul.f32 %v1945_v3, %v1912_v46 }
 0x157   :  { %v913_v1 = vmul.f32 %v873_v5, %v1842_v29  ;;  %951 = vst [vmem:[%s2274_s3 + $0x88] sm:$0xff] %v911_v14  ;;  %1033 = vtanh.f32 %v741_v19  ;;  %v356_v45 = vmul.f32 %v1942_v61, %v355_v50  ;;  %v401_v8 = vmul.f32 %v1926_v52, %v1467_v9 }
 0x158   :  { %952 = vst [vmem:[%s2274_s3 + $0x90] sm:$0xff] %v912_v60  ;;  %1035 = vtanh.f32 %v742_v23  ;;  %v402_v29 = vmul.f32 %v1926_v52, %v1470_v13  ;;  %v336_v4 = vmul.f32 %v1945_v3, %v335_v41  ;;  %v479_v21 = vmul.f32 %v1634_v54, %v399_v58  ;;  %v2307_v41 = vld [vmem:[#allocation16_spill] sm:$0xff] }
 0x159   :  { %953 = vst.msk [vmem:[%s2274_s3 + $0x98] sm:$0xff] %vm73_vm0, %v913_v1  ;;  %1037 = vtanh.f32 %v743_v35  ;;  %v357_v26 = vmul.f32 0.5, %v356_v45  ;;  %v480_v17 = vmul.f32 %v1634_v54, %v400_v51  ;;  %v481_v9 = vmul.f32 %v1634_v54, %v401_v8  ;;  %v2305_v35 = vld [vmem:[#allocation2_spill] sm:$0xff] }
 0x15a   :  { %v482_v13 = vmul.f32 %v1634_v54, %v402_v29  ;;  %v337_v49 = vmul.f32 0.5, %v336_v4  ;;  %vm340_vm2 = vweird.f32 %v1912_v46  ;;  %v483_v44 = vmul.f32 %v1634_v54, %v403_v59 }
 0x15b   :  { %v1030_v57 = vpop.eup %1029  ;;  %v1987_v38 = vadd.f32 %v522_v42, %v479_v21  ;;  %v358_v52 = vsub.f32 1.5, %v357_v26  ;;  %vm341_vm3 = vweird.f32 %v1945_v3  ;;  %v1990_v58 = vadd.f32 %v522_v42, %v480_v17 }
 0x15c   :  { %v1032_v43 = vpop.eup %1031  ;;  %v819_v10 = vadd.f32 1.0, %v1030_v57  ;;  %v338_v27 = vsub.f32 1.5, %v337_v49  ;;  %v1992_v56 = vadd.f32 %v522_v42, %v481_v9  ;;  %v1994_v11 = vadd.f32 %v522_v42, %v482_v13  ;;  %vm342_vm5 = vmor %vm340_vm2, %vm341_vm3 }
 0x15d   :  { %v1034_v25 = vpop.eup %1033  ;;  %v820_v24 = vadd.f32 1.0, %v1032_v43  ;;  %v1997_v54 = vmul.f32 %v1942_v61, %v358_v52  ;;  %v1999_v2 = vadd.f32 %v522_v42, %v483_v44  ;;  %v599_v40 = vmul.f32 %v1987_v38, %v1987_v38 }
 0x15e   :  { %v1036_v63 = vpop.eup %1035  ;;  %v821_v37 = vadd.f32 1.0, %v1034_v25  ;;  %v859_v15 = vmul.f32 0.5, %v819_v10  ;;  %v339_v18 = vmul.f32 %v1945_v3, %v338_v27  ;;  %vm361_vm4 = vweird.f32 %v1942_v61 }
 0x15f   :  { %v1038_v28 = vpop.eup %1037  ;;  %v822_v47 = vadd.f32 1.0, %v1036_v63  ;;  %v860_v62 = vmul.f32 0.5, %v820_v24  ;;  %v600_v30 = vmul.f32 %v1990_v58, %v1990_v58  ;;  %v601_v23 = vmul.f32 %v1992_v56, %v1992_v56 }
 0x160   :  { %v823_v34 = vadd.f32 1.0, %v1038_v28  ;;  %v861_v20 = vmul.f32 0.5, %v821_v37  ;;  %v899_v0 = vmul.f32 %v859_v15, %v1894_v16  ;;  %v343_v19 = vsel %vm342_vm5, %v1945_v3, %v339_v18 }
 0x161   :  { %v862_v6 = vmul.f32 0.5, %v822_v47  ;;  %v900_v22 = vmul.f32 %v860_v62, %v1897_v53  ;;  %vm360_vm6 = vweird.f32 %v1872_v39  ;;  %v394_v46 = vmul.f32 %v343_v19, %v1399_v48  ;;  %v2306_v48 = vld [vmem:[#allocation13_spill] sm:$0xff]  ;;  %v277_v39 = vpop.xlane.xlu0 %276 }
 0x162   :  { %v863_v5 = vmul.f32 0.5, %v823_v34  ;;  %v901_v16 = vmul.f32 %v861_v20, %v1900_v7  ;;  %939 = vst [vmem:[%s2274_s3 + $0x28] sm:$0xff] %v899_v0  ;;  %v395_v14 = vmul.f32 %v343_v19, %v1433_v12  ;;  %v396_v3 = vmul.f32 %v343_v19, %v1504_v31  ;;  %vm362_vm7 = vmor %vm360_vm6, %vm361_vm4 }
 0x163   :  { %v902_v53 = vmul.f32 %v862_v6, %v1903_v36  ;;  %940 = vst [vmem:[%s2274_s3 + $0x30] sm:$0xff] %v900_v22  ;;  %v397_v7 = vmul.f32 %v343_v19, %v1512_v33  ;;  %v398_v60 = vmul.f32 %v343_v19, %v2305_v35  ;;  %v474_v12 = vmul.f32 %v2306_v48, %v394_v46 }
 0x164   :  { %v903_v50 = vmul.f32 %v863_v5, %v1906_v55  ;;  %941 = vst [vmem:[%s2274_s3 + $0x38] sm:$0xff] %v901_v16  ;;  %v475_v36 = vmul.f32 %v2306_v48, %v395_v14  ;;  %v602_v51 = vmul.f32 %v1994_v11, %v1994_v11  ;;  %v476_v31 = vmul.f32 %v2306_v48, %v396_v3  ;;  %v2308_v3 = vld [vmem:[#allocation3_spill] sm:$0xff] }
 0x165   :  { %942 = vst [vmem:[%s2274_s3 + $0x40] sm:$0xff] %v902_v53  ;;  %v477_v33 = vmul.f32 %v2306_v48, %v397_v7  ;;  %v478_v55 = vmul.f32 %v2306_v48, %v398_v60  ;;  %v603_v1 = vmul.f32 %v1999_v2, %v1999_v2  ;;  %v2051_v45 = vadd.f32 %v2307_v41, %v474_v12  ;;  %v2309_v48 = vld [vmem:[#allocation4_spill] sm:$0xff] }
 0x166   :  { %943 = vst.msk [vmem:[%s2274_s3 + $0x48] sm:$0xff] %vm73_vm0, %v903_v50  ;;  %v2054_v8 = vadd.f32 %v2307_v41, %v475_v36  ;;  %v639_v29 = vmul.f32 %v599_v40, %v1987_v38  ;;  %v640_v4 = vmul.f32 %v600_v30, %v1990_v58  ;;  %v2059_v59 = vadd.f32 %v2307_v41, %v476_v31 }
 0x167   :  { %v2062_v21 = vadd.f32 %v2307_v41, %v477_v33  ;;  %v2065_v26 = vadd.f32 %v2307_v41, %v478_v55  ;;  %v641_v17 = vmul.f32 %v601_v23, %v1992_v56  ;;  %v594_v9 = vmul.f32 %v2051_v45, %v2051_v45 }
 0x168   :  { %v595_v13 = vmul.f32 %v2054_v8, %v2054_v8  ;;  %v642_v42 = vmul.f32 %v602_v51, %v1994_v11  ;;  %v643_v57 = vmul.f32 %v603_v1, %v1999_v2  ;;  %v596_v49 = vmul.f32 %v2059_v59, %v2059_v59  ;;  %v2310_v1 = vld [vmem:[#allocation5_spill] sm:$0xff] }
 0x169   :  { %v597_v44 = vmul.f32 %v2062_v21, %v2062_v21  ;;  %v598_v43 = vmul.f32 %v2065_v26, %v2065_v26  ;;  %v679_v10 = vmul.f32 0.044715, %v639_v29  ;;  %v634_v52 = vmul.f32 %v594_v9, %v2051_v45  ;;  %v2311_v29 = vld [vmem:[#allocation6_spill] sm:$0xff] }
 0x16a   :  { %v635_v25 = vmul.f32 %v595_v13, %v2054_v8  ;;  %v680_v24 = vmul.f32 0.044715, %v640_v4  ;;  %v681_v27 = vmul.f32 0.044715, %v641_v17  ;;  %v636_v63 = vmul.f32 %v596_v49, %v2059_v59  ;;  %v2312_v4 = vld [vmem:[#allocation7_spill] sm:$0xff]  ;;  %v2313_v9 = vld [vmem:[#allocation14_spill] sm:$0xff] }
 0x16b   :  { %v637_v37 = vmul.f32 %v597_v44, %v2062_v21  ;;  %v638_v15 = vmul.f32 %v598_v43, %v2065_v26  ;;  %v682_v28 = vmul.f32 0.044715, %v642_v42  ;;  %v363_v47 = vsel %vm362_vm7, %v1942_v61, %v1997_v54 }
 0x16c   :  { %v674_v62 = vmul.f32 0.044715, %v634_v52  ;;  %v675_v18 = vmul.f32 0.044715, %v635_v25  ;;  %v683_v40 = vmul.f32 0.044715, %v643_v57  ;;  %v719_v30 = vadd.f32 %v679_v10, %v1987_v38  ;;  %v527_v57 = vpop.permute.xlu1 %526 }
 0x16d   :  { %v676_v34 = vmul.f32 0.044715, %v636_v63  ;;  %v677_v20 = vmul.f32 0.044715, %v637_v37  ;;  %v678_v0 = vmul.f32 0.044715, %v638_v15  ;;  %v720_v19 = vadd.f32 %v680_v24, %v1990_v58 }
 0x16e   :  { %v714_v6 = vadd.f32 %v674_v62, %v2051_v45  ;;  %v715_v22 = vadd.f32 %v675_v18, %v2054_v8  ;;  %v721_v23 = vadd.f32 %v681_v27, %v1992_v56  ;;  %v722_v16 = vadd.f32 %v682_v28, %v1994_v11 }
 0x16f   :  { %v716_v5 = vadd.f32 %v676_v34, %v2059_v59  ;;  %v717_v61 = vadd.f32 %v677_v20, %v2062_v21  ;;  %v718_v54 = vadd.f32 %v678_v0, %v2065_v26  ;;  %v285_v53 = vmul.f32 %v277_v39, %v1390_v32 }
 0x170   :  { %v754_v46 = vmul.f32 0.7978846, %v714_v6  ;;  %v755_v14 = vmul.f32 0.7978846, %v715_v22  ;;  %v404_v7 = vmul.f32 %v363_v47, %v2308_v3  ;;  %v723_v50 = vadd.f32 %v683_v40, %v1999_v2 }
 0x171   :  { %v756_v35 = vmul.f32 0.7978846, %v716_v5  ;;  %v757_v60 = vmul.f32 0.7978846, %v717_v61  ;;  %v405_v12 = vmul.f32 %v363_v47, %v2309_v48  ;;  %v758_v36 = vmul.f32 0.7978846, %v718_v54 }
 0x172   :  { %1039 = vtanh.f32 %v754_v46  ;;  %v759_v51 = vmul.f32 0.7978846, %v719_v30  ;;  %v760_v31 = vmul.f32 0.7978846, %v720_v19  ;;  %v761_v33 = vmul.f32 0.7978846, %v721_v23 }
 0x173   :  { %1041 = vtanh.f32 %v755_v14  ;;  %v762_v55 = vmul.f32 0.7978846, %v722_v16  ;;  %v406_v41 = vmul.f32 %v363_v47, %v2310_v1  ;;  %v407_v32 = vmul.f32 %v363_v47, %v2311_v29 }
 0x174   :  { %1043 = vtanh.f32 %v756_v35  ;;  %v408_v17 = vmul.f32 %v363_v47, %v2312_v4  ;;  %v484_v13 = vmul.f32 %v2313_v9, %v404_v7  ;;  %v763_v42 = vmul.f32 0.7978846, %v723_v50 }
 0x175   :  { %1045 = vtanh.f32 %v757_v60  ;;  %v485_v49 = vmul.f32 %v2313_v9, %v405_v12  ;;  %v486_v44 = vmul.f32 %v2313_v9, %v406_v41  ;;  %v487_v43 = vmul.f32 %v2313_v9, %v407_v32 }
 0x176   :  { %1047 = vtanh.f32 %v758_v36  ;;  %v488_v10 = vmul.f32 %v2313_v9, %v408_v17  ;;  %v2112_v52 = vadd.f32 %v527_v57, %v484_v13  ;;  %v2114_v25 = vadd.f32 1e-05, %v285_v53 }
 0x177   :  { %1049 = vtanh.f32 %v759_v51  ;;  %v2116_v24 = vadd.f32 %v527_v57, %v485_v49  ;;  %v2118_v27 = vadd.f32 %v527_v57, %v486_v44  ;;  %v2120_v37 = vadd.f32 %v527_v57, %v487_v43 }
 0x178   :  { %v1040_v63 = vpop.eup %1039  ;;  %1051 = vtanh.f32 %v760_v31  ;;  %v2122_v15 = vadd.f32 %v527_v57, %v488_v10  ;;  %v604_v28 = vmul.f32 %v2112_v52, %v2112_v52  ;;  %vm370_vm9 = vweird.f32 %v2114_v25 }
 0x179   :  { %v1042_v47 = vpop.eup %1041  ;;  %v834_v62 = vadd.f32 1.0, %v1040_v63  ;;  %1053 = vtanh.f32 %v761_v33  ;;  %v605_v18 = vmul.f32 %v2116_v24, %v2116_v24  ;;  %v606_v40 = vmul.f32 %v2118_v27, %v2118_v27 }
 0x17a   :  { %v1044_v34 = vpop.eup %1043  ;;  %v835_v20 = vadd.f32 1.0, %v1042_v47  ;;  %1055 = vtanh.f32 %v762_v55  ;;  %v607_v0 = vmul.f32 %v2120_v37, %v2120_v37  ;;  %v608_v30 = vmul.f32 %v2122_v15, %v2122_v15 }
 0x17b   :  { %v1046_v39 = vpop.eup %1045  ;;  %v836_v6 = vadd.f32 1.0, %v1044_v34  ;;  %v874_v22 = vmul.f32 0.5, %v834_v62  ;;  %1057 = vtanh.f32 %v763_v42  ;;  %v644_v19 = vmul.f32 %v604_v28, %v2112_v52 }
 0x17c   :  { %v1048_v23 = vpop.eup %1047  ;;  %v837_v5 = vadd.f32 1.0, %v1046_v39  ;;  %v875_v61 = vmul.f32 0.5, %v835_v20  ;;  %1059 = vrsqrt.f32 %v2114_v25  ;;  %v645_v54 = vmul.f32 %v605_v18, %v2116_v24 }
 0x17d   :  { %v1050_v16 = vpop.eup %1049  ;;  %v838_v46 = vadd.f32 1.0, %v1048_v23  ;;  %v876_v14 = vmul.f32 0.5, %v836_v6  ;;  %v914_v53 = vmul.f32 %v874_v22, %v2051_v45  ;;  %v646_v3 = vmul.f32 %v606_v40, %v2118_v27  ;;  %v2314_v23 = vld [vmem:[#allocation8_spill] sm:$0xff] }
 0x17e   :  { %v1052_v7 = vpop.eup %1051  ;;  %v877_v35 = vmul.f32 0.5, %v837_v5  ;;  %v915_v60 = vmul.f32 %v875_v61, %v2054_v8  ;;  %v839_v50 = vadd.f32 1.0, %v1050_v16  ;;  %v647_v48 = vmul.f32 %v607_v0, %v2120_v37  ;;  %v2315_v61 = vld [vmem:[#allocation9_spill] sm:$0xff]  ;;  %v2316_v16 = vld [vmem:[#allocation10_spill] sm:$0xff] }
 0x17f   :  { %v1054_v12 = vpop.eup %1053  ;;  %v878_v36 = vmul.f32 0.5, %v838_v46  ;;  %v916_v51 = vmul.f32 %v876_v14, %v2059_v59  ;;  %954 = vst [vmem:[%s2274_s3 + $0xa0] sm:$0xff] %v914_v53  ;;  %v840_v31 = vadd.f32 1.0, %v1052_v7  ;;  %v648_v45 = vmul.f32 %v608_v30, %v2122_v15  ;;  %v2317_v14 = vld [vmem:[#allocation11_spill] sm:$0xff]  ;;  %v2318_v7 = vld [vmem:[#allocation12_spill] sm:$0xff] }
 0x180   :  { %v1056_v33 = vpop.eup %1055  ;;  %v917_v55 = vmul.f32 %v877_v35, %v2062_v21  ;;  %955 = vst [vmem:[%s2274_s3 + $0xa8] sm:$0xff] %v915_v60  ;;  %v841_v8 = vadd.f32 1.0, %v1054_v12  ;;  %v879_v1 = vmul.f32 0.5, %v839_v50  ;;  %v684_v41 = vmul.f32 0.044715, %v644_v19 }
 0x181   :  { %v1058_v29 = vpop.eup %1057  ;;  %v918_v59 = vmul.f32 %v878_v36, %v2065_v26  ;;  %956 = vst [vmem:[%s2274_s3 + $0xb0] sm:$0xff] %v916_v51  ;;  %v842_v32 = vadd.f32 1.0, %v1056_v33  ;;  %v880_v4 = vmul.f32 0.5, %v840_v31  ;;  %v685_v17 = vmul.f32 0.044715, %v645_v54 }
 0x182   :  { %v1060_v9 = vpop.eup %1059  ;;  %957 = vst [vmem:[%s2274_s3 + $0xb8] sm:$0xff] %v917_v55  ;;  %v843_v21 = vadd.f32 1.0, %v1058_v29  ;;  %v881_v13 = vmul.f32 0.5, %v841_v8  ;;  %v919_v42 = vmul.f32 %v879_v1, %v1987_v38  ;;  %v686_v57 = vmul.f32 0.044715, %v646_v3  ;;  %v532_v55 = vpop.permute.xlu0 %531 }
 0x183   :  { %958 = vst.msk [vmem:[%s2274_s3 + $0xc0] sm:$0xff] %vm73_vm0, %v918_v59  ;;  %v882_v26 = vmul.f32 0.5, %v842_v32  ;;  %v920_v49 = vmul.f32 %v880_v4, %v1990_v58  ;;  %v365_v44 = vmul.f32 %v1060_v9, %v2114_v25  ;;  %v687_v63 = vmul.f32 0.044715, %v647_v48  ;;  %v2319_v48 = vld [vmem:[#allocation15_spill] sm:$0xff] }
 0x184   :  { %v883_v43 = vmul.f32 0.5, %v843_v21  ;;  %v921_v10 = vmul.f32 %v881_v13, %v1992_v56  ;;  %959 = vst [vmem:[%s2274_s3 + $0xc8] sm:$0xff] %v919_v42  ;;  %v688_v38 = vmul.f32 0.044715, %v648_v45  ;;  %v724_v58 = vadd.f32 %v684_v41, %v2112_v52 }
 0x185   :  { %v922_v28 = vmul.f32 %v882_v26, %v1994_v11  ;;  %960 = vst [vmem:[%s2274_s3 + $0xd0] sm:$0xff] %v920_v49  ;;  %v366_v47 = vmul.f32 %v1060_v9, %v365_v44  ;;  %v725_v62 = vadd.f32 %v685_v17, %v2116_v24  ;;  %v726_v56 = vadd.f32 %v686_v57, %v2118_v27 }
 0x186   :  { %v923_v18 = vmul.f32 %v883_v43, %v1999_v2  ;;  %961 = vst [vmem:[%s2274_s3 + $0xd8] sm:$0xff] %v921_v10  ;;  %v727_v40 = vadd.f32 %v687_v63, %v2120_v37  ;;  %v728_v11 = vadd.f32 %v688_v38, %v2122_v15  ;;  %v764_v20 = vmul.f32 0.7978846, %v724_v58 }
 0x187   :  { %962 = vst [vmem:[%s2274_s3 + $0xe0] sm:$0xff] %v922_v28  ;;  %v367_v34 = vmul.f32 0.5, %v366_v47  ;;  %v765_v0 = vmul.f32 0.7978846, %v725_v62  ;;  %v766_v2 = vmul.f32 0.7978846, %v726_v56  ;;  %vm371_vm8 = vweird.f32 %v1060_v9 }
 0x188   :  { %963 = vst.msk [vmem:[%s2274_s3 + $0xe8] sm:$0xff] %vm73_vm0, %v923_v18  ;;  %v767_v30 = vmul.f32 0.7978846, %v727_v40  ;;  %v768_v6 = vmul.f32 0.7978846, %v728_v11  ;;  %1061 = vtanh.f32 %v764_v20  ;;  %vm372_vm10 = vmor %vm370_vm9, %vm371_vm8 }
 0x189   :  { %v368_v39 = vsub.f32 1.5, %v367_v34  ;;  %1063 = vtanh.f32 %v765_v0 }
 0x18a   :  { %1065 = vtanh.f32 %v766_v2 }
 0x18b   :  { %v369_v22 = vmul.f32 %v1060_v9, %v368_v39  ;;  %1067 = vtanh.f32 %v767_v30 }
 0x18c   :  { %1069 = vtanh.f32 %v768_v6 }
 0x18d   :  { %v373_v19 = vsel %vm372_vm10, %v1060_v9, %v369_v22 }
 0x18e   :  { %v409_v5 = vmul.f32 %v373_v19, %v2314_v23  ;;  %v410_v54 = vmul.f32 %v373_v19, %v2315_v61  ;;  %v411_v46 = vmul.f32 %v373_v19, %v2316_v16  ;;  %v412_v53 = vmul.f32 %v373_v19, %v2317_v14  ;;  %v1062_v3 = vpop.eup %1061 }
 0x18f   :  { %v413_v35 = vmul.f32 %v373_v19, %v2318_v7  ;;  %v1064_v60 = vpop.eup %1063  ;;  %v844_v50 = vadd.f32 1.0, %v1062_v3 }
 0x190   :  { %v489_v25 = vmul.f32 %v2319_v48, %v409_v5  ;;  %v490_v12 = vmul.f32 %v2319_v48, %v410_v54  ;;  %v491_v36 = vmul.f32 %v2319_v48, %v411_v46  ;;  %v1066_v51 = vpop.eup %1065  ;;  %v845_v31 = vadd.f32 1.0, %v1064_v60 }
 0x191   :  { %v492_v45 = vmul.f32 %v2319_v48, %v412_v53  ;;  %v493_v33 = vmul.f32 %v2319_v48, %v413_v35  ;;  %v1068_v8 = vpop.eup %1067  ;;  %v846_v1 = vadd.f32 1.0, %v1066_v51  ;;  %v884_v41 = vmul.f32 0.5, %v844_v50 }
 0x192   :  { %v2199_v29 = vadd.f32 %v532_v55, %v489_v25  ;;  %v2201_v59 = vadd.f32 %v532_v55, %v490_v12  ;;  %v1070_v32 = vpop.eup %1069  ;;  %v847_v4 = vadd.f32 1.0, %v1068_v8  ;;  %v885_v17 = vmul.f32 0.5, %v845_v31 }
 0x193   :  { %v2203_v9 = vadd.f32 %v532_v55, %v491_v36  ;;  %v2205_v21 = vadd.f32 %v532_v55, %v492_v45  ;;  %v848_v13 = vadd.f32 1.0, %v1070_v32  ;;  %v886_v42 = vmul.f32 0.5, %v846_v1 }
 0x194   :  { %v924_v57 = vmul.f32 %v884_v41, %v2112_v52  ;;  %v2208_v26 = vadd.f32 %v532_v55, %v493_v33  ;;  %v887_v49 = vmul.f32 0.5, %v847_v4  ;;  %v925_v44 = vmul.f32 %v885_v17, %v2116_v24 }
 0x195   :  { %v609_v43 = vmul.f32 %v2199_v29, %v2199_v29  ;;  %v610_v10 = vmul.f32 %v2201_v59, %v2201_v59  ;;  %v888_v63 = vmul.f32 0.5, %v848_v13  ;;  %v926_v38 = vmul.f32 %v886_v42, %v2118_v27 }
 0x196   :  { %964 = vst [vmem:[%s2274_s3 + $0xf0] sm:$0xff] %v924_v57  ;;  %v611_v52 = vmul.f32 %v2203_v9, %v2203_v9  ;;  %v612_v28 = vmul.f32 %v2205_v21, %v2205_v21  ;;  %v927_v24 = vmul.f32 %v887_v49, %v2120_v37  ;;  %v613_v47 = vmul.f32 %v2208_v26, %v2208_v26 }
 0x197   :  { %965 = vst [vmem:[%s2274_s3 + $0xf8] sm:$0xff] %v925_v44  ;;  %v649_v27 = vmul.f32 %v609_v43, %v2199_v29  ;;  %v650_v58 = vmul.f32 %v610_v10, %v2201_v59  ;;  %v928_v62 = vmul.f32 %v888_v63, %v2122_v15 }
 0x198   :  { %966 = vst [vmem:[%s2274_s3 + $0x100] sm:$0xff] %v926_v38  ;;  %v651_v18 = vmul.f32 %v611_v52, %v2203_v9  ;;  %v652_v37 = vmul.f32 %v612_v28, %v2205_v21  ;;  %v653_v56 = vmul.f32 %v613_v47, %v2208_v26 }
 0x199   :  { %967 = vst [vmem:[%s2274_s3 + $0x108] sm:$0xff] %v927_v24  ;;  %v689_v40 = vmul.f32 0.044715, %v649_v27  ;;  %v690_v11 = vmul.f32 0.044715, %v650_v58 }
 0x19a   :  { %968 = vst.msk [vmem:[%s2274_s3 + $0x110] sm:$0xff] %vm73_vm0, %v928_v62  ;;  %v691_v15 = vmul.f32 0.044715, %v651_v18  ;;  %v692_v34 = vmul.f32 0.044715, %v652_v37 }
 0x19b   :  { %v693_v20 = vmul.f32 0.044715, %v653_v56  ;;  %v729_v0 = vadd.f32 %v689_v40, %v2199_v29  ;;  %v730_v2 = vadd.f32 %v690_v11, %v2201_v59 }
 0x19c   :  { %v731_v30 = vadd.f32 %v691_v15, %v2203_v9  ;;  %v732_v39 = vadd.f32 %v692_v34, %v2205_v21 }
 0x19d   :  { %v733_v6 = vadd.f32 %v693_v20, %v2208_v26  ;;  %v769_v22 = vmul.f32 0.7978846, %v729_v0  ;;  %v770_v19 = vmul.f32 0.7978846, %v730_v2 }
 0x19e   :  { %v771_v23 = vmul.f32 0.7978846, %v731_v30  ;;  %v772_v5 = vmul.f32 0.7978846, %v732_v39 }
 0x19f   :  { %v773_v61 = vmul.f32 0.7978846, %v733_v6  ;;  %1071 = vtanh.f32 %v769_v22 }
 0x1a0   :  { %1073 = vtanh.f32 %v770_v19 }
 0x1a1   :  { %1075 = vtanh.f32 %v771_v23 }
 0x1a2   :  { %1077 = vtanh.f32 %v772_v5 }
 0x1a3   :  { %1079 = vtanh.f32 %v773_v61 }
 0x1a5   :  { %v1072_v54 = vpop.eup %1071 }
 0x1a6   :  { %v1074_v16 = vpop.eup %1073  ;;  %v849_v46 = vadd.f32 1.0, %v1072_v54 }
 0x1a7   :  { %v1076_v14 = vpop.eup %1075  ;;  %v850_v53 = vadd.f32 1.0, %v1074_v16 }
 0x1a8   :  { %v1078_v3 = vpop.eup %1077  ;;  %v851_v7 = vadd.f32 1.0, %v1076_v14  ;;  %v889_v35 = vmul.f32 0.5, %v849_v46 }
 0x1a9   :  { %v1080_v60 = vpop.eup %1079  ;;  %v852_v50 = vadd.f32 1.0, %v1078_v3  ;;  %v890_v48 = vmul.f32 0.5, %v850_v53 }
 0x1aa   :  { %v853_v25 = vadd.f32 1.0, %v1080_v60  ;;  %v891_v12 = vmul.f32 0.5, %v851_v7  ;;  %v929_v36 = vmul.f32 %v889_v35, %v2199_v29 }
 0x1ab   :  { %v892_v51 = vmul.f32 0.5, %v852_v50  ;;  %v930_v31 = vmul.f32 %v890_v48, %v2201_v59 }
 0x1ac   :  { %v893_v45 = vmul.f32 0.5, %v853_v25  ;;  %v931_v33 = vmul.f32 %v891_v12, %v2203_v9  ;;  %969 = vst [vmem:[%s2274_s3 + $0x118] sm:$0xff] %v929_v36 }
 0x1ad   :  { %v932_v55 = vmul.f32 %v892_v51, %v2205_v21  ;;  %970 = vst [vmem:[%s2274_s3 + $0x120] sm:$0xff] %v930_v31 }
 0x1ae   :  { %v933_v8 = vmul.f32 %v893_v45, %v2208_v26  ;;  %971 = vst [vmem:[%s2274_s3 + $0x128] sm:$0xff] %v931_v33 }
 0x1af   :  { %972 = vst [vmem:[%s2274_s3 + $0x130] sm:$0xff] %v932_v55 }
 0x1b0   :  { %973 = vst.msk [vmem:[%s2274_s3 + $0x138] sm:$0xff] %vm73_vm0, %v933_v8 }

// kernel: forward.24
= control target key start
LH: loop header
LB: loop body
LE: loop exit
PB: predicated region body
PF: predicated region fallthrough
CT: control target
= control target key end

     0   :  { %s2271_s9 = smov 0   ;;  %s2273_s10 = smov 0   ;;  %s3113_s0 = inlined_call_operand.vmem [shape: bf16[638,96], index: 0, kind: input, shape index: {}]   ;;  %s3114_s1 = inlined_call_operand.vmem [shape: bf16[96,32], index: 1, kind: input, shape index: {}]   ;;  %s3115_s2 = inlined_call_operand.vmem [shape: f32[638,32], index: 2, kind: output, shape index: {}]  }
   0x1   :  { %s2275_s11 = smov 0  }
   0x2 LB: > { %s2284_s12 = sadd.s32 4294967295, %s2222_s11   ;;  %s2286_s13 = sadd.s32 1, %s2222_s11   ;;  %s2222_s11 = sphi %s2275_s11, %s3124_s11   ;;  %s2218_s10 = sphi %s2273_s10, %s3123_s10   ;;  %s2214_s9 = sphi %s2271_s9, %s3122_s9  }
   0x3   : > { %s63_s14 = ssub.s32 %s2222_s11, %s2286_s13  ;;  %s66_s15 = sadd.s32 1, %s2218_s10 }
   0x4   : > { %p64_p0 = scmp.eq.s32.totalorder %s63_s14, 0  ;;  %p76_p1 = scmp.ne.s32.totalorder %s2218_s10, %s2214_s9 }
   0x5   : > { %p77_p2 = scmp.eq.s32.totalorder %s2284_s12, 1  ;;  %p1688_p3 = scmp.ge.s32.totalorder %s2222_s11, 1 }
   0x6   : > { %s2294_s16 = scalar_select %p64_p0, %s2218_s10, %s66_s15  }
   0x7   : > { %p2296_p4 = por %p77_p2, %p76_p1  ;;  %p121_p5 = scmp.lt.s32.totalorder %s2222_s11, 3 }
   0x9   : > { %p122_p6 = pnand %p1688_p3, %p121_p5 }
   0xa   : > { %s2307_s22 = sshll.u32 (!%p122_p6), %s2284_s12, 6  ;;  %s143_s8 = sand.u32 (!%p122_p6), 1, %s2214_s9  }
   0xb   : > { %125 = sbr.rel (%p122_p6) target bundleno = 396 (0x18c), region = 28  ;;  %p151_p7 = scmp.lt.s32.totalorder (!%p122_p6), %s2307_s22, 79 }
   0xc   : > { %s1689_s9 = sshll.u32 (!%p122_p6), %s143_s8, 9 }
   0xd   : > { %s2459_s11 = scalar_lea.vmem (!%p122_p6), [#allocation2], %s1689_s9  }
  0x10   : > { %v1930_v0 = vld [vmem:[%s3114_s1 + $0x28] sm:$0xff]  ;;  %v1929_v1 = vld [vmem:[%s3114_s1 + $0x20] sm:$0xff]  ;;  %v1928_v2 = vld [vmem:[%s3114_s1 + $0x18] sm:$0xff]  ;;  %s152_s27 = scalar_select %p151_p7, %s2307_s22, 79  ;;  %vm438_vm0 = vcmask 785408   ;;  %vm1280_vm1 = vcmask 261120  }
  0x11   : > { %537 = vmatpush.bf16.msra.mxu0 %v1930_v0  ;;  %1934 = vmatpush.bf16.msra.mxu1 %v1930_v0  ;;  %v1927_v3 = vld [vmem:[%s3114_s1 + $0x10] sm:$0xff]  ;;  %v1926_v4 = vld [vmem:[%s3114_s1 + $0x8] sm:$0xff]  ;;  %v1925_v5 = vld [vmem:[%s3114_s1] sm:$0xff]  ;;  %s1353_s14 = ssub.s32 (%p2296_p4), 80, %s2307_s22  ;;  %s1931_s15 = sshll.u32 (%p2296_p4), %s2284_s12, 9 }
  0x12   : > { %1935 = vmatpush.bf16.msra.mxu2 %v1930_v0  ;;  %1936 = vmatpush.bf16.msra.mxu3 %v1930_v0  ;;  %s1691_s30 = sshll.u32 %s152_s27, 2  ;;  %p1354_p8 = scmp.lt.s32.totalorder (%p2296_p4), %s1353_s14, 64 }
  0x13   : > { %s2326_s7 = scalar_lea.vmem %s3113_s0, %s1691_s30  ;;  %s2978_s20 = scalar_lea.vmem (%p2296_p4), %s3115_s2, %s1931_s15  }
  0x14   : > { %v1893_v6 = vld [vmem:[%s2326_s7] sm:$0xff]  ;;  %v1894_v10 = vld [vmem:[%s2326_s7 + $0x8] sm:$0xff]  ;;  %v1895_v14 = vld [vmem:[%s2326_s7 + $0x10] sm:$0xff] }
  0x15   : > { %538 = vmatpush.bf16.msra.mxu0 %v1929_v1  ;;  %1937 = vmatpush.bf16.msra.mxu1 %v1929_v1  ;;  %v1901_v7 = vld [vmem:[%s2326_s7 + $0x40] sm:$0xff]  ;;  %v1902_v11 = vld [vmem:[%s2326_s7 + $0x48] sm:$0xff]  ;;  %v1903_v15 = vld [vmem:[%s2326_s7 + $0x50] sm:$0xff] }
  0x16   : > { %1938 = vmatpush.bf16.msra.mxu2 %v1929_v1  ;;  %1939 = vmatpush.bf16.msra.mxu3 %v1929_v1  ;;  %v1909_v8 = vld [vmem:[%s2326_s7 + $0x80] sm:$0xff]  ;;  %v1910_v12 = vld [vmem:[%s2326_s7 + $0x88] sm:$0xff]  ;;  %v1911_v16 = vld [vmem:[%s2326_s7 + $0x90] sm:$0xff] }
  0x17   : > { %v1917_v9 = vld [vmem:[%s2326_s7 + $0xc0] sm:$0xff]  ;;  %v1918_v13 = vld [vmem:[%s2326_s7 + $0xc8] sm:$0xff]  ;;  %v1919_v17 = vld [vmem:[%s2326_s7 + $0xd0] sm:$0xff] }
  0x18   : > { %v1896_v18 = vld [vmem:[%s2326_s7 + $0x18] sm:$0xff]  ;;  %v1897_v22 = vld [vmem:[%s2326_s7 + $0x20] sm:$0xff]  ;;  %v1898_v26 = vld [vmem:[%s2326_s7 + $0x28] sm:$0xff] }
  0x19   : > { %539 = vmatpush.bf16.msra.mxu0 %v1928_v2  ;;  %1940 = vmatpush.bf16.msra.mxu1 %v1928_v2  ;;  %v1904_v19 = vld [vmem:[%s2326_s7 + $0x58] sm:$0xff]  ;;  %v1905_v23 = vld [vmem:[%s2326_s7 + $0x60] sm:$0xff]  ;;  %v1906_v27 = vld [vmem:[%s2326_s7 + $0x68] sm:$0xff] }
  0x1a   : > { %1941 = vmatpush.bf16.msra.mxu2 %v1928_v2  ;;  %1942 = vmatpush.bf16.msra.mxu3 %v1928_v2  ;;  %v1912_v20 = vld [vmem:[%s2326_s7 + $0x98] sm:$0xff]  ;;  %v1913_v24 = vld [vmem:[%s2326_s7 + $0xa0] sm:$0xff]  ;;  %v1914_v28 = vld [vmem:[%s2326_s7 + $0xa8] sm:$0xff] }
  0x1b   : > { %v1920_v21 = vld [vmem:[%s2326_s7 + $0xd8] sm:$0xff]  ;;  %v1921_v25 = vld [vmem:[%s2326_s7 + $0xe0] sm:$0xff]  ;;  %v1922_v29 = vld [vmem:[%s2326_s7 + $0xe8] sm:$0xff] }
  0x1c   : > { %v1899_v30 = vld [vmem:[%s2326_s7 + $0x30] sm:$0xff]  ;;  %v1900_v34 = vld [vmem:[%s2326_s7 + $0x38] sm:$0xff] }
  0x1d   : > { %540 = vmatpush.bf16.msra.mxu0 %v1927_v3  ;;  %1943 = vmatpush.bf16.msra.mxu1 %v1927_v3  ;;  %v1907_v31 = vld [vmem:[%s2326_s7 + $0x70] sm:$0xff]  ;;  %v1908_v35 = vld [vmem:[%s2326_s7 + $0x78] sm:$0xff] }
  0x1e   : > { %1944 = vmatpush.bf16.msra.mxu2 %v1927_v3  ;;  %1945 = vmatpush.bf16.msra.mxu3 %v1927_v3  ;;  %v1915_v32 = vld [vmem:[%s2326_s7 + $0xb0] sm:$0xff]  ;;  %v1916_v36 = vld [vmem:[%s2326_s7 + $0xb8] sm:$0xff] }
  0x1f   : > { %v1923_v33 = vld [vmem:[%s2326_s7 + $0xf0] sm:$0xff]  ;;  %v1924_v37 = vld [vmem:[%s2326_s7 + $0xf8] sm:$0xff] }
  0x21   : > { %541 = vmatpush.bf16.msra.mxu0 %v1926_v4  ;;  %1946 = vmatpush.bf16.msra.mxu1 %v1926_v4 }
  0x22   : > { %1947 = vmatpush.bf16.msra.mxu2 %v1926_v4  ;;  %1948 = vmatpush.bf16.msra.mxu3 %v1926_v4 }
  0x25   : > { %542 = vmatpush.bf16.msra.mxu0 %v1925_v5  ;;  %1949 = vmatpush.bf16.msra.mxu1 %v1925_v5 }
  0x26   : > { %1950 = vmatpush.bf16.msra.mxu2 %v1925_v5  ;;  %1951 = vmatpush.bf16.msra.mxu3 %v1925_v5 }
  0x28   : > { %1844 = vmatmul.msk.bf16.vlgmr.msra.gmra.mxu0 %vm438_vm0, %v1893_v6  ;;  %1852 = vmatmul.msk.bf16.vlgmr.msra.gmra.mxu1 %vm438_vm0, %v1901_v7 }
  0x29   : > { %1860 = vmatmul.msk.bf16.vlgmr.msra.gmra.mxu2 %vm438_vm0, %v1909_v8  ;;  %1868 = vmatmul.msk.bf16.vlgmr.msra.gmra.mxu3 %vm438_vm0, %v1917_v9 }
  0x38   : > { %1845 = vmatmul.msk.bf16.gmra.mxu0 %vm438_vm0, %v1894_v10  ;;  %1853 = vmatmul.msk.bf16.gmra.mxu1 %vm438_vm0, %v1902_v11 }
  0x39   : > { %1861 = vmatmul.msk.bf16.gmra.mxu2 %vm438_vm0, %v1910_v12  ;;  %1869 = vmatmul.msk.bf16.gmra.mxu3 %vm438_vm0, %v1918_v13 }
  0x48   : > { %1846 = vmatmul.msk.bf16.gmra.mxu0 %vm438_vm0, %v1895_v14  ;;  %1854 = vmatmul.msk.bf16.gmra.mxu1 %vm438_vm0, %v1903_v15 }
  0x49   : > { %1862 = vmatmul.msk.bf16.gmra.mxu2 %vm438_vm0, %v1911_v16  ;;  %1870 = vmatmul.msk.bf16.gmra.mxu3 %vm438_vm0, %v1919_v17 }
  0x58   : > { %1847 = vmatmul.msk.bf16.gmra.mxu0 %vm438_vm0, %v1896_v18  ;;  %1855 = vmatmul.msk.bf16.gmra.mxu1 %vm438_vm0, %v1904_v19 }
  0x59   : > { %1863 = vmatmul.msk.bf16.gmra.mxu2 %vm438_vm0, %v1912_v20  ;;  %1871 = vmatmul.msk.bf16.gmra.mxu3 %vm438_vm0, %v1920_v21 }
  0x68   : > { %1848 = vmatmul.msk.bf16.gmra.mxu0 %vm438_vm0, %v1897_v22  ;;  %1856 = vmatmul.msk.bf16.gmra.mxu1 %vm438_vm0, %v1905_v23 }
  0x69   : > { %1864 = vmatmul.msk.bf16.gmra.mxu2 %vm438_vm0, %v1913_v24  ;;  %1872 = vmatmul.msk.bf16.gmra.mxu3 %vm438_vm0, %v1921_v25 }
  0x78   : > { %1849 = vmatmul.msk.bf16.gmra.mxu0 %vm438_vm0, %v1898_v26  ;;  %1857 = vmatmul.msk.bf16.gmra.mxu1 %vm438_vm0, %v1906_v27 }
  0x79   : > { %1865 = vmatmul.msk.bf16.gmra.mxu2 %vm438_vm0, %v1914_v28  ;;  %1873 = vmatmul.msk.bf16.gmra.mxu3 %vm438_vm0, %v1922_v29 }
  0x88   : > { %1850 = vmatmul.msk.bf16.gmra.mxu0 %vm438_vm0, %v1899_v30  ;;  %1858 = vmatmul.msk.bf16.gmra.mxu1 %vm438_vm0, %v1907_v31 }
  0x89   : > { %1866 = vmatmul.msk.bf16.gmra.mxu2 %vm438_vm0, %v1915_v32  ;;  %1874 = vmatmul.msk.bf16.gmra.mxu3 %vm438_vm0, %v1923_v33 }
  0x98   : > { %1851 = vmatmul.msk.bf16.gmra.mxu0 %vm438_vm0, %v1900_v34  ;;  %1859 = vmatmul.msk.bf16.gmra.mxu1 %vm438_vm0, %v1908_v35 }
  0x99   : > { %1867 = vmatmul.msk.bf16.gmra.mxu2 %vm438_vm0, %v1916_v36  ;;  %1875 = vmatmul.msk.bf16.gmra.mxu3 %vm438_vm0, %v1924_v37 }
  0xa5   : > { %v2392_v38 = vpop.f32.mrf.mxu0  ;;  %v2394_v39 = vpop.f32.mrf.mxu1 }
  0xa6   : > { %v704_v40 = vmul.f32 %v2392_v38, %v2392_v38  ;;  %v720_v41 = vmul.f32 %v2394_v39, %v2394_v39 }
  0xa8   : > { %v768_v42 = vmul.f32 %v704_v40, %v2392_v38  ;;  %v784_v43 = vmul.f32 %v720_v41, %v2394_v39 }
  0xaa   : > { %v832_v44 = vmul.f32 0.044715, %v768_v42  ;;  %v848_v45 = vmul.f32 0.044715, %v784_v43 }
  0xac   : > { %v896_v46 = vadd.f32 %v832_v44, %v2392_v38  ;;  %v912_v47 = vadd.f32 %v848_v45, %v2394_v39  ;;  %v2404_v48 = vpop.f32.mrf.mxu2  ;;  %v2406_v49 = vpop.f32.mrf.mxu3 }
  0xad   : > { %v736_v50 = vmul.f32 %v2404_v48, %v2404_v48  ;;  %v752_v51 = vmul.f32 %v2406_v49, %v2406_v49  ;;  %v2412_v52 = vpop.f32.mrf.mxu0  ;;  %v2414_v53 = vpop.f32.mrf.mxu1 }
  0xae   : > { %v960_v54 = vmul.f32 0.7978846, %v896_v46  ;;  %v976_v55 = vmul.f32 0.7978846, %v912_v47  ;;  %v705_v56 = vmul.f32 %v2412_v52, %v2412_v52  ;;  %v721_v57 = vmul.f32 %v2414_v53, %v2414_v53 }
  0xaf   : > { %v800_v58 = vmul.f32 %v736_v50, %v2404_v48  ;;  %v816_v59 = vmul.f32 %v752_v51, %v2406_v49 }
  0xb0   : > { %2040 = vtanh.f32 %v960_v54  ;;  %v769_v60 = vmul.f32 %v705_v56, %v2412_v52  ;;  %v785_v61 = vmul.f32 %v721_v57, %v2414_v53 }
  0xb1   : > { %2042 = vtanh.f32 %v976_v55  ;;  %v864_v62 = vmul.f32 0.044715, %v800_v58  ;;  %v880_v63 = vmul.f32 0.044715, %v816_v59 }
  0xb2   : > { %v833_v0 = vmul.f32 0.044715, %v769_v60  ;;  %v849_v1 = vmul.f32 0.044715, %v785_v61 }
  0xb3   : > { %v928_v2 = vadd.f32 %v864_v62, %v2404_v48  ;;  %v944_v3 = vadd.f32 %v880_v63, %v2406_v49 }
  0xb4   : > { %v897_v4 = vadd.f32 %v833_v0, %v2412_v52  ;;  %v913_v5 = vadd.f32 %v849_v1, %v2414_v53  ;;  %v2429_v6 = vpop.f32.mrf.mxu2  ;;  %v2431_v7 = vpop.f32.mrf.mxu3 }
  0xb5   : > { %v992_v8 = vmul.f32 0.7978846, %v928_v2  ;;  %v1008_v9 = vmul.f32 0.7978846, %v944_v3  ;;  %v737_v10 = vmul.f32 %v2429_v6, %v2429_v6  ;;  %v753_v11 = vmul.f32 %v2431_v7, %v2431_v7  ;;  %v2437_v12 = vpop.f32.mrf.mxu0  ;;  %v2439_v13 = vpop.f32.mrf.mxu1 }
  0xb6   : > { %v2041_v14 = vpop.eup %2040  ;;  %v961_v15 = vmul.f32 0.7978846, %v897_v4  ;;  %v977_v16 = vmul.f32 0.7978846, %v913_v5  ;;  %v706_v17 = vmul.f32 %v2437_v12, %v2437_v12  ;;  %v722_v18 = vmul.f32 %v2439_v13, %v2439_v13 }
  0xb7   : > { %v2043_v19 = vpop.eup %2042  ;;  %v1088_v20 = vadd.f32 1.0, %v2041_v14  ;;  %2044 = vtanh.f32 %v992_v8  ;;  %v801_v21 = vmul.f32 %v737_v10, %v2429_v6  ;;  %v817_v22 = vmul.f32 %v753_v11, %v2431_v7 }
  0xb8   : > { %v1104_v23 = vadd.f32 1.0, %v2043_v19  ;;  %2046 = vtanh.f32 %v1008_v9  ;;  %v770_v24 = vmul.f32 %v706_v17, %v2437_v12  ;;  %v786_v25 = vmul.f32 %v722_v18, %v2439_v13 }
  0xb9   : > { %v1152_v26 = vmul.f32 0.5, %v1088_v20  ;;  %2048 = vtanh.f32 %v961_v15  ;;  %v865_v27 = vmul.f32 0.044715, %v801_v21  ;;  %v881_v28 = vmul.f32 0.044715, %v817_v22 }
  0xba   : > { %v1168_v29 = vmul.f32 0.5, %v1104_v23  ;;  %2050 = vtanh.f32 %v977_v16  ;;  %v834_v30 = vmul.f32 0.044715, %v770_v24  ;;  %v850_v31 = vmul.f32 0.044715, %v786_v25 }
  0xbb   : > { %v1216_v32 = vmul.f32 %v1152_v26, %v2392_v38  ;;  %v929_v33 = vadd.f32 %v865_v27, %v2429_v6  ;;  %v945_v34 = vadd.f32 %v881_v28, %v2431_v7 }
  0xbc   : > { %v1232_v35 = vmul.f32 %v1168_v29, %v2394_v39  ;;  %v898_v36 = vadd.f32 %v834_v30, %v2437_v12  ;;  %v914_v37 = vadd.f32 %v850_v31, %v2439_v13  ;;  %v2455_v40 = vpop.f32.mrf.mxu2  ;;  %v2457_v41 = vpop.f32.mrf.mxu3 }
  0xbd   : > { %v2045_v42 = vpop.eup %2044  ;;  %1281 = vst.msk [vmem:[%s2459_s11] sm:$0xff] %vm1280_vm1, %v1216_v32  ;;  %v993_v38 = vmul.f32 0.7978846, %v929_v33  ;;  %v1009_v43 = vmul.f32 0.7978846, %v945_v34  ;;  %v738_v39 = vmul.f32 %v2455_v40, %v2455_v40  ;;  %v754_v44 = vmul.f32 %v2457_v41, %v2457_v41  ;;  %v2467_v45 = vpop.f32.mrf.mxu0 }
  0xbe   : > { %v2469_v46 = vpop.f32.mrf.mxu1  ;;  %v2047_v47 = vpop.eup %2046  ;;  %1297 = vst.msk [vmem:[%s2459_s11 + $0x80] sm:$0xff] %vm1280_vm1, %v1232_v35  ;;  %v1120_v50 = vadd.f32 1.0, %v2045_v42  ;;  %v962_v51 = vmul.f32 0.7978846, %v898_v36  ;;  %v978_v54 = vmul.f32 0.7978846, %v914_v37  ;;  %v707_v55 = vmul.f32 %v2467_v45, %v2467_v45 }
  0xbf   : > { %v2049_v56 = vpop.eup %2048  ;;  %v1136_v57 = vadd.f32 1.0, %v2047_v47  ;;  %2052 = vtanh.f32 %v993_v38  ;;  %v802_v58 = vmul.f32 %v738_v39, %v2455_v40  ;;  %v818_v59 = vmul.f32 %v754_v44, %v2457_v41 }
  0xc0   : > { %v2051_v60 = vpop.eup %2050  ;;  %v1184_v61 = vmul.f32 0.5, %v1120_v50  ;;  %v1089_v62 = vadd.f32 1.0, %v2049_v56  ;;  %2054 = vtanh.f32 %v1009_v43  ;;  %v771_v63 = vmul.f32 %v707_v55, %v2467_v45 }
  0xc1   : > { %v1200_v0 = vmul.f32 0.5, %v1136_v57  ;;  %v1105_v1 = vadd.f32 1.0, %v2051_v60  ;;  %2056 = vtanh.f32 %v962_v51  ;;  %v866_v2 = vmul.f32 0.044715, %v802_v58 }
  0xc2   : > { %v1248_v3 = vmul.f32 %v1184_v61, %v2404_v48  ;;  %v1153_v4 = vmul.f32 0.5, %v1089_v62  ;;  %2058 = vtanh.f32 %v978_v54  ;;  %v882_v5 = vmul.f32 0.044715, %v818_v59 }
  0xc3   : > { %v1264_v8 = vmul.f32 %v1200_v0, %v2406_v49  ;;  %v1169_v9 = vmul.f32 0.5, %v1105_v1  ;;  %v930_v10 = vadd.f32 %v866_v2, %v2455_v40  ;;  %v835_v11 = vmul.f32 0.044715, %v771_v63 }
  0xc4   : > { %1313 = vst.msk [vmem:[%s2459_s11 + $0x100] sm:$0xff] %vm1280_vm1, %v1248_v3  ;;  %v1217_v14 = vmul.f32 %v1153_v4, %v2412_v52  ;;  %v946_v15 = vadd.f32 %v882_v5, %v2457_v41  ;;  %v723_v16 = vmul.f32 %v2469_v46, %v2469_v46  ;;  %v2487_v48 = vpop.f32.mrf.mxu2  ;;  %v2489_v17 = vpop.f32.mrf.mxu3 }
  0xc5   : > { %v2053_v49 = vpop.eup %2052  ;;  %1329 = vst.msk [vmem:[%s2459_s11 + $0x180] sm:$0xff] %vm1280_vm1, %v1264_v8  ;;  %v1233_v18 = vmul.f32 %v1169_v9, %v2414_v53  ;;  %v994_v19 = vmul.f32 0.7978846, %v930_v10  ;;  %v899_v20 = vadd.f32 %v835_v11, %v2467_v45  ;;  %v739_v52 = vmul.f32 %v2487_v48, %v2487_v48  ;;  %v2497_v21 = vpop.f32.mrf.mxu0 }
  0xc6   : > { %v2499_v22 = vpop.f32.mrf.mxu1  ;;  %v2055_v23 = vpop.eup %2054  ;;  %1282 = vst.msk [vmem:[%s2459_s11 + $0x8] sm:$0xff] %vm1280_vm1, %v1217_v14  ;;  %v1121_v24 = vadd.f32 1.0, %v2053_v49  ;;  %v1010_v25 = vmul.f32 0.7978846, %v946_v15  ;;  %v787_v26 = vmul.f32 %v723_v16, %v2469_v46  ;;  %v755_v53 = vmul.f32 %v2489_v17, %v2489_v17 }
  0xc7   : > { %v2057_v27 = vpop.eup %2056  ;;  %1298 = vst.msk [vmem:[%s2459_s11 + $0x88] sm:$0xff] %vm1280_vm1, %v1233_v18  ;;  %v1137_v28 = vadd.f32 1.0, %v2055_v23  ;;  %2060 = vtanh.f32 %v994_v19  ;;  %v963_v29 = vmul.f32 0.7978846, %v899_v20  ;;  %v803_v30 = vmul.f32 %v739_v52, %v2487_v48 }
  0xc8   : > { %v2059_v31 = vpop.eup %2058  ;;  %v1185_v32 = vmul.f32 0.5, %v1121_v24  ;;  %v1090_v33 = vadd.f32 1.0, %v2057_v27  ;;  %2062 = vtanh.f32 %v1010_v25  ;;  %v851_v34 = vmul.f32 0.044715, %v787_v26 }
  0xc9   : > { %v1201_v35 = vmul.f32 0.5, %v1137_v28  ;;  %v1106_v36 = vadd.f32 1.0, %v2059_v31  ;;  %2064 = vtanh.f32 %v963_v29  ;;  %v867_v37 = vmul.f32 0.044715, %v803_v30 }
  0xca   : > { %v1249_v42 = vmul.f32 %v1185_v32, %v2429_v6  ;;  %v1154_v38 = vmul.f32 0.5, %v1090_v33  ;;  %v915_v43 = vadd.f32 %v851_v34, %v2469_v46  ;;  %v819_v39 = vmul.f32 %v755_v53, %v2489_v17 }
  0xcb   : > { %v1265_v44 = vmul.f32 %v1201_v35, %v2431_v7  ;;  %v1170_v47 = vmul.f32 0.5, %v1106_v36  ;;  %v931_v50 = vadd.f32 %v867_v37, %v2487_v48  ;;  %v708_v51 = vmul.f32 %v2497_v21, %v2497_v21 }
  0xcc   : > { %1314 = vst.msk [vmem:[%s2459_s11 + $0x108] sm:$0xff] %vm1280_vm1, %v1249_v42  ;;  %v1218_v54 = vmul.f32 %v1154_v38, %v2437_v12  ;;  %v979_v6 = vmul.f32 0.7978846, %v915_v43  ;;  %v883_v55 = vmul.f32 0.044715, %v819_v39  ;;  %v724_v56 = vmul.f32 %v2499_v22, %v2499_v22  ;;  %v2521_v57 = vpop.f32.mrf.mxu2  ;;  %v2523_v58 = vpop.f32.mrf.mxu3 }
  0xcd   : > { %v2061_v7 = vpop.eup %2060  ;;  %1330 = vst.msk [vmem:[%s2459_s11 + $0x188] sm:$0xff] %vm1280_vm1, %v1265_v44  ;;  %v1234_v59 = vmul.f32 %v1170_v47, %v2439_v13  ;;  %v995_v60 = vmul.f32 0.7978846, %v931_v50  ;;  %v772_v61 = vmul.f32 %v708_v51, %v2497_v21  ;;  %v740_v12 = vmul.f32 %v2521_v57, %v2521_v57  ;;  %v2531_v62 = vpop.f32.mrf.mxu0 }
  0xce   : > { %v2533_v63 = vpop.f32.mrf.mxu1  ;;  %v2063_v0 = vpop.eup %2062  ;;  %1283 = vst.msk [vmem:[%s2459_s11 + $0x10] sm:$0xff] %vm1280_vm1, %v1218_v54  ;;  %v1122_v1 = vadd.f32 1.0, %v2061_v7  ;;  %2066 = vtanh.f32 %v979_v6  ;;  %v947_v2 = vadd.f32 %v883_v55, %v2489_v17  ;;  %v788_v3 = vmul.f32 %v724_v56, %v2499_v22 }
  0xcf   : > { %v2065_v13 = vpop.eup %2064  ;;  %1299 = vst.msk [vmem:[%s2459_s11 + $0x90] sm:$0xff] %vm1280_vm1, %v1234_v59  ;;  %v1138_v4 = vadd.f32 1.0, %v2063_v0  ;;  %2068 = vtanh.f32 %v995_v60  ;;  %v836_v5 = vmul.f32 0.044715, %v772_v61  ;;  %v804_v8 = vmul.f32 %v740_v12, %v2521_v57 }
  0xd0   : > { %v1186_v9 = vmul.f32 0.5, %v1122_v1  ;;  %v1091_v10 = vadd.f32 1.0, %v2065_v13  ;;  %v1011_v11 = vmul.f32 0.7978846, %v947_v2  ;;  %v852_v14 = vmul.f32 0.044715, %v788_v3 }
  0xd1   : > { %v1202_v15 = vmul.f32 0.5, %v1138_v4  ;;  %v900_v16 = vadd.f32 %v836_v5, %v2497_v21  ;;  %v868_v49 = vmul.f32 0.044715, %v804_v8  ;;  %v756_v18 = vmul.f32 %v2523_v58, %v2523_v58 }
  0xd2   : > { %v1250_v19 = vmul.f32 %v1186_v9, %v2455_v40  ;;  %v1155_v20 = vmul.f32 0.5, %v1091_v10  ;;  %2070 = vtanh.f32 %v1011_v11  ;;  %v916_v52 = vadd.f32 %v852_v14, %v2499_v22 }
  0xd3   : > { %v1266_v23 = vmul.f32 %v1202_v15, %v2457_v41  ;;  %v964_v24 = vmul.f32 0.7978846, %v900_v16  ;;  %v932_v25 = vadd.f32 %v868_v49, %v2521_v57  ;;  %v820_v26 = vmul.f32 %v756_v18, %v2523_v58 }
  0xd4   : > { %v2067_v53 = vpop.eup %2066  ;;  %1315 = vst.msk [vmem:[%s2459_s11 + $0x110] sm:$0xff] %vm1280_vm1, %v1250_v19  ;;  %v1219_v27 = vmul.f32 %v1155_v20, %v2467_v45  ;;  %v980_v28 = vmul.f32 0.7978846, %v916_v52  ;;  %v709_v40 = vmul.f32 %v2531_v62, %v2531_v62  ;;  %v725_v29 = vmul.f32 %v2533_v63, %v2533_v63  ;;  %v2557_v30 = vpop.f32.mrf.mxu2 }
  0xd5   : > { %v2559_v41 = vpop.f32.mrf.mxu3  ;;  %v2069_v31 = vpop.eup %2068  ;;  %1331 = vst.msk [vmem:[%s2459_s11 + $0x190] sm:$0xff] %vm1280_vm1, %v1266_v23  ;;  %v1107_v32 = vadd.f32 1.0, %v2067_v53  ;;  %2072 = vtanh.f32 %v964_v24  ;;  %v996_v33 = vmul.f32 0.7978846, %v932_v25  ;;  %v884_v34 = vmul.f32 0.044715, %v820_v26 }
  0xd6   : > { %v2563_v35 = vpop.f32.mrf.mxu0  ;;  %v2565_v45 = vpop.f32.mrf.mxu1  ;;  %1284 = vst.msk [vmem:[%s2459_s11 + $0x18] sm:$0xff] %vm1280_vm1, %v1219_v27  ;;  %v1123_v36 = vadd.f32 1.0, %v2069_v31  ;;  %2074 = vtanh.f32 %v980_v28  ;;  %v773_v37 = vmul.f32 %v709_v40, %v2531_v62  ;;  %v789_v42 = vmul.f32 %v725_v29, %v2533_v63 }
  0xd7   : > { %v1171_v38 = vmul.f32 0.5, %v1107_v32  ;;  %2076 = vtanh.f32 %v996_v33  ;;  %v948_v43 = vadd.f32 %v884_v34, %v2523_v58  ;;  %v741_v39 = vmul.f32 %v2557_v30, %v2557_v30 }
  0xd8   : > { %v2071_v44 = vpop.eup %2070  ;;  %v1187_v47 = vmul.f32 0.5, %v1123_v36  ;;  %v837_v50 = vmul.f32 0.044715, %v773_v37  ;;  %v853_v51 = vmul.f32 0.044715, %v789_v42  ;;  %v757_v54 = vmul.f32 %v2559_v41, %v2559_v41 }
  0xd9   : > { %v1235_v6 = vmul.f32 %v1171_v38, %v2469_v46  ;;  %v1139_v55 = vadd.f32 1.0, %v2071_v44  ;;  %v1012_v56 = vmul.f32 0.7978846, %v948_v43  ;;  %v805_v7 = vmul.f32 %v741_v39, %v2557_v30 }
  0xda   : > { %v1251_v59 = vmul.f32 %v1187_v47, %v2487_v48  ;;  %v901_v60 = vadd.f32 %v837_v50, %v2531_v62  ;;  %v917_v61 = vadd.f32 %v853_v51, %v2533_v63  ;;  %v821_v12 = vmul.f32 %v757_v54, %v2559_v41 }
  0xdb   : > { %v2073_v0 = vpop.eup %2072  ;;  %1300 = vst.msk [vmem:[%s2459_s11 + $0x98] sm:$0xff] %vm1280_vm1, %v1235_v6  ;;  %v1203_v1 = vmul.f32 0.5, %v1139_v55  ;;  %2078 = vtanh.f32 %v1012_v56  ;;  %v869_v2 = vmul.f32 0.044715, %v805_v7  ;;  %v710_v46 = vmul.f32 %v2563_v35, %v2563_v35 }
  0xdc   : > { %v2075_v3 = vpop.eup %2074  ;;  %1316 = vst.msk [vmem:[%s2459_s11 + $0x118] sm:$0xff] %vm1280_vm1, %v1251_v59  ;;  %v1092_v13 = vadd.f32 1.0, %v2073_v0  ;;  %v965_v48 = vmul.f32 0.7978846, %v901_v60  ;;  %v981_v4 = vmul.f32 0.7978846, %v917_v61  ;;  %v726_v5 = vmul.f32 %v2565_v45, %v2565_v45  ;;  %v2590_v8 = vpop.f32.mrf.mxu2 }
  0xdd   : > { %v2592_v9 = vpop.f32.mrf.mxu3  ;;  %v2077_v10 = vpop.eup %2076  ;;  %v1267_v11 = vmul.f32 %v1203_v1, %v2489_v17  ;;  %v1108_v14 = vadd.f32 1.0, %v2075_v3  ;;  %v933_v15 = vadd.f32 %v869_v2, %v2557_v30  ;;  %v885_v16 = vmul.f32 0.044715, %v821_v12 }
  0xde   : > { %v2596_v49 = vpop.f32.mrf.mxu0  ;;  %v2598_v18 = vpop.f32.mrf.mxu1  ;;  %v1156_v19 = vmul.f32 0.5, %v1092_v13  ;;  %v1124_v20 = vadd.f32 1.0, %v2077_v10  ;;  %2080 = vtanh.f32 %v965_v48  ;;  %v774_v52 = vmul.f32 %v710_v46, %v2563_v35 }
  0xdf   : > { %1332 = vst.msk [vmem:[%s2459_s11 + $0x198] sm:$0xff] %vm1280_vm1, %v1267_v11  ;;  %v1172_v23 = vmul.f32 0.5, %v1108_v14  ;;  %2082 = vtanh.f32 %v981_v4  ;;  %v997_v24 = vmul.f32 0.7978846, %v933_v15  ;;  %v949_v17 = vadd.f32 %v885_v16, %v2559_v41 }
  0xe0   : > { %v1220_v25 = vmul.f32 %v1156_v19, %v2497_v21  ;;  %v1188_v26 = vmul.f32 0.5, %v1124_v20  ;;  %v838_v53 = vmul.f32 0.044715, %v774_v52  ;;  %v790_v27 = vmul.f32 %v726_v5, %v2565_v45 }
  0xe1   : > { %v2079_v28 = vpop.eup %2078  ;;  %v1236_v40 = vmul.f32 %v1172_v23, %v2499_v22  ;;  %2084 = vtanh.f32 %v997_v24  ;;  %v1013_v29 = vmul.f32 0.7978846, %v949_v17  ;;  %v742_v31 = vmul.f32 %v2590_v8, %v2590_v8 }
  0xe2   : > { %1285 = vst.msk [vmem:[%s2459_s11 + $0x20] sm:$0xff] %vm1280_vm1, %v1220_v25  ;;  %v1252_v32 = vmul.f32 %v1188_v26, %v2521_v57  ;;  %v1140_v33 = vadd.f32 1.0, %v2079_v28  ;;  %v902_v21 = vadd.f32 %v838_v53, %v2563_v35  ;;  %v854_v34 = vmul.f32 0.044715, %v790_v27 }
  0xe3   : > { %1301 = vst.msk [vmem:[%s2459_s11 + $0xa0] sm:$0xff] %vm1280_vm1, %v1236_v40  ;;  %2086 = vtanh.f32 %v1013_v29  ;;  %v806_v36 = vmul.f32 %v742_v31, %v2590_v8  ;;  %v758_v22 = vmul.f32 %v2592_v9, %v2592_v9  ;;  %v711_v37 = vmul.f32 %v2596_v49, %v2596_v49 }
  0xe4   : > { %v2081_v42 = vpop.eup %2080  ;;  %1317 = vst.msk [vmem:[%s2459_s11 + $0x120] sm:$0xff] %vm1280_vm1, %v1252_v32  ;;  %v1204_v38 = vmul.f32 0.5, %v1140_v33  ;;  %v966_v57 = vmul.f32 0.7978846, %v902_v21  ;;  %v918_v43 = vadd.f32 %v854_v34, %v2565_v45  ;;  %v727_v39 = vmul.f32 %v2598_v18, %v2598_v18  ;;  %v2625_v44 = vpop.f32.mrf.mxu2 }
  0xe5   : > { %v2627_v47 = vpop.f32.mrf.mxu3  ;;  %v2083_v50 = vpop.eup %2082  ;;  %v1093_v51 = vadd.f32 1.0, %v2081_v42  ;;  %v870_v54 = vmul.f32 0.044715, %v806_v36  ;;  %v822_v6 = vmul.f32 %v758_v22, %v2592_v9  ;;  %v775_v55 = vmul.f32 %v711_v37, %v2596_v49 }
  0xe6   : > { %v2631_v56 = vpop.f32.mrf.mxu0  ;;  %v2633_v7 = vpop.f32.mrf.mxu1  ;;  %v1268_v59 = vmul.f32 %v1204_v38, %v2523_v58  ;;  %v1109_v60 = vadd.f32 1.0, %v2083_v50  ;;  %2088 = vtanh.f32 %v966_v57  ;;  %v982_v61 = vmul.f32 0.7978846, %v918_v43 }
  0xe7   : > { %v2085_v12 = vpop.eup %2084  ;;  %v1157_v0 = vmul.f32 0.5, %v1093_v51  ;;  %v934_v1 = vadd.f32 %v870_v54, %v2590_v8  ;;  %v886_v2 = vmul.f32 0.044715, %v822_v6  ;;  %v839_v46 = vmul.f32 0.044715, %v775_v55 }
  0xe8   : > { %1333 = vst.msk [vmem:[%s2459_s11 + $0x1a0] sm:$0xff] %vm1280_vm1, %v1268_v59  ;;  %v1173_v3 = vmul.f32 0.5, %v1109_v60  ;;  %v1125_v13 = vadd.f32 1.0, %v2085_v12  ;;  %2090 = vtanh.f32 %v982_v61  ;;  %v791_v48 = vmul.f32 %v727_v39, %v2598_v18 }
  0xe9   : > { %v2087_v4 = vpop.eup %2086  ;;  %v1221_v58 = vmul.f32 %v1157_v0, %v2531_v62  ;;  %v998_v5 = vmul.f32 0.7978846, %v934_v1  ;;  %v950_v10 = vadd.f32 %v886_v2, %v2592_v9  ;;  %v903_v11 = vadd.f32 %v839_v46, %v2596_v49 }
  0xea   : > { %v1237_v14 = vmul.f32 %v1173_v3, %v2533_v63  ;;  %v1189_v15 = vmul.f32 0.5, %v1125_v13  ;;  %v1141_v16 = vadd.f32 1.0, %v2087_v4  ;;  %v855_v19 = vmul.f32 0.044715, %v791_v48 }
  0xeb   : > { %1286 = vst.msk [vmem:[%s2459_s11 + $0x28] sm:$0xff] %vm1280_vm1, %v1221_v58  ;;  %2092 = vtanh.f32 %v998_v5  ;;  %v1014_v20 = vmul.f32 0.7978846, %v950_v10  ;;  %v967_v52 = vmul.f32 0.7978846, %v903_v11  ;;  %v743_v23 = vmul.f32 %v2625_v44, %v2625_v44 }
  0xec   : > { %v2089_v62 = vpop.eup %2088  ;;  %1302 = vst.msk [vmem:[%s2459_s11 + $0xa8] sm:$0xff] %vm1280_vm1, %v1237_v14  ;;  %v1253_v24 = vmul.f32 %v1189_v15, %v2557_v30  ;;  %v1205_v17 = vmul.f32 0.5, %v1141_v16  ;;  %v919_v63 = vadd.f32 %v855_v19, %v2598_v18  ;;  %v759_v25 = vmul.f32 %v2627_v47, %v2627_v47  ;;  %v2654_v26 = vpop.f32.mrf.mxu2 }
  0xed   : > { %v2656_v53 = vpop.f32.mrf.mxu3  ;;  %v1094_v27 = vadd.f32 1.0, %v2089_v62  ;;  %2094 = vtanh.f32 %v1014_v20  ;;  %v807_v28 = vmul.f32 %v743_v23, %v2625_v44  ;;  %v712_v40 = vmul.f32 %v2631_v56, %v2631_v56 }
  0xee   : > { %v2661_v29 = vpop.f32.mrf.mxu0  ;;  %v2663_v30 = vpop.f32.mrf.mxu1  ;;  %1318 = vst.msk [vmem:[%s2459_s11 + $0x128] sm:$0xff] %vm1280_vm1, %v1253_v24  ;;  %v1269_v32 = vmul.f32 %v1205_v17, %v2559_v41  ;;  %2096 = vtanh.f32 %v967_v52  ;;  %v983_v33 = vmul.f32 0.7978846, %v919_v63  ;;  %v823_v21 = vmul.f32 %v759_v25, %v2627_v47 }
  0xef   : > { %v2091_v31 = vpop.eup %2090  ;;  %v1158_v34 = vmul.f32 0.5, %v1094_v27  ;;  %v871_v22 = vmul.f32 0.044715, %v807_v28  ;;  %v776_v37 = vmul.f32 %v712_v40, %v2631_v56  ;;  %v728_v38 = vmul.f32 %v2633_v7, %v2633_v7 }
  0xf0   : > { %v1110_v36 = vadd.f32 1.0, %v2091_v31  ;;  %1334 = vst.msk [vmem:[%s2459_s11 + $0x1a8] sm:$0xff] %vm1280_vm1, %v1269_v32  ;;  %2098 = vtanh.f32 %v983_v33  ;;  %v887_v42 = vmul.f32 0.044715, %v823_v21  ;;  %v744_v41 = vmul.f32 %v2654_v26, %v2654_v26 }
  0xf1   : > { %v2093_v57 = vpop.eup %2092  ;;  %v1222_v43 = vmul.f32 %v1158_v34, %v2563_v35  ;;  %v935_v50 = vadd.f32 %v871_v22, %v2625_v44  ;;  %v840_v51 = vmul.f32 0.044715, %v776_v37  ;;  %v792_v55 = vmul.f32 %v728_v38, %v2633_v7 }
  0xf2   : > { %v1174_v39 = vmul.f32 0.5, %v1110_v36  ;;  %v1126_v54 = vadd.f32 1.0, %v2093_v57  ;;  %v951_v6 = vadd.f32 %v887_v42, %v2627_v47  ;;  %v808_v59 = vmul.f32 %v744_v41, %v2654_v26 }
  0xf3   : > { %v2095_v60 = vpop.eup %2094  ;;  %1287 = vst.msk [vmem:[%s2459_s11 + $0x30] sm:$0xff] %vm1280_vm1, %v1222_v43  ;;  %v999_v12 = vmul.f32 0.7978846, %v935_v50  ;;  %v904_v35 = vadd.f32 %v840_v51, %v2631_v56  ;;  %v760_v0 = vmul.f32 %v2656_v53, %v2656_v53  ;;  %v856_v13 = vmul.f32 0.044715, %v792_v55 }
  0xf4   : > { %v1238_v61 = vmul.f32 %v1174_v39, %v2565_v45  ;;  %v2097_v1 = vpop.eup %2096  ;;  %v1190_v2 = vmul.f32 0.5, %v1126_v54  ;;  %v1142_v46 = vadd.f32 1.0, %v2095_v60  ;;  %v1015_v3 = vmul.f32 0.7978846, %v951_v6  ;;  %v2687_v48 = vpop.f32.mrf.mxu2 }
  0xf5   : > { %v2689_v4 = vpop.f32.mrf.mxu3  ;;  %v1095_v58 = vadd.f32 1.0, %v2097_v1  ;;  %2100 = vtanh.f32 %v999_v12  ;;  %v968_v45 = vmul.f32 0.7978846, %v904_v35  ;;  %v872_v5 = vmul.f32 0.044715, %v808_v59 }
  0xf6   : > { %1303 = vst.msk [vmem:[%s2459_s11 + $0xb0] sm:$0xff] %vm1280_vm1, %v1238_v61  ;;  %v2099_v10 = vpop.eup %2098  ;;  %v1254_v11 = vmul.f32 %v1190_v2, %v2590_v8  ;;  %v1206_v14 = vmul.f32 0.5, %v1142_v46  ;;  %2102 = vtanh.f32 %v1015_v3  ;;  %v920_v15 = vadd.f32 %v856_v13, %v2633_v7  ;;  %v2695_v16 = vpop.f32.mrf.mxu0 }
  0xf7   : > { %v1159_v19 = vmul.f32 0.5, %v1095_v58  ;;  %v1111_v20 = vadd.f32 1.0, %v2099_v10  ;;  %2104 = vtanh.f32 %v968_v45  ;;  %v936_v52 = vadd.f32 %v872_v5, %v2654_v26  ;;  %v2698_v23 = vpop.f32.mrf.mxu1 }
  0xf8   : > { %1319 = vst.msk [vmem:[%s2459_s11 + $0x130] sm:$0xff] %vm1280_vm1, %v1254_v11  ;;  %v1270_v62 = vmul.f32 %v1206_v14, %v2592_v9  ;;  %v984_v8 = vmul.f32 0.7978846, %v920_v15  ;;  %v824_v24 = vmul.f32 %v760_v0, %v2656_v53  ;;  %v713_v17 = vmul.f32 %v2661_v29, %v2661_v29 }
  0xf9   : > { %v1223_v63 = vmul.f32 %v1159_v19, %v2596_v49  ;;  %v1175_v25 = vmul.f32 0.5, %v1111_v20  ;;  %v1000_v27 = vmul.f32 0.7978846, %v936_v52  ;;  %v729_v28 = vmul.f32 %v2663_v30, %v2663_v30 }
  0xfa   : > { %1335 = vst.msk [vmem:[%s2459_s11 + $0x1b0] sm:$0xff] %vm1280_vm1, %v1270_v62  ;;  %2106 = vtanh.f32 %v984_v8  ;;  %v888_v40 = vmul.f32 0.044715, %v824_v24  ;;  %v777_v9 = vmul.f32 %v713_v17, %v2661_v29  ;;  %v745_v31 = vmul.f32 %v2687_v48, %v2687_v48 }
  0xfb   : > { %v2101_v32 = vpop.eup %2100  ;;  %1288 = vst.msk [vmem:[%s2459_s11 + $0x38] sm:$0xff] %vm1280_vm1, %v1223_v63  ;;  %v1239_v49 = vmul.f32 %v1175_v25, %v2598_v18  ;;  %2108 = vtanh.f32 %v1000_v27  ;;  %v793_v33 = vmul.f32 %v729_v28, %v2663_v30  ;;  %v761_v21 = vmul.f32 %v2689_v4, %v2689_v4 }
  0xfc   : > { %v2103_v34 = vpop.eup %2102  ;;  %v1127_v36 = vadd.f32 1.0, %v2101_v32  ;;  %v952_v22 = vadd.f32 %v888_v40, %v2656_v53  ;;  %v841_v37 = vmul.f32 0.044715, %v777_v9  ;;  %v809_v42 = vmul.f32 %v745_v31, %v2687_v48  ;;  %v2722_v38 = vpop.f32.mrf.mxu2 }
  0xfd   : > { %v2105_v41 = vpop.eup %2104  ;;  %1304 = vst.msk [vmem:[%s2459_s11 + $0xb8] sm:$0xff] %vm1280_vm1, %v1239_v49  ;;  %v1143_v57 = vadd.f32 1.0, %v2103_v34  ;;  %v857_v18 = vmul.f32 0.044715, %v793_v33  ;;  %v825_v43 = vmul.f32 %v761_v21, %v2689_v4  ;;  %v714_v39 = vmul.f32 %v2695_v16, %v2695_v16  ;;  %v2730_v55 = vpop.f32.mrf.mxu3 }
  0xfe   : > { %v1191_v50 = vmul.f32 0.5, %v1127_v36  ;;  %v1096_v51 = vadd.f32 1.0, %v2105_v41  ;;  %v1016_v54 = vmul.f32 0.7978846, %v952_v22  ;;  %v905_v6 = vadd.f32 %v841_v37, %v2661_v29  ;;  %v2734_v46 = vpop.f32.mrf.mxu0 }
  0xff   : > { %v1207_v59 = vmul.f32 0.5, %v1143_v57  ;;  %v921_v60 = vadd.f32 %v857_v18, %v2663_v30  ;;  %v873_v61 = vmul.f32 0.044715, %v809_v42  ;;  %v889_v12 = vmul.f32 0.044715, %v825_v43  ;;  %v2738_v10 = vpop.f32.mrf.mxu1 }
 0x100   : > { %v2107_v35 = vpop.eup %2106  ;;  %v1255_v0 = vmul.f32 %v1191_v50, %v2625_v44  ;;  %v1160_v1 = vmul.f32 0.5, %v1096_v51  ;;  %2110 = vtanh.f32 %v1016_v54  ;;  %v969_v2 = vmul.f32 0.7978846, %v905_v6 }
 0x101   : > { %v2109_v3 = vpop.eup %2108  ;;  %v1271_v13 = vmul.f32 %v1207_v59, %v2627_v47  ;;  %v1112_v58 = vadd.f32 1.0, %v2107_v35  ;;  %v985_v45 = vmul.f32 0.7978846, %v921_v60  ;;  %v937_v5 = vadd.f32 %v873_v61, %v2687_v48 }
 0x102   : > { %1320 = vst.msk [vmem:[%s2459_s11 + $0x138] sm:$0xff] %vm1280_vm1, %v1255_v0  ;;  %v1224_v44 = vmul.f32 %v1160_v1, %v2631_v56  ;;  %v1128_v11 = vadd.f32 1.0, %v2109_v3  ;;  %2112 = vtanh.f32 %v969_v2  ;;  %v953_v14 = vadd.f32 %v889_v12, %v2689_v4 }
 0x103   : > { %1336 = vst.msk [vmem:[%s2459_s11 + $0x1b8] sm:$0xff] %vm1280_vm1, %v1271_v13  ;;  %v1176_v15 = vmul.f32 0.5, %v1112_v58  ;;  %2114 = vtanh.f32 %v985_v45  ;;  %v1001_v19 = vmul.f32 0.7978846, %v937_v5  ;;  %v778_v47 = vmul.f32 %v714_v39, %v2695_v16 }
 0x104   : > { %1289 = vst.msk [vmem:[%s2459_s11 + $0x40] sm:$0xff] %vm1280_vm1, %v1224_v44  ;;  %v1192_v20 = vmul.f32 0.5, %v1128_v11  ;;  %v1017_v52 = vmul.f32 0.7978846, %v953_v14  ;;  %v730_v62 = vmul.f32 %v2698_v23, %v2698_v23  ;;  %v746_v56 = vmul.f32 %v2722_v38, %v2722_v38  ;;  %v2756_v63 = vpop.f32.mrf.mxu2 }
 0x105   : > { %v1240_v8 = vmul.f32 %v1176_v15, %v2633_v7  ;;  %2116 = vtanh.f32 %v1001_v19  ;;  %v842_v24 = vmul.f32 0.044715, %v778_v47  ;;  %v762_v17 = vmul.f32 %v2730_v55, %v2730_v55  ;;  %v2773_v36 = vpop.f32.mrf.mxu3 }
 0x106   : > { %v2111_v25 = vpop.eup %2110  ;;  %v1256_v27 = vmul.f32 %v1192_v20, %v2654_v26  ;;  %2118 = vtanh.f32 %v1017_v52  ;;  %v794_v28 = vmul.f32 %v730_v62, %v2698_v23  ;;  %v810_v40 = vmul.f32 %v746_v56, %v2722_v38  ;;  %v2778_v51 = vpop.f32.mrf.mxu0 }
 0x107   : > { %1305 = vst.msk [vmem:[%s2459_s11 + $0xc0] sm:$0xff] %vm1280_vm1, %v1240_v8  ;;  %v1144_v9 = vadd.f32 1.0, %v2111_v25  ;;  %v906_v7 = vadd.f32 %v842_v24, %v2695_v16  ;;  %v826_v31 = vmul.f32 %v762_v17, %v2730_v55  ;;  %v715_v32 = vmul.f32 %v2734_v46, %v2734_v46  ;;  %v2782_v61 = vpop.f32.mrf.mxu1 }
 0x108   : > { %v2113_v49 = vpop.eup %2112  ;;  %1321 = vst.msk [vmem:[%s2459_s11 + $0x140] sm:$0xff] %vm1280_vm1, %v1256_v27  ;;  %v858_v33 = vmul.f32 0.044715, %v794_v28  ;;  %v874_v26 = vmul.f32 0.044715, %v810_v40  ;;  %v731_v21 = vmul.f32 %v2738_v10, %v2738_v10  ;;  %v747_v34 = vmul.f32 %v2756_v63, %v2756_v63 }
 0x109   : > { %v2115_v22 = vpop.eup %2114  ;;  %v1208_v37 = vmul.f32 0.5, %v1144_v9  ;;  %v1097_v42 = vadd.f32 1.0, %v2113_v49  ;;  %v970_v41 = vmul.f32 0.7978846, %v906_v7  ;;  %v890_v57 = vmul.f32 0.044715, %v826_v31 }
 0x10a   : > { %v1113_v18 = vadd.f32 1.0, %v2115_v22  ;;  %v922_v43 = vadd.f32 %v858_v33, %v2698_v23  ;;  %v938_v39 = vadd.f32 %v874_v26, %v2722_v38  ;;  %v779_v50 = vmul.f32 %v715_v32, %v2734_v46 }
 0x10b   : > { %v2117_v54 = vpop.eup %2116  ;;  %v1272_v6 = vmul.f32 %v1208_v37, %v2656_v53  ;;  %v1161_v59 = vmul.f32 0.5, %v1097_v42  ;;  %2120 = vtanh.f32 %v970_v41  ;;  %v954_v60 = vadd.f32 %v890_v57, %v2730_v55 }
 0x10c   : > { %v2119_v12 = vpop.eup %2118  ;;  %v1177_v35 = vmul.f32 0.5, %v1113_v18  ;;  %v1129_v0 = vadd.f32 1.0, %v2117_v54  ;;  %v986_v1 = vmul.f32 0.7978846, %v922_v43  ;;  %v1002_v2 = vmul.f32 0.7978846, %v938_v39  ;;  %v2798_v47 = vpop.f32.mrf.mxu2 }
 0x10d   : > { %1337 = vst.msk [vmem:[%s2459_s11 + $0x1c0] sm:$0xff] %vm1280_vm1, %v1272_v6  ;;  %v1225_v3 = vmul.f32 %v1161_v59, %v2661_v29  ;;  %v1145_v13 = vadd.f32 1.0, %v2119_v12  ;;  %v1018_v58 = vmul.f32 0.7978846, %v954_v60  ;;  %v843_v53 = vmul.f32 0.044715, %v779_v50  ;;  %v2809_v27 = vpop.f32.mrf.mxu3 }
 0x10e   : > { %v1241_v45 = vmul.f32 %v1177_v35, %v2663_v30  ;;  %v1193_v5 = vmul.f32 0.5, %v1129_v0  ;;  %2122 = vtanh.f32 %v986_v1  ;;  %v795_v44 = vmul.f32 %v731_v21, %v2738_v10  ;;  %v2818_v33 = vpop.f32.mrf.mxu0 }
 0x10f   : > { %1290 = vst.msk [vmem:[%s2459_s11 + $0x48] sm:$0xff] %vm1280_vm1, %v1225_v3  ;;  %v1209_v11 = vmul.f32 0.5, %v1145_v13  ;;  %2124 = vtanh.f32 %v1002_v2  ;;  %v907_v14 = vadd.f32 %v843_v53, %v2734_v46  ;;  %v811_v15 = vmul.f32 %v747_v34, %v2756_v63  ;;  %v2821_v42 = vpop.f32.mrf.mxu1 }
 0x110   : > { %1306 = vst.msk [vmem:[%s2459_s11 + $0xc8] sm:$0xff] %vm1280_vm1, %v1241_v45  ;;  %v1257_v29 = vmul.f32 %v1193_v5, %v2687_v48  ;;  %2126 = vtanh.f32 %v1018_v58  ;;  %v859_v30 = vmul.f32 0.044715, %v795_v44  ;;  %v763_v19 = vmul.f32 %v2773_v36, %v2773_v36 }
 0x111   : > { %v2121_v20 = vpop.eup %2120  ;;  %v1273_v52 = vmul.f32 %v1209_v11, %v2689_v4  ;;  %v971_v62 = vmul.f32 0.7978846, %v907_v14  ;;  %v875_v56 = vmul.f32 0.044715, %v811_v15  ;;  %v716_v8 = vmul.f32 %v2778_v51, %v2778_v51 }
 0x112   : > { %1322 = vst.msk [vmem:[%s2459_s11 + $0x148] sm:$0xff] %vm1280_vm1, %v1257_v29  ;;  %v1098_v24 = vadd.f32 1.0, %v2121_v20  ;;  %v923_v48 = vadd.f32 %v859_v30, %v2738_v10  ;;  %v827_v17 = vmul.f32 %v763_v19, %v2773_v36  ;;  %v732_v25 = vmul.f32 %v2782_v61, %v2782_v61 }
 0x113   : > { %1338 = vst.msk [vmem:[%s2459_s11 + $0x1c8] sm:$0xff] %vm1280_vm1, %v1273_v52  ;;  %2128 = vtanh.f32 %v971_v62  ;;  %v939_v4 = vadd.f32 %v875_v56, %v2756_v63  ;;  %v780_v28 = vmul.f32 %v716_v8, %v2778_v51  ;;  %v748_v40 = vmul.f32 %v2798_v47, %v2798_v47 }
 0x114   : > { %v2123_v9 = vpop.eup %2122  ;;  %v1162_v7 = vmul.f32 0.5, %v1098_v24  ;;  %v987_v31 = vmul.f32 0.7978846, %v923_v48  ;;  %v891_v32 = vmul.f32 0.044715, %v827_v17  ;;  %v796_v49 = vmul.f32 %v732_v25, %v2782_v61  ;;  %v2833_v53 = vpop.f32.mrf.mxu2 }
 0x115   : > { %v2125_v26 = vpop.eup %2124  ;;  %v1114_v21 = vadd.f32 1.0, %v2123_v9  ;;  %v1003_v34 = vmul.f32 0.7978846, %v939_v4  ;;  %v844_v22 = vmul.f32 0.044715, %v780_v28  ;;  %v812_v37 = vmul.f32 %v748_v40, %v2798_v47  ;;  %v2846_v29 = vpop.f32.mrf.mxu3 }
 0x116   : > { %v2127_v41 = vpop.eup %2126  ;;  %v1226_v57 = vmul.f32 %v1162_v7, %v2695_v16  ;;  %v1130_v18 = vadd.f32 1.0, %v2125_v26  ;;  %2130 = vtanh.f32 %v987_v31  ;;  %v955_v43 = vadd.f32 %v891_v32, %v2773_v36  ;;  %v2854_v24 = vpop.f32.mrf.mxu0 }
 0x117   : > { %v1178_v39 = vmul.f32 0.5, %v1114_v21  ;;  %v1146_v50 = vadd.f32 1.0, %v2127_v41  ;;  %2132 = vtanh.f32 %v1003_v34  ;;  %v908_v54 = vadd.f32 %v844_v22, %v2778_v51  ;;  %v2858_v4 = vpop.f32.mrf.mxu1 }
 0x118   : > { %1291 = vst.msk [vmem:[%s2459_s11 + $0x50] sm:$0xff] %vm1280_vm1, %v1226_v57  ;;  %v1194_v6 = vmul.f32 0.5, %v1130_v18  ;;  %v1019_v59 = vmul.f32 0.7978846, %v955_v43  ;;  %v860_v60 = vmul.f32 0.044715, %v796_v49  ;;  %v764_v12 = vmul.f32 %v2809_v27, %v2809_v27 }
 0x119   : > { %v2129_v35 = vpop.eup %2128  ;;  %v1242_v16 = vmul.f32 %v1178_v39, %v2698_v23  ;;  %v1210_v0 = vmul.f32 0.5, %v1146_v50  ;;  %v972_v1 = vmul.f32 0.7978846, %v908_v54  ;;  %v876_v2 = vmul.f32 0.044715, %v812_v37 }
 0x11a   : > { %v1258_v3 = vmul.f32 %v1194_v6, %v2722_v38  ;;  %v1099_v13 = vadd.f32 1.0, %v2129_v35  ;;  %2134 = vtanh.f32 %v1019_v59  ;;  %v924_v58 = vadd.f32 %v860_v60, %v2782_v61 }
 0x11b   : > { %1307 = vst.msk [vmem:[%s2459_s11 + $0xd0] sm:$0xff] %vm1280_vm1, %v1242_v16  ;;  %v1274_v45 = vmul.f32 %v1210_v0, %v2730_v55  ;;  %2136 = vtanh.f32 %v972_v1  ;;  %v940_v5 = vadd.f32 %v876_v2, %v2798_v47  ;;  %v828_v23 = vmul.f32 %v764_v12, %v2809_v27 }
 0x11c   : > { %v2131_v44 = vpop.eup %2130  ;;  %1323 = vst.msk [vmem:[%s2459_s11 + $0x150] sm:$0xff] %vm1280_vm1, %v1258_v3  ;;  %v1163_v38 = vmul.f32 0.5, %v1099_v13  ;;  %v988_v11 = vmul.f32 0.7978846, %v924_v58  ;;  %v717_v14 = vmul.f32 %v2818_v33, %v2818_v33  ;;  %v733_v15 = vmul.f32 %v2821_v42, %v2821_v42  ;;  %v2878_v16 = vpop.f32.mrf.mxu2 }
 0x11d   : > { %v2133_v30 = vpop.eup %2132  ;;  %1339 = vst.msk [vmem:[%s2459_s11 + $0x1d0] sm:$0xff] %vm1280_vm1, %v1274_v45  ;;  %v1115_v55 = vadd.f32 1.0, %v2131_v44  ;;  %v1004_v19 = vmul.f32 0.7978846, %v940_v5  ;;  %v892_v20 = vmul.f32 0.044715, %v828_v23  ;;  %v749_v52 = vmul.f32 %v2833_v53, %v2833_v53  ;;  %v2881_v3 = vpop.f32.mrf.mxu3 }
 0x11e   : > { %v1227_v62 = vmul.f32 %v1163_v38, %v2734_v46  ;;  %v1131_v56 = vadd.f32 1.0, %v2133_v30  ;;  %2138 = vtanh.f32 %v988_v11  ;;  %v781_v8 = vmul.f32 %v717_v14, %v2818_v33  ;;  %v2893_v23 = vpop.f32.mrf.mxu0 }
 0x11f   : > { %v1179_v48 = vmul.f32 0.5, %v1115_v55  ;;  %2140 = vtanh.f32 %v1004_v19  ;;  %v956_v17 = vadd.f32 %v892_v20, %v2809_v27  ;;  %v797_v25 = vmul.f32 %v733_v15, %v2821_v42  ;;  %v2898_v30 = vpop.f32.mrf.mxu1 }
 0x120   : > { %v2135_v28 = vpop.eup %2134  ;;  %1292 = vst.msk [vmem:[%s2459_s11 + $0x58] sm:$0xff] %vm1280_vm1, %v1227_v62  ;;  %v1195_v40 = vmul.f32 0.5, %v1131_v56  ;;  %v845_v46 = vmul.f32 0.044715, %v781_v8  ;;  %v813_v9 = vmul.f32 %v749_v52, %v2833_v53  ;;  %v765_v7 = vmul.f32 %v2846_v29, %v2846_v29 }
 0x121   : > { %v2137_v31 = vpop.eup %2136  ;;  %v1243_v32 = vmul.f32 %v1179_v48, %v2738_v10  ;;  %v1147_v49 = vadd.f32 1.0, %v2135_v28  ;;  %v1020_v26 = vmul.f32 0.7978846, %v956_v17  ;;  %v861_v21 = vmul.f32 0.044715, %v797_v25 }
 0x122   : > { %v1259_v34 = vmul.f32 %v1195_v40, %v2756_v63  ;;  %v1100_v22 = vadd.f32 1.0, %v2137_v31  ;;  %v909_v37 = vadd.f32 %v845_v46, %v2818_v33  ;;  %v877_v41 = vmul.f32 0.044715, %v813_v9 }
 0x123   : > { %1308 = vst.msk [vmem:[%s2459_s11 + $0xd8] sm:$0xff] %vm1280_vm1, %v1243_v32  ;;  %v1211_v57 = vmul.f32 0.5, %v1147_v49  ;;  %2142 = vtanh.f32 %v1020_v26  ;;  %v925_v18 = vadd.f32 %v861_v21, %v2821_v42  ;;  %v829_v43 = vmul.f32 %v765_v7, %v2846_v29 }
 0x124   : > { %v2139_v39 = vpop.eup %2138  ;;  %1324 = vst.msk [vmem:[%s2459_s11 + $0x158] sm:$0xff] %vm1280_vm1, %v1259_v34  ;;  %v1164_v10 = vmul.f32 0.5, %v1100_v22  ;;  %v973_v50 = vmul.f32 0.7978846, %v909_v37  ;;  %v941_v63 = vadd.f32 %v877_v41, %v2833_v53  ;;  %v718_v54 = vmul.f32 %v2854_v24, %v2854_v24 }
 0x125   : > { %v2141_v6 = vpop.eup %2140  ;;  %v1275_v59 = vmul.f32 %v1211_v57, %v2773_v36  ;;  %v1116_v60 = vadd.f32 1.0, %v2139_v39  ;;  %v989_v12 = vmul.f32 0.7978846, %v925_v18  ;;  %v893_v35 = vmul.f32 0.044715, %v829_v43  ;;  %v2921_v39 = vpop.f32.mrf.mxu2 }
 0x126   : > { %v1228_v0 = vmul.f32 %v1164_v10, %v2778_v51  ;;  %v1132_v1 = vadd.f32 1.0, %v2141_v6  ;;  %2144 = vtanh.f32 %v973_v50  ;;  %v1005_v2 = vmul.f32 0.7978846, %v941_v63  ;;  %v2924_v6 = vpop.f32.mrf.mxu3 }
 0x127   : > { %1340 = vst.msk [vmem:[%s2459_s11 + $0x1d8] sm:$0xff] %vm1280_vm1, %v1275_v59  ;;  %v1180_v13 = vmul.f32 0.5, %v1116_v60  ;;  %2146 = vtanh.f32 %v989_v12  ;;  %v957_v58 = vadd.f32 %v893_v35, %v2846_v29  ;;  %v782_v36 = vmul.f32 %v718_v54, %v2854_v24 }
 0x128   : > { %1293 = vst.msk [vmem:[%s2459_s11 + $0x60] sm:$0xff] %vm1280_vm1, %v1228_v0  ;;  %v1196_v45 = vmul.f32 0.5, %v1132_v1  ;;  %2148 = vtanh.f32 %v1005_v2  ;;  %v734_v51 = vmul.f32 %v2858_v4, %v2858_v4  ;;  %v750_v5 = vmul.f32 %v2878_v16, %v2878_v16 }
 0x129   : > { %v2143_v44 = vpop.eup %2142  ;;  %v1244_v38 = vmul.f32 %v1180_v13, %v2782_v61  ;;  %v1021_v11 = vmul.f32 0.7978846, %v957_v58  ;;  %v846_v14 = vmul.f32 0.044715, %v782_v36  ;;  %v766_v15 = vmul.f32 %v2881_v3, %v2881_v3 }
 0x12a   : > { %v1260_v55 = vmul.f32 %v1196_v45, %v2798_v47  ;;  %v1148_v19 = vadd.f32 1.0, %v2143_v44  ;;  %v798_v20 = vmul.f32 %v734_v51, %v2858_v4  ;;  %v814_v52 = vmul.f32 %v750_v5, %v2878_v16 }
 0x12b   : > { %1309 = vst.msk [vmem:[%s2459_s11 + $0xe0] sm:$0xff] %vm1280_vm1, %v1244_v38  ;;  %2150 = vtanh.f32 %v1021_v11  ;;  %v910_v62 = vadd.f32 %v846_v14, %v2854_v24  ;;  %v830_v61 = vmul.f32 %v766_v15, %v2881_v3  ;;  %v719_v56 = vmul.f32 %v2893_v23, %v2893_v23 }
 0x12c   : > { %v2145_v8 = vpop.eup %2144  ;;  %1325 = vst.msk [vmem:[%s2459_s11 + $0x160] sm:$0xff] %vm1280_vm1, %v1260_v55  ;;  %v1212_v48 = vmul.f32 0.5, %v1148_v19  ;;  %v862_v47 = vmul.f32 0.044715, %v798_v20  ;;  %v878_v17 = vmul.f32 0.044715, %v814_v52  ;;  %v735_v25 = vmul.f32 %v2898_v30, %v2898_v30 }
 0x12d   : > { %v2147_v28 = vpop.eup %2146  ;;  %v1101_v40 = vadd.f32 1.0, %v2145_v8  ;;  %v974_v46 = vmul.f32 0.7978846, %v910_v62  ;;  %v894_v9 = vmul.f32 0.044715, %v830_v61  ;;  %v783_v7 = vmul.f32 %v719_v56, %v2893_v23 }
 0x12e   : > { %v2149_v31 = vpop.eup %2148  ;;  %v1276_v32 = vmul.f32 %v1212_v48, %v2809_v27  ;;  %v1117_v49 = vadd.f32 1.0, %v2147_v28  ;;  %v926_v26 = vadd.f32 %v862_v47, %v2858_v4  ;;  %v942_v21 = vadd.f32 %v878_v17, %v2878_v16 }
 0x12f   : > { %v1165_v34 = vmul.f32 0.5, %v1101_v40  ;;  %v1133_v22 = vadd.f32 1.0, %v2149_v31  ;;  %2152 = vtanh.f32 %v974_v46  ;;  %v958_v37 = vadd.f32 %v894_v9, %v2881_v3 }
 0x130   : > { %1341 = vst.msk [vmem:[%s2459_s11 + $0x1e0] sm:$0xff] %vm1280_vm1, %v1276_v32  ;;  %v1181_v41 = vmul.f32 0.5, %v1117_v49  ;;  %v990_v57 = vmul.f32 0.7978846, %v926_v26  ;;  %v1006_v18 = vmul.f32 0.7978846, %v942_v21  ;;  %v799_v43 = vmul.f32 %v735_v25, %v2898_v30 }
 0x131   : > { %v2151_v27 = vpop.eup %2150  ;;  %v1229_v10 = vmul.f32 %v1165_v34, %v2818_v33  ;;  %v1197_v50 = vmul.f32 0.5, %v1133_v22  ;;  %v1022_v63 = vmul.f32 0.7978846, %v958_v37  ;;  %v847_v54 = vmul.f32 0.044715, %v783_v7 }
 0x132   : > { %v1245_v59 = vmul.f32 %v1181_v41, %v2821_v42  ;;  %v1149_v60 = vadd.f32 1.0, %v2151_v27  ;;  %2154 = vtanh.f32 %v990_v57  ;;  %v863_v12 = vmul.f32 0.044715, %v799_v43 }
 0x133   : > { %1294 = vst.msk [vmem:[%s2459_s11 + $0x68] sm:$0xff] %vm1280_vm1, %v1229_v10  ;;  %v1261_v35 = vmul.f32 %v1197_v50, %v2833_v53  ;;  %2156 = vtanh.f32 %v1006_v18  ;;  %v911_v0 = vadd.f32 %v847_v54, %v2893_v23  ;;  %v751_v33 = vmul.f32 %v2921_v39, %v2921_v39 }
 0x134   : > { %1310 = vst.msk [vmem:[%s2459_s11 + $0xe8] sm:$0xff] %vm1280_vm1, %v1245_v59  ;;  %v1213_v1 = vmul.f32 0.5, %v1149_v60  ;;  %2158 = vtanh.f32 %v1022_v63  ;;  %v927_v42 = vadd.f32 %v863_v12, %v2898_v30  ;;  %v767_v2 = vmul.f32 %v2924_v6, %v2924_v6 }
 0x135   : > { %v2153_v13 = vpop.eup %2152  ;;  %1326 = vst.msk [vmem:[%s2459_s11 + $0x168] sm:$0xff] %vm1280_vm1, %v1261_v35  ;;  %v975_v53 = vmul.f32 0.7978846, %v911_v0  ;;  %v815_v58 = vmul.f32 %v751_v33, %v2921_v39 }
 0x136   : > { %v1277_v36 = vmul.f32 %v1213_v1, %v2846_v29  ;;  %v1102_v45 = vadd.f32 1.0, %v2153_v13  ;;  %v991_v51 = vmul.f32 0.7978846, %v927_v42  ;;  %v831_v5 = vmul.f32 %v767_v2, %v2924_v6 }
 0x137   : > { %2160 = vtanh.f32 %v975_v53  ;;  %v879_v44 = vmul.f32 0.044715, %v815_v58 }
 0x138   : > { %v2155_v38 = vpop.eup %2154  ;;  %1342 = vst.msk [vmem:[%s2459_s11 + $0x1e8] sm:$0xff] %vm1280_vm1, %v1277_v36  ;;  %v1166_v11 = vmul.f32 0.5, %v1102_v45  ;;  %2162 = vtanh.f32 %v991_v51  ;;  %v895_v14 = vmul.f32 0.044715, %v831_v5 }
 0x139   : > { %v2157_v15 = vpop.eup %2156  ;;  %v1118_v55 = vadd.f32 1.0, %v2155_v38  ;;  %v943_v19 = vadd.f32 %v879_v44, %v2921_v39 }
 0x13a   : > { %v2159_v20 = vpop.eup %2158  ;;  %v1230_v29 = vmul.f32 %v1166_v11, %v2854_v24  ;;  %v1134_v52 = vadd.f32 1.0, %v2157_v15  ;;  %v959_v62 = vadd.f32 %v895_v14, %v2924_v6 }
 0x13b   : > { %v1182_v61 = vmul.f32 0.5, %v1118_v55  ;;  %v1150_v56 = vadd.f32 1.0, %v2159_v20  ;;  %v1007_v8 = vmul.f32 0.7978846, %v943_v19 }
 0x13c   : > { %1295 = vst.msk [vmem:[%s2459_s11 + $0x70] sm:$0xff] %vm1280_vm1, %v1230_v29  ;;  %v1198_v48 = vmul.f32 0.5, %v1134_v52  ;;  %v1023_v47 = vmul.f32 0.7978846, %v959_v62 }
 0x13d   : > { %v2161_v17 = vpop.eup %2160  ;;  %v1246_v25 = vmul.f32 %v1182_v61, %v2858_v4  ;;  %v1214_v28 = vmul.f32 0.5, %v1150_v56  ;;  %2164 = vtanh.f32 %v1007_v8 }
 0x13e   : > { %v2163_v24 = vpop.eup %2162  ;;  %v1262_v40 = vmul.f32 %v1198_v48, %v2878_v16  ;;  %v1103_v46 = vadd.f32 1.0, %v2161_v17  ;;  %2166 = vtanh.f32 %v1023_v47 }
 0x13f   : > { %1311 = vst.msk [vmem:[%s2459_s11 + $0xf0] sm:$0xff] %vm1280_vm1, %v1246_v25  ;;  %v1278_v9 = vmul.f32 %v1214_v28, %v2881_v3  ;;  %v1119_v7 = vadd.f32 1.0, %v2163_v24 }
 0x140   : > { %1327 = vst.msk [vmem:[%s2459_s11 + $0x170] sm:$0xff] %vm1280_vm1, %v1262_v40  ;;  %v1167_v31 = vmul.f32 0.5, %v1103_v46 }
 0x141   : > { %1343 = vst.msk [vmem:[%s2459_s11 + $0x1f0] sm:$0xff] %vm1280_vm1, %v1278_v9  ;;  %v1183_v4 = vmul.f32 0.5, %v1119_v7 }
 0x142   : > { %v1231_v32 = vmul.f32 %v1167_v31, %v2893_v23 }
 0x143   : > { %v2165_v49 = vpop.eup %2164  ;;  %v1247_v16 = vmul.f32 %v1183_v4, %v2898_v30 }
 0x144   : > { %v2167_v26 = vpop.eup %2166  ;;  %1296 = vst.msk [vmem:[%s2459_s11 + $0x78] sm:$0xff] %vm1280_vm1, %v1231_v32  ;;  %v1135_v21 = vadd.f32 1.0, %v2165_v49 }
 0x145   : > { %1312 = vst.msk [vmem:[%s2459_s11 + $0xf8] sm:$0xff] %vm1280_vm1, %v1247_v16  ;;  %v1151_v3 = vadd.f32 1.0, %v2167_v26 }
 0x146   : > { %v1199_v34 = vmul.f32 0.5, %v1135_v21 }
 0x147   : > { %v1215_v22 = vmul.f32 0.5, %v1151_v3  ;;  %1351 = sbr.rel (!%p2296_p4) target bundleno = 396 (0x18c), region = 32 }
 0x148   : > { %v1263_v37 = vmul.f32 %v1199_v34, %v2921_v39 }
 0x149   : > { %v1279_v41 = vmul.f32 %v1215_v22, %v2924_v6 }
 0x14a   : > { %1328 = vst.msk [vmem:[%s2459_s11 + $0x178] sm:$0xff] %vm1280_vm1, %v1263_v37 }
 0x14b   : > { %1344 = vst.msk [vmem:[%s2459_s11 + $0x1f8] sm:$0xff] %vm1280_vm1, %v1279_v41 }
 0x14c   : > { %s3126_s14 = smov (!%p1354_p8, %s1353_s14), 64 }
 0x14d   : > { %s1878_s21 = sshll.u32 %s3126_s14, 3 }
 0x14e   : > { %p1881_p9 = scmp.eq.s32.totalorder %s1878_s21, 0 }
 0x14f   : > { %s2984_s23 = sshrl.u32 (!%p1881_p9), %s3126_s14, 5 }
 0x150   : > { %1362 = sbr.rel (%p1881_p9) target bundleno = 396 (0x18c), region = 36  ;;  %p1882_p10 = scmp.le.s32.totalorder (!%p1881_p9), %s2984_s23, 0 }
 0x155   : > { %1641 = sbr.rel (%p1882_p10) target bundleno = 379 (0x17b), region = 112  ;;  %s3117_s12 = smov (!%p1882_p10), %s2978_s20 }
 0x156   : > { %s3118_s17 = smov (!%p1882_p10), %s2459_s11  ;;  %s2993_s22 = smov (!%p1882_p10), 0  }
 0x157   : > { %s2995_s24 = smov (!%p1882_p10), 0  }
 0x15a LB: >> { %v1487_v23 = vld [vmem:[%s2230_s17] sm:$0xff]  ;;  %v1489_v30 = vld [vmem:[%s2230_s17 + $0x8] sm:$0xff]  ;;  %v1491_v57 = vld [vmem:[%s2230_s17 + $0x10] sm:$0xff]  ;;  %s1551_s25 = sadd.s32 1, %s2234_s22  ;;  %s1481_s24 = sadd.s32 1, %s2238_s24   ;;  %s2238_s24 = sphi %s2995_s24, %s1481_s24   ;;  %s2234_s22 = sphi %s2993_s22, %s3121_s22   ;;  %s2230_s17 = sphi %s3118_s17, %s3120_s17   ;;  %s2226_s12 = sphi %s3117_s12, %s3119_s12  }
 0x15b   : >> { %1488 = vst [vmem:[%s2226_s12] sm:$0xff] %v1487_v23  ;;  %v1493_v18 = vld [vmem:[%s2230_s17 + $0x18] sm:$0xff]  ;;  %p1552_p11 = scmp.ge.s32.totalorder %s1551_s25, %s2984_s23  ;;  %v1495_v43 = vld [vmem:[%s2230_s17 + $0x20] sm:$0xff]  ;;  %v1497_v39 = vld [vmem:[%s2230_s17 + $0x28] sm:$0xff]  ;;  %p1480_p12 = scmp.ge.s32.totalorder %s1481_s24, %s2984_s23 }
 0x15c   : >> { %1490 = vst [vmem:[%s2226_s12 + $0x8] sm:$0xff] %v1489_v30  ;;  %v1499_v27 = vld [vmem:[%s2230_s17 + $0x30] sm:$0xff]  ;;  %v1501_v10 = vld [vmem:[%s2230_s17 + $0x38] sm:$0xff]  ;;  %v1503_v50 = vld [vmem:[%s2230_s17 + $0x40] sm:$0xff] }
 0x15d   : >> { %1492 = vst [vmem:[%s2226_s12 + $0x10] sm:$0xff] %v1491_v57  ;;  %s3128_s25 = smov (%p1552_p11, %s1551_s25), 0  ;;  %v1505_v63 = vld [vmem:[%s2230_s17 + $0x48] sm:$0xff]  ;;  %v1507_v54 = vld [vmem:[%s2230_s17 + $0x50] sm:$0xff]  ;;  %v1509_v6 = vld [vmem:[%s2230_s17 + $0x58] sm:$0xff] }
 0x15e   : >> { %1494 = vst [vmem:[%s2226_s12 + $0x18] sm:$0xff] %v1493_v18  ;;  %s1883_s26 = sshll.u32 %s3128_s25, 8  ;;  %v1511_v59 = vld [vmem:[%s2230_s17 + $0x60] sm:$0xff]  ;;  %v1513_v60 = vld [vmem:[%s2230_s17 + $0x68] sm:$0xff]  ;;  %v1515_v12 = vld [vmem:[%s2230_s17 + $0x70] sm:$0xff]  ;;  %s3121_s22 = smov %s3128_s25 }
 0x15f   : >> { %1496 = vst [vmem:[%s2226_s12 + $0x20] sm:$0xff] %v1495_v43  ;;  %s3027_s27 = scalar_lea.vmem %s2459_s11, %s1883_s26 [#allocation2]   ;;  %s3030_s28 = scalar_lea.vmem %s2978_s20, %s1883_s26   ;;  %v1517_v35 = vld [vmem:[%s2230_s17 + $0x78] sm:$0xff]  ;;  %v1519_v0 = vld [vmem:[%s2230_s17 + $0x80] sm:$0xff]  ;;  %v1521_v33 = vld [vmem:[%s2230_s17 + $0x88] sm:$0xff] }
 0x160   : >> { %1498 = vst [vmem:[%s2226_s12 + $0x28] sm:$0xff] %v1497_v39  ;;  %v1523_v1 = vld [vmem:[%s2230_s17 + $0x90] sm:$0xff]  ;;  %v1525_v42 = vld [vmem:[%s2230_s17 + $0x98] sm:$0xff]  ;;  %v1527_v2 = vld [vmem:[%s2230_s17 + $0xa0] sm:$0xff] }
 0x161   : >> { %1500 = vst [vmem:[%s2226_s12 + $0x30] sm:$0xff] %v1499_v27  ;;  %v1529_v13 = vld [vmem:[%s2230_s17 + $0xa8] sm:$0xff]  ;;  %v1531_v53 = vld [vmem:[%s2230_s17 + $0xb0] sm:$0xff]  ;;  %v1533_v58 = vld [vmem:[%s2230_s17 + $0xb8] sm:$0xff] }
 0x162   : >> { %1502 = vst [vmem:[%s2226_s12 + $0x38] sm:$0xff] %v1501_v10  ;;  %v1535_v36 = vld [vmem:[%s2230_s17 + $0xc0] sm:$0xff]  ;;  %v1537_v45 = vld [vmem:[%s2230_s17 + $0xc8] sm:$0xff]  ;;  %v1539_v51 = vld [vmem:[%s2230_s17 + $0xd0] sm:$0xff] }
 0x163   : >> { %1504 = vst [vmem:[%s2226_s12 + $0x40] sm:$0xff] %v1503_v50  ;;  %v1541_v5 = vld [vmem:[%s2230_s17 + $0xd8] sm:$0xff]  ;;  %v1543_v44 = vld [vmem:[%s2230_s17 + $0xe0] sm:$0xff]  ;;  %v1545_v38 = vld [vmem:[%s2230_s17 + $0xe8] sm:$0xff] }
 0x164   : >> { %1506 = vst [vmem:[%s2226_s12 + $0x48] sm:$0xff] %v1505_v63  ;;  %v1547_v11 = vld [vmem:[%s2230_s17 + $0xf0] sm:$0xff]  ;;  %v1549_v14 = vld [vmem:[%s2230_s17 + $0xf8] sm:$0xff]  ;;  %s3120_s17 = smov %s3027_s27 }
 0x165   : >> { %1508 = vst [vmem:[%s2226_s12 + $0x50] sm:$0xff] %v1507_v54 }
 0x166   : >> { %1510 = vst [vmem:[%s2226_s12 + $0x58] sm:$0xff] %v1509_v6 }
 0x167   : >> { %1512 = vst [vmem:[%s2226_s12 + $0x60] sm:$0xff] %v1511_v59 }
 0x168   : >> { %1514 = vst [vmem:[%s2226_s12 + $0x68] sm:$0xff] %v1513_v60 }
 0x169   : >> { %1516 = vst [vmem:[%s2226_s12 + $0x70] sm:$0xff] %v1515_v12 }
 0x16a   : >> { %1518 = vst [vmem:[%s2226_s12 + $0x78] sm:$0xff] %v1517_v35 }
 0x16b   : >> { %1520 = vst [vmem:[%s2226_s12 + $0x80] sm:$0xff] %v1519_v0 }
 0x16c   : >> { %1522 = vst [vmem:[%s2226_s12 + $0x88] sm:$0xff] %v1521_v33 }
 0x16d   : >> { %1524 = vst [vmem:[%s2226_s12 + $0x90] sm:$0xff] %v1523_v1 }
 0x16e   : >> { %1526 = vst [vmem:[%s2226_s12 + $0x98] sm:$0xff] %v1525_v42 }
 0x16f   : >> { %1528 = vst [vmem:[%s2226_s12 + $0xa0] sm:$0xff] %v1527_v2 }
 0x170   : >> { %1530 = vst [vmem:[%s2226_s12 + $0xa8] sm:$0xff] %v1529_v13 }
 0x171   : >> { %1532 = vst [vmem:[%s2226_s12 + $0xb0] sm:$0xff] %v1531_v53 }
 0x172   : >> { %1534 = vst [vmem:[%s2226_s12 + $0xb8] sm:$0xff] %v1533_v58 }
 0x173   : >> { %1536 = vst [vmem:[%s2226_s12 + $0xc0] sm:$0xff] %v1535_v36 }
 0x174   : >> { %1538 = vst [vmem:[%s2226_s12 + $0xc8] sm:$0xff] %v1537_v45 }
 0x175   : >> { %1540 = vst [vmem:[%s2226_s12 + $0xd0] sm:$0xff] %v1539_v51 }
 0x176   : >> { %1542 = vst [vmem:[%s2226_s12 + $0xd8] sm:$0xff] %v1541_v5  ;;  %1483 = sbr.rel (!%p1480_p12) target bundleno = 346 (0x15a), region = 118 }
 0x177   : >> { %1544 = vst [vmem:[%s2226_s12 + $0xe0] sm:$0xff] %v1543_v44 }
 0x178   : >> { %1546 = vst [vmem:[%s2226_s12 + $0xe8] sm:$0xff] %v1545_v38 }
 0x179   : >> { %1548 = vst [vmem:[%s2226_s12 + $0xf0] sm:$0xff] %v1547_v11 }
 0x17a   : >> { %1550 = vst [vmem:[%s2226_s12 + $0xf8] sm:$0xff] %v1549_v14  ;;  %s3119_s12 = smov %s3030_s28 }
 0x17b PF: > { %s3095_s29 = sand.u32 31, %s3126_s14   ;;  %s1932_s30 = sshll.u32 %s2984_s23, 8 }
 0x17c   : > { %s1562_s3 = scalar_lea.vmem %s2459_s11, %s1932_s30 [#allocation2]   ;;  %s1564_s4 = scalar_lea.vmem %s2978_s20, %s1932_s30  }
 0x17d   : > { %p1888_p13 = scmp.le.s32.totalorder %s3095_s29, 0 }
 0x17e   : > { %s2240_s5 = smov (!%p1888_p13), %s1564_s4   ;;  %s2244_s6 = smov (!%p1888_p13), %s1562_s3  }
 0x17f   : > { %1655 = sbr.rel (%p1888_p13) target bundleno = 396 (0x18c), region = 123  ;;  %s2248_s7 = smov (!%p1888_p13), 0  }
 0x180   : > { %s2252_s8 = smov (!%p1888_p13), 0  }
 0x184 LB: >> { %v1574_v15 = vld [vmem:[%s2246_s6] sm:$0xff]  ;;  %s1576_s9 = sadd.s32 1, %s2250_s7  ;;  %s1568_s8 = sadd.s32 1, %s2254_s8   ;;  %s2254_s8 = sphi %s2252_s8, %s1568_s8   ;;  %s2250_s7 = sphi %s2248_s7, %s2249_s7   ;;  %s2246_s6 = sphi %s2244_s6, %s1581_s6   ;;  %s2242_s5 = sphi %s2240_s5, %s1582_s5  }
 0x185   : >> { %1575 = vst [vmem:[%s2242_s5] sm:$0xff] %v1574_v15  ;;  %p1577_p0 = scmp.ge.s32.totalorder %s1576_s9, %s3095_s29  ;;  %p1567_p1 = scmp.ge.s32.totalorder %s1568_s8, %s3095_s29 }
 0x187   : >> { %s3130_s9 = smov (%p1577_p0, %s1576_s9), 0  ;;  %1570 = sbr.rel (!%p1567_p1) target bundleno = 388 (0x184), region = 129 }
 0x188   : >> { %s1889_s11 = sshll.u32 %s3130_s9, 3  ;;  %s2249_s7 = smov %s3130_s9  }
 0x189   : >> { %s1581_s6 = scalar_lea.vmem %s1562_s3, %s1889_s11 [#allocation2]   ;;  %s1582_s5 = scalar_lea.vmem %s1564_s4, %s1889_s11  }
 0x18c PF: > { %p9_p2 = scmp.ge.s32.totalorder %s2286_s13, 4   ;;  %s3122_s9 = smov %s2218_s10 }
 0x18d   : > { %s3123_s10 = smov %s2294_s16  ;;  %s3124_s11 = smov %s2286_s13 }
 0x18e   :  { %11 = sbr.rel (!%p9_p2) target bundleno = 2 (0x2), region = 140 }

// kernel: forward.25
= control target key start
LH: loop header
LB: loop body
LE: loop exit
PB: predicated region body
PF: predicated region fallthrough
CT: control target
= control target key end

     0   :  { %vm200_vm0 = vcmask 785408   ;;  %vm730_vm1 = vcmask 261120   ;;  %vm770_vm2 = vcmask 259072   ;;  %s1579_s1 = inlined_call_operand.vmem [shape: bf16[96,32], index: 1, kind: input, shape index: {}]   ;;  %s1580_s0 = inlined_call_operand.vmem [shape: bf16[318,96], index: 0, kind: input, shape index: {}]   ;;  %s1581_s2 = inlined_call_operand.vmem [shape: f32[318,32], index: 2, kind: output, shape index: {}]  }
   0x1   :  { %v925_v0 = vld [vmem:[%s1579_s1 + $0x28] sm:$0xff]  ;;  %v924_v1 = vld [vmem:[%s1579_s1 + $0x20] sm:$0xff]  ;;  %v923_v2 = vld [vmem:[%s1579_s1 + $0x18] sm:$0xff] }
   0x2   :  { %263 = vmatpush.bf16.msra.mxu0 %v925_v0  ;;  %926 = vmatpush.bf16.msra.mxu1 %v925_v0  ;;  %v922_v3 = vld [vmem:[%s1579_s1 + $0x10] sm:$0xff]  ;;  %v921_v4 = vld [vmem:[%s1579_s1 + $0x8] sm:$0xff]  ;;  %v920_v5 = vld [vmem:[%s1579_s1] sm:$0xff] }
   0x3   :  { %927 = vmatpush.bf16.msra.mxu2 %v925_v0  ;;  %928 = vmatpush.bf16.msra.mxu3 %v925_v0  ;;  %v900_v6 = vld [vmem:[%s1580_s0] sm:$0xff]  ;;  %v905_v7 = vld [vmem:[%s1580_s0 + $0x28] sm:$0xff]  ;;  %v910_v8 = vld [vmem:[%s1580_s0 + $0x50] sm:$0xff] }
   0x4   :  { %v915_v9 = vld [vmem:[%s1580_s0 + $0x78] sm:$0xff]  ;;  %v901_v10 = vld [vmem:[%s1580_s0 + $0x8] sm:$0xff]  ;;  %v906_v11 = vld [vmem:[%s1580_s0 + $0x30] sm:$0xff] }
   0x5   :  { %v911_v12 = vld [vmem:[%s1580_s0 + $0x58] sm:$0xff]  ;;  %v916_v13 = vld [vmem:[%s1580_s0 + $0x80] sm:$0xff]  ;;  %v902_v14 = vld [vmem:[%s1580_s0 + $0x10] sm:$0xff] }
   0x6   :  { %264 = vmatpush.bf16.msra.mxu0 %v924_v1  ;;  %929 = vmatpush.bf16.msra.mxu1 %v924_v1  ;;  %v907_v15 = vld [vmem:[%s1580_s0 + $0x38] sm:$0xff]  ;;  %v912_v16 = vld [vmem:[%s1580_s0 + $0x60] sm:$0xff]  ;;  %v917_v17 = vld [vmem:[%s1580_s0 + $0x88] sm:$0xff] }
   0x7   :  { %930 = vmatpush.bf16.msra.mxu2 %v924_v1  ;;  %931 = vmatpush.bf16.msra.mxu3 %v924_v1  ;;  %v903_v18 = vld [vmem:[%s1580_s0 + $0x18] sm:$0xff]  ;;  %v908_v19 = vld [vmem:[%s1580_s0 + $0x40] sm:$0xff]  ;;  %v913_v20 = vld [vmem:[%s1580_s0 + $0x68] sm:$0xff] }
   0x8   :  { %v918_v21 = vld [vmem:[%s1580_s0 + $0x90] sm:$0xff]  ;;  %v854_v22 = vld [vmem:[%s1580_s0 + $0x98] sm:$0xf]  ;;  %v919_v23 = vld [vmem:[%s1580_s0 + $0x98] sm:$0x70] }
   0x9   :  { %v904_v24 = vld [vmem:[%s1580_s0 + $0x20] sm:$0xff]  ;;  %v909_v25 = vld [vmem:[%s1580_s0 + $0x48] sm:$0xff]  ;;  %v914_v26 = vld [vmem:[%s1580_s0 + $0x70] sm:$0xff]  ;;  %v855_v27 = vor.u32 %v919_v23, %v854_v22 }
   0xa   :  { %265 = vmatpush.bf16.msra.mxu0 %v923_v2  ;;  %932 = vmatpush.bf16.msra.mxu1 %v923_v2 }
   0xb   :  { %933 = vmatpush.bf16.msra.mxu2 %v923_v2  ;;  %934 = vmatpush.bf16.msra.mxu3 %v923_v2 }
   0xe   :  { %266 = vmatpush.bf16.msra.mxu0 %v922_v3  ;;  %935 = vmatpush.bf16.msra.mxu1 %v922_v3 }
   0xf   :  { %936 = vmatpush.bf16.msra.mxu2 %v922_v3  ;;  %937 = vmatpush.bf16.msra.mxu3 %v922_v3 }
  0x12   :  { %267 = vmatpush.bf16.msra.mxu0 %v921_v4  ;;  %938 = vmatpush.bf16.msra.mxu1 %v921_v4 }
  0x13   :  { %939 = vmatpush.bf16.msra.mxu2 %v921_v4  ;;  %940 = vmatpush.bf16.msra.mxu3 %v921_v4 }
  0x16   :  { %268 = vmatpush.bf16.msra.mxu0 %v920_v5  ;;  %941 = vmatpush.bf16.msra.mxu1 %v920_v5 }
  0x17   :  { %942 = vmatpush.bf16.msra.mxu2 %v920_v5  ;;  %943 = vmatpush.bf16.msra.mxu3 %v920_v5 }
  0x19   :  { %880 = vmatmul.msk.bf16.vlgmr.msra.gmra.mxu0 %vm200_vm0, %v900_v6  ;;  %885 = vmatmul.msk.bf16.vlgmr.msra.gmra.mxu1 %vm200_vm0, %v905_v7 }
  0x1a   :  { %890 = vmatmul.msk.bf16.vlgmr.msra.gmra.mxu2 %vm200_vm0, %v910_v8  ;;  %895 = vmatmul.msk.bf16.vlgmr.msra.gmra.mxu3 %vm200_vm0, %v915_v9 }
  0x29   :  { %881 = vmatmul.msk.bf16.gmra.mxu0 %vm200_vm0, %v901_v10  ;;  %886 = vmatmul.msk.bf16.gmra.mxu1 %vm200_vm0, %v906_v11 }
  0x2a   :  { %891 = vmatmul.msk.bf16.gmra.mxu2 %vm200_vm0, %v911_v12  ;;  %896 = vmatmul.msk.bf16.gmra.mxu3 %vm200_vm0, %v916_v13 }
  0x39   :  { %882 = vmatmul.msk.bf16.gmra.mxu0 %vm200_vm0, %v902_v14  ;;  %887 = vmatmul.msk.bf16.gmra.mxu1 %vm200_vm0, %v907_v15 }
  0x3a   :  { %892 = vmatmul.msk.bf16.gmra.mxu2 %vm200_vm0, %v912_v16  ;;  %897 = vmatmul.msk.bf16.gmra.mxu3 %vm200_vm0, %v917_v17 }
  0x49   :  { %883 = vmatmul.msk.bf16.gmra.mxu0 %vm200_vm0, %v903_v18  ;;  %888 = vmatmul.msk.bf16.gmra.mxu1 %vm200_vm0, %v908_v19 }
  0x4a   :  { %893 = vmatmul.msk.bf16.gmra.mxu2 %vm200_vm0, %v913_v20  ;;  %898 = vmatmul.msk.bf16.gmra.mxu3 %vm200_vm0, %v918_v21 }
  0x59   :  { %884 = vmatmul.msk.bf16.gmra.mxu0 %vm200_vm0, %v904_v24  ;;  %889 = vmatmul.msk.bf16.gmra.mxu1 %vm200_vm0, %v909_v25 }
  0x5a   :  { %894 = vmatmul.msk.bf16.gmra.mxu2 %vm200_vm0, %v914_v26  ;;  %899 = vmatmul.msk.bf16.gmra.mxu3 %vm200_vm0, %v855_v27 }
  0x96   :  { %v1140_v28 = vpop.f32.mrf.mxu0  ;;  %v1142_v29 = vpop.f32.mrf.mxu1 }
  0x97   :  { %v370_v30 = vmul.f32 %v1140_v28, %v1140_v28  ;;  %v380_v31 = vmul.f32 %v1142_v29, %v1142_v29 }
  0x99   :  { %v410_v32 = vmul.f32 %v370_v30, %v1140_v28  ;;  %v420_v33 = vmul.f32 %v380_v31, %v1142_v29 }
  0x9b   :  { %v450_v34 = vmul.f32 0.044715, %v410_v32  ;;  %v460_v35 = vmul.f32 0.044715, %v420_v33 }
  0x9d   :  { %v490_v36 = vadd.f32 %v450_v34, %v1140_v28  ;;  %v500_v37 = vadd.f32 %v460_v35, %v1142_v29  ;;  %v1152_v38 = vpop.f32.mrf.mxu2  ;;  %v1154_v39 = vpop.f32.mrf.mxu3 }
  0x9e   :  { %v390_v40 = vmul.f32 %v1152_v38, %v1152_v38  ;;  %v400_v41 = vmul.f32 %v1154_v39, %v1154_v39  ;;  %v1160_v42 = vpop.f32.mrf.mxu0  ;;  %v1162_v43 = vpop.f32.mrf.mxu1 }
  0x9f   :  { %v530_v44 = vmul.f32 0.7978846, %v490_v36  ;;  %v540_v45 = vmul.f32 0.7978846, %v500_v37  ;;  %v371_v46 = vmul.f32 %v1160_v42, %v1160_v42  ;;  %v381_v47 = vmul.f32 %v1162_v43, %v1162_v43 }
  0xa0   :  { %v430_v48 = vmul.f32 %v390_v40, %v1152_v38  ;;  %v440_v49 = vmul.f32 %v400_v41, %v1154_v39 }
  0xa1   :  { %944 = vtanh.f32 %v530_v44  ;;  %v411_v50 = vmul.f32 %v371_v46, %v1160_v42  ;;  %v421_v51 = vmul.f32 %v381_v47, %v1162_v43 }
  0xa2   :  { %946 = vtanh.f32 %v540_v45  ;;  %v470_v52 = vmul.f32 0.044715, %v430_v48  ;;  %v480_v53 = vmul.f32 0.044715, %v440_v49 }
  0xa3   :  { %v451_v54 = vmul.f32 0.044715, %v411_v50  ;;  %v461_v55 = vmul.f32 0.044715, %v421_v51 }
  0xa4   :  { %v510_v56 = vadd.f32 %v470_v52, %v1152_v38  ;;  %v520_v57 = vadd.f32 %v480_v53, %v1154_v39 }
  0xa5   :  { %v491_v58 = vadd.f32 %v451_v54, %v1160_v42  ;;  %v501_v59 = vadd.f32 %v461_v55, %v1162_v43  ;;  %v1176_v60 = vpop.f32.mrf.mxu2  ;;  %v1178_v61 = vpop.f32.mrf.mxu3 }
  0xa6   :  { %v550_v62 = vmul.f32 0.7978846, %v510_v56  ;;  %v560_v63 = vmul.f32 0.7978846, %v520_v57  ;;  %v391_v0 = vmul.f32 %v1176_v60, %v1176_v60  ;;  %v401_v1 = vmul.f32 %v1178_v61, %v1178_v61  ;;  %v1184_v2 = vpop.f32.mrf.mxu0  ;;  %v1186_v3 = vpop.f32.mrf.mxu1 }
  0xa7   :  { %v945_v4 = vpop.eup %944  ;;  %v531_v5 = vmul.f32 0.7978846, %v491_v58  ;;  %v541_v6 = vmul.f32 0.7978846, %v501_v59  ;;  %v372_v7 = vmul.f32 %v1184_v2, %v1184_v2  ;;  %v382_v8 = vmul.f32 %v1186_v3, %v1186_v3 }
  0xa8   :  { %v947_v9 = vpop.eup %946  ;;  %v610_v10 = vadd.f32 1.0, %v945_v4  ;;  %948 = vtanh.f32 %v550_v62  ;;  %v431_v11 = vmul.f32 %v391_v0, %v1176_v60  ;;  %v441_v12 = vmul.f32 %v401_v1, %v1178_v61 }
  0xa9   :  { %v620_v13 = vadd.f32 1.0, %v947_v9  ;;  %950 = vtanh.f32 %v560_v63  ;;  %v412_v14 = vmul.f32 %v372_v7, %v1184_v2  ;;  %v422_v15 = vmul.f32 %v382_v8, %v1186_v3 }
  0xaa   :  { %v650_v16 = vmul.f32 0.5, %v610_v10  ;;  %952 = vtanh.f32 %v531_v5  ;;  %v471_v17 = vmul.f32 0.044715, %v431_v11  ;;  %v481_v18 = vmul.f32 0.044715, %v441_v12 }
  0xab   :  { %v660_v19 = vmul.f32 0.5, %v620_v13  ;;  %954 = vtanh.f32 %v541_v6  ;;  %v452_v20 = vmul.f32 0.044715, %v412_v14  ;;  %v462_v21 = vmul.f32 0.044715, %v422_v15 }
  0xac   :  { %v690_v22 = vmul.f32 %v650_v16, %v1140_v28  ;;  %v511_v23 = vadd.f32 %v471_v17, %v1176_v60  ;;  %v521_v24 = vadd.f32 %v481_v18, %v1178_v61 }
  0xad   :  { %v700_v25 = vmul.f32 %v660_v19, %v1142_v29  ;;  %v492_v26 = vadd.f32 %v452_v20, %v1184_v2  ;;  %v502_v27 = vadd.f32 %v462_v21, %v1186_v3  ;;  %v1202_v30 = vpop.f32.mrf.mxu2  ;;  %v1204_v31 = vpop.f32.mrf.mxu3 }
  0xae   :  { %v949_v32 = vpop.eup %948  ;;  %731 = vst.msk [vmem:[%s1581_s2] sm:$0xff] %vm730_vm1, %v690_v22  ;;  %v551_v28 = vmul.f32 0.7978846, %v511_v23  ;;  %v561_v33 = vmul.f32 0.7978846, %v521_v24  ;;  %v392_v34 = vmul.f32 %v1202_v30, %v1202_v30  ;;  %v402_v29 = vmul.f32 %v1204_v31, %v1204_v31  ;;  %v1214_v35 = vpop.f32.mrf.mxu0 }
  0xaf   :  { %v1216_v36 = vpop.f32.mrf.mxu1  ;;  %v951_v37 = vpop.eup %950  ;;  %741 = vst.msk [vmem:[%s1581_s2 + $0x50] sm:$0xff] %vm730_vm1, %v700_v25  ;;  %v630_v40 = vadd.f32 1.0, %v949_v32  ;;  %v532_v41 = vmul.f32 0.7978846, %v492_v26  ;;  %v542_v44 = vmul.f32 0.7978846, %v502_v27  ;;  %v373_v45 = vmul.f32 %v1214_v35, %v1214_v35 }
  0xb0   :  { %v953_v46 = vpop.eup %952  ;;  %v640_v47 = vadd.f32 1.0, %v951_v37  ;;  %956 = vtanh.f32 %v551_v28  ;;  %v432_v48 = vmul.f32 %v392_v34, %v1202_v30  ;;  %v442_v49 = vmul.f32 %v402_v29, %v1204_v31 }
  0xb1   :  { %v955_v50 = vpop.eup %954  ;;  %v670_v51 = vmul.f32 0.5, %v630_v40  ;;  %v611_v52 = vadd.f32 1.0, %v953_v46  ;;  %958 = vtanh.f32 %v561_v33  ;;  %v413_v53 = vmul.f32 %v373_v45, %v1214_v35 }
  0xb2   :  { %v680_v54 = vmul.f32 0.5, %v640_v47  ;;  %v621_v55 = vadd.f32 1.0, %v955_v50  ;;  %960 = vtanh.f32 %v532_v41  ;;  %v472_v56 = vmul.f32 0.044715, %v432_v48 }
  0xb3   :  { %v710_v57 = vmul.f32 %v670_v51, %v1152_v38  ;;  %v651_v58 = vmul.f32 0.5, %v611_v52  ;;  %962 = vtanh.f32 %v542_v44  ;;  %v482_v59 = vmul.f32 0.044715, %v442_v49 }
  0xb4   :  { %v720_v62 = vmul.f32 %v680_v54, %v1154_v39  ;;  %v661_v63 = vmul.f32 0.5, %v621_v55  ;;  %v512_v0 = vadd.f32 %v472_v56, %v1202_v30  ;;  %v453_v1 = vmul.f32 0.044715, %v413_v53 }
  0xb5   :  { %751 = vst.msk [vmem:[%s1581_s2 + $0xa0] sm:$0xff] %vm730_vm1, %v710_v57  ;;  %v691_v4 = vmul.f32 %v651_v58, %v1160_v42  ;;  %v522_v5 = vadd.f32 %v482_v59, %v1204_v31  ;;  %v383_v38 = vmul.f32 %v1216_v36, %v1216_v36  ;;  %v1238_v6 = vpop.f32.mrf.mxu2  ;;  %v1240_v7 = vpop.f32.mrf.mxu3 }
  0xb6   :  { %v957_v39 = vpop.eup %956  ;;  %761 = vst.msk [vmem:[%s1581_s2 + $0xf0] sm:$0xff] %vm730_vm1, %v720_v62  ;;  %v701_v8 = vmul.f32 %v661_v63, %v1162_v43  ;;  %v552_v9 = vmul.f32 0.7978846, %v512_v0  ;;  %v493_v42 = vadd.f32 %v453_v1, %v1214_v35  ;;  %v393_v10 = vmul.f32 %v1238_v6, %v1238_v6  ;;  %v1250_v11 = vpop.f32.mrf.mxu0 }
  0xb7   :  { %v1252_v12 = vpop.f32.mrf.mxu1  ;;  %v959_v13 = vpop.eup %958  ;;  %732 = vst.msk [vmem:[%s1581_s2 + $0x8] sm:$0xff] %vm730_vm1, %v691_v4  ;;  %v631_v14 = vadd.f32 1.0, %v957_v39  ;;  %v562_v15 = vmul.f32 0.7978846, %v522_v5  ;;  %v423_v43 = vmul.f32 %v383_v38, %v1216_v36  ;;  %v403_v16 = vmul.f32 %v1240_v7, %v1240_v7 }
  0xb8   :  { %v961_v17 = vpop.eup %960  ;;  %742 = vst.msk [vmem:[%s1581_s2 + $0x58] sm:$0xff] %vm730_vm1, %v701_v8  ;;  %v641_v18 = vadd.f32 1.0, %v959_v13  ;;  %964 = vtanh.f32 %v552_v9  ;;  %v533_v19 = vmul.f32 0.7978846, %v493_v42  ;;  %v433_v20 = vmul.f32 %v393_v10, %v1238_v6 }
  0xb9   :  { %v963_v21 = vpop.eup %962  ;;  %v671_v22 = vmul.f32 0.5, %v631_v14  ;;  %v612_v23 = vadd.f32 1.0, %v961_v17  ;;  %966 = vtanh.f32 %v562_v15  ;;  %v463_v24 = vmul.f32 0.044715, %v423_v43 }
  0xba   :  { %v681_v25 = vmul.f32 0.5, %v641_v18  ;;  %v622_v26 = vadd.f32 1.0, %v963_v21  ;;  %968 = vtanh.f32 %v533_v19  ;;  %v473_v27 = vmul.f32 0.044715, %v433_v20 }
  0xbb   :  { %v711_v32 = vmul.f32 %v671_v22, %v1176_v60  ;;  %v652_v28 = vmul.f32 0.5, %v612_v23  ;;  %v503_v33 = vadd.f32 %v463_v24, %v1216_v36  ;;  %v443_v34 = vmul.f32 %v403_v16, %v1240_v7 }
  0xbc   :  { %v721_v29 = vmul.f32 %v681_v25, %v1178_v61  ;;  %v662_v37 = vmul.f32 0.5, %v622_v26  ;;  %v513_v40 = vadd.f32 %v473_v27, %v1238_v6  ;;  %v374_v41 = vmul.f32 %v1250_v11, %v1250_v11 }
  0xbd   :  { %752 = vst.msk [vmem:[%s1581_s2 + $0xa8] sm:$0xff] %vm730_vm1, %v711_v32  ;;  %v692_v60 = vmul.f32 %v652_v28, %v1184_v2  ;;  %v543_v44 = vmul.f32 0.7978846, %v503_v33  ;;  %v483_v45 = vmul.f32 0.044715, %v443_v34  ;;  %v384_v46 = vmul.f32 %v1252_v12, %v1252_v12  ;;  %v1280_v47 = vpop.f32.mrf.mxu2  ;;  %v1282_v61 = vpop.f32.mrf.mxu3 }
  0xbe   :  { %v965_v48 = vpop.eup %964  ;;  %762 = vst.msk [vmem:[%s1581_s2 + $0xf8] sm:$0xff] %vm730_vm1, %v721_v29  ;;  %v702_v49 = vmul.f32 %v662_v37, %v1186_v3  ;;  %v553_v50 = vmul.f32 0.7978846, %v513_v40  ;;  %v414_v2 = vmul.f32 %v374_v41, %v1250_v11  ;;  %v394_v51 = vmul.f32 %v1280_v47, %v1280_v47  ;;  %v1292_v52 = vpop.f32.mrf.mxu0 }
  0xbf   :  { %v1294_v53 = vpop.f32.mrf.mxu1  ;;  %v967_v54 = vpop.eup %966  ;;  %733 = vst.msk [vmem:[%s1581_s2 + $0x10] sm:$0xff] %vm730_vm1, %v692_v60  ;;  %v632_v55 = vadd.f32 1.0, %v965_v48  ;;  %970 = vtanh.f32 %v543_v44  ;;  %v523_v3 = vadd.f32 %v483_v45, %v1240_v7  ;;  %v424_v56 = vmul.f32 %v384_v46, %v1252_v12 }
  0xc0   :  { %v969_v57 = vpop.eup %968  ;;  %743 = vst.msk [vmem:[%s1581_s2 + $0x60] sm:$0xff] %vm730_vm1, %v702_v49  ;;  %v642_v58 = vadd.f32 1.0, %v967_v54  ;;  %972 = vtanh.f32 %v553_v50  ;;  %v454_v59 = vmul.f32 0.044715, %v414_v2  ;;  %v434_v62 = vmul.f32 %v394_v51, %v1280_v47 }
  0xc1   :  { %v672_v63 = vmul.f32 0.5, %v632_v55  ;;  %v613_v0 = vadd.f32 1.0, %v969_v57  ;;  %v563_v1 = vmul.f32 0.7978846, %v523_v3  ;;  %v464_v4 = vmul.f32 0.044715, %v424_v56 }
  0xc2   :  { %v682_v5 = vmul.f32 0.5, %v642_v58  ;;  %v494_v38 = vadd.f32 %v454_v59, %v1250_v11  ;;  %v474_v39 = vmul.f32 0.044715, %v434_v62  ;;  %v404_v8 = vmul.f32 %v1282_v61, %v1282_v61 }
  0xc3   :  { %v712_v9 = vmul.f32 %v672_v63, %v1202_v30  ;;  %v653_v42 = vmul.f32 0.5, %v613_v0  ;;  %974 = vtanh.f32 %v563_v1  ;;  %v504_v10 = vadd.f32 %v464_v4, %v1252_v12 }
  0xc4   :  { %v722_v13 = vmul.f32 %v682_v5, %v1204_v31  ;;  %v534_v14 = vmul.f32 0.7978846, %v494_v38  ;;  %v514_v15 = vadd.f32 %v474_v39, %v1280_v47  ;;  %v444_v43 = vmul.f32 %v404_v8, %v1282_v61 }
  0xc5   :  { %v971_v16 = vpop.eup %970  ;;  %753 = vst.msk [vmem:[%s1581_s2 + $0xb0] sm:$0xff] %vm730_vm1, %v712_v9  ;;  %v693_v17 = vmul.f32 %v653_v42, %v1214_v35  ;;  %v544_v30 = vmul.f32 0.7978846, %v504_v10  ;;  %v375_v18 = vmul.f32 %v1292_v52, %v1292_v52  ;;  %v385_v31 = vmul.f32 %v1294_v53, %v1294_v53  ;;  %v1324_v19 = vpop.f32.mrf.mxu2 }
  0xc6   :  { %v1326_v20 = vpop.f32.mrf.mxu3  ;;  %v973_v21 = vpop.eup %972  ;;  %763 = vst.msk [vmem:[%s1581_s2 + $0x100] sm:$0xff] %vm730_vm1, %v722_v13  ;;  %v623_v22 = vadd.f32 1.0, %v971_v16  ;;  %976 = vtanh.f32 %v534_v14  ;;  %v554_v35 = vmul.f32 0.7978846, %v514_v15  ;;  %v484_v23 = vmul.f32 0.044715, %v444_v43 }
  0xc7   :  { %734 = vst.msk [vmem:[%s1581_s2 + $0x18] sm:$0xff] %vm730_vm1, %v693_v17  ;;  %v633_v24 = vadd.f32 1.0, %v973_v21  ;;  %978 = vtanh.f32 %v544_v30  ;;  %v415_v25 = vmul.f32 %v375_v18, %v1292_v52  ;;  %v425_v26 = vmul.f32 %v385_v31, %v1294_v53  ;;  %v1338_v27 = vpop.f32.mrf.mxu0  ;;  %v1343_v34 = vpop.f32.mrf.mxu1 }
  0xc8   :  { %v663_v32 = vmul.f32 0.5, %v623_v22  ;;  %980 = vtanh.f32 %v554_v35  ;;  %v524_v28 = vadd.f32 %v484_v23, %v1282_v61  ;;  %v395_v33 = vmul.f32 %v1324_v19, %v1324_v19 }
  0xc9   :  { %v975_v29 = vpop.eup %974  ;;  %v673_v37 = vmul.f32 0.5, %v633_v24  ;;  %v455_v40 = vmul.f32 0.044715, %v415_v25  ;;  %v465_v41 = vmul.f32 0.044715, %v425_v26  ;;  %v405_v60 = vmul.f32 %v1326_v20, %v1326_v20 }
  0xca   :  { %v703_v44 = vmul.f32 %v663_v32, %v1216_v36  ;;  %v643_v45 = vadd.f32 1.0, %v975_v29  ;;  %v564_v46 = vmul.f32 0.7978846, %v524_v28  ;;  %v435_v48 = vmul.f32 %v395_v33, %v1324_v19 }
  0xcb   :  { %v713_v49 = vmul.f32 %v673_v37, %v1238_v6  ;;  %v495_v50 = vadd.f32 %v455_v40, %v1292_v52  ;;  %v505_v2 = vadd.f32 %v465_v41, %v1294_v53  ;;  %v445_v51 = vmul.f32 %v405_v60, %v1326_v20 }
  0xcc   :  { %v977_v54 = vpop.eup %976  ;;  %744 = vst.msk [vmem:[%s1581_s2 + $0x68] sm:$0xff] %vm730_vm1, %v703_v44  ;;  %v683_v55 = vmul.f32 0.5, %v643_v45  ;;  %982 = vtanh.f32 %v564_v46  ;;  %v475_v36 = vmul.f32 0.044715, %v435_v48  ;;  %v376_v3 = vmul.f32 %v1338_v27, %v1338_v27 }
  0xcd   :  { %v979_v56 = vpop.eup %978  ;;  %754 = vst.msk [vmem:[%s1581_s2 + $0xb8] sm:$0xff] %vm730_vm1, %v713_v49  ;;  %v614_v6 = vadd.f32 1.0, %v977_v54  ;;  %v535_v57 = vmul.f32 0.7978846, %v495_v50  ;;  %v545_v58 = vmul.f32 0.7978846, %v505_v2  ;;  %v386_v59 = vmul.f32 %v1343_v34, %v1343_v34  ;;  %v1365_v62 = vpop.f32.mrf.mxu2 }
  0xce   :  { %v1367_v63 = vpop.f32.mrf.mxu3  ;;  %v981_v0 = vpop.eup %980  ;;  %v723_v1 = vmul.f32 %v683_v55, %v1240_v7  ;;  %v624_v4 = vadd.f32 1.0, %v979_v56  ;;  %v515_v5 = vadd.f32 %v475_v36, %v1324_v19  ;;  %v485_v38 = vmul.f32 0.044715, %v445_v51 }
  0xcf   :  { %v654_v39 = vmul.f32 0.5, %v614_v6  ;;  %v634_v8 = vadd.f32 1.0, %v981_v0  ;;  %984 = vtanh.f32 %v535_v57  ;;  %v416_v9 = vmul.f32 %v376_v3, %v1338_v27  ;;  %v1379_v16 = vpop.f32.mrf.mxu0  ;;  %v1384_v21 = vpop.f32.mrf.mxu1 }
  0xd0   :  { %764 = vst.msk [vmem:[%s1581_s2 + $0x108] sm:$0xff] %vm730_vm1, %v723_v1  ;;  %v664_v42 = vmul.f32 0.5, %v624_v4  ;;  %986 = vtanh.f32 %v545_v58  ;;  %v555_v10 = vmul.f32 0.7978846, %v515_v5  ;;  %v525_v13 = vadd.f32 %v485_v38, %v1326_v20 }
  0xd1   :  { %v694_v7 = vmul.f32 %v654_v39, %v1250_v11  ;;  %v674_v14 = vmul.f32 0.5, %v634_v8  ;;  %v456_v15 = vmul.f32 0.044715, %v416_v9  ;;  %v426_v43 = vmul.f32 %v386_v59, %v1343_v34 }
  0xd2   :  { %v983_v17 = vpop.eup %982  ;;  %v704_v30 = vmul.f32 %v664_v42, %v1252_v12  ;;  %988 = vtanh.f32 %v555_v10  ;;  %v565_v18 = vmul.f32 0.7978846, %v525_v13  ;;  %v396_v31 = vmul.f32 %v1365_v62, %v1365_v62 }
  0xd3   :  { %735 = vst.msk [vmem:[%s1581_s2 + $0x20] sm:$0xff] %vm730_vm1, %v694_v7  ;;  %v714_v11 = vmul.f32 %v674_v14, %v1280_v47  ;;  %v644_v22 = vadd.f32 1.0, %v983_v17  ;;  %v496_v35 = vadd.f32 %v456_v15, %v1338_v27  ;;  %v466_v23 = vmul.f32 0.044715, %v426_v43 }
  0xd4   :  { %745 = vst.msk [vmem:[%s1581_s2 + $0x70] sm:$0xff] %vm730_vm1, %v704_v30  ;;  %990 = vtanh.f32 %v565_v18  ;;  %v436_v12 = vmul.f32 %v396_v31, %v1365_v62  ;;  %v406_v24 = vmul.f32 %v1367_v63, %v1367_v63  ;;  %v377_v25 = vmul.f32 %v1379_v16, %v1379_v16 }
  0xd5   :  { %v985_v26 = vpop.eup %984  ;;  %755 = vst.msk [vmem:[%s1581_s2 + $0xc0] sm:$0xff] %vm730_vm1, %v714_v11  ;;  %v684_v47 = vmul.f32 0.5, %v644_v22  ;;  %v536_v32 = vmul.f32 0.7978846, %v496_v35  ;;  %v506_v28 = vadd.f32 %v466_v23, %v1343_v34  ;;  %v387_v33 = vmul.f32 %v1384_v21, %v1384_v21  ;;  %v1408_v29 = vpop.f32.mrf.mxu2 }
  0xd6   :  { %v1410_v37 = vpop.f32.mrf.mxu3  ;;  %v987_v40 = vpop.eup %986  ;;  %v615_v41 = vadd.f32 1.0, %v985_v26  ;;  %v476_v60 = vmul.f32 0.044715, %v436_v12  ;;  %v446_v44 = vmul.f32 %v406_v24, %v1367_v63  ;;  %v417_v45 = vmul.f32 %v377_v25, %v1379_v16 }
  0xd7   :  { %v724_v46 = vmul.f32 %v684_v47, %v1282_v61  ;;  %v625_v48 = vadd.f32 1.0, %v987_v40  ;;  %992 = vtanh.f32 %v536_v32  ;;  %v546_v49 = vmul.f32 0.7978846, %v506_v28  ;;  %v1425_v38 = vpop.f32.mrf.mxu0  ;;  %v1441_v7 = vpop.f32.mrf.mxu1 }
  0xd8   :  { %v989_v50 = vpop.eup %988  ;;  %v655_v2 = vmul.f32 0.5, %v615_v41  ;;  %v516_v51 = vadd.f32 %v476_v60, %v1365_v62  ;;  %v486_v54 = vmul.f32 0.044715, %v446_v44  ;;  %v457_v55 = vmul.f32 0.044715, %v417_v45 }
  0xd9   :  { %765 = vst.msk [vmem:[%s1581_s2 + $0x110] sm:$0xff] %vm730_vm1, %v724_v46  ;;  %v665_v36 = vmul.f32 0.5, %v625_v48  ;;  %v635_v3 = vadd.f32 1.0, %v989_v50  ;;  %994 = vtanh.f32 %v546_v49  ;;  %v427_v56 = vmul.f32 %v387_v33, %v1384_v21 }
  0xda   :  { %v991_v61 = vpop.eup %990  ;;  %v695_v6 = vmul.f32 %v655_v2, %v1292_v52  ;;  %v556_v57 = vmul.f32 0.7978846, %v516_v51  ;;  %v526_v58 = vadd.f32 %v486_v54, %v1367_v63  ;;  %v497_v59 = vadd.f32 %v457_v55, %v1379_v16 }
  0xdb   :  { %v705_v0 = vmul.f32 %v665_v36, %v1294_v53  ;;  %v675_v1 = vmul.f32 0.5, %v635_v3  ;;  %v645_v4 = vadd.f32 1.0, %v991_v61  ;;  %v467_v5 = vmul.f32 0.044715, %v427_v56 }
  0xdc   :  { %736 = vst.msk [vmem:[%s1581_s2 + $0x28] sm:$0xff] %vm730_vm1, %v695_v6  ;;  %996 = vtanh.f32 %v556_v57  ;;  %v566_v39 = vmul.f32 0.7978846, %v526_v58  ;;  %v537_v52 = vmul.f32 0.7978846, %v497_v59  ;;  %v397_v8 = vmul.f32 %v1408_v29, %v1408_v29 }
  0xdd   :  { %v993_v9 = vpop.eup %992  ;;  %746 = vst.msk [vmem:[%s1581_s2 + $0x78] sm:$0xff] %vm730_vm1, %v705_v0  ;;  %v715_v53 = vmul.f32 %v675_v1, %v1324_v19  ;;  %v685_v42 = vmul.f32 0.5, %v645_v4  ;;  %v507_v10 = vadd.f32 %v467_v5, %v1384_v21  ;;  %v407_v13 = vmul.f32 %v1410_v37, %v1410_v37  ;;  %v1446_v17 = vpop.f32.mrf.mxu2 }
  0xde   :  { %v616_v14 = vadd.f32 1.0, %v993_v9  ;;  %998 = vtanh.f32 %v566_v39  ;;  %v437_v15 = vmul.f32 %v397_v8, %v1408_v29  ;;  %v378_v43 = vmul.f32 %v1425_v38, %v1425_v38  ;;  %v1454_v11 = vpop.f32.mrf.mxu3 }
  0xdf   :  { %v995_v30 = vpop.eup %994  ;;  %756 = vst.msk [vmem:[%s1581_s2 + $0xc8] sm:$0xff] %vm730_vm1, %v715_v53  ;;  %v725_v19 = vmul.f32 %v685_v42, %v1326_v20  ;;  %1000 = vtanh.f32 %v537_v52  ;;  %v547_v18 = vmul.f32 0.7978846, %v507_v10  ;;  %v447_v31 = vmul.f32 %v407_v13, %v1410_v37  ;;  %v1482_v56 = vpop.f32.mrf.mxu0 }
  0xe0   :  { %v656_v22 = vmul.f32 0.5, %v616_v14  ;;  %v626_v35 = vadd.f32 1.0, %v995_v30  ;;  %v477_v23 = vmul.f32 0.044715, %v437_v15  ;;  %v418_v12 = vmul.f32 %v378_v43, %v1425_v38  ;;  %v1486_v59 = vpop.f32.mrf.mxu1 }
  0xe1   :  { %766 = vst.msk [vmem:[%s1581_s2 + $0x118] sm:$0xff] %vm730_vm1, %v725_v19  ;;  %1002 = vtanh.f32 %v547_v18  ;;  %v487_v24 = vmul.f32 0.044715, %v447_v31  ;;  %v388_v20 = vmul.f32 %v1441_v7, %v1441_v7  ;;  %v398_v25 = vmul.f32 %v1446_v17, %v1446_v17 }
  0xe2   :  { %v997_v26 = vpop.eup %996  ;;  %v696_v47 = vmul.f32 %v656_v22, %v1338_v27  ;;  %v666_v32 = vmul.f32 0.5, %v626_v35  ;;  %v517_v28 = vadd.f32 %v477_v23, %v1408_v29  ;;  %v458_v33 = vmul.f32 0.044715, %v418_v12 }
  0xe3   :  { %v636_v40 = vadd.f32 1.0, %v997_v26  ;;  %v527_v41 = vadd.f32 %v487_v24, %v1410_v37  ;;  %v428_v60 = vmul.f32 %v388_v20, %v1441_v7  ;;  %v438_v44 = vmul.f32 %v398_v25, %v1446_v17 }
  0xe4   :  { %v999_v45 = vpop.eup %998  ;;  %737 = vst.msk [vmem:[%s1581_s2 + $0x30] sm:$0xff] %vm730_vm1, %v696_v47  ;;  %v706_v46 = vmul.f32 %v666_v32, %v1343_v34  ;;  %v557_v27 = vmul.f32 0.7978846, %v517_v28  ;;  %v498_v48 = vadd.f32 %v458_v33, %v1425_v38  ;;  %v408_v49 = vmul.f32 %v1454_v11, %v1454_v11 }
  0xe5   :  { %v1001_v50 = vpop.eup %1000  ;;  %v676_v2 = vmul.f32 0.5, %v636_v40  ;;  %v646_v51 = vadd.f32 1.0, %v999_v45  ;;  %v567_v54 = vmul.f32 0.7978846, %v527_v41  ;;  %v468_v55 = vmul.f32 0.044715, %v428_v60  ;;  %v1489_v5 = vpop.f32.mrf.mxu2 }
  0xe6   :  { %747 = vst.msk [vmem:[%s1581_s2 + $0x80] sm:$0xff] %vm730_vm1, %v706_v46  ;;  %v617_v36 = vadd.f32 1.0, %v1001_v50  ;;  %1004 = vtanh.f32 %v557_v27  ;;  %v538_v3 = vmul.f32 0.7978846, %v498_v48  ;;  %v478_v34 = vmul.f32 0.044715, %v438_v44  ;;  %v1499_v9 = vpop.f32.mrf.mxu3 }
  0xe7   :  { %v1003_v61 = vpop.eup %1002  ;;  %v716_v6 = vmul.f32 %v676_v2, %v1365_v62  ;;  %v686_v57 = vmul.f32 0.5, %v646_v51  ;;  %1006 = vtanh.f32 %v567_v54  ;;  %v508_v58 = vadd.f32 %v468_v55, %v1441_v7 }
  0xe8   :  { %v657_v0 = vmul.f32 0.5, %v617_v36  ;;  %v627_v1 = vadd.f32 1.0, %v1003_v61  ;;  %1008 = vtanh.f32 %v538_v3  ;;  %v518_v4 = vadd.f32 %v478_v34, %v1446_v17 }
  0xe9   :  { %757 = vst.msk [vmem:[%s1581_s2 + $0xd0] sm:$0xff] %vm730_vm1, %v716_v6  ;;  %v726_v62 = vmul.f32 %v686_v57, %v1367_v63  ;;  %v548_v39 = vmul.f32 0.7978846, %v508_v58  ;;  %v448_v52 = vmul.f32 %v408_v49, %v1454_v11  ;;  %v379_v8 = vmul.f32 %v1482_v56, %v1482_v56 }
  0xea   :  { %v697_v53 = vmul.f32 %v657_v0, %v1379_v16  ;;  %v667_v42 = vmul.f32 0.5, %v627_v1  ;;  %v558_v10 = vmul.f32 0.7978846, %v518_v4  ;;  %v389_v13 = vmul.f32 %v1486_v59, %v1486_v59 }
  0xeb   :  { %767 = vst.msk [vmem:[%s1581_s2 + $0x120] sm:$0xff] %vm730_vm1, %v726_v62  ;;  %1010 = vtanh.f32 %v548_v39  ;;  %v488_v63 = vmul.f32 0.044715, %v448_v52  ;;  %v419_v14 = vmul.f32 %v379_v8, %v1482_v56  ;;  %v399_v15 = vmul.f32 %v1489_v5, %v1489_v5 }
  0xec   :  { %v1005_v43 = vpop.eup %1004  ;;  %738 = vst.msk [vmem:[%s1581_s2 + $0x38] sm:$0xff] %vm730_vm1, %v697_v53  ;;  %v707_v16 = vmul.f32 %v667_v42, %v1384_v21  ;;  %1012 = vtanh.f32 %v558_v10  ;;  %v429_v30 = vmul.f32 %v389_v13, %v1486_v59  ;;  %v409_v19 = vmul.f32 %v1499_v9, %v1499_v9 }
  0xed   :  { %v1007_v18 = vpop.eup %1006  ;;  %v637_v31 = vadd.f32 1.0, %v1005_v43  ;;  %v528_v22 = vadd.f32 %v488_v63, %v1454_v11  ;;  %v459_v35 = vmul.f32 0.044715, %v419_v14  ;;  %v439_v23 = vmul.f32 %v399_v15, %v1489_v5 }
  0xee   :  { %v1009_v12 = vpop.eup %1008  ;;  %748 = vst.msk [vmem:[%s1581_s2 + $0x88] sm:$0xff] %vm730_vm1, %v707_v16  ;;  %v647_v21 = vadd.f32 1.0, %v1007_v18  ;;  %v469_v24 = vmul.f32 0.044715, %v429_v30  ;;  %v449_v20 = vmul.f32 %v409_v19, %v1499_v9 }
  0xef   :  { %v677_v25 = vmul.f32 0.5, %v637_v31  ;;  %v618_v26 = vadd.f32 1.0, %v1009_v12  ;;  %v568_v47 = vmul.f32 0.7978846, %v528_v22  ;;  %v499_v32 = vadd.f32 %v459_v35, %v1482_v56 }
  0xf0   :  { %v687_v28 = vmul.f32 0.5, %v647_v21  ;;  %v509_v33 = vadd.f32 %v469_v24, %v1486_v59  ;;  %v479_v40 = vmul.f32 0.044715, %v439_v23  ;;  %v489_v41 = vmul.f32 0.044715, %v449_v20 }
  0xf1   :  { %v1011_v60 = vpop.eup %1010  ;;  %v717_v44 = vmul.f32 %v677_v25, %v1408_v29  ;;  %v658_v45 = vmul.f32 0.5, %v618_v26  ;;  %1014 = vtanh.f32 %v568_v47  ;;  %v539_v46 = vmul.f32 0.7978846, %v499_v32 }
  0xf2   :  { %v1013_v27 = vpop.eup %1012  ;;  %v727_v48 = vmul.f32 %v687_v28, %v1410_v37  ;;  %v628_v49 = vadd.f32 1.0, %v1011_v60  ;;  %v549_v50 = vmul.f32 0.7978846, %v509_v33  ;;  %v519_v2 = vadd.f32 %v479_v40, %v1489_v5 }
  0xf3   :  { %758 = vst.msk [vmem:[%s1581_s2 + $0xd8] sm:$0xff] %vm730_vm1, %v717_v44  ;;  %v698_v51 = vmul.f32 %v658_v45, %v1425_v38  ;;  %v638_v54 = vadd.f32 1.0, %v1013_v27  ;;  %1016 = vtanh.f32 %v539_v46  ;;  %v529_v29 = vadd.f32 %v489_v41, %v1499_v9 }
  0xf4   :  { %768 = vst.msk [vmem:[%s1581_s2 + $0x128] sm:$0xff] %vm730_vm1, %v727_v48  ;;  %v668_v37 = vmul.f32 0.5, %v628_v49  ;;  %1018 = vtanh.f32 %v549_v50  ;;  %v559_v55 = vmul.f32 0.7978846, %v519_v2 }
  0xf5   :  { %739 = vst.msk [vmem:[%s1581_s2 + $0x40] sm:$0xff] %vm730_vm1, %v698_v51  ;;  %v678_v36 = vmul.f32 0.5, %v638_v54  ;;  %v569_v3 = vmul.f32 0.7978846, %v529_v29 }
  0xf6   :  { %v708_v38 = vmul.f32 %v668_v37, %v1441_v7  ;;  %1020 = vtanh.f32 %v559_v55 }
  0xf7   :  { %v1015_v34 = vpop.eup %1014  ;;  %v718_v61 = vmul.f32 %v678_v36, %v1446_v17  ;;  %1022 = vtanh.f32 %v569_v3 }
  0xf8   :  { %749 = vst.msk [vmem:[%s1581_s2 + $0x90] sm:$0xff] %vm730_vm1, %v708_v38  ;;  %v648_v6 = vadd.f32 1.0, %v1015_v34 }
  0xf9   :  { %v1017_v57 = vpop.eup %1016  ;;  %759 = vst.msk [vmem:[%s1581_s2 + $0xe0] sm:$0xff] %vm730_vm1, %v718_v61 }
  0xfa   :  { %v1019_v58 = vpop.eup %1018  ;;  %v688_v0 = vmul.f32 0.5, %v648_v6  ;;  %v619_v7 = vadd.f32 1.0, %v1017_v57 }
  0xfb   :  { %v629_v1 = vadd.f32 1.0, %v1019_v58 }
  0xfc   :  { %v1021_v4 = vpop.eup %1020  ;;  %v728_v17 = vmul.f32 %v688_v0, %v1454_v11  ;;  %v659_v62 = vmul.f32 0.5, %v619_v7 }
  0xfd   :  { %v1023_v39 = vpop.eup %1022  ;;  %v669_v52 = vmul.f32 0.5, %v629_v1  ;;  %v639_v8 = vadd.f32 1.0, %v1021_v4 }
  0xfe   :  { %769 = vst.msk [vmem:[%s1581_s2 + $0x130] sm:$0xff] %vm730_vm1, %v728_v17  ;;  %v699_v53 = vmul.f32 %v659_v62, %v1482_v56  ;;  %v649_v42 = vadd.f32 1.0, %v1023_v39 }
  0xff   :  { %v709_v10 = vmul.f32 %v669_v52, %v1486_v59  ;;  %v679_v13 = vmul.f32 0.5, %v639_v8 }
 0x100   :  { %740 = vst.msk [vmem:[%s1581_s2 + $0x48] sm:$0xff] %vm730_vm1, %v699_v53  ;;  %v689_v11 = vmul.f32 0.5, %v649_v42 }
 0x101   :  { %750 = vst.msk [vmem:[%s1581_s2 + $0x98] sm:$0xff] %vm730_vm1, %v709_v10  ;;  %v719_v63 = vmul.f32 %v679_v13, %v1489_v5 }
 0x102   :  { %v729_v56 = vmul.f32 %v689_v11, %v1499_v9 }
 0x103   :  { %760 = vst.msk [vmem:[%s1581_s2 + $0xe8] sm:$0xff] %vm730_vm1, %v719_v63 }
 0x104   :  { %771 = vst.msk [vmem:[%s1581_s2 + $0x138] sm:$0x3f] %vm770_vm2, %v729_v56 }

// kernel: forward.26
= control target key start
LH: loop header
LB: loop body
LE: loop exit
PB: predicated region body
PF: predicated region fallthrough
CT: control target
= control target key end

     0   :  { %vm130_vm0 = vcmask 785408   ;;  %vm400_vm1 = vcmask 261120   ;;  %vm420_vm2 = vcmask 259072   ;;  %s862_s1 = inlined_call_operand.vmem [shape: bf16[96,32], index: 1, kind: input, shape index: {}]   ;;  %s863_s0 = inlined_call_operand.vmem [shape: bf16[158,96], index: 0, kind: input, shape index: {}]   ;;  %s864_s2 = inlined_call_operand.vmem [shape: f32[158,32], index: 2, kind: output, shape index: {}]  }
   0x1   :  { %v515_v0 = vld [vmem:[%s862_s1 + $0x28] sm:$0xff]  ;;  %v514_v1 = vld [vmem:[%s862_s1 + $0x20] sm:$0xff]  ;;  %v513_v2 = vld [vmem:[%s862_s1 + $0x18] sm:$0xff] }
   0x2   :  { %163 = vmatpush.bf16.msra.mxu0 %v515_v0  ;;  %516 = vmatpush.bf16.msra.mxu1 %v515_v0  ;;  %v512_v3 = vld [vmem:[%s862_s1 + $0x10] sm:$0xff]  ;;  %v511_v4 = vld [vmem:[%s862_s1 + $0x8] sm:$0xff]  ;;  %v510_v5 = vld [vmem:[%s862_s1] sm:$0xff] }
   0x3   :  { %517 = vmatpush.bf16.msra.mxu2 %v515_v0  ;;  %518 = vmatpush.bf16.msra.mxu3 %v515_v0  ;;  %v500_v6 = vld [vmem:[%s863_s0] sm:$0xff]  ;;  %v502_v7 = vld [vmem:[%s863_s0 + $0x10] sm:$0xff]  ;;  %v505_v8 = vld [vmem:[%s863_s0 + $0x28] sm:$0xff] }
   0x4   :  { %v508_v9 = vld [vmem:[%s863_s0 + $0x40] sm:$0xff]  ;;  %v464_v10 = vld [vmem:[%s863_s0 + $0x48] sm:$0xf]  ;;  %v509_v11 = vld [vmem:[%s863_s0 + $0x48] sm:$0x70] }
   0x5   :  { %v501_v12 = vld [vmem:[%s863_s0 + $0x8] sm:$0xff]  ;;  %v503_v13 = vld [vmem:[%s863_s0 + $0x18] sm:$0xff]  ;;  %v506_v14 = vld [vmem:[%s863_s0 + $0x30] sm:$0xff]  ;;  %v465_v15 = vor.u32 %v509_v11, %v464_v10 }
   0x6   :  { %164 = vmatpush.bf16.msra.mxu0 %v514_v1  ;;  %519 = vmatpush.bf16.msra.mxu1 %v514_v1  ;;  %v504_v16 = vld [vmem:[%s863_s0 + $0x20] sm:$0xff]  ;;  %v507_v17 = vld [vmem:[%s863_s0 + $0x38] sm:$0xff] }
   0x7   :  { %520 = vmatpush.bf16.msra.mxu2 %v514_v1  ;;  %521 = vmatpush.bf16.msra.mxu3 %v514_v1 }
   0xa   :  { %165 = vmatpush.bf16.msra.mxu0 %v513_v2  ;;  %522 = vmatpush.bf16.msra.mxu1 %v513_v2 }
   0xb   :  { %523 = vmatpush.bf16.msra.mxu2 %v513_v2  ;;  %524 = vmatpush.bf16.msra.mxu3 %v513_v2 }
   0xe   :  { %166 = vmatpush.bf16.msra.mxu0 %v512_v3  ;;  %525 = vmatpush.bf16.msra.mxu1 %v512_v3 }
   0xf   :  { %526 = vmatpush.bf16.msra.mxu2 %v512_v3  ;;  %527 = vmatpush.bf16.msra.mxu3 %v512_v3 }
  0x12   :  { %167 = vmatpush.bf16.msra.mxu0 %v511_v4  ;;  %528 = vmatpush.bf16.msra.mxu1 %v511_v4 }
  0x13   :  { %529 = vmatpush.bf16.msra.mxu2 %v511_v4  ;;  %530 = vmatpush.bf16.msra.mxu3 %v511_v4 }
  0x16   :  { %168 = vmatpush.bf16.msra.mxu0 %v510_v5  ;;  %531 = vmatpush.bf16.msra.mxu1 %v510_v5 }
  0x17   :  { %532 = vmatpush.bf16.msra.mxu2 %v510_v5  ;;  %533 = vmatpush.bf16.msra.mxu3 %v510_v5 }
  0x19   :  { %490 = vmatmul.msk.bf16.vlgmr.msra.gmra.mxu0 %vm130_vm0, %v500_v6  ;;  %492 = vmatmul.msk.bf16.vlgmr.msra.gmra.mxu1 %vm130_vm0, %v502_v7 }
  0x1a   :  { %495 = vmatmul.msk.bf16.vlgmr.msra.gmra.mxu2 %vm130_vm0, %v505_v8  ;;  %498 = vmatmul.msk.bf16.vlgmr.msra.gmra.mxu3 %vm130_vm0, %v508_v9 }
  0x29   :  { %491 = vmatmul.msk.bf16.gmra.mxu0 %vm130_vm0, %v501_v12  ;;  %493 = vmatmul.msk.bf16.gmra.mxu1 %vm130_vm0, %v503_v13 }
  0x2a   :  { %496 = vmatmul.msk.bf16.gmra.mxu2 %vm130_vm0, %v506_v14  ;;  %499 = vmatmul.msk.bf16.gmra.mxu3 %vm130_vm0, %v465_v15 }
  0x39   :  { %494 = vmatmul.msk.bf16.gmra.mxu1 %vm130_vm0, %v504_v16 }
  0x3a   :  { %497 = vmatmul.msk.bf16.gmra.mxu2 %vm130_vm0, %v507_v17 }
  0x96   :  { %v650_v18 = vpop.f32.mrf.mxu0  ;;  %v652_v19 = vpop.f32.mrf.mxu1 }
  0x97   :  { %v220_v20 = vmul.f32 %v650_v18, %v650_v18  ;;  %v224_v21 = vmul.f32 %v652_v19, %v652_v19 }
  0x99   :  { %v240_v22 = vmul.f32 %v220_v20, %v650_v18  ;;  %v244_v23 = vmul.f32 %v224_v21, %v652_v19 }
  0x9b   :  { %v260_v24 = vmul.f32 0.044715, %v240_v22  ;;  %v264_v25 = vmul.f32 0.044715, %v244_v23 }
  0x9d   :  { %v280_v26 = vadd.f32 %v260_v24, %v650_v18  ;;  %v284_v27 = vadd.f32 %v264_v25, %v652_v19  ;;  %v662_v28 = vpop.f32.mrf.mxu2  ;;  %v664_v29 = vpop.f32.mrf.mxu3 }
  0x9e   :  { %v230_v30 = vmul.f32 %v662_v28, %v662_v28  ;;  %v236_v31 = vmul.f32 %v664_v29, %v664_v29  ;;  %v670_v32 = vpop.f32.mrf.mxu0  ;;  %v672_v33 = vpop.f32.mrf.mxu1 }
  0x9f   :  { %v300_v34 = vmul.f32 0.7978846, %v280_v26  ;;  %v304_v35 = vmul.f32 0.7978846, %v284_v27  ;;  %v221_v36 = vmul.f32 %v670_v32, %v670_v32  ;;  %v225_v37 = vmul.f32 %v672_v33, %v672_v33 }
  0xa0   :  { %v250_v38 = vmul.f32 %v230_v30, %v662_v28  ;;  %v256_v39 = vmul.f32 %v236_v31, %v664_v29 }
  0xa1   :  { %534 = vtanh.f32 %v300_v34  ;;  %v241_v40 = vmul.f32 %v221_v36, %v670_v32  ;;  %v245_v41 = vmul.f32 %v225_v37, %v672_v33 }
  0xa2   :  { %536 = vtanh.f32 %v304_v35  ;;  %v270_v42 = vmul.f32 0.044715, %v250_v38  ;;  %v276_v43 = vmul.f32 0.044715, %v256_v39 }
  0xa3   :  { %v261_v44 = vmul.f32 0.044715, %v241_v40  ;;  %v265_v45 = vmul.f32 0.044715, %v245_v41 }
  0xa4   :  { %v290_v46 = vadd.f32 %v270_v42, %v662_v28  ;;  %v296_v47 = vadd.f32 %v276_v43, %v664_v29 }
  0xa5   :  { %v281_v48 = vadd.f32 %v261_v44, %v670_v32  ;;  %v285_v49 = vadd.f32 %v265_v45, %v672_v33  ;;  %v686_v50 = vpop.f32.mrf.mxu2  ;;  %v688_v51 = vpop.f32.mrf.mxu3 }
  0xa6   :  { %v310_v52 = vmul.f32 0.7978846, %v290_v46  ;;  %v316_v53 = vmul.f32 0.7978846, %v296_v47  ;;  %v231_v54 = vmul.f32 %v686_v50, %v686_v50  ;;  %v237_v55 = vmul.f32 %v688_v51, %v688_v51  ;;  %v694_v56 = vpop.f32.mrf.mxu0  ;;  %v696_v57 = vpop.f32.mrf.mxu1 }
  0xa7   :  { %v535_v58 = vpop.eup %534  ;;  %v301_v59 = vmul.f32 0.7978846, %v281_v48  ;;  %v305_v60 = vmul.f32 0.7978846, %v285_v49  ;;  %v222_v61 = vmul.f32 %v694_v56, %v694_v56  ;;  %v226_v62 = vmul.f32 %v696_v57, %v696_v57 }
  0xa8   :  { %v537_v63 = vpop.eup %536  ;;  %v340_v0 = vadd.f32 1.0, %v535_v58  ;;  %538 = vtanh.f32 %v310_v52  ;;  %v251_v1 = vmul.f32 %v231_v54, %v686_v50  ;;  %v257_v2 = vmul.f32 %v237_v55, %v688_v51 }
  0xa9   :  { %v344_v3 = vadd.f32 1.0, %v537_v63  ;;  %540 = vtanh.f32 %v316_v53  ;;  %v242_v4 = vmul.f32 %v222_v61, %v694_v56  ;;  %v246_v5 = vmul.f32 %v226_v62, %v696_v57 }
  0xaa   :  { %v360_v6 = vmul.f32 0.5, %v340_v0  ;;  %542 = vtanh.f32 %v301_v59  ;;  %v271_v7 = vmul.f32 0.044715, %v251_v1  ;;  %v277_v8 = vmul.f32 0.044715, %v257_v2 }
  0xab   :  { %v364_v9 = vmul.f32 0.5, %v344_v3  ;;  %544 = vtanh.f32 %v305_v60  ;;  %v262_v10 = vmul.f32 0.044715, %v242_v4  ;;  %v266_v11 = vmul.f32 0.044715, %v246_v5 }
  0xac   :  { %v380_v12 = vmul.f32 %v360_v6, %v650_v18  ;;  %v291_v13 = vadd.f32 %v271_v7, %v686_v50  ;;  %v297_v14 = vadd.f32 %v277_v8, %v688_v51 }
  0xad   :  { %v384_v15 = vmul.f32 %v364_v9, %v652_v19  ;;  %v282_v16 = vadd.f32 %v262_v10, %v694_v56  ;;  %v286_v17 = vadd.f32 %v266_v11, %v696_v57  ;;  %v712_v20 = vpop.f32.mrf.mxu2  ;;  %v714_v21 = vpop.f32.mrf.mxu3 }
  0xae   :  { %v539_v22 = vpop.eup %538  ;;  %401 = vst.msk [vmem:[%s864_s2] sm:$0xff] %vm400_vm1, %v380_v12  ;;  %v311_v18 = vmul.f32 0.7978846, %v291_v13  ;;  %v317_v23 = vmul.f32 0.7978846, %v297_v14  ;;  %v232_v24 = vmul.f32 %v712_v20, %v712_v20  ;;  %v238_v19 = vmul.f32 %v714_v21, %v714_v21  ;;  %v724_v25 = vpop.f32.mrf.mxu0 }
  0xaf   :  { %v726_v26 = vpop.f32.mrf.mxu1  ;;  %v541_v27 = vpop.eup %540  ;;  %405 = vst.msk [vmem:[%s864_s2 + $0x20] sm:$0xff] %vm400_vm1, %v384_v15  ;;  %v350_v30 = vadd.f32 1.0, %v539_v22  ;;  %v302_v31 = vmul.f32 0.7978846, %v282_v16  ;;  %v306_v34 = vmul.f32 0.7978846, %v286_v17  ;;  %v223_v35 = vmul.f32 %v724_v25, %v724_v25 }
  0xb0   :  { %v543_v36 = vpop.eup %542  ;;  %v356_v37 = vadd.f32 1.0, %v541_v27  ;;  %546 = vtanh.f32 %v311_v18  ;;  %v252_v38 = vmul.f32 %v232_v24, %v712_v20  ;;  %v258_v39 = vmul.f32 %v238_v19, %v714_v21 }
  0xb1   :  { %v545_v40 = vpop.eup %544  ;;  %v370_v41 = vmul.f32 0.5, %v350_v30  ;;  %v341_v42 = vadd.f32 1.0, %v543_v36  ;;  %548 = vtanh.f32 %v317_v23  ;;  %v243_v43 = vmul.f32 %v223_v35, %v724_v25 }
  0xb2   :  { %v376_v44 = vmul.f32 0.5, %v356_v37  ;;  %v345_v45 = vadd.f32 1.0, %v545_v40  ;;  %550 = vtanh.f32 %v302_v31  ;;  %v272_v46 = vmul.f32 0.044715, %v252_v38 }
  0xb3   :  { %v390_v47 = vmul.f32 %v370_v41, %v662_v28  ;;  %v361_v48 = vmul.f32 0.5, %v341_v42  ;;  %552 = vtanh.f32 %v306_v34  ;;  %v278_v49 = vmul.f32 0.044715, %v258_v39 }
  0xb4   :  { %v396_v52 = vmul.f32 %v376_v44, %v664_v29  ;;  %v365_v53 = vmul.f32 0.5, %v345_v45  ;;  %v292_v54 = vadd.f32 %v272_v46, %v712_v20  ;;  %v263_v55 = vmul.f32 0.044715, %v243_v43 }
  0xb5   :  { %411 = vst.msk [vmem:[%s864_s2 + $0x50] sm:$0xff] %vm400_vm1, %v390_v47  ;;  %v381_v58 = vmul.f32 %v361_v48, %v670_v32  ;;  %v298_v59 = vadd.f32 %v278_v49, %v714_v21  ;;  %v227_v28 = vmul.f32 %v726_v26, %v726_v26  ;;  %v748_v60 = vpop.f32.mrf.mxu2  ;;  %v750_v61 = vpop.f32.mrf.mxu3 }
  0xb6   :  { %v547_v29 = vpop.eup %546  ;;  %417 = vst.msk [vmem:[%s864_s2 + $0x80] sm:$0xff] %vm400_vm1, %v396_v52  ;;  %v385_v62 = vmul.f32 %v365_v53, %v672_v33  ;;  %v312_v63 = vmul.f32 0.7978846, %v292_v54  ;;  %v283_v32 = vadd.f32 %v263_v55, %v724_v25  ;;  %v233_v0 = vmul.f32 %v748_v60, %v748_v60 }
  0xb7   :  { %v760_v1 = vpop.f32.mrf.mxu1  ;;  %v549_v2 = vpop.eup %548  ;;  %402 = vst.msk [vmem:[%s864_s2 + $0x8] sm:$0xff] %vm400_vm1, %v381_v58  ;;  %v351_v3 = vadd.f32 1.0, %v547_v29  ;;  %v318_v4 = vmul.f32 0.7978846, %v298_v59  ;;  %v247_v5 = vmul.f32 %v227_v28, %v726_v26  ;;  %v239_v33 = vmul.f32 %v750_v61, %v750_v61 }
  0xb8   :  { %v551_v6 = vpop.eup %550  ;;  %406 = vst.msk [vmem:[%s864_s2 + $0x28] sm:$0xff] %vm400_vm1, %v385_v62  ;;  %v357_v7 = vadd.f32 1.0, %v549_v2  ;;  %554 = vtanh.f32 %v312_v63  ;;  %v303_v8 = vmul.f32 0.7978846, %v283_v32  ;;  %v253_v9 = vmul.f32 %v233_v0, %v748_v60 }
  0xb9   :  { %v553_v10 = vpop.eup %552  ;;  %v371_v11 = vmul.f32 0.5, %v351_v3  ;;  %v342_v12 = vadd.f32 1.0, %v551_v6  ;;  %556 = vtanh.f32 %v318_v4  ;;  %v267_v13 = vmul.f32 0.044715, %v247_v5 }
  0xba   :  { %v377_v14 = vmul.f32 0.5, %v357_v7  ;;  %v346_v15 = vadd.f32 1.0, %v553_v10  ;;  %558 = vtanh.f32 %v303_v8  ;;  %v273_v16 = vmul.f32 0.044715, %v253_v9 }
  0xbb   :  { %v391_v17 = vmul.f32 %v371_v11, %v686_v50  ;;  %v362_v22 = vmul.f32 0.5, %v342_v12  ;;  %v287_v18 = vadd.f32 %v267_v13, %v726_v26  ;;  %v259_v23 = vmul.f32 %v239_v33, %v750_v61 }
  0xbc   :  { %v397_v24 = vmul.f32 %v377_v14, %v688_v51  ;;  %v366_v19 = vmul.f32 0.5, %v346_v15  ;;  %v293_v27 = vadd.f32 %v273_v16, %v748_v60  ;;  %v228_v30 = vmul.f32 %v760_v1, %v760_v1 }
  0xbd   :  { %412 = vst.msk [vmem:[%s864_s2 + $0x58] sm:$0xff] %vm400_vm1, %v391_v17  ;;  %v382_v50 = vmul.f32 %v362_v22, %v694_v56  ;;  %v307_v31 = vmul.f32 0.7978846, %v287_v18  ;;  %v279_v34 = vmul.f32 0.044715, %v259_v23  ;;  %v786_v35 = vpop.f32.mrf.mxu2 }
  0xbe   :  { %v555_v36 = vpop.eup %554  ;;  %418 = vst.msk [vmem:[%s864_s2 + $0x88] sm:$0xff] %vm400_vm1, %v397_v24  ;;  %v386_v51 = vmul.f32 %v366_v19, %v696_v57  ;;  %v313_v37 = vmul.f32 0.7978846, %v293_v27  ;;  %v248_v38 = vmul.f32 %v228_v30, %v760_v1  ;;  %v234_v39 = vmul.f32 %v786_v35, %v786_v35 }
  0xbf   :  { %v796_v40 = vpop.f32.mrf.mxu1  ;;  %v557_v56 = vpop.eup %556  ;;  %403 = vst.msk [vmem:[%s864_s2 + $0x10] sm:$0xff] %vm400_vm1, %v382_v50  ;;  %v352_v41 = vadd.f32 1.0, %v555_v36  ;;  %560 = vtanh.f32 %v307_v31  ;;  %v299_v42 = vadd.f32 %v279_v34, %v750_v61 }
  0xc0   :  { %v229_v57 = vmul.f32 %v796_v40, %v796_v40  ;;  %v559_v43 = vpop.eup %558  ;;  %407 = vst.msk [vmem:[%s864_s2 + $0x30] sm:$0xff] %vm400_vm1, %v386_v51  ;;  %v358_v44 = vadd.f32 1.0, %v557_v56  ;;  %562 = vtanh.f32 %v313_v37  ;;  %v268_v45 = vmul.f32 0.044715, %v248_v38 }
  0xc1   :  { %v254_v46 = vmul.f32 %v234_v39, %v786_v35  ;;  %v372_v47 = vmul.f32 0.5, %v352_v41  ;;  %v343_v48 = vadd.f32 1.0, %v559_v43  ;;  %v319_v49 = vmul.f32 0.7978846, %v299_v42 }
  0xc2   :  { %v249_v52 = vmul.f32 %v229_v57, %v796_v40  ;;  %v378_v53 = vmul.f32 0.5, %v358_v44  ;;  %v288_v54 = vadd.f32 %v268_v45, %v760_v1 }
  0xc3   :  { %v274_v55 = vmul.f32 0.044715, %v254_v46  ;;  %v392_v58 = vmul.f32 %v372_v47, %v712_v20  ;;  %v363_v59 = vmul.f32 0.5, %v343_v48  ;;  %564 = vtanh.f32 %v319_v49 }
  0xc4   :  { %v269_v28 = vmul.f32 0.044715, %v249_v52  ;;  %v398_v29 = vmul.f32 %v378_v53, %v714_v21  ;;  %v308_v62 = vmul.f32 0.7978846, %v288_v54 }
  0xc5   :  { %v294_v63 = vadd.f32 %v274_v55, %v786_v35  ;;  %v561_v32 = vpop.eup %560  ;;  %413 = vst.msk [vmem:[%s864_s2 + $0x60] sm:$0xff] %vm400_vm1, %v392_v58  ;;  %v383_v0 = vmul.f32 %v363_v59, %v724_v25  ;;  %v207_v3 = vpop.f32.mrf.mxu2 }
  0xc6   :  { %v289_v2 = vadd.f32 %v269_v28, %v796_v40  ;;  %v563_v20 = vpop.eup %562  ;;  %419 = vst.msk [vmem:[%s864_s2 + $0x90] sm:$0xff] %vm400_vm1, %v398_v29  ;;  %v347_v21 = vadd.f32 1.0, %v561_v32  ;;  %566 = vtanh.f32 %v308_v62  ;;  %v235_v5 = vmul.f32 %v207_v3, %v207_v3 }
  0xc7   :  { %v314_v4 = vmul.f32 0.7978846, %v294_v63  ;;  %404 = vst.msk [vmem:[%s864_s2 + $0x18] sm:$0xff] %vm400_vm1, %v383_v0  ;;  %v353_v33 = vadd.f32 1.0, %v563_v20 }
  0xc8   :  { %v309_v25 = vmul.f32 0.7978846, %v289_v2  ;;  %v367_v6 = vmul.f32 0.5, %v347_v21  ;;  %v255_v7 = vmul.f32 %v235_v5, %v207_v3 }
  0xc9   :  { %568 = vtanh.f32 %v314_v4  ;;  %v565_v8 = vpop.eup %564  ;;  %v373_v9 = vmul.f32 0.5, %v353_v33 }
  0xca   :  { %570 = vtanh.f32 %v309_v25  ;;  %v387_v10 = vmul.f32 %v367_v6, %v726_v26  ;;  %v359_v11 = vadd.f32 1.0, %v565_v8  ;;  %v275_v12 = vmul.f32 0.044715, %v255_v7 }
  0xcb   :  { %v393_v13 = vmul.f32 %v373_v9, %v748_v60 }
  0xcc   :  { %v567_v14 = vpop.eup %566  ;;  %408 = vst.msk [vmem:[%s864_s2 + $0x38] sm:$0xff] %vm400_vm1, %v387_v10  ;;  %v379_v15 = vmul.f32 0.5, %v359_v11  ;;  %v295_v16 = vadd.f32 %v275_v12, %v207_v3 }
  0xcd   :  { %414 = vst.msk [vmem:[%s864_s2 + $0x68] sm:$0xff] %vm400_vm1, %v393_v13  ;;  %v348_v17 = vadd.f32 1.0, %v567_v14 }
  0xce   :  { %v399_v22 = vmul.f32 %v379_v15, %v750_v61  ;;  %v315_v18 = vmul.f32 0.7978846, %v295_v16 }
  0xcf   :  { %v569_v26 = vpop.eup %568  ;;  %v368_v23 = vmul.f32 0.5, %v348_v17 }
  0xd0   :  { %v571_v60 = vpop.eup %570  ;;  %v354_v24 = vadd.f32 1.0, %v569_v26  ;;  %421 = vst.msk [vmem:[%s864_s2 + $0x98] sm:$0x3f] %vm420_vm2, %v399_v22  ;;  %572 = vtanh.f32 %v315_v18 }
  0xd1   :  { %v349_v19 = vadd.f32 1.0, %v571_v60  ;;  %v388_v27 = vmul.f32 %v368_v23, %v760_v1 }
  0xd2   :  { %v374_v30 = vmul.f32 0.5, %v354_v24 }
  0xd3   :  { %v369_v50 = vmul.f32 0.5, %v349_v19  ;;  %409 = vst.msk [vmem:[%s864_s2 + $0x40] sm:$0xff] %vm400_vm1, %v388_v27 }
  0xd4   :  { %v394_v61 = vmul.f32 %v374_v30, %v786_v35 }
  0xd5   :  { %v389_v31 = vmul.f32 %v369_v50, %v796_v40 }
  0xd6   :  { %415 = vst.msk [vmem:[%s864_s2 + $0x70] sm:$0xff] %vm400_vm1, %v394_v61  ;;  %v573_v34 = vpop.eup %572 }
  0xd7   :  { %410 = vst.msk [vmem:[%s864_s2 + $0x48] sm:$0xff] %vm400_vm1, %v389_v31  ;;  %v355_v1 = vadd.f32 1.0, %v573_v34 }
  0xd9   :  { %v375_v36 = vmul.f32 0.5, %v355_v1 }
  0xdb   :  { %v395_v51 = vmul.f32 %v375_v36, %v207_v3 }
  0xdd   :  { %416 = vst.msk [vmem:[%s864_s2 + $0x78] sm:$0xff] %vm400_vm1, %v395_v51 }

// kernel: forward.27
= control target key start
LH: loop header
LB: loop body
LE: loop exit
PB: predicated region body
PF: predicated region fallthrough
CT: control target
= control target key end

     0   :  { %vm95_vm0 = vcmask 785408   ;;  %vm235_vm1 = vcmask 261120   ;;  %vm245_vm2 = vcmask 259072   ;;  %s481_s1 = inlined_call_operand.vmem [shape: bf16[96,32], index: 1, kind: input, shape index: {}]   ;;  %s482_s0 = inlined_call_operand.vmem [shape: bf16[78,96], index: 0, kind: input, shape index: {}]   ;;  %s483_s2 = inlined_call_operand.vmem [shape: f32[78,32], index: 2, kind: output, shape index: {}]  }
   0x1   :  { %v310_v0 = vld [vmem:[%s481_s1 + $0x28] sm:$0xff]  ;;  %v309_v1 = vld [vmem:[%s481_s1 + $0x20] sm:$0xff]  ;;  %v308_v2 = vld [vmem:[%s481_s1 + $0x18] sm:$0xff] }
   0x2   :  { %113 = vmatpush.bf16.msra.mxu0 %v310_v0  ;;  %311 = vmatpush.bf16.msra.mxu1 %v310_v0  ;;  %v307_v3 = vld [vmem:[%s481_s1 + $0x10] sm:$0xff]  ;;  %v306_v4 = vld [vmem:[%s481_s1 + $0x8] sm:$0xff]  ;;  %v305_v5 = vld [vmem:[%s481_s1] sm:$0xff] }
   0x3   :  { %312 = vmatpush.bf16.msra.mxu2 %v310_v0  ;;  %313 = vmatpush.bf16.msra.mxu3 %v310_v0  ;;  %v300_v6 = vld [vmem:[%s482_s0] sm:$0xff]  ;;  %v301_v7 = vld [vmem:[%s482_s0 + $0x8] sm:$0xff]  ;;  %v302_v8 = vld [vmem:[%s482_s0 + $0x10] sm:$0xff] }
   0x4   :  { %v303_v9 = vld [vmem:[%s482_s0 + $0x18] sm:$0xff]  ;;  %v269_v10 = vld [vmem:[%s482_s0 + $0x20] sm:$0xf]  ;;  %v304_v11 = vld [vmem:[%s482_s0 + $0x20] sm:$0x70] }
   0x5   :  { %v270_v12 = vor.u32 %v304_v11, %v269_v10 }
   0x6   :  { %114 = vmatpush.bf16.msra.mxu0 %v309_v1  ;;  %314 = vmatpush.bf16.msra.mxu1 %v309_v1 }
   0x7   :  { %315 = vmatpush.bf16.msra.mxu2 %v309_v1  ;;  %316 = vmatpush.bf16.msra.mxu3 %v309_v1 }
   0xa   :  { %115 = vmatpush.bf16.msra.mxu0 %v308_v2  ;;  %317 = vmatpush.bf16.msra.mxu1 %v308_v2 }
   0xb   :  { %318 = vmatpush.bf16.msra.mxu2 %v308_v2  ;;  %319 = vmatpush.bf16.msra.mxu3 %v308_v2 }
   0xe   :  { %116 = vmatpush.bf16.msra.mxu0 %v307_v3  ;;  %320 = vmatpush.bf16.msra.mxu1 %v307_v3 }
   0xf   :  { %321 = vmatpush.bf16.msra.mxu2 %v307_v3  ;;  %322 = vmatpush.bf16.msra.mxu3 %v307_v3 }
  0x12   :  { %117 = vmatpush.bf16.msra.mxu0 %v306_v4  ;;  %323 = vmatpush.bf16.msra.mxu1 %v306_v4 }
  0x13   :  { %324 = vmatpush.bf16.msra.mxu2 %v306_v4  ;;  %325 = vmatpush.bf16.msra.mxu3 %v306_v4 }
  0x16   :  { %118 = vmatpush.bf16.msra.mxu0 %v305_v5  ;;  %326 = vmatpush.bf16.msra.mxu1 %v305_v5 }
  0x17   :  { %327 = vmatpush.bf16.msra.mxu2 %v305_v5  ;;  %328 = vmatpush.bf16.msra.mxu3 %v305_v5 }
  0x19   :  { %295 = vmatmul.msk.bf16.vlgmr.msra.gmra.mxu0 %vm95_vm0, %v300_v6  ;;  %296 = vmatmul.msk.bf16.vlgmr.msra.gmra.mxu1 %vm95_vm0, %v301_v7 }
  0x1a   :  { %297 = vmatmul.msk.bf16.vlgmr.msra.gmra.mxu2 %vm95_vm0, %v302_v8  ;;  %298 = vmatmul.msk.bf16.vlgmr.msra.gmra.mxu3 %vm95_vm0, %v303_v9 }
  0x2a   :  { %299 = vmatmul.msk.bf16.gmra.mxu3 %vm95_vm0, %v270_v12 }
  0x96   :  { %v120_v13 = vpop.f32.mrf.mxu0  ;;  %v125_v14 = vpop.f32.mrf.mxu1 }
  0x97   :  { %v145_v15 = vmul.f32 %v120_v13, %v120_v13  ;;  %v147_v16 = vmul.f32 %v125_v14, %v125_v14 }
  0x99   :  { %v155_v17 = vmul.f32 %v145_v15, %v120_v13  ;;  %v157_v18 = vmul.f32 %v147_v16, %v125_v14 }
  0x9b   :  { %v165_v19 = vmul.f32 0.044715, %v155_v17  ;;  %v167_v20 = vmul.f32 0.044715, %v157_v18 }
  0x9d   :  { %v175_v21 = vadd.f32 %v165_v19, %v120_v13  ;;  %v177_v22 = vadd.f32 %v167_v20, %v125_v14  ;;  %v400_v23 = vpop.f32.mrf.mxu2  ;;  %v402_v24 = vpop.f32.mrf.mxu3 }
  0x9e   :  { %v149_v25 = vmul.f32 %v400_v23, %v400_v23  ;;  %v151_v26 = vmul.f32 %v402_v24, %v402_v24  ;;  %v408_v27 = vpop.f32.mrf.mxu0  ;;  %v410_v28 = vpop.f32.mrf.mxu1 }
  0x9f   :  { %v185_v29 = vmul.f32 0.7978846, %v175_v21  ;;  %v187_v30 = vmul.f32 0.7978846, %v177_v22  ;;  %v146_v31 = vmul.f32 %v408_v27, %v408_v27  ;;  %v148_v32 = vmul.f32 %v410_v28, %v410_v28 }
  0xa0   :  { %v159_v33 = vmul.f32 %v149_v25, %v400_v23  ;;  %v161_v34 = vmul.f32 %v151_v26, %v402_v24 }
  0xa1   :  { %329 = vtanh.f32 %v185_v29  ;;  %v156_v35 = vmul.f32 %v146_v31, %v408_v27  ;;  %v158_v36 = vmul.f32 %v148_v32, %v410_v28 }
  0xa2   :  { %331 = vtanh.f32 %v187_v30  ;;  %v169_v37 = vmul.f32 0.044715, %v159_v33  ;;  %v171_v38 = vmul.f32 0.044715, %v161_v34 }
  0xa3   :  { %v166_v39 = vmul.f32 0.044715, %v156_v35  ;;  %v168_v40 = vmul.f32 0.044715, %v158_v36 }
  0xa4   :  { %v179_v41 = vadd.f32 %v169_v37, %v400_v23  ;;  %v181_v42 = vadd.f32 %v171_v38, %v402_v24 }
  0xa5   :  { %v176_v43 = vadd.f32 %v166_v39, %v408_v27  ;;  %v178_v44 = vadd.f32 %v168_v40, %v410_v28  ;;  %v424_v45 = vpop.f32.mrf.mxu2  ;;  %v426_v46 = vpop.f32.mrf.mxu3 }
  0xa6   :  { %v189_v47 = vmul.f32 0.7978846, %v179_v41  ;;  %v191_v48 = vmul.f32 0.7978846, %v181_v42  ;;  %v150_v49 = vmul.f32 %v424_v45, %v424_v45  ;;  %v152_v50 = vmul.f32 %v426_v46, %v426_v46 }
  0xa7   :  { %v330_v51 = vpop.eup %329  ;;  %v186_v52 = vmul.f32 0.7978846, %v176_v43  ;;  %v188_v53 = vmul.f32 0.7978846, %v178_v44 }
  0xa8   :  { %v332_v54 = vpop.eup %331  ;;  %v205_v55 = vadd.f32 1.0, %v330_v51  ;;  %333 = vtanh.f32 %v189_v47  ;;  %v160_v56 = vmul.f32 %v150_v49, %v424_v45  ;;  %v162_v57 = vmul.f32 %v152_v50, %v426_v46 }
  0xa9   :  { %v207_v58 = vadd.f32 1.0, %v332_v54  ;;  %335 = vtanh.f32 %v191_v48 }
  0xaa   :  { %v215_v59 = vmul.f32 0.5, %v205_v55  ;;  %337 = vtanh.f32 %v186_v52  ;;  %v170_v60 = vmul.f32 0.044715, %v160_v56  ;;  %v172_v61 = vmul.f32 0.044715, %v162_v57 }
  0xab   :  { %v217_v62 = vmul.f32 0.5, %v207_v58  ;;  %339 = vtanh.f32 %v188_v53 }
  0xac   :  { %v225_v63 = vmul.f32 %v215_v59, %v120_v13  ;;  %v180_v0 = vadd.f32 %v170_v60, %v424_v45  ;;  %v182_v1 = vadd.f32 %v172_v61, %v426_v46 }
  0xad   :  { %v227_v2 = vmul.f32 %v217_v62, %v125_v14  ;;  %v140_v3 = vpop.f32.mrf.mxu3 }
  0xae   :  { %v334_v4 = vpop.eup %333  ;;  %236 = vst.msk [vmem:[%s483_s2] sm:$0xff] %vm235_vm1, %v225_v63  ;;  %v190_v5 = vmul.f32 0.7978846, %v180_v0  ;;  %v192_v6 = vmul.f32 0.7978846, %v182_v1  ;;  %v153_v7 = vmul.f32 %v140_v3, %v140_v3 }
  0xaf   :  { %v336_v8 = vpop.eup %335  ;;  %238 = vst.msk [vmem:[%s483_s2 + $0x10] sm:$0xff] %vm235_vm1, %v227_v2  ;;  %v209_v9 = vadd.f32 1.0, %v334_v4 }
  0xb0   :  { %v338_v10 = vpop.eup %337  ;;  %v211_v11 = vadd.f32 1.0, %v336_v8  ;;  %341 = vtanh.f32 %v190_v5  ;;  %v163_v12 = vmul.f32 %v153_v7, %v140_v3 }
  0xb1   :  { %v340_v13 = vpop.eup %339  ;;  %v219_v14 = vmul.f32 0.5, %v209_v9  ;;  %v206_v15 = vadd.f32 1.0, %v338_v10  ;;  %343 = vtanh.f32 %v192_v6 }
  0xb2   :  { %v221_v16 = vmul.f32 0.5, %v211_v11  ;;  %v208_v17 = vadd.f32 1.0, %v340_v13  ;;  %v173_v18 = vmul.f32 0.044715, %v163_v12 }
  0xb3   :  { %v229_v19 = vmul.f32 %v219_v14, %v400_v23  ;;  %v216_v20 = vmul.f32 0.5, %v206_v15 }
  0xb4   :  { %v231_v21 = vmul.f32 %v221_v16, %v402_v24  ;;  %v218_v22 = vmul.f32 0.5, %v208_v17  ;;  %v183_v25 = vadd.f32 %v173_v18, %v140_v3 }
  0xb5   :  { %240 = vst.msk [vmem:[%s483_s2 + $0x20] sm:$0xff] %vm235_vm1, %v229_v19  ;;  %v226_v26 = vmul.f32 %v216_v20, %v408_v27  ;;  %v142_v29 = vpop.f32.mrf.mxu3 }
  0xb6   :  { %v342_v30 = vpop.eup %341  ;;  %242 = vst.msk [vmem:[%s483_s2 + $0x30] sm:$0xff] %vm235_vm1, %v231_v21  ;;  %v228_v23 = vmul.f32 %v218_v22, %v410_v28  ;;  %v193_v31 = vmul.f32 0.7978846, %v183_v25  ;;  %v154_v24 = vmul.f32 %v142_v29, %v142_v29 }
  0xb7   :  { %v344_v32 = vpop.eup %343  ;;  %237 = vst.msk [vmem:[%s483_s2 + $0x8] sm:$0xff] %vm235_vm1, %v226_v26  ;;  %v210_v33 = vadd.f32 1.0, %v342_v30 }
  0xb8   :  { %239 = vst.msk [vmem:[%s483_s2 + $0x18] sm:$0xff] %vm235_vm1, %v228_v23  ;;  %v212_v27 = vadd.f32 1.0, %v344_v32  ;;  %345 = vtanh.f32 %v193_v31  ;;  %v164_v34 = vmul.f32 %v154_v24, %v142_v29 }
  0xb9   :  { %v220_v35 = vmul.f32 0.5, %v210_v33 }
  0xba   :  { %v222_v36 = vmul.f32 0.5, %v212_v27  ;;  %v174_v28 = vmul.f32 0.044715, %v164_v34 }
  0xbb   :  { %v230_v37 = vmul.f32 %v220_v35, %v424_v45 }
  0xbc   :  { %v232_v38 = vmul.f32 %v222_v36, %v426_v46  ;;  %v184_v39 = vadd.f32 %v174_v28, %v142_v29 }
  0xbd   :  { %241 = vst.msk [vmem:[%s483_s2 + $0x28] sm:$0xff] %vm235_vm1, %v230_v37 }
  0xbe   :  { %v346_v40 = vpop.eup %345  ;;  %243 = vst.msk [vmem:[%s483_s2 + $0x38] sm:$0xff] %vm235_vm1, %v232_v38  ;;  %v194_v41 = vmul.f32 0.7978846, %v184_v39 }
  0xbf   :  { %v213_v42 = vadd.f32 1.0, %v346_v40 }
  0xc0   :  { %347 = vtanh.f32 %v194_v41 }
  0xc1   :  { %v223_v43 = vmul.f32 0.5, %v213_v42 }
  0xc3   :  { %v233_v44 = vmul.f32 %v223_v43, %v140_v3 }
  0xc5   :  { %244 = vst.msk [vmem:[%s483_s2 + $0x40] sm:$0xff] %vm235_vm1, %v233_v44 }
  0xc6   :  { %v348_v45 = vpop.eup %347 }
  0xc7   :  { %v214_v46 = vadd.f32 1.0, %v348_v45 }
  0xc9   :  { %v224_v47 = vmul.f32 0.5, %v214_v46 }
  0xcb   :  { %v234_v48 = vmul.f32 %v224_v47, %v142_v29 }
  0xcd   :  { %246 = vst.msk [vmem:[%s483_s2 + $0x48] sm:$0x3f] %vm245_vm2, %v234_v48 }

// kernel: forward.29
= control target key start
LH: loop header
LB: loop body
LE: loop exit
PB: predicated region body
PF: predicated region fallthrough
CT: control target
= control target key end

     0   :  { %vm55_vm0 = vcmask 523264   ;;  %vm107_vm1 = vcmask 261120   ;;  %vm110_vm2 = vcmask 254976   ;;  %s195_s1 = inlined_call_operand.vmem [shape: bf16[64,32], index: 1, kind: input, shape index: {}]   ;;  %s196_s0 = inlined_call_operand.vmem [shape: bf16[18,64], index: 0, kind: input, shape index: {}]   ;;  %s197_s2 = inlined_call_operand.vmem [shape: f32[18,32], index: 2, kind: output, shape index: {}]  }
   0x1   :  { %v142_v0 = vld [vmem:[%s195_s1 + $0x18] sm:$0xff]  ;;  %v141_v1 = vld [vmem:[%s195_s1 + $0x10] sm:$0xff]  ;;  %v140_v2 = vld [vmem:[%s195_s1 + $0x8] sm:$0xff] }
   0x2   :  { %66 = vmatpush.bf16.msra.mxu0 %v142_v0  ;;  %143 = vmatpush.bf16.msra.mxu1 %v142_v0  ;;  %v14_v3 = vld [vmem:[%s196_s0 + $0x8] sm:$0x1]  ;;  %v139_v5 = vld [vmem:[%s195_s1] sm:$0xff] }
   0x3   :  { %v28_v4 = vunpack.c.l.b16 %v14_v3  ;;  %v138_v6 = vld [vmem:[%s196_s0] sm:$0xff] }
   0x5   :  { %v30_v7 = vpack.c.b16 %v28_v4, %v28_v4 }
   0x6   :  { %67 = vmatpush.bf16.msra.mxu0 %v141_v1  ;;  %144 = vmatpush.bf16.msra.mxu1 %v141_v1 }
   0xa   :  { %68 = vmatpush.bf16.msra.mxu0 %v140_v2  ;;  %145 = vmatpush.bf16.msra.mxu1 %v140_v2 }
   0xe   :  { %69 = vmatpush.bf16.msra.mxu0 %v139_v5  ;;  %146 = vmatpush.bf16.msra.mxu1 %v139_v5 }
  0x11   :  { %136 = vmatmul.msk.bf16.vlgmr.msra.gmra.mxu0 %vm55_vm0, %v138_v6  ;;  %137 = vmatmul.msk.bf16.vlgmr.msra.gmra.mxu1 %vm55_vm0, %v30_v7 }
  0x8e   :  { %v71_v8 = vpop.f32.mrf.mxu0  ;;  %v76_v9 = vpop.f32.mrf.mxu1 }
  0x8f   :  { %v80_v10 = vmul.f32 %v71_v8, %v71_v8  ;;  %v82_v11 = vmul.f32 %v76_v9, %v76_v9 }
  0x91   :  { %v83_v12 = vmul.f32 %v80_v10, %v71_v8  ;;  %v85_v13 = vmul.f32 %v82_v11, %v76_v9 }
  0x93   :  { %v86_v14 = vmul.f32 0.044715, %v83_v12  ;;  %v88_v15 = vmul.f32 0.044715, %v85_v13 }
  0x95   :  { %v89_v16 = vadd.f32 %v86_v14, %v71_v8  ;;  %v91_v17 = vadd.f32 %v88_v15, %v76_v9 }
  0x96   :  { %v73_v18 = vpop.f32.mrf.mxu0  ;;  %v78_v19 = vpop.f32.mrf.mxu1 }
  0x97   :  { %v92_v20 = vmul.f32 0.7978846, %v89_v16  ;;  %v94_v21 = vmul.f32 0.7978846, %v91_v17  ;;  %v81_v22 = vmul.f32 %v73_v18, %v73_v18 }
  0x99   :  { %147 = vtanh.f32 %v92_v20  ;;  %v84_v23 = vmul.f32 %v81_v22, %v73_v18 }
  0x9a   :  { %149 = vtanh.f32 %v94_v21 }
  0x9b   :  { %v87_v24 = vmul.f32 0.044715, %v84_v23 }
  0x9d   :  { %v90_v25 = vadd.f32 %v87_v24, %v73_v18 }
  0x9f   :  { %v148_v26 = vpop.eup %147  ;;  %v93_v27 = vmul.f32 0.7978846, %v90_v25 }
  0xa0   :  { %v150_v28 = vpop.eup %149  ;;  %v98_v29 = vadd.f32 1.0, %v148_v26 }
  0xa1   :  { %v100_v30 = vadd.f32 1.0, %v150_v28  ;;  %151 = vtanh.f32 %v93_v27 }
  0xa2   :  { %v101_v31 = vmul.f32 0.5, %v98_v29 }
  0xa3   :  { %v103_v32 = vmul.f32 0.5, %v100_v30 }
  0xa4   :  { %v104_v33 = vmul.f32 %v101_v31, %v71_v8 }
  0xa5   :  { %v106_v34 = vmul.f32 %v103_v32, %v76_v9 }
  0xa6   :  { %108 = vst.msk [vmem:[%s197_s2] sm:$0xff] %vm107_vm1, %v104_v33 }
  0xa7   :  { %v152_v35 = vpop.eup %151  ;;  %111 = vst.msk [vmem:[%s197_s2 + $0x10] sm:$0x3] %vm110_vm2, %v106_v34 }
  0xa8   :  { %v99_v36 = vadd.f32 1.0, %v152_v35 }
  0xaa   :  { %v102_v37 = vmul.f32 0.5, %v99_v36 }
  0xac   :  { %v105_v38 = vmul.f32 %v102_v37, %v73_v18 }
  0xae   :  { %109 = vst.msk [vmem:[%s197_s2 + $0x8] sm:$0xff] %vm107_vm1, %v105_v38 }

// kernel: forward.28
= control target key start
LH: loop header
LB: loop body
LE: loop exit
PB: predicated region body
PF: predicated region fallthrough
CT: control target
= control target key end

     0   :  { %vm62_vm0 = vcmask 523264   ;;  %vm140_vm1 = vcmask 261120   ;;  %vm145_vm2 = vcmask 259072   ;;  %s257_s1 = inlined_call_operand.vmem [shape: bf16[64,32], index: 1, kind: input, shape index: {}]   ;;  %s258_s0 = inlined_call_operand.vmem [shape: bf16[38,64], index: 0, kind: input, shape index: {}]   ;;  %s259_s2 = inlined_call_operand.vmem [shape: f32[38,32], index: 2, kind: output, shape index: {}]  }
   0x1   :  { %v183_v0 = vld [vmem:[%s257_s1 + $0x18] sm:$0xff]  ;;  %v182_v1 = vld [vmem:[%s257_s1 + $0x10] sm:$0xff]  ;;  %v181_v2 = vld [vmem:[%s257_s1 + $0x8] sm:$0xff] }
   0x2   :  { %76 = vmatpush.bf16.msra.mxu0 %v183_v0  ;;  %184 = vmatpush.bf16.msra.mxu1 %v183_v0  ;;  %v16_v3 = vld [vmem:[%s258_s0 + $0x10] sm:$0x7]  ;;  %v180_v4 = vld [vmem:[%s257_s1] sm:$0xff]  ;;  %v179_v7 = vld [vmem:[%s258_s0 + $0x8] sm:$0xff] }
   0x3   :  { %185 = vmatpush.bf16.msra.mxu2 %v183_v0  ;;  %v34_v5 = vunpack.c.l.b16 %v16_v3  ;;  %v178_v6 = vld [vmem:[%s258_s0] sm:$0xff] }
   0x5   :  { %v37_v8 = vpack.c.b16 %v34_v5, %v34_v5 }
   0x6   :  { %77 = vmatpush.bf16.msra.mxu0 %v182_v1  ;;  %186 = vmatpush.bf16.msra.mxu1 %v182_v1 }
   0x7   :  { %187 = vmatpush.bf16.msra.mxu2 %v182_v1 }
   0xa   :  { %78 = vmatpush.bf16.msra.mxu0 %v181_v2  ;;  %188 = vmatpush.bf16.msra.mxu1 %v181_v2 }
   0xb   :  { %189 = vmatpush.bf16.msra.mxu2 %v181_v2 }
   0xe   :  { %79 = vmatpush.bf16.msra.mxu0 %v180_v4  ;;  %190 = vmatpush.bf16.msra.mxu1 %v180_v4 }
   0xf   :  { %191 = vmatpush.bf16.msra.mxu2 %v180_v4 }
  0x11   :  { %175 = vmatmul.msk.bf16.vlgmr.msra.gmra.mxu0 %vm62_vm0, %v178_v6  ;;  %176 = vmatmul.msk.bf16.vlgmr.msra.gmra.mxu1 %vm62_vm0, %v179_v7 }
  0x12   :  { %177 = vmatmul.msk.bf16.vlgmr.msra.gmra.mxu2 %vm62_vm0, %v37_v8 }
  0x8e   :  { %v81_v9 = vpop.f32.mrf.mxu0  ;;  %v86_v10 = vpop.f32.mrf.mxu1 }
  0x8f   :  { %v95_v11 = vmul.f32 %v81_v9, %v81_v9  ;;  %v97_v12 = vmul.f32 %v86_v10, %v86_v10 }
  0x91   :  { %v100_v13 = vmul.f32 %v95_v11, %v81_v9  ;;  %v102_v14 = vmul.f32 %v97_v12, %v86_v10 }
  0x93   :  { %v105_v15 = vmul.f32 0.044715, %v100_v13  ;;  %v107_v16 = vmul.f32 0.044715, %v102_v14 }
  0x95   :  { %v110_v17 = vadd.f32 %v105_v15, %v81_v9  ;;  %v112_v18 = vadd.f32 %v107_v16, %v86_v10  ;;  %v91_v19 = vpop.f32.mrf.mxu2 }
  0x96   :  { %v99_v20 = vmul.f32 %v91_v19, %v91_v19  ;;  %v83_v21 = vpop.f32.mrf.mxu0  ;;  %v88_v22 = vpop.f32.mrf.mxu1 }
  0x97   :  { %v115_v23 = vmul.f32 0.7978846, %v110_v17  ;;  %v117_v24 = vmul.f32 0.7978846, %v112_v18  ;;  %v96_v25 = vmul.f32 %v83_v21, %v83_v21  ;;  %v98_v26 = vmul.f32 %v88_v22, %v88_v22 }
  0x98   :  { %v104_v27 = vmul.f32 %v99_v20, %v91_v19 }
  0x99   :  { %192 = vtanh.f32 %v115_v23  ;;  %v101_v28 = vmul.f32 %v96_v25, %v83_v21  ;;  %v103_v29 = vmul.f32 %v98_v26, %v88_v22 }
  0x9a   :  { %194 = vtanh.f32 %v117_v24  ;;  %v109_v30 = vmul.f32 0.044715, %v104_v27 }
  0x9b   :  { %v106_v31 = vmul.f32 0.044715, %v101_v28  ;;  %v108_v32 = vmul.f32 0.044715, %v103_v29 }
  0x9c   :  { %v114_v33 = vadd.f32 %v109_v30, %v91_v19 }
  0x9d   :  { %v111_v34 = vadd.f32 %v106_v31, %v83_v21  ;;  %v113_v35 = vadd.f32 %v108_v32, %v88_v22  ;;  %v93_v36 = vpop.f32.mrf.mxu2 }
  0x9e   :  { %v119_v37 = vmul.f32 0.7978846, %v114_v33 }
  0x9f   :  { %v193_v38 = vpop.eup %192  ;;  %v116_v39 = vmul.f32 0.7978846, %v111_v34  ;;  %v118_v40 = vmul.f32 0.7978846, %v113_v35 }
  0xa0   :  { %v195_v41 = vpop.eup %194  ;;  %v125_v42 = vadd.f32 1.0, %v193_v38  ;;  %196 = vtanh.f32 %v119_v37 }
  0xa1   :  { %v127_v43 = vadd.f32 1.0, %v195_v41  ;;  %198 = vtanh.f32 %v116_v39 }
  0xa2   :  { %v130_v44 = vmul.f32 0.5, %v125_v42  ;;  %200 = vtanh.f32 %v118_v40 }
  0xa3   :  { %v132_v45 = vmul.f32 0.5, %v127_v43 }
  0xa4   :  { %v135_v46 = vmul.f32 %v130_v44, %v81_v9 }
  0xa5   :  { %v137_v47 = vmul.f32 %v132_v45, %v86_v10 }
  0xa6   :  { %v197_v48 = vpop.eup %196  ;;  %141 = vst.msk [vmem:[%s259_s2] sm:$0xff] %vm140_vm1, %v135_v46 }
  0xa7   :  { %v199_v49 = vpop.eup %198  ;;  %143 = vst.msk [vmem:[%s259_s2 + $0x10] sm:$0xff] %vm140_vm1, %v137_v47  ;;  %v129_v50 = vadd.f32 1.0, %v197_v48 }
  0xa8   :  { %v201_v51 = vpop.eup %200  ;;  %v126_v52 = vadd.f32 1.0, %v199_v49 }
  0xa9   :  { %v134_v53 = vmul.f32 0.5, %v129_v50  ;;  %v128_v54 = vadd.f32 1.0, %v201_v51 }
  0xaa   :  { %v131_v55 = vmul.f32 0.5, %v126_v52 }
  0xab   :  { %v139_v56 = vmul.f32 %v134_v53, %v91_v19  ;;  %v133_v57 = vmul.f32 0.5, %v128_v54 }
  0xac   :  { %v136_v58 = vmul.f32 %v131_v55, %v83_v21 }
  0xad   :  { %146 = vst.msk [vmem:[%s259_s2 + $0x20] sm:$0x3f] %vm145_vm2, %v139_v56  ;;  %v138_v59 = vmul.f32 %v133_v57, %v88_v22 }
  0xae   :  { %142 = vst.msk [vmem:[%s259_s2 + $0x8] sm:$0xff] %vm140_vm1, %v136_v58 }
  0xaf   :  { %144 = vst.msk [vmem:[%s259_s2 + $0x18] sm:$0xff] %vm140_vm1, %v138_v59 }

// kernel: forward.30
= control target key start
LH: loop header
LB: loop body
LE: loop exit
PB: predicated region body
PF: predicated region fallthrough
CT: control target
= control target key end

     0   :  { %vm26_vm0 = vcmask 261120   ;;  %vm33_vm1 = vcmask 254976   ;;  %v194_v6 = vmov 32.0   ;;  %vm159_vm12 = vcmask 523264   ;;  %s271_s0 = inlined_call_operand.vmem [shape: f32[18,32], index: 0, kind: input, shape index: {}]   ;;  %s272_s3 = inlined_call_operand.vmem [shape: f32[1,32], index: 3, kind: input, shape index: {}]   ;;  %s273_s4 = inlined_call_operand.vmem [shape: f32[1,32], index: 4, kind: input, shape index: {}]   ;;  %s274_s2 = inlined_call_operand.vmem [shape: f32[1,64], index: 2, kind: input, shape index: {}]   ;;  %s275_s1 = inlined_call_operand.vmem [shape: bf16[32,64], index: 1, kind: input, shape index: {}]   ;;  %s276_s5 = inlined_call_operand.vmem [shape: f32[18,64], index: 5, kind: output, shape index: {}]  }
   0x1   :  { %v21_v0 = vld [vmem:[%s271_s0] sm:$0xff]  ;;  %v23_v1 = vld [vmem:[%s271_s0 + $0x10] sm:$0x3]  ;;  %v22_v4 = vld [vmem:[%s271_s0 + $0x8] sm:$0xff]  ;;  %186 = vrcp.f32 %v194_v6  ;;  %vm162_vm13 = vcmask 517120  }
   0x2   :  { %v27_v2 = vsel %vm26_vm0, %v21_v0, 0.0  ;;  %v34_v3 = vsel %vm33_vm1, %v23_v1, 0.0  ;;  %v30_v5 = vsel %vm26_vm0, %v22_v4, 0.0  ;;  %v179_v28 = vld [vmem:[%s275_s1 + $0x8] sm:$0xff]  ;;  %v178_v31 = vld [vmem:[%s275_s1] sm:$0xff] }
   0x3   :  { %28 = vadd.xlane.f32.xlu0 %v27_v2  ;;  %35 = vadd.xlane.f32.xlu1 %v34_v3  ;;  %v183_v53 = vld [vmem:[%s272_s3] ss:$0 sm:$0xff] }
   0x4   :  { %147 = vmatpush.bf16.msra.mxu0 %v179_v28  ;;  %180 = vmatpush.bf16.msra.mxu1 %v179_v28  ;;  %v184_v60 = vld [vmem:[%s273_s4] ss:$0 sm:$0xff] }
   0x7   :  { %v187_v7 = vpop.eup %186 }
   0x8   :  { %v38_v8 = vmul.f32 32.0, %v187_v7  ;;  %vm42_vm2 = vweird.f32 %v187_v7  ;;  %148 = vmatpush.bf16.msra.mxu0 %v178_v31  ;;  %181 = vmatpush.bf16.msra.mxu1 %v178_v31 }
   0xa   :  { %v39_v9 = vsub.f32 1.0, %v38_v8 }
   0xb   :  { %31 = vadd.xlane.f32.xlu0 %v30_v5 }
   0xc   :  { %v40_v10 = vmul.f32 %v187_v7, %v39_v9  ;;  %v185_v9 = vld [vmem:[%s274_s2] ss:$0 sm:$0xff] }
   0xe   :  { %v41_v11 = vadd.f32 %v187_v7, %v40_v10 }
  0x10   :  { %v43_v12 = vsel %vm42_vm2, %v187_v7, %v41_v11 }
  0x76   :  { %v29_v13 = vpop.xlane.xlu0 %28  ;;  %v36_v17 = vpop.xlane.xlu1 %35 }
  0x77   :  { %v44_v14 = vmul.f32 %v43_v12, %v29_v13  ;;  %v46_v21 = vmul.f32 %v43_v12, %v36_v17 }
  0x79   :  { %v47_v15 = vsub.f32 %v21_v0, %v44_v14  ;;  %v238_v23 = vsub.f32 %v23_v1, %v46_v21 }
  0x7b   :  { %v50_v16 = vmul.f32 %v47_v15, %v47_v15  ;;  %v52_v26 = vmul.f32 %v238_v23, %v238_v23 }
  0x7d   :  { %v53_v18 = vsel %vm26_vm0, %v50_v16, 0.0  ;;  %v59_v27 = vsel %vm33_vm1, %v52_v26, 0.0 }
  0x7e   :  { %54 = vadd.xlane.f32.xlu1 %v53_v18  ;;  %v32_v19 = vpop.xlane.xlu0 %31 }
  0x7f   :  { %v45_v20 = vmul.f32 %v43_v12, %v32_v19 }
  0x81   :  { %v48_v22 = vsub.f32 %v22_v4, %v45_v20 }
  0x83   :  { %v51_v24 = vmul.f32 %v48_v22, %v48_v22 }
  0x85   :  { %v56_v25 = vsel %vm26_vm0, %v51_v24, 0.0 }
  0x86   :  { %57 = vadd.xlane.f32.xlu2 %v56_v25 }
  0x8e   :  { %60 = vadd.xlane.f32.xlu2 %v59_v27 }
  0xf1   :  { %v55_v29 = vpop.xlane.xlu1 %54 }
  0xf2   :  { %v62_v30 = vmul.f32 %v55_v29, %v43_v12 }
  0xf4   :  { %v65_v32 = vadd.f32 1e-05, %v62_v30 }
  0xf6   :  { %188 = vrsqrt.f32 %v65_v32  ;;  %vm74_vm4 = vweird.f32 %v65_v32 }
  0xf9   :  { %v58_v33 = vpop.xlane.xlu2 %57 }
  0xfa   :  { %v63_v34 = vmul.f32 %v58_v33, %v43_v12 }
  0xfc   :  { %v189_v35 = vpop.eup %188  ;;  %v66_v36 = vadd.f32 1e-05, %v63_v34 }
  0xfd   :  { %v69_v37 = vmul.f32 %v189_v35, %v65_v32  ;;  %vm75_vm3 = vweird.f32 %v189_v35 }
  0xfe   :  { %190 = vrsqrt.f32 %v66_v36  ;;  %vm76_vm5 = vmor %vm74_vm4, %vm75_vm3  ;;  %vm84_vm7 = vweird.f32 %v66_v36 }
  0xff   :  { %v70_v38 = vmul.f32 %v189_v35, %v69_v37 }
 0x101   :  { %v71_v39 = vmul.f32 0.5, %v70_v38  ;;  %v61_v40 = vpop.xlane.xlu2 %60 }
 0x102   :  { %v64_v41 = vmul.f32 %v61_v40, %v43_v12 }
 0x103   :  { %v72_v42 = vsub.f32 1.5, %v71_v39 }
 0x104   :  { %v191_v43 = vpop.eup %190  ;;  %v67_v44 = vadd.f32 1e-05, %v64_v41 }
 0x105   :  { %v73_v45 = vmul.f32 %v189_v35, %v72_v42  ;;  %v79_v46 = vmul.f32 %v191_v43, %v66_v36  ;;  %vm85_vm6 = vweird.f32 %v191_v43 }
 0x106   :  { %192 = vrsqrt.f32 %v67_v44  ;;  %vm86_vm8 = vmor %vm84_vm7, %vm85_vm6  ;;  %vm94_vm10 = vweird.f32 %v67_v44 }
 0x107   :  { %v80_v47 = vmul.f32 %v191_v43, %v79_v46  ;;  %v77_v48 = vsel %vm76_vm5, %v189_v35, %v73_v45 }
 0x108   :  { %v98_v52 = vmul.f32 %v77_v48, %v47_v15 }
 0x109   :  { %v81_v49 = vmul.f32 0.5, %v80_v47 }
 0x10a   :  { %v104_v59 = vmul.f32 %v183_v53, %v98_v52 }
 0x10b   :  { %v82_v50 = vsub.f32 1.5, %v81_v49 }
 0x10c   :  { %v193_v51 = vpop.eup %192  ;;  %v110_v0 = vadd.f32 %v184_v60, %v104_v59 }
 0x10d   :  { %v83_v54 = vmul.f32 %v191_v43, %v82_v50  ;;  %v89_v55 = vmul.f32 %v193_v51, %v67_v44  ;;  %vm95_vm9 = vweird.f32 %v193_v51 }
 0x10e   :  { %vm96_vm11 = vmor %vm94_vm10, %vm95_vm9 }
 0x10f   :  { %v87_v56 = vsel %vm86_vm8, %v191_v43, %v83_v54  ;;  %v90_v57 = vmul.f32 %v193_v51, %v89_v55 }
 0x110   :  { %v99_v58 = vmul.f32 %v87_v56, %v48_v22 }
 0x111   :  { %v91_v61 = vmul.f32 0.5, %v90_v57 }
 0x112   :  { %v105_v62 = vmul.f32 %v183_v53, %v99_v58 }
 0x113   :  { %v92_v63 = vsub.f32 1.5, %v91_v61 }
 0x114   :  { %v111_v1 = vadd.f32 %v184_v60, %v105_v62 }
 0x115   :  { %v93_v2 = vmul.f32 %v193_v51, %v92_v63 }
 0x116   :  { %v113_v3 = vpack.c.bf16 %v111_v1, %v110_v0 }
 0x117   :  { %v97_v4 = vsel %vm96_vm11, %v193_v51, %v93_v2 }
 0x118   :  { %176 = vmatmul.msk.bf16.vlgmr.msra.gmra.mxu0 %vm26_vm0, %v113_v3  ;;  %v100_v5 = vmul.f32 %v97_v4, %v238_v23 }
 0x11a   :  { %v106_v6 = vmul.f32 %v183_v53, %v100_v5 }
 0x11c   :  { %v112_v7 = vadd.f32 %v184_v60, %v106_v6 }
 0x11e   :  { %v114_v8 = vpack.c.bf16 %v112_v7, %v112_v7 }
 0x120   :  { %177 = vmatmul.msk.bf16.vlgmr.msra.gmra.mxu1 %vm26_vm0, %v114_v8 }
 0x195   :  { %v150_v10 = vpop.f32.mrf.mxu0 }
 0x196   :  { %v151_v11 = vadd.f32 %v185_v9, %v150_v10 }
 0x198   :  { %160 = vst.msk [vmem:[%s276_s5] sm:$0xff] %vm159_vm12, %v151_v11 }
 0x19d   :  { %v152_v12 = vpop.f32.mrf.mxu0  ;;  %v155_v13 = vpop.f32.mrf.mxu1 }
 0x19e   :  { %v153_v14 = vadd.f32 %v185_v9, %v152_v12  ;;  %v156_v15 = vadd.f32 %v185_v9, %v155_v13 }
 0x1a0   :  { %161 = vst.msk [vmem:[%s276_s5 + $0x8] sm:$0xff] %vm159_vm12, %v153_v14 }
 0x1a1   :  { %163 = vst.msk [vmem:[%s276_s5 + $0x10] sm:$0x3] %vm162_vm13, %v156_v15 }
 0x1a5   :  { %v157_v16 = vpop.f32.mrf.mxu1 }

// kernel: forward.31
= control target key start
LH: loop header
LB: loop body
LE: loop exit
PB: predicated region body
PF: predicated region fallthrough
CT: control target
= control target key end

     0   :  { %vm229_vm0 = vcmask 523264   ;;  %vm232_vm1 = vcmask 519168   ;;  %s446_s1 = inlined_call_operand.vmem [shape: bf16[256,64], index: 1, kind: input, shape index: {}]   ;;  %s447_s2 = inlined_call_operand.vmem [shape: f32[1,64], index: 2, kind: input, shape index: {}]   ;;  %s448_s0 = inlined_call_operand.vmem [shape: bf16[20,256], index: 0, kind: input, shape index: {}]   ;;  %s449_s3 = inlined_call_operand.vmem [shape: f32[20,64], index: 3, kind: output, shape index: {}]  }
   0x1   :  { %v319_v0 = vld [vmem:[%s446_s1 + $0x38] sm:$0xff]  ;;  %v318_v2 = vld [vmem:[%s446_s1 + $0x30] sm:$0xff]  ;;  %v317_v4 = vld [vmem:[%s446_s1 + $0x28] sm:$0xff] }
   0x2   :  { %v327_v1 = vld [vmem:[%s446_s1 + $0x78] sm:$0xff]  ;;  %166 = vmatpush.bf16.msra.mxu0 %v319_v0  ;;  %328 = vmatpush.bf16.msra.mxu2 %v319_v0  ;;  %v326_v3 = vld [vmem:[%s446_s1 + $0x70] sm:$0xff]  ;;  %v325_v5 = vld [vmem:[%s446_s1 + $0x68] sm:$0xff] }
   0x3   :  { %184 = vmatpush.bf16.msra.mxu1 %v327_v1  ;;  %336 = vmatpush.bf16.msra.mxu3 %v327_v1  ;;  %v316_v6 = vld [vmem:[%s446_s1 + $0x20] sm:$0xff]  ;;  %v315_v8 = vld [vmem:[%s446_s1 + $0x18] sm:$0xff]  ;;  %v314_v10 = vld [vmem:[%s446_s1 + $0x10] sm:$0xff] }
   0x4   :  { %v324_v7 = vld [vmem:[%s446_s1 + $0x60] sm:$0xff]  ;;  %v323_v9 = vld [vmem:[%s446_s1 + $0x58] sm:$0xff]  ;;  %v322_v11 = vld [vmem:[%s446_s1 + $0x50] sm:$0xff] }
   0x5   :  { %v313_v12 = vld [vmem:[%s446_s1 + $0x8] sm:$0xff]  ;;  %v16_v13 = vld [vmem:[%s448_s0 + $0x10] sm:$0x33]  ;;  %v312_v16 = vld [vmem:[%s446_s1] sm:$0xff] }
   0x6   :  { %167 = vmatpush.bf16.msra.mxu0 %v318_v2  ;;  %329 = vmatpush.bf16.msra.mxu2 %v318_v2  ;;  %v321_v14 = vld [vmem:[%s446_s1 + $0x48] sm:$0xff]  ;;  %v60_v15 = vunpack.c.l.b16 %v16_v13  ;;  %v240_v17 = vld [vmem:[%s448_s0] sm:$0xf]  ;;  %v61_v19 = vunpack.c.h.b16 %v16_v13  ;;  %v310_v21 = vld [vmem:[%s448_s0 + $0x4] sm:$0xf] }
   0x7   :  { %185 = vmatpush.bf16.msra.mxu1 %v326_v3  ;;  %337 = vmatpush.bf16.msra.mxu3 %v326_v3  ;;  %v311_v18 = vld [vmem:[%s448_s0 + $0x4] sm:$0xf0]  ;;  %v320_v20 = vld [vmem:[%s446_s1 + $0x40] sm:$0xff]  ;;  %v242_v22 = vld [vmem:[%s448_s0 + $0x8] sm:$0xf0] }
   0x8   :  { %v241_v23 = vor.u32 %v311_v18, %v240_v17  ;;  %v64_v24 = vpack.c.b16 %v60_v15, %v60_v15  ;;  %v245_v25 = vor.u32 %v310_v21, %v242_v22  ;;  %v65_v26 = vpack.c.b16 %v61_v19, %v61_v19  ;;  %v344_v27 = vld [vmem:[%s447_s2] ss:$0 sm:$0xff] }
   0xa   :  { %168 = vmatpush.bf16.msra.mxu0 %v317_v4  ;;  %330 = vmatpush.bf16.msra.mxu2 %v317_v4 }
   0xb   :  { %186 = vmatpush.bf16.msra.mxu1 %v325_v5  ;;  %338 = vmatpush.bf16.msra.mxu3 %v325_v5 }
   0xe   :  { %169 = vmatpush.bf16.msra.mxu0 %v316_v6  ;;  %331 = vmatpush.bf16.msra.mxu2 %v316_v6 }
   0xf   :  { %187 = vmatpush.bf16.msra.mxu1 %v324_v7  ;;  %339 = vmatpush.bf16.msra.mxu3 %v324_v7 }
  0x12   :  { %170 = vmatpush.bf16.msra.mxu0 %v315_v8  ;;  %332 = vmatpush.bf16.msra.mxu2 %v315_v8 }
  0x13   :  { %188 = vmatpush.bf16.msra.mxu1 %v323_v9  ;;  %340 = vmatpush.bf16.msra.mxu3 %v323_v9 }
  0x16   :  { %171 = vmatpush.bf16.msra.mxu0 %v314_v10  ;;  %333 = vmatpush.bf16.msra.mxu2 %v314_v10 }
  0x17   :  { %189 = vmatpush.bf16.msra.mxu1 %v322_v11  ;;  %341 = vmatpush.bf16.msra.mxu3 %v322_v11 }
  0x1a   :  { %172 = vmatpush.bf16.msra.mxu0 %v313_v12  ;;  %334 = vmatpush.bf16.msra.mxu2 %v313_v12 }
  0x1b   :  { %190 = vmatpush.bf16.msra.mxu1 %v321_v14  ;;  %342 = vmatpush.bf16.msra.mxu3 %v321_v14 }
  0x1e   :  { %173 = vmatpush.bf16.msra.mxu0 %v312_v16  ;;  %335 = vmatpush.bf16.msra.mxu2 %v312_v16 }
  0x1f   :  { %191 = vmatpush.bf16.msra.mxu1 %v320_v20  ;;  %343 = vmatpush.bf16.msra.mxu3 %v320_v20 }
  0x21   :  { %174 = vmatmul.bf16.vlgmr.msra.gmra.mxu0 %v241_v23  ;;  %179 = vmatmul.bf16.vlgmr.msra.gmra.mxu2 %v64_v24 }
  0x22   :  { %192 = vmatmul.bf16.vlgmr.msra.gmra.mxu1 %v245_v25  ;;  %197 = vmatmul.bf16.vlgmr.msra.gmra.mxu3 %v65_v26 }
  0x9e   :  { %v175_v28 = vpop.f32.mrf.mxu0 }
  0x9f   :  { %v176_v29 = vadd.f32 %v344_v27, %v175_v28  ;;  %v193_v30 = vpop.f32.mrf.mxu1 }
  0xa1   :  { %v194_v31 = vadd.f32 %v193_v30, %v176_v29 }
  0xa3   :  { %v202_v32 = vmul.f32 %v194_v31, %v194_v31 }
  0xa4   :  { %v180_v33 = vpop.f32.mrf.mxu2 }
  0xa5   :  { %v205_v34 = vmul.f32 %v202_v32, %v194_v31  ;;  %v181_v35 = vadd.f32 %v344_v27, %v180_v33  ;;  %v198_v36 = vpop.f32.mrf.mxu3 }
  0xa6   :  { %v177_v37 = vpop.f32.mrf.mxu0 }
  0xa7   :  { %v208_v38 = vmul.f32 0.044715, %v205_v34  ;;  %v199_v39 = vadd.f32 %v198_v36, %v181_v35  ;;  %v178_v40 = vadd.f32 %v344_v27, %v177_v37  ;;  %v195_v41 = vpop.f32.mrf.mxu1 }
  0xa9   :  { %v211_v42 = vadd.f32 %v208_v38, %v194_v31  ;;  %v204_v43 = vmul.f32 %v199_v39, %v199_v39  ;;  %v196_v44 = vadd.f32 %v195_v41, %v178_v40 }
  0xab   :  { %v214_v45 = vmul.f32 0.7978846, %v211_v42  ;;  %v207_v46 = vmul.f32 %v204_v43, %v199_v39  ;;  %v203_v47 = vmul.f32 %v196_v44, %v196_v44 }
  0xac   :  { %v182_v48 = vpop.f32.mrf.mxu2 }
  0xad   :  { %345 = vtanh.f32 %v214_v45  ;;  %v210_v49 = vmul.f32 0.044715, %v207_v46  ;;  %v206_v50 = vmul.f32 %v203_v47, %v196_v44  ;;  %v200_v51 = vpop.f32.mrf.mxu3 }
  0xaf   :  { %v213_v52 = vadd.f32 %v210_v49, %v199_v39  ;;  %v209_v53 = vmul.f32 0.044715, %v206_v50 }
  0xb1   :  { %v216_v54 = vmul.f32 0.7978846, %v213_v52  ;;  %v212_v55 = vadd.f32 %v209_v53, %v196_v44 }
  0xb3   :  { %v346_v56 = vpop.eup %345  ;;  %347 = vtanh.f32 %v216_v54  ;;  %v215_v57 = vmul.f32 0.7978846, %v212_v55 }
  0xb4   :  { %v220_v58 = vadd.f32 1.0, %v346_v56 }
  0xb5   :  { %349 = vtanh.f32 %v215_v57 }
  0xb6   :  { %v223_v59 = vmul.f32 0.5, %v220_v58 }
  0xb8   :  { %v226_v60 = vmul.f32 %v223_v59, %v194_v31 }
  0xb9   :  { %v348_v61 = vpop.eup %347 }
  0xba   :  { %230 = vst.msk [vmem:[%s449_s3] sm:$0xff] %vm229_vm0, %v226_v60  ;;  %v222_v62 = vadd.f32 1.0, %v348_v61 }
  0xbb   :  { %v350_v63 = vpop.eup %349 }
  0xbc   :  { %v225_v0 = vmul.f32 0.5, %v222_v62  ;;  %v221_v1 = vadd.f32 1.0, %v350_v63 }
  0xbe   :  { %v228_v2 = vmul.f32 %v225_v0, %v199_v39  ;;  %v224_v3 = vmul.f32 0.5, %v221_v1 }
  0xc0   :  { %233 = vst.msk [vmem:[%s449_s3 + $0x10] sm:$0xf] %vm232_vm1, %v228_v2  ;;  %v227_v4 = vmul.f32 %v224_v3, %v196_v44 }
  0xc2   :  { %231 = vst.msk [vmem:[%s449_s3 + $0x8] sm:$0xff] %vm229_vm0, %v227_v4 }

// kernel: forward.32
= control target key start
LH: loop header
LB: loop body
LE: loop exit
PB: predicated region body
PF: predicated region fallthrough
CT: control target
= control target key end

     0   :  { %vm28_vm0 = vcmask 523264   ;;  %vm35_vm1 = vcmask 517120   ;;  %v133_v12 = vmov 64.0   ;;  %s201_s0 = inlined_call_operand.vmem [shape: f32[18,64], index: 0, kind: input, shape index: {}]   ;;  %s202_s3 = inlined_call_operand.vmem [shape: f32[18,64], index: 3, kind: input, shape index: {}]   ;;  %s203_s1 = inlined_call_operand.vmem [shape: f32[1,64], index: 1, kind: input, shape index: {}]   ;;  %s204_s2 = inlined_call_operand.vmem [shape: f32[1,64], index: 2, kind: input, shape index: {}]   ;;  %s205_s4 = inlined_call_operand.vmem [shape: f32[18,64], index: 4, kind: output, shape index: {}]  }
   0x1   :  { %v17_v0 = vld [vmem:[%s201_s0] sm:$0xff]  ;;  %v19_v3 = vld [vmem:[%s201_s0 + $0x10] sm:$0x3]  ;;  %v18_v5 = vld [vmem:[%s201_s0 + $0x8] sm:$0xff]  ;;  %125 = vrcp.f32 %v133_v12 }
   0x2   :  { %v20_v1 = vld [vmem:[%s202_s3] sm:$0xff]  ;;  %v22_v4 = vld [vmem:[%s202_s3 + $0x10] sm:$0x3]  ;;  %v21_v6 = vld [vmem:[%s202_s3 + $0x8] sm:$0xff] }
   0x3   :  { %v23_v2 = vadd.f32 %v20_v1, %v17_v0  ;;  %v25_v7 = vadd.f32 %v22_v4, %v19_v3  ;;  %v24_v10 = vadd.f32 %v21_v6, %v18_v5  ;;  %v123_v51 = vld [vmem:[%s203_s1] ss:$0 sm:$0xff] }
   0x4   :  { %v124_v54 = vld [vmem:[%s204_s2] ss:$0 sm:$0xff] }
   0x5   :  { %v29_v8 = vsel %vm28_vm0, %v23_v2, 0.0  ;;  %v36_v9 = vsel %vm35_vm1, %v25_v7, 0.0  ;;  %v32_v11 = vsel %vm28_vm0, %v24_v10, 0.0 }
   0x6   :  { %30 = vadd.xlane.f32.xlu0 %v29_v8  ;;  %37 = vadd.xlane.f32.xlu1 %v36_v9 }
   0x7   :  { %v126_v13 = vpop.eup %125 }
   0x8   :  { %v40_v14 = vmul.f32 64.0, %v126_v13  ;;  %vm44_vm2 = vweird.f32 %v126_v13 }
   0xa   :  { %v41_v15 = vsub.f32 1.0, %v40_v14 }
   0xc   :  { %v42_v16 = vmul.f32 %v126_v13, %v41_v15 }
   0xe   :  { %33 = vadd.xlane.f32.xlu0 %v32_v11  ;;  %v43_v17 = vadd.f32 %v126_v13, %v42_v16 }
  0x10   :  { %v45_v18 = vsel %vm44_vm2, %v126_v13, %v43_v17 }
  0x79   :  { %v31_v19 = vpop.xlane.xlu0 %30  ;;  %v38_v23 = vpop.xlane.xlu1 %37 }
  0x7a   :  { %v46_v20 = vmul.f32 %v45_v18, %v31_v19  ;;  %v48_v27 = vmul.f32 %v45_v18, %v38_v23 }
  0x7c   :  { %v49_v21 = vsub.f32 %v23_v2, %v46_v20  ;;  %v51_v29 = vsub.f32 %v25_v7, %v48_v27 }
  0x7e   :  { %v52_v22 = vmul.f32 %v49_v21, %v49_v21  ;;  %v54_v32 = vmul.f32 %v51_v29, %v51_v29 }
  0x80   :  { %v55_v24 = vsel %vm28_vm0, %v52_v22, 0.0  ;;  %v61_v33 = vsel %vm35_vm1, %v54_v32, 0.0 }
  0x81   :  { %56 = vadd.xlane.f32.xlu1 %v55_v24  ;;  %v34_v25 = vpop.xlane.xlu0 %33 }
  0x82   :  { %v47_v26 = vmul.f32 %v45_v18, %v34_v25 }
  0x84   :  { %v50_v28 = vsub.f32 %v24_v10, %v47_v26 }
  0x86   :  { %v53_v30 = vmul.f32 %v50_v28, %v50_v28 }
  0x88   :  { %v58_v31 = vsel %vm28_vm0, %v53_v30, 0.0 }
  0x89   :  { %59 = vadd.xlane.f32.xlu2 %v58_v31 }
  0x91   :  { %62 = vadd.xlane.f32.xlu2 %v61_v33 }
  0xf4   :  { %v57_v34 = vpop.xlane.xlu1 %56 }
  0xf5   :  { %v64_v35 = vmul.f32 %v57_v34, %v45_v18 }
  0xf7   :  { %v67_v36 = vadd.f32 1e-05, %v64_v35 }
  0xf9   :  { %127 = vrsqrt.f32 %v67_v36  ;;  %vm76_vm4 = vweird.f32 %v67_v36 }
  0xfc   :  { %v60_v37 = vpop.xlane.xlu2 %59 }
  0xfd   :  { %v65_v38 = vmul.f32 %v60_v37, %v45_v18 }
  0xff   :  { %v128_v39 = vpop.eup %127  ;;  %v68_v40 = vadd.f32 1e-05, %v65_v38 }
 0x100   :  { %v71_v41 = vmul.f32 %v128_v39, %v67_v36  ;;  %vm77_vm3 = vweird.f32 %v128_v39 }
 0x101   :  { %129 = vrsqrt.f32 %v68_v40  ;;  %vm78_vm5 = vmor %vm76_vm4, %vm77_vm3  ;;  %vm86_vm7 = vweird.f32 %v68_v40 }
 0x102   :  { %v72_v42 = vmul.f32 %v128_v39, %v71_v41 }
 0x104   :  { %v73_v43 = vmul.f32 0.5, %v72_v42  ;;  %v63_v44 = vpop.xlane.xlu2 %62 }
 0x105   :  { %v66_v45 = vmul.f32 %v63_v44, %v45_v18 }
 0x106   :  { %v74_v46 = vsub.f32 1.5, %v73_v43 }
 0x107   :  { %v130_v47 = vpop.eup %129  ;;  %v69_v48 = vadd.f32 1e-05, %v66_v45 }
 0x108   :  { %v75_v49 = vmul.f32 %v128_v39, %v74_v46  ;;  %v81_v50 = vmul.f32 %v130_v47, %v68_v40  ;;  %vm87_vm6 = vweird.f32 %v130_v47 }
 0x109   :  { %131 = vrsqrt.f32 %v69_v48  ;;  %vm88_vm8 = vmor %vm86_vm7, %vm87_vm6  ;;  %vm96_vm10 = vweird.f32 %v69_v48 }
 0x10a   :  { %v79_v52 = vsel %vm78_vm5, %v128_v39, %v75_v49  ;;  %v82_v53 = vmul.f32 %v130_v47, %v81_v50 }
 0x10b   :  { %v100_v55 = vmul.f32 %v79_v52, %v49_v21 }
 0x10c   :  { %v83_v56 = vmul.f32 0.5, %v82_v53 }
 0x10d   :  { %v106_v57 = vmul.f32 %v123_v51, %v100_v55 }
 0x10e   :  { %v84_v58 = vsub.f32 1.5, %v83_v56 }
 0x10f   :  { %v132_v59 = vpop.eup %131  ;;  %v112_v60 = vadd.f32 %v124_v54, %v106_v57 }
 0x110   :  { %v85_v61 = vmul.f32 %v130_v47, %v84_v58  ;;  %v91_v62 = vmul.f32 %v132_v59, %v69_v48  ;;  %vm97_vm9 = vweird.f32 %v132_v59 }
 0x111   :  { %115 = vst.msk [vmem:[%s205_s4] sm:$0xff] %vm28_vm0, %v112_v60  ;;  %vm98_vm11 = vmor %vm96_vm10, %vm97_vm9 }
 0x112   :  { %v89_v63 = vsel %vm88_vm8, %v130_v47, %v85_v61  ;;  %v92_v0 = vmul.f32 %v132_v59, %v91_v62 }
 0x113   :  { %v101_v1 = vmul.f32 %v89_v63, %v50_v28 }
 0x114   :  { %v93_v2 = vmul.f32 0.5, %v92_v0 }
 0x115   :  { %v107_v3 = vmul.f32 %v123_v51, %v101_v1 }
 0x116   :  { %v94_v4 = vsub.f32 1.5, %v93_v2 }
 0x117   :  { %v113_v5 = vadd.f32 %v124_v54, %v107_v3 }
 0x118   :  { %v95_v6 = vmul.f32 %v132_v59, %v94_v4 }
 0x119   :  { %116 = vst.msk [vmem:[%s205_s4 + $0x8] sm:$0xff] %vm28_vm0, %v113_v5 }
 0x11a   :  { %v99_v7 = vsel %vm98_vm11, %v132_v59, %v95_v6 }
 0x11b   :  { %v102_v8 = vmul.f32 %v99_v7, %v51_v29 }
 0x11d   :  { %v108_v9 = vmul.f32 %v123_v51, %v102_v8 }
 0x11f   :  { %v114_v10 = vadd.f32 %v124_v54, %v108_v9 }
 0x121   :  { %117 = vst.msk [vmem:[%s205_s4 + $0x10] sm:$0x3] %vm35_vm1, %v114_v10 }

// kernel: forward.33
= control target key start
LH: loop header
LB: loop body
LE: loop exit
PB: predicated region body
PF: predicated region fallthrough
CT: control target
= control target key end

     0   :  { %vm80_vm0 = vcmask 523264   ;;  %vm128_vm1 = vcmask 517120   ;;  %s292_s1 = inlined_call_operand.vmem [shape: bf16[64,192], index: 1, kind: input, shape index: {}]   ;;  %s293_s0 = inlined_call_operand.vmem [shape: bf16[18,64], index: 0, kind: input, shape index: {}]   ;;  %s294_s2 = inlined_call_operand.vmem [shape: f32[1,192], index: 2, kind: input, shape index: {}]   ;;  %s295_s3 = inlined_call_operand.vmem [shape: f32[18,192], index: 3, kind: output, shape index: {}]  }
   0x1   :  { %v164_v0 = vld [vmem:[%s292_s1 + $0x30] sm:$0xf]  ;;  %v182_v1 = vld [vmem:[%s292_s1 + $0x34] sm:$0xf0]  ;;  %v181_v2 = vld [vmem:[%s292_s1 + $0x34] sm:$0xf] }
   0x2   :  { %v165_v3 = vor.u32 %v182_v1, %v164_v0  ;;  %v166_v4 = vld [vmem:[%s292_s1 + $0x38] sm:$0xf0]  ;;  %v156_v5 = vld [vmem:[%s292_s1 + $0x20] sm:$0xf]  ;;  %v180_v6 = vld [vmem:[%s292_s1 + $0x24] sm:$0xf0] }
   0x3   :  { %v169_v7 = vor.u32 %v181_v2, %v166_v4  ;;  %v179_v8 = vld [vmem:[%s292_s1 + $0x24] sm:$0xf]  ;;  %v158_v9 = vld [vmem:[%s292_s1 + $0x28] sm:$0xf0]  ;;  %v157_v10 = vor.u32 %v180_v6, %v156_v5  ;;  %v148_v12 = vld [vmem:[%s292_s1 + $0x10] sm:$0xf] }
   0x4   :  { %91 = vmatpush.bf16.msra.mxu0 %v165_v3  ;;  %183 = vmatpush.bf16.msra.mxu2 %v165_v3  ;;  %v161_v11 = vor.u32 %v179_v8, %v158_v9  ;;  %v178_v13 = vld [vmem:[%s292_s1 + $0x14] sm:$0xf0]  ;;  %v177_v14 = vld [vmem:[%s292_s1 + $0x14] sm:$0xf]  ;;  %v150_v15 = vld [vmem:[%s292_s1 + $0x18] sm:$0xf0] }
   0x5   :  { %109 = vmatpush.bf16.msra.mxu1 %v169_v7  ;;  %187 = vmatpush.bf16.msra.mxu3 %v169_v7  ;;  %v149_v16 = vor.u32 %v178_v13, %v148_v12  ;;  %v17_v17 = vld [vmem:[%s293_s0 + $0x8] sm:$0x1]  ;;  %v153_v18 = vor.u32 %v177_v14, %v150_v15  ;;  %v140_v19 = vld [vmem:[%s292_s1] sm:$0xf]  ;;  %v175_v21 = vld [vmem:[%s292_s1 + $0x4] sm:$0xf] }
   0x6   :  { %v176_v20 = vld [vmem:[%s292_s1 + $0x4] sm:$0xf0]  ;;  %v142_v22 = vld [vmem:[%s292_s1 + $0x8] sm:$0xf0]  ;;  %v37_v23 = vunpack.c.l.b16 %v17_v17  ;;  %v174_v26 = vld [vmem:[%s293_s0] sm:$0xff] }
   0x7   :  { %v141_v24 = vor.u32 %v176_v20, %v140_v19  ;;  %v145_v25 = vor.u32 %v175_v21, %v142_v22  ;;  %v26_v28 = vld [vmem:[%s294_s2] sm:$0x3] }
   0x8   :  { %92 = vmatpush.bf16.msra.mxu0 %v157_v10  ;;  %184 = vmatpush.bf16.msra.mxu2 %v157_v10  ;;  %v39_v27 = vpack.c.b16 %v37_v23, %v37_v23  ;;  %v28_v29 = vperm.slane %v26_v28, 0  ;;  %v29_v30 = vperm.slane %v26_v28, 1 }
   0x9   :  { %110 = vmatpush.bf16.msra.mxu1 %v161_v11  ;;  %188 = vmatpush.bf16.msra.mxu3 %v161_v11 }
   0xc   :  { %93 = vmatpush.bf16.msra.mxu0 %v149_v16  ;;  %185 = vmatpush.bf16.msra.mxu2 %v149_v16 }
   0xd   :  { %111 = vmatpush.bf16.msra.mxu1 %v153_v18  ;;  %189 = vmatpush.bf16.msra.mxu3 %v153_v18 }
  0x10   :  { %94 = vmatpush.bf16.msra.mxu0 %v141_v24  ;;  %186 = vmatpush.bf16.msra.mxu2 %v141_v24 }
  0x11   :  { %112 = vmatpush.bf16.msra.mxu1 %v145_v25  ;;  %190 = vmatpush.bf16.msra.mxu3 %v145_v25 }
  0x13   :  { %170 = vmatmul.msk.bf16.vlgmr.msra.gmra.mxu0 %vm80_vm0, %v174_v26  ;;  %171 = vmatmul.msk.bf16.vlgmr.msra.gmra.mxu2 %vm80_vm0, %v39_v27 }
  0x14   :  { %172 = vmatmul.msk.bf16.vlgmr.msra.gmra.mxu1 %vm80_vm0, %v174_v26  ;;  %173 = vmatmul.msk.bf16.vlgmr.msra.gmra.mxu3 %vm80_vm0, %v39_v27 }
  0x90   :  { %v96_v31 = vpop.f32.mrf.mxu0 }
  0x91   :  { %v97_v32 = vadd.f32 %v96_v31, %v28_v29  ;;  %v114_v33 = vpop.f32.mrf.mxu1 }
  0x92   :  { %v115_v34 = vadd.f32 %v114_v33, %v29_v30 }
  0x93   :  { %123 = vst [vmem:[%s295_s3] sm:$0xff] %v97_v32 }
  0x94   :  { %124 = vst.msk [vmem:[%s295_s3 + $0x8] sm:$0xff] %vm80_vm0, %v115_v34 }
  0x96   :  { %v101_v35 = vpop.f32.mrf.mxu2 }
  0x97   :  { %v102_v36 = vadd.f32 %v101_v35, %v28_v29  ;;  %v119_v37 = vpop.f32.mrf.mxu3 }
  0x98   :  { %v120_v38 = vadd.f32 %v119_v37, %v29_v30  ;;  %v98_v39 = vpop.f32.mrf.mxu0 }
  0x99   :  { %127 = vst [vmem:[%s295_s3 + $0x20] sm:$0x3] %v102_v36  ;;  %v99_v40 = vadd.f32 %v98_v39, %v28_v29  ;;  %v116_v41 = vpop.f32.mrf.mxu1 }
  0x9a   :  { %129 = vst.msk [vmem:[%s295_s3 + $0x28] sm:$0x3] %vm128_vm1, %v120_v38  ;;  %v117_v42 = vadd.f32 %v116_v41, %v29_v30 }
  0x9b   :  { %125 = vst [vmem:[%s295_s3 + $0x10] sm:$0xff] %v99_v40 }
  0x9c   :  { %126 = vst.msk [vmem:[%s295_s3 + $0x18] sm:$0xff] %vm80_vm0, %v117_v42 }
  0x9e   :  { %v103_v43 = vpop.f32.mrf.mxu2 }
  0x9f   :  { %v121_v44 = vpop.f32.mrf.mxu3 }

// kernel: forward.36
= control target key start
LH: loop header
LB: loop body
LE: loop exit
PB: predicated region body
PF: predicated region fallthrough
CT: control target
= control target key end

     0   :  { %vm62_vm0 = vcmask 523264   ;;  %s209_s1 = inlined_call_operand.vmem [shape: bf16[64,128], index: 1, kind: input, shape index: {}]   ;;  %s210_s2 = inlined_call_operand.vmem [shape: f32[1,128], index: 2, kind: input, shape index: {}]   ;;  %s211_s0 = inlined_call_operand.vmem [shape: bf16[18,64], index: 0, kind: input, shape index: {}]   ;;  %s212_s3 = inlined_call_operand.vmem [shape: f32[18,128], index: 3, kind: output, shape index: {}]  }
   0x1   :  { %v147_v0 = vld [vmem:[%s209_s1 + $0x18] sm:$0xff]  ;;  %v146_v1 = vld [vmem:[%s209_s1 + $0x10] sm:$0xff]  ;;  %v145_v2 = vld [vmem:[%s209_s1 + $0x8] sm:$0xff] }
   0x2   :  { %73 = vmatpush.bf16.msra.mxu0 %v147_v0  ;;  %148 = vmatpush.bf16.msra.mxu1 %v147_v0  ;;  %v17_v3 = vld [vmem:[%s211_s0 + $0x8] sm:$0x1]  ;;  %v144_v5 = vld [vmem:[%s209_s1] sm:$0xff] }
   0x3   :  { %v35_v4 = vunpack.c.l.b16 %v17_v3  ;;  %v143_v6 = vld [vmem:[%s211_s0] sm:$0xff] }
   0x4   :  { %v152_v8 = vld [vmem:[%s210_s2] ss:$0 sm:$0xff] }
   0x5   :  { %v37_v7 = vpack.c.b16 %v35_v4, %v35_v4 }
   0x6   :  { %74 = vmatpush.bf16.msra.mxu0 %v146_v1  ;;  %149 = vmatpush.bf16.msra.mxu1 %v146_v1 }
   0xa   :  { %75 = vmatpush.bf16.msra.mxu0 %v145_v2  ;;  %150 = vmatpush.bf16.msra.mxu1 %v145_v2 }
   0xe   :  { %76 = vmatpush.bf16.msra.mxu0 %v144_v5  ;;  %151 = vmatpush.bf16.msra.mxu1 %v144_v5 }
  0x11   :  { %141 = vmatmul.msk.bf16.vlgmr.msra.gmra.mxu0 %vm62_vm0, %v143_v6  ;;  %142 = vmatmul.msk.bf16.vlgmr.msra.gmra.mxu1 %vm62_vm0, %v37_v7 }
  0x8e   :  { %v78_v9 = vpop.f32.mrf.mxu0  ;;  %v83_v10 = vpop.f32.mrf.mxu1 }
  0x8f   :  { %v79_v11 = vadd.f32 %v152_v8, %v78_v9  ;;  %v84_v12 = vadd.f32 %v152_v8, %v83_v10 }
  0x91   :  { %v87_v13 = vmul.f32 %v79_v11, %v79_v11  ;;  %v89_v14 = vmul.f32 %v84_v12, %v84_v12 }
  0x93   :  { %v90_v15 = vmul.f32 %v87_v13, %v79_v11  ;;  %v92_v16 = vmul.f32 %v89_v14, %v84_v12 }
  0x95   :  { %v93_v17 = vmul.f32 0.044715, %v90_v15  ;;  %v95_v18 = vmul.f32 0.044715, %v92_v16 }
  0x96   :  { %v80_v19 = vpop.f32.mrf.mxu0  ;;  %v85_v20 = vpop.f32.mrf.mxu1 }
  0x97   :  { %v96_v21 = vadd.f32 %v93_v17, %v79_v11  ;;  %v98_v22 = vadd.f32 %v95_v18, %v84_v12  ;;  %v81_v23 = vadd.f32 %v152_v8, %v80_v19 }
  0x99   :  { %v99_v24 = vmul.f32 0.7978846, %v96_v21  ;;  %v101_v25 = vmul.f32 0.7978846, %v98_v22  ;;  %v88_v26 = vmul.f32 %v81_v23, %v81_v23 }
  0x9b   :  { %153 = vtanh.f32 %v99_v24  ;;  %v91_v27 = vmul.f32 %v88_v26, %v81_v23 }
  0x9c   :  { %155 = vtanh.f32 %v101_v25 }
  0x9d   :  { %v94_v28 = vmul.f32 0.044715, %v91_v27 }
  0x9f   :  { %v97_v29 = vadd.f32 %v94_v28, %v81_v23 }
  0xa1   :  { %v154_v30 = vpop.eup %153  ;;  %v100_v31 = vmul.f32 0.7978846, %v97_v29 }
  0xa2   :  { %v156_v32 = vpop.eup %155  ;;  %v105_v33 = vadd.f32 1.0, %v154_v30 }
  0xa3   :  { %v107_v34 = vadd.f32 1.0, %v156_v32  ;;  %157 = vtanh.f32 %v100_v31 }
  0xa4   :  { %v108_v35 = vmul.f32 0.5, %v105_v33 }
  0xa5   :  { %v110_v36 = vmul.f32 0.5, %v107_v34 }
  0xa6   :  { %v111_v37 = vmul.f32 %v108_v35, %v79_v11 }
  0xa7   :  { %v113_v38 = vmul.f32 %v110_v36, %v84_v12 }
  0xa8   :  { %114 = vst [vmem:[%s212_s3] sm:$0xff] %v111_v37 }
  0xa9   :  { %v158_v39 = vpop.eup %157  ;;  %116 = vst [vmem:[%s212_s3 + $0x10] sm:$0x3] %v113_v38 }
  0xaa   :  { %v106_v40 = vadd.f32 1.0, %v158_v39 }
  0xac   :  { %v109_v41 = vmul.f32 0.5, %v106_v40 }
  0xae   :  { %v112_v42 = vmul.f32 %v109_v41, %v81_v23 }
  0xb0   :  { %115 = vst [vmem:[%s212_s3 + $0x8] sm:$0xff] %v112_v42 }

// kernel: forward.35
= control target key start
LH: loop header
LB: loop body
LE: loop exit
PB: predicated region body
PF: predicated region fallthrough
CT: control target
= control target key end

     0   :  { %vm71_vm0 = vcmask 523264   ;;  %vm110_vm1 = vcmask 517120   ;;  %v240_v25 = vmov 64.0   ;;  %s332_s1 = inlined_call_operand.vmem [shape: bf16[64,64], index: 1, kind: input, shape index: {}]   ;;  %s333_s2 = inlined_call_operand.vmem [shape: f32[1,64], index: 2, kind: input, shape index: {}]   ;;  %s334_s0 = inlined_call_operand.vmem [shape: bf16[18,64], index: 0, kind: input, shape index: {}]   ;;  %s335_s3 = inlined_call_operand.vmem [shape: f32[18,64], index: 3, kind: input, shape index: {}]   ;;  %s336_s4 = inlined_call_operand.vmem [shape: f32[1,64], index: 4, kind: input, shape index: {}]   ;;  %s337_s5 = inlined_call_operand.vmem [shape: f32[1,64], index: 5, kind: input, shape index: {}]   ;;  %s338_s6 = inlined_call_operand.vmem [shape: f32[18,64], index: 6, kind: output, shape index: {}]  }
   0x1   :  { %v223_v0 = vld [vmem:[%s332_s1 + $0x18] sm:$0xff]  ;;  %v222_v1 = vld [vmem:[%s332_s1 + $0x10] sm:$0xff]  ;;  %v221_v2 = vld [vmem:[%s332_s1 + $0x8] sm:$0xff]  ;;  %232 = vrcp.f32 %v240_v25 }
   0x2   :  { %82 = vmatpush.bf16.msra.mxu0 %v223_v0  ;;  %224 = vmatpush.bf16.msra.mxu1 %v223_v0  ;;  %v26_v3 = vld [vmem:[%s334_s0 + $0x8] sm:$0x1]  ;;  %v220_v5 = vld [vmem:[%s332_s1] sm:$0xff]  ;;  %v98_v11 = vld [vmem:[%s335_s3 + $0x10] sm:$0x3] }
   0x3   :  { %v44_v4 = vunpack.c.l.b16 %v26_v3  ;;  %v219_v6 = vld [vmem:[%s334_s0] sm:$0xff]  ;;  %v97_v20 = vld [vmem:[%s335_s3 + $0x8] sm:$0xff] }
   0x4   :  { %v229_v8 = vld [vmem:[%s333_s2] ss:$0 sm:$0xff] }
   0x5   :  { %v46_v7 = vpack.c.b16 %v44_v4, %v44_v4  ;;  %v96_v12 = vld [vmem:[%s335_s3] sm:$0xff] }
   0x6   :  { %83 = vmatpush.bf16.msra.mxu0 %v222_v1  ;;  %225 = vmatpush.bf16.msra.mxu1 %v222_v1  ;;  %v230_v0 = vld [vmem:[%s336_s4] ss:$0 sm:$0xff] }
   0x7   :  { %v233_v26 = vpop.eup %232  ;;  %v231_v3 = vld [vmem:[%s337_s5] ss:$0 sm:$0xff] }
   0x8   :  { %v115_v27 = vmul.f32 64.0, %v233_v26  ;;  %vm119_vm2 = vweird.f32 %v233_v26 }
   0xa   :  { %84 = vmatpush.bf16.msra.mxu0 %v221_v2  ;;  %226 = vmatpush.bf16.msra.mxu1 %v221_v2  ;;  %v116_v28 = vsub.f32 1.0, %v115_v27 }
   0xc   :  { %v117_v29 = vmul.f32 %v233_v26, %v116_v28 }
   0xe   :  { %85 = vmatpush.bf16.msra.mxu0 %v220_v5  ;;  %227 = vmatpush.bf16.msra.mxu1 %v220_v5  ;;  %v118_v30 = vadd.f32 %v233_v26, %v117_v29 }
  0x10   :  { %v120_v31 = vsel %vm119_vm2, %v233_v26, %v118_v30 }
  0x11   :  { %217 = vmatmul.msk.bf16.vlgmr.msra.gmra.mxu0 %vm71_vm0, %v219_v6  ;;  %218 = vmatmul.msk.bf16.vlgmr.msra.gmra.mxu1 %vm71_vm0, %v46_v7 }
  0x8e   :  { %v87_v9 = vpop.f32.mrf.mxu0  ;;  %v92_v10 = vpop.f32.mrf.mxu1 }
  0x8f   :  { %v88_v13 = vadd.f32 %v229_v8, %v87_v9  ;;  %v93_v14 = vadd.f32 %v229_v8, %v92_v10 }
  0x91   :  { %v101_v15 = vadd.f32 %v98_v11, %v93_v14  ;;  %v99_v16 = vadd.f32 %v96_v12, %v88_v13 }
  0x93   :  { %v111_v17 = vsel %vm110_vm1, %v101_v15, 0.0  ;;  %v104_v18 = vsel %vm71_vm0, %v99_v16, 0.0 }
  0x94   :  { %112 = vadd.xlane.f32.xlu1 %v111_v17  ;;  %105 = vadd.xlane.f32.xlu0 %v104_v18 }
  0x96   :  { %v89_v19 = vpop.f32.mrf.mxu0  ;;  %v94_v21 = vpop.f32.mrf.mxu1 }
  0x97   :  { %v90_v22 = vadd.f32 %v229_v8, %v89_v19 }
  0x99   :  { %v100_v23 = vadd.f32 %v97_v20, %v90_v22 }
  0x9b   :  { %v107_v24 = vsel %vm71_vm0, %v100_v23, 0.0 }
  0x9c   :  { %108 = vadd.xlane.f32.xlu0 %v107_v24 }
 0x107   :  { %v106_v32 = vpop.xlane.xlu0 %105  ;;  %v113_v37 = vpop.xlane.xlu1 %112 }
 0x108   :  { %v121_v33 = vmul.f32 %v120_v31, %v106_v32  ;;  %v123_v40 = vmul.f32 %v120_v31, %v113_v37 }
 0x10a   :  { %v124_v34 = vsub.f32 %v99_v16, %v121_v33  ;;  %v126_v43 = vsub.f32 %v101_v15, %v123_v40 }
 0x10c   :  { %v127_v35 = vmul.f32 %v124_v34, %v124_v34  ;;  %v129_v45 = vmul.f32 %v126_v43, %v126_v43 }
 0x10e   :  { %v130_v36 = vsel %vm71_vm0, %v127_v35, 0.0  ;;  %v136_v46 = vsel %vm110_vm1, %v129_v45, 0.0 }
 0x10f   :  { %131 = vadd.xlane.f32.xlu1 %v130_v36  ;;  %v109_v38 = vpop.xlane.xlu0 %108 }
 0x110   :  { %v122_v39 = vmul.f32 %v120_v31, %v109_v38 }
 0x112   :  { %v125_v41 = vsub.f32 %v100_v23, %v122_v39 }
 0x114   :  { %v128_v42 = vmul.f32 %v125_v41, %v125_v41 }
 0x116   :  { %v133_v44 = vsel %vm71_vm0, %v128_v42, 0.0 }
 0x117   :  { %134 = vadd.xlane.f32.xlu2 %v133_v44 }
 0x11f   :  { %137 = vadd.xlane.f32.xlu2 %v136_v46 }
 0x182   :  { %v132_v47 = vpop.xlane.xlu1 %131 }
 0x183   :  { %v139_v48 = vmul.f32 %v132_v47, %v120_v31 }
 0x185   :  { %v142_v49 = vadd.f32 1e-05, %v139_v48 }
 0x187   :  { %234 = vrsqrt.f32 %v142_v49  ;;  %vm151_vm4 = vweird.f32 %v142_v49 }
 0x18a   :  { %v135_v50 = vpop.xlane.xlu2 %134 }
 0x18b   :  { %v140_v51 = vmul.f32 %v135_v50, %v120_v31 }
 0x18d   :  { %v235_v52 = vpop.eup %234  ;;  %v143_v53 = vadd.f32 1e-05, %v140_v51 }
 0x18e   :  { %v146_v54 = vmul.f32 %v235_v52, %v142_v49  ;;  %vm152_vm3 = vweird.f32 %v235_v52 }
 0x18f   :  { %236 = vrsqrt.f32 %v143_v53  ;;  %vm153_vm5 = vmor %vm151_vm4, %vm152_vm3  ;;  %vm161_vm7 = vweird.f32 %v143_v53 }
 0x190   :  { %v147_v55 = vmul.f32 %v235_v52, %v146_v54 }
 0x192   :  { %v148_v56 = vmul.f32 0.5, %v147_v55  ;;  %v138_v57 = vpop.xlane.xlu2 %137 }
 0x193   :  { %v141_v58 = vmul.f32 %v138_v57, %v120_v31 }
 0x194   :  { %v149_v59 = vsub.f32 1.5, %v148_v56 }
 0x195   :  { %v237_v60 = vpop.eup %236  ;;  %v144_v61 = vadd.f32 1e-05, %v141_v58 }
 0x196   :  { %v150_v62 = vmul.f32 %v235_v52, %v149_v59  ;;  %v156_v63 = vmul.f32 %v237_v60, %v143_v53  ;;  %vm162_vm6 = vweird.f32 %v237_v60 }
 0x197   :  { %238 = vrsqrt.f32 %v144_v61  ;;  %vm163_vm8 = vmor %vm161_vm7, %vm162_vm6  ;;  %vm171_vm10 = vweird.f32 %v144_v61 }
 0x198   :  { %v154_v1 = vsel %vm153_vm5, %v235_v52, %v150_v62  ;;  %v157_v2 = vmul.f32 %v237_v60, %v156_v63 }
 0x199   :  { %v175_v4 = vmul.f32 %v154_v1, %v124_v34 }
 0x19a   :  { %v158_v5 = vmul.f32 0.5, %v157_v2 }
 0x19b   :  { %v181_v6 = vmul.f32 %v230_v0, %v175_v4 }
 0x19c   :  { %v159_v7 = vsub.f32 1.5, %v158_v5 }
 0x19d   :  { %v239_v8 = vpop.eup %238  ;;  %v187_v9 = vadd.f32 %v231_v3, %v181_v6 }
 0x19e   :  { %v160_v10 = vmul.f32 %v237_v60, %v159_v7  ;;  %v166_v11 = vmul.f32 %v239_v8, %v144_v61  ;;  %vm172_vm9 = vweird.f32 %v239_v8 }
 0x19f   :  { %190 = vst.msk [vmem:[%s338_s6] sm:$0xff] %vm71_vm0, %v187_v9  ;;  %vm173_vm11 = vmor %vm171_vm10, %vm172_vm9 }
 0x1a0   :  { %v164_v12 = vsel %vm163_vm8, %v237_v60, %v160_v10  ;;  %v167_v13 = vmul.f32 %v239_v8, %v166_v11 }
 0x1a1   :  { %v176_v14 = vmul.f32 %v164_v12, %v125_v41 }
 0x1a2   :  { %v168_v15 = vmul.f32 0.5, %v167_v13 }
 0x1a3   :  { %v182_v16 = vmul.f32 %v230_v0, %v176_v14 }
 0x1a4   :  { %v169_v17 = vsub.f32 1.5, %v168_v15 }
 0x1a5   :  { %v188_v18 = vadd.f32 %v231_v3, %v182_v16 }
 0x1a6   :  { %v170_v19 = vmul.f32 %v239_v8, %v169_v17 }
 0x1a7   :  { %191 = vst.msk [vmem:[%s338_s6 + $0x8] sm:$0xff] %vm71_vm0, %v188_v18 }
 0x1a8   :  { %v174_v20 = vsel %vm173_vm11, %v239_v8, %v170_v19 }
 0x1a9   :  { %v177_v21 = vmul.f32 %v174_v20, %v126_v43 }
 0x1ab   :  { %v183_v22 = vmul.f32 %v230_v0, %v177_v21 }
 0x1ad   :  { %v189_v23 = vadd.f32 %v231_v3, %v183_v22 }
 0x1af   :  { %192 = vst.msk [vmem:[%s338_s6 + $0x10] sm:$0x3] %vm110_vm1, %v189_v23 }

// kernel: forward.37
= control target key start
LH: loop header
LB: loop body
LE: loop exit
PB: predicated region body
PF: predicated region fallthrough
CT: control target
= control target key end

     0   :  { %vm137_vm0 = vcmask 517120   ;;  %vm130_vm1 = vcmask 523264   ;;  %v289_v29 = vmov 64.0   ;;  %s391_s1 = inlined_call_operand.vmem [shape: bf16[128,64], index: 1, kind: input, shape index: {}]   ;;  %s392_s2 = inlined_call_operand.vmem [shape: f32[1,64], index: 2, kind: input, shape index: {}]   ;;  %s393_s0 = inlined_call_operand.vmem [shape: bf16[18,128], index: 0, kind: input, shape index: {}]   ;;  %s394_s3 = inlined_call_operand.vmem [shape: f32[18,64], index: 3, kind: input, shape index: {}]   ;;  %s395_s4 = inlined_call_operand.vmem [shape: f32[1,64], index: 4, kind: input, shape index: {}]   ;;  %s396_s5 = inlined_call_operand.vmem [shape: f32[1,64], index: 5, kind: input, shape index: {}]   ;;  %s397_s6 = inlined_call_operand.vmem [shape: f32[18,64], index: 6, kind: output, shape index: {}]  }
   0x1   :  { %v268_v0 = vld [vmem:[%s391_s1 + $0x38] sm:$0xff]  ;;  %v267_v1 = vld [vmem:[%s391_s1 + $0x30] sm:$0xff]  ;;  %v266_v2 = vld [vmem:[%s391_s1 + $0x28] sm:$0xff]  ;;  %281 = vrcp.f32 %v289_v29 }
   0x2   :  { %104 = vmatpush.bf16.msra.mxu0 %v268_v0  ;;  %269 = vmatpush.bf16.msra.mxu1 %v268_v0  ;;  %v265_v3 = vld [vmem:[%s391_s1 + $0x20] sm:$0xff]  ;;  %v264_v4 = vld [vmem:[%s391_s1 + $0x18] sm:$0xff]  ;;  %v263_v5 = vld [vmem:[%s391_s1 + $0x10] sm:$0xff] }
   0x3   :  { %v262_v6 = vld [vmem:[%s391_s1 + $0x8] sm:$0xff]  ;;  %v261_v9 = vld [vmem:[%s391_s1] sm:$0xff]  ;;  %v124_v15 = vld [vmem:[%s394_s3 + $0x10] sm:$0x3] }
   0x4   :  { %v25_v7 = vld [vmem:[%s393_s0 + $0x8] sm:$0x1]  ;;  %v260_v10 = vld [vmem:[%s393_s0] sm:$0xff] }
   0x5   :  { %v51_v8 = vunpack.c.l.b16 %v25_v7  ;;  %v278_v12 = vld [vmem:[%s392_s2] ss:$0 sm:$0xff]  ;;  %v123_v24 = vld [vmem:[%s394_s3 + $0x8] sm:$0xff] }
   0x6   :  { %105 = vmatpush.bf16.msra.mxu0 %v267_v1  ;;  %270 = vmatpush.bf16.msra.mxu1 %v267_v1  ;;  %v122_v16 = vld [vmem:[%s394_s3] sm:$0xff] }
   0x7   :  { %v53_v11 = vpack.c.b16 %v51_v8, %v51_v8  ;;  %v282_v30 = vpop.eup %281  ;;  %v280_v7 = vld [vmem:[%s396_s5] ss:$0 sm:$0xff] }
   0x8   :  { %v142_v31 = vmul.f32 64.0, %v282_v30  ;;  %vm146_vm2 = vweird.f32 %v282_v30 }
   0xa   :  { %106 = vmatpush.bf16.msra.mxu0 %v266_v2  ;;  %271 = vmatpush.bf16.msra.mxu1 %v266_v2  ;;  %v143_v32 = vsub.f32 1.0, %v142_v31 }
   0xc   :  { %v144_v33 = vmul.f32 %v282_v30, %v143_v32 }
   0xe   :  { %107 = vmatpush.bf16.msra.mxu0 %v265_v3  ;;  %272 = vmatpush.bf16.msra.mxu1 %v265_v3  ;;  %v145_v34 = vadd.f32 %v282_v30, %v144_v33 }
  0x10   :  { %v147_v35 = vsel %vm146_vm2, %v282_v30, %v145_v34 }
  0x12   :  { %108 = vmatpush.bf16.msra.mxu0 %v264_v4  ;;  %273 = vmatpush.bf16.msra.mxu1 %v264_v4  ;;  %v279_v4 = vld [vmem:[%s395_s4] ss:$0 sm:$0xff] }
  0x16   :  { %109 = vmatpush.bf16.msra.mxu0 %v263_v5  ;;  %274 = vmatpush.bf16.msra.mxu1 %v263_v5 }
  0x1a   :  { %110 = vmatpush.bf16.msra.mxu0 %v262_v6  ;;  %275 = vmatpush.bf16.msra.mxu1 %v262_v6 }
  0x1e   :  { %111 = vmatpush.bf16.msra.mxu0 %v261_v9  ;;  %276 = vmatpush.bf16.msra.mxu1 %v261_v9 }
  0x21   :  { %112 = vmatmul.bf16.vlgmr.msra.gmra.mxu0 %v260_v10  ;;  %117 = vmatmul.bf16.vlgmr.msra.gmra.mxu1 %v53_v11 }
  0x9e   :  { %v113_v13 = vpop.f32.mrf.mxu0  ;;  %v118_v14 = vpop.f32.mrf.mxu1 }
  0x9f   :  { %v114_v17 = vadd.f32 %v278_v12, %v113_v13  ;;  %v119_v18 = vadd.f32 %v278_v12, %v118_v14 }
  0xa1   :  { %v127_v19 = vadd.f32 %v124_v15, %v119_v18  ;;  %v125_v20 = vadd.f32 %v122_v16, %v114_v17 }
  0xa3   :  { %v138_v21 = vsel %vm137_vm0, %v127_v19, 0.0  ;;  %v131_v22 = vsel %vm130_vm1, %v125_v20, 0.0 }
  0xa4   :  { %139 = vadd.xlane.f32.xlu1 %v138_v21  ;;  %132 = vadd.xlane.f32.xlu0 %v131_v22 }
  0xa6   :  { %v115_v23 = vpop.f32.mrf.mxu0  ;;  %v120_v25 = vpop.f32.mrf.mxu1 }
  0xa7   :  { %v116_v26 = vadd.f32 %v278_v12, %v115_v23 }
  0xa9   :  { %v126_v27 = vadd.f32 %v123_v24, %v116_v26 }
  0xab   :  { %v134_v28 = vsel %vm130_vm1, %v126_v27, 0.0 }
  0xac   :  { %135 = vadd.xlane.f32.xlu0 %v134_v28 }
 0x117   :  { %v133_v36 = vpop.xlane.xlu0 %132  ;;  %v140_v41 = vpop.xlane.xlu1 %139 }
 0x118   :  { %v148_v37 = vmul.f32 %v147_v35, %v133_v36  ;;  %v150_v44 = vmul.f32 %v147_v35, %v140_v41 }
 0x11a   :  { %v151_v38 = vsub.f32 %v125_v20, %v148_v37  ;;  %v153_v47 = vsub.f32 %v127_v19, %v150_v44 }
 0x11c   :  { %v154_v39 = vmul.f32 %v151_v38, %v151_v38  ;;  %v156_v49 = vmul.f32 %v153_v47, %v153_v47 }
 0x11e   :  { %v157_v40 = vsel %vm130_vm1, %v154_v39, 0.0  ;;  %v163_v50 = vsel %vm137_vm0, %v156_v49, 0.0 }
 0x11f   :  { %158 = vadd.xlane.f32.xlu1 %v157_v40  ;;  %v136_v42 = vpop.xlane.xlu0 %135 }
 0x120   :  { %v149_v43 = vmul.f32 %v147_v35, %v136_v42 }
 0x122   :  { %v152_v45 = vsub.f32 %v126_v27, %v149_v43 }
 0x124   :  { %v155_v46 = vmul.f32 %v152_v45, %v152_v45 }
 0x126   :  { %v160_v48 = vsel %vm130_vm1, %v155_v46, 0.0 }
 0x127   :  { %161 = vadd.xlane.f32.xlu2 %v160_v48 }
 0x12f   :  { %164 = vadd.xlane.f32.xlu2 %v163_v50 }
 0x192   :  { %v159_v51 = vpop.xlane.xlu1 %158 }
 0x193   :  { %v166_v52 = vmul.f32 %v159_v51, %v147_v35 }
 0x195   :  { %v169_v53 = vadd.f32 1e-05, %v166_v52 }
 0x197   :  { %283 = vrsqrt.f32 %v169_v53  ;;  %vm178_vm4 = vweird.f32 %v169_v53 }
 0x19a   :  { %v162_v54 = vpop.xlane.xlu2 %161 }
 0x19b   :  { %v167_v55 = vmul.f32 %v162_v54, %v147_v35 }
 0x19d   :  { %v284_v56 = vpop.eup %283  ;;  %v170_v57 = vadd.f32 1e-05, %v167_v55 }
 0x19e   :  { %v173_v58 = vmul.f32 %v284_v56, %v169_v53  ;;  %vm179_vm3 = vweird.f32 %v284_v56 }
 0x19f   :  { %285 = vrsqrt.f32 %v170_v57  ;;  %vm180_vm5 = vmor %vm178_vm4, %vm179_vm3  ;;  %vm188_vm7 = vweird.f32 %v170_v57 }
 0x1a0   :  { %v174_v59 = vmul.f32 %v284_v56, %v173_v58 }
 0x1a2   :  { %v175_v60 = vmul.f32 0.5, %v174_v59  ;;  %v165_v61 = vpop.xlane.xlu2 %164 }
 0x1a3   :  { %v168_v62 = vmul.f32 %v165_v61, %v147_v35 }
 0x1a4   :  { %v176_v63 = vsub.f32 1.5, %v175_v60 }
 0x1a5   :  { %v286_v0 = vpop.eup %285  ;;  %v171_v1 = vadd.f32 1e-05, %v168_v62 }
 0x1a6   :  { %v177_v2 = vmul.f32 %v284_v56, %v176_v63  ;;  %v183_v3 = vmul.f32 %v286_v0, %v170_v57  ;;  %vm189_vm6 = vweird.f32 %v286_v0 }
 0x1a7   :  { %287 = vrsqrt.f32 %v171_v1  ;;  %vm190_vm8 = vmor %vm188_vm7, %vm189_vm6  ;;  %vm198_vm10 = vweird.f32 %v171_v1 }
 0x1a8   :  { %v181_v5 = vsel %vm180_vm5, %v284_v56, %v177_v2  ;;  %v184_v6 = vmul.f32 %v286_v0, %v183_v3 }
 0x1a9   :  { %v202_v8 = vmul.f32 %v181_v5, %v151_v38 }
 0x1aa   :  { %v185_v9 = vmul.f32 0.5, %v184_v6 }
 0x1ab   :  { %v208_v10 = vmul.f32 %v279_v4, %v202_v8 }
 0x1ac   :  { %v186_v11 = vsub.f32 1.5, %v185_v9 }
 0x1ad   :  { %v288_v12 = vpop.eup %287  ;;  %v214_v13 = vadd.f32 %v280_v7, %v208_v10 }
 0x1ae   :  { %v187_v14 = vmul.f32 %v286_v0, %v186_v11  ;;  %v193_v15 = vmul.f32 %v288_v12, %v171_v1  ;;  %vm199_vm9 = vweird.f32 %v288_v12 }
 0x1af   :  { %217 = vst.msk [vmem:[%s397_s6] sm:$0xff] %vm130_vm1, %v214_v13  ;;  %vm200_vm11 = vmor %vm198_vm10, %vm199_vm9 }
 0x1b0   :  { %v191_v16 = vsel %vm190_vm8, %v286_v0, %v187_v14  ;;  %v194_v17 = vmul.f32 %v288_v12, %v193_v15 }
 0x1b1   :  { %v203_v18 = vmul.f32 %v191_v16, %v152_v45 }
 0x1b2   :  { %v195_v19 = vmul.f32 0.5, %v194_v17 }
 0x1b3   :  { %v209_v20 = vmul.f32 %v279_v4, %v203_v18 }
 0x1b4   :  { %v196_v21 = vsub.f32 1.5, %v195_v19 }
 0x1b5   :  { %v215_v22 = vadd.f32 %v280_v7, %v209_v20 }
 0x1b6   :  { %v197_v23 = vmul.f32 %v288_v12, %v196_v21 }
 0x1b7   :  { %218 = vst.msk [vmem:[%s397_s6 + $0x8] sm:$0xff] %vm130_vm1, %v215_v22 }
 0x1b8   :  { %v201_v24 = vsel %vm200_vm11, %v288_v12, %v197_v23 }
 0x1b9   :  { %v204_v25 = vmul.f32 %v201_v24, %v153_v47 }
 0x1bb   :  { %v210_v26 = vmul.f32 %v279_v4, %v204_v25 }
 0x1bd   :  { %v216_v27 = vadd.f32 %v280_v7, %v210_v26 }
 0x1bf   :  { %219 = vst.msk [vmem:[%s397_s6 + $0x10] sm:$0x3] %vm137_vm0, %v216_v27 }

// kernel: forward.34
= control target key start
LH: loop header
LB: loop body
LE: loop exit
PB: predicated region body
PF: predicated region fallthrough
CT: control target
= control target key end

     0   :  { %vm57_vm0 = vcmask 130048   ;;  %vm304_vm1 = vcmask 72704   ;;  %vm308_vm2 = vcmask 65536   ;;  %vm527_vm3 = vcmask 1043456   ;;  %s1393_s1 = inlined_call_operand.vmem [shape: bf16[8,9,16], index: 1, kind: input, shape index: {}]   ;;  %s1394_s0 = inlined_call_operand.vmem [shape: bf16[8,9,16], index: 0, kind: input, shape index: {}]   ;;  %s1395_s2 = inlined_call_operand.vmem [shape: bf16[8,9,16], index: 2, kind: input, shape index: {}]   ;;  %s1396_s3 = inlined_call_operand.vmem [shape: f32[8,9,16], index: 3, kind: output, shape index: {}]  }
   0x1   :  { %v785_v0 = vld [vmem:[%s1393_s1] sm:$0xf]  ;;  %v899_v1 = vld [vmem:[%s1393_s1] sm:$0x10]  ;;  %v794_v2 = vld [vmem:[%s1393_s1 + $0x8] sm:$0xf] }
   0x2   :  { %v786_v3 = vor.u32 %v899_v1, %v785_v0  ;;  %v900_v4 = vld [vmem:[%s1393_s1 + $0x8] sm:$0x10]  ;;  %v803_v5 = vld [vmem:[%s1393_s1 + $0x10] sm:$0xf]  ;;  %v901_v6 = vld [vmem:[%s1393_s1 + $0x10] sm:$0x10] }
   0x3   :  { %v795_v7 = vor.u32 %v900_v4, %v794_v2  ;;  %v804_v8 = vor.u32 %v901_v6, %v803_v5  ;;  %v812_v9 = vld [vmem:[%s1393_s1 + $0x18] sm:$0xf]  ;;  %v902_v10 = vld [vmem:[%s1393_s1 + $0x18] sm:$0x10]  ;;  %v781_v11 = vld [vmem:[%s1394_s0] sm:$0xf] }
   0x4   :  { %v62_v12 = vsel %vm57_vm0, %v786_v3, 0  ;;  %v813_v13 = vor.u32 %v902_v10, %v812_v9  ;;  %v891_v14 = vld [vmem:[%s1394_s0] sm:$0x10]  ;;  %v790_v15 = vld [vmem:[%s1394_s0 + $0x8] sm:$0xf]  ;;  %vm528_vm4 = vcmask 1044480  }
   0x5   :  { %71 = vmatpush.bf16.xpose.msra.mxu0 %v62_v12  ;;  %v92_v16 = vsel %vm57_vm0, %v795_v7, 0  ;;  %v122_v17 = vsel %vm57_vm0, %v804_v8, 0  ;;  %v892_v18 = vld [vmem:[%s1394_s0 + $0x8] sm:$0x10]  ;;  %v799_v19 = vld [vmem:[%s1394_s0 + $0x10] sm:$0xf]  ;;  %v782_v26 = vor.u32 %v891_v14, %v781_v11 }
   0x6   :  { %101 = vmatpush.bf16.xpose.msra.mxu1 %v92_v16  ;;  %131 = vmatpush.bf16.xpose.msra.mxu2 %v122_v17  ;;  %v152_v20 = vsel %vm57_vm0, %v813_v13, 0  ;;  %v893_v21 = vld [vmem:[%s1394_s0 + $0x10] sm:$0x10]  ;;  %v808_v22 = vld [vmem:[%s1394_s0 + $0x18] sm:$0xf]  ;;  %v791_v31 = vor.u32 %v892_v18, %v790_v15  ;;  %vm759_vm5 = vcmask 122880  }
   0x7   :  { %161 = vmatpush.bf16.xpose.msra.mxu3 %v152_v20  ;;  %v894_v23 = vld [vmem:[%s1394_s0 + $0x18] sm:$0x10]  ;;  %v839_v24 = vld [vmem:[%s1393_s1 + $0x30] sm:$0xf]  ;;  %v905_v25 = vld [vmem:[%s1393_s1 + $0x30] sm:$0x10]  ;;  %v800_v32 = vor.u32 %v893_v21, %v799_v19 }
   0x8   :  { %v840_v27 = vor.u32 %v905_v25, %v839_v24  ;;  %v848_v28 = vld [vmem:[%s1393_s1 + $0x38] sm:$0xf]  ;;  %v906_v29 = vld [vmem:[%s1393_s1 + $0x38] sm:$0x10]  ;;  %v821_v30 = vld [vmem:[%s1393_s1 + $0x20] sm:$0xf]  ;;  %v809_v35 = vor.u32 %v894_v23, %v808_v22 }
   0x9   :  { %v849_v33 = vor.u32 %v906_v29, %v848_v28  ;;  %v903_v34 = vld [vmem:[%s1393_s1 + $0x20] sm:$0x10]  ;;  %v830_v38 = vld [vmem:[%s1393_s1 + $0x28] sm:$0xf]  ;;  %v904_v39 = vld [vmem:[%s1393_s1 + $0x28] sm:$0x10] }
   0xa   :  { %v242_v36 = vsel %vm57_vm0, %v840_v27, 0  ;;  %v822_v37 = vor.u32 %v903_v34, %v821_v30  ;;  %v831_v41 = vor.u32 %v904_v39, %v830_v38  ;;  %v817_v44 = vld [vmem:[%s1394_s0 + $0x20] sm:$0xf]  ;;  %v895_v45 = vld [vmem:[%s1394_s0 + $0x20] sm:$0x10] }
   0xb   :  { %v272_v40 = vsel %vm57_vm0, %v849_v33, 0  ;;  %v835_v46 = vld [vmem:[%s1394_s0 + $0x30] sm:$0xf]  ;;  %v897_v47 = vld [vmem:[%s1394_s0 + $0x30] sm:$0x10]  ;;  %v818_v52 = vor.u32 %v895_v45, %v817_v44 }
   0xc   :  { %787 = vmatmul.msk.bf16.vlgmr.msra.gmra.mxu0 %vm57_vm0, %v782_v26  ;;  %v182_v42 = vsel %vm57_vm0, %v822_v37, 0  ;;  %v212_v43 = vsel %vm57_vm0, %v831_v41, 0  ;;  %v826_v48 = vld [vmem:[%s1394_s0 + $0x28] sm:$0xf]  ;;  %v896_v49 = vld [vmem:[%s1394_s0 + $0x28] sm:$0x10]  ;;  %v836_v53 = vor.u32 %v897_v47, %v835_v46 }
   0xd   :  { %796 = vmatmul.msk.bf16.vlgmr.msra.gmra.mxu1 %vm57_vm0, %v791_v31  ;;  %805 = vmatmul.msk.bf16.vlgmr.msra.gmra.mxu2 %vm57_vm0, %v800_v32  ;;  %v844_v50 = vld [vmem:[%s1394_s0 + $0x38] sm:$0xf]  ;;  %v898_v51 = vld [vmem:[%s1394_s0 + $0x38] sm:$0x10]  ;;  %v827_v54 = vor.u32 %v896_v49, %v826_v48 }
   0xe   :  { %251 = vmatpush.bf16.xpose.msrb.mxu2 %v242_v36  ;;  %814 = vmatmul.msk.bf16.vlgmr.msra.gmra.mxu3 %vm57_vm0, %v809_v35  ;;  %v845_v55 = vor.u32 %v898_v51, %v844_v50 }
   0xf   :  { %281 = vmatpush.bf16.xpose.msrb.mxu3 %v272_v40  ;;  %191 = vmatpush.bf16.xpose.msrb.mxu0 %v182_v42 }
  0x10   :  { %221 = vmatpush.bf16.xpose.msrb.mxu1 %v212_v43 }
  0x1c   :  { %823 = vmatmul.msk.bf16.vlgmr.msrb.gmra.mxu0 %vm57_vm0, %v818_v52 }
  0x1d   :  { %841 = vmatmul.msk.bf16.vlgmr.msrb.gmra.mxu2 %vm57_vm0, %v836_v53  ;;  %832 = vmatmul.msk.bf16.vlgmr.msrb.gmra.mxu1 %vm57_vm0, %v827_v54 }
  0x1e   :  { %850 = vmatmul.msk.bf16.vlgmr.msrb.gmra.mxu3 %vm57_vm0, %v845_v55 }
  0x89   :  { %v73_v56 = vpop.f32.mrf.mxu0 }
  0x8a   :  { %v1113_v57 = vmul.f32 0.25, %v73_v56  ;;  %v103_v58 = vpop.f32.mrf.mxu1 }
  0x8b   :  { %v1115_v59 = vmul.f32 0.25, %v103_v58 }
  0x8c   :  { %v305_v60 = vsel %vm304_vm1, %v1113_v57, -inf }
  0x8d   :  { %v312_v61 = vsel %vm304_vm1, %v1115_v59, -inf  ;;  %306 = vmax.xlane.f32.xlu2 %v305_v60 }
  0x8e   :  { %313 = vmax.xlane.f32.xlu0 %v312_v61 }
  0x90   :  { %v133_v62 = vpop.f32.mrf.mxu2 }
  0x91   :  { %v1121_v63 = vmul.f32 0.25, %v133_v62  ;;  %v163_v0 = vpop.f32.mrf.mxu3  ;;  %v75_v1 = vpop.f32.mrf.mxu0 }
  0x92   :  { %v1123_v2 = vmul.f32 0.25, %v163_v0  ;;  %v1125_v3 = vmul.f32 0.25, %v75_v1  ;;  %v105_v11 = vpop.f32.mrf.mxu1 }
  0x93   :  { %v318_v4 = vsel %vm304_vm1, %v1121_v63, -inf  ;;  %v1143_v16 = vmul.f32 0.25, %v105_v11 }
  0x94   :  { %v324_v5 = vsel %vm304_vm1, %v1123_v2, -inf  ;;  %v309_v6 = vsel %vm308_vm2, %v1125_v3, -inf }
  0x95   :  { %325 = vmax.xlane.f32.xlu1 %v324_v5  ;;  %310 = vmax.xlane.f32.xlu2 %v309_v6  ;;  %v315_v23 = vsel %vm308_vm2, %v1143_v16, -inf }
  0x96   :  { %319 = vmax.xlane.f32.xlu0 %v318_v4 }
  0x98   :  { %v135_v7 = vpop.f32.mrf.mxu2 }
  0x99   :  { %v1133_v8 = vmul.f32 0.25, %v135_v7  ;;  %v165_v9 = vpop.f32.mrf.mxu3  ;;  %v193_v14 = vpop.f32.mrf.mxu0 }
  0x9a   :  { %v1135_v10 = vmul.f32 0.25, %v165_v9  ;;  %v1141_v15 = vmul.f32 0.25, %v193_v14  ;;  %v223_v22 = vpop.f32.mrf.mxu1 }
  0x9b   :  { %v321_v13 = vsel %vm308_vm2, %v1133_v8, -inf  ;;  %v1167_v35 = vmul.f32 0.25, %v223_v22 }
  0x9c   :  { %v327_v12 = vsel %vm308_vm2, %v1135_v10, -inf  ;;  %v330_v21 = vsel %vm304_vm1, %v1141_v15, -inf }
  0x9d   :  { %328 = vmax.xlane.f32.xlu1 %v327_v12  ;;  %v336_v37 = vsel %vm304_vm1, %v1167_v35, -inf }
  0x9e   :  { %322 = vmax.xlane.f32.xlu0 %v321_v13 }
  0xa0   :  { %v253_v17 = vpop.f32.mrf.mxu2 }
  0xa1   :  { %v1145_v18 = vmul.f32 0.25, %v253_v17  ;;  %v283_v19 = vpop.f32.mrf.mxu3  ;;  %v195_v31 = vpop.f32.mrf.mxu0 }
  0xa2   :  { %v1153_v24 = vmul.f32 0.25, %v283_v19  ;;  %v225_v33 = vpop.f32.mrf.mxu1  ;;  %v1165_v34 = vmul.f32 0.25, %v195_v31 }
  0xa3   :  { %v342_v20 = vsel %vm304_vm1, %v1145_v18, -inf  ;;  %v1169_v36 = vmul.f32 0.25, %v225_v33 }
  0xa4   :  { %343 = vmax.xlane.f32.xlu2 %v342_v20  ;;  %v348_v29 = vsel %vm304_vm1, %v1153_v24, -inf  ;;  %v333_v38 = vsel %vm308_vm2, %v1165_v34, -inf }
  0xa5   :  { %316 = vmax.xlane.f32.xlu1 %v315_v23  ;;  %v339_v39 = vsel %vm308_vm2, %v1169_v36, -inf }
  0xa6   :  { %331 = vmax.xlane.f32.xlu0 %v330_v21 }
  0xa8   :  { %v255_v25 = vpop.f32.mrf.mxu2 }
  0xa9   :  { %v1155_v26 = vmul.f32 0.25, %v255_v25  ;;  %v285_v27 = vpop.f32.mrf.mxu3 }
  0xaa   :  { %v1157_v28 = vmul.f32 0.25, %v285_v27 }
  0xab   :  { %v345_v32 = vsel %vm308_vm2, %v1155_v26, -inf }
  0xac   :  { %v351_v30 = vsel %vm308_vm2, %v1157_v28, -inf }
  0xad   :  { %349 = vmax.xlane.f32.xlu1 %v348_v29  ;;  %352 = vmax.xlane.f32.xlu2 %v351_v30 }
  0xae   :  { %346 = vmax.xlane.f32.xlu0 %v345_v32 }
  0xb5   :  { %337 = vmax.xlane.f32.xlu2 %v336_v37  ;;  %334 = vmax.xlane.f32.xlu1 %v333_v38 }
  0xb6   :  { %340 = vmax.xlane.f32.xlu0 %v339_v39 }
 0x100   :  { %v307_v40 = vpop.xlane.xlu2 %306 }
 0x101   :  { %v314_v41 = vpop.xlane.xlu0 %313  ;;  %v354_v42 = vsub.f32 %v1113_v57, %v307_v40 }
 0x102   :  { %v356_v43 = vsub.f32 %v1115_v59, %v314_v41 }
 0x103   :  { %v370_v44 = vmul.f32 1.442695, %v354_v42 }
 0x104   :  { %v374_v45 = vmul.f32 1.442695, %v356_v43 }
 0x105   :  { %916 = vpow2.f32 %v370_v44 }
 0x106   :  { %918 = vpow2.f32 %v374_v45 }
 0x108   :  { %v326_v46 = vpop.xlane.xlu1 %325  ;;  %v311_v47 = vpop.xlane.xlu2 %310 }
 0x109   :  { %v360_v48 = vsub.f32 %v1123_v2, %v326_v46  ;;  %v320_v49 = vpop.xlane.xlu0 %319  ;;  %v355_v53 = vsub.f32 %v1125_v3, %v311_v47 }
 0x10a   :  { %v358_v50 = vsub.f32 %v1121_v63, %v320_v49 }
 0x10b   :  { %v1181_v51 = vpop.eup %916  ;;  %v382_v52 = vmul.f32 1.442695, %v360_v48  ;;  %v372_v58 = vmul.f32 1.442695, %v355_v53 }
 0x10c   :  { %v1184_v54 = vpop.eup %918  ;;  %v378_v55 = vmul.f32 1.442695, %v358_v50  ;;  %v402_v56 = vsel %vm304_vm1, %v1181_v51, 0.0 }
 0x10d   :  { %920 = vpow2.f32 %v382_v52  ;;  %403 = vadd.xlane.f32.xlu2 %v402_v56  ;;  %v408_v57 = vsel %vm304_vm1, %v1184_v54, 0.0 }
 0x10e   :  { %922 = vpow2.f32 %v378_v55  ;;  %409 = vadd.xlane.f32.xlu1 %v408_v57 }
 0x10f   :  { %924 = vpow2.f32 %v372_v58  ;;  %v853_v58 = vld [vmem:[%s1395_s2] sm:$0xf] }
 0x110   :  { %v329_v59 = vpop.xlane.xlu1 %328 }
 0x111   :  { %v361_v60 = vsub.f32 %v1135_v10, %v329_v59  ;;  %v323_v61 = vpop.xlane.xlu0 %322  ;;  %v907_v59 = vld [vmem:[%s1395_s2] sm:$0x10] }
 0x112   :  { %v359_v62 = vsub.f32 %v1133_v8, %v323_v61 }
 0x113   :  { %v1192_v63 = vpop.eup %920  ;;  %v384_v0 = vmul.f32 1.442695, %v361_v60  ;;  %v980_v60 = vmov 65535  }
 0x114   :  { %v1194_v1 = vpop.eup %922  ;;  %v380_v2 = vmul.f32 1.442695, %v359_v62  ;;  %v420_v3 = vsel %vm304_vm1, %v1192_v63, 0.0  ;;  %v529_v61 = vsel %vm527_vm3, 4294967295, %v980_v60  ;;  %v854_v62 = vor.u32 %v907_v59, %v853_v58 }
 0x115   :  { %926 = vpow2.f32 %v384_v0  ;;  %421 = vadd.xlane.f32.xlu0 %v420_v3  ;;  %v414_v4 = vsel %vm304_vm1, %v1194_v1, 0.0  ;;  %v1201_v8 = vpop.eup %924  ;;  %v863_v0 = vld [vmem:[%s1395_s2 + $0x10] sm:$0xf]  ;;  %v530_v3 = vsel %vm528_vm4, %v529_v61, 0 }
 0x116   :  { %928 = vpow2.f32 %v380_v2  ;;  %415 = vadd.xlane.f32.xlu1 %v414_v4  ;;  %v405_v20 = vsel %vm308_vm2, %v1201_v8, 0.0  ;;  %v909_v2 = vld [vmem:[%s1395_s2 + $0x10] sm:$0x10] }
 0x117   :  { %v344_v5 = vpop.xlane.xlu2 %343  ;;  %v864_v4 = vor.u32 %v909_v2, %v863_v0 }
 0x118   :  { %v317_v6 = vpop.xlane.xlu1 %316  ;;  %v366_v7 = vsub.f32 %v1145_v18, %v344_v5  ;;  %v868_v5 = vld [vmem:[%s1395_s2 + $0x18] sm:$0xf] }
 0x119   :  { %v357_v9 = vsub.f32 %v1143_v16, %v317_v6  ;;  %v332_v10 = vpop.xlane.xlu0 %331  ;;  %v910_v6 = vld [vmem:[%s1395_s2 + $0x18] sm:$0x10] }
 0x11a   :  { %v394_v11 = vmul.f32 1.442695, %v366_v7  ;;  %v362_v12 = vsub.f32 %v1141_v15, %v332_v10  ;;  %v532_v7 = vand.u32 %v854_v62, %v530_v3  ;;  %v592_v10 = vand.u32 %v864_v4, %v530_v3 }
 0x11b   :  { %v1205_v13 = vpop.eup %926  ;;  %v376_v14 = vmul.f32 1.442695, %v357_v9  ;;  %v869_v9 = vor.u32 %v910_v6, %v868_v5 }
 0x11c   :  { %v1207_v17 = vpop.eup %928  ;;  %930 = vpow2.f32 %v394_v11  ;;  %v386_v19 = vmul.f32 1.442695, %v362_v12  ;;  %v423_v16 = vsel %vm308_vm2, %v1205_v13, 0.0  ;;  %541 = vmatpush.bf16.msra.mxu0 %v532_v7  ;;  %601 = vmatpush.bf16.msra.mxu2 %v592_v10 }
 0x11d   :  { %932 = vpow2.f32 %v376_v14  ;;  %406 = vadd.xlane.f32.xlu0 %v405_v20  ;;  %v417_v18 = vsel %vm308_vm2, %v1207_v17, 0.0  ;;  %v622_v11 = vand.u32 %v869_v9, %v530_v3  ;;  %v858_v14 = vld [vmem:[%s1395_s2 + $0x8] sm:$0xf] }
 0x11e   :  { %934 = vpow2.f32 %v386_v19  ;;  %418 = vadd.xlane.f32.xlu2 %v417_v18  ;;  %424 = vadd.xlane.f32.xlu1 %v423_v16  ;;  %v908_v19 = vld [vmem:[%s1395_s2 + $0x8] sm:$0x10] }
 0x11f   :  { %631 = vmatpush.bf16.msra.mxu3 %v622_v11  ;;  %v859_v20 = vor.u32 %v908_v19, %v858_v14 }
 0x120   :  { %v350_v15 = vpop.xlane.xlu1 %349  ;;  %v353_v21 = vpop.xlane.xlu2 %352 }
 0x121   :  { %v368_v22 = vsub.f32 %v1153_v24, %v350_v15  ;;  %v369_v23 = vsub.f32 %v1157_v28, %v353_v21  ;;  %v347_v25 = vpop.xlane.xlu0 %346  ;;  %v562_v18 = vand.u32 %v859_v20, %v530_v3 }
 0x122   :  { %v1217_v27 = vpop.eup %930  ;;  %v367_v29 = vsub.f32 %v1155_v26, %v347_v25  ;;  %v888_v25 = vld [vmem:[%s1395_s2 + $0x38] sm:$0xf] }
 0x123   :  { %v1220_v30 = vpop.eup %932  ;;  %v398_v31 = vmul.f32 1.442695, %v368_v22  ;;  %v400_v32 = vmul.f32 1.442695, %v369_v23  ;;  %v438_v33 = vsel %vm304_vm1, %v1217_v27, 0.0  ;;  %571 = vmatpush.bf16.msra.mxu1 %v562_v18 }
 0x124   :  { %v1224_v37 = vpop.eup %934  ;;  %v396_v38 = vmul.f32 1.442695, %v367_v29  ;;  %v411_v24 = vsel %vm308_vm2, %v1220_v30, 0.0  ;;  %v883_v22 = vld [vmem:[%s1395_s2 + $0x30] sm:$0xf] }
 0x125   :  { %936 = vpow2.f32 %v398_v31  ;;  %439 = vadd.xlane.f32.xlu0 %v438_v33  ;;  %v426_v28 = vsel %vm304_vm1, %v1224_v37, 0.0  ;;  %v913_v23 = vld [vmem:[%s1395_s2 + $0x30] sm:$0x10]  ;;  %v914_v31 = vld [vmem:[%s1395_s2 + $0x38] sm:$0x10] }
 0x126   :  { %938 = vpow2.f32 %v400_v32  ;;  %412 = vadd.xlane.f32.xlu2 %v411_v24  ;;  %427 = vadd.xlane.f32.xlu1 %v426_v28  ;;  %v884_v29 = vor.u32 %v913_v23, %v883_v22  ;;  %v889_v32 = vor.u32 %v914_v31, %v888_v25 }
 0x127   :  { %940 = vpow2.f32 %v396_v38 }
 0x128   :  { %v338_v26 = vpop.xlane.xlu2 %337  ;;  %v335_v39 = vpop.xlane.xlu1 %334  ;;  %v712_v33 = vand.u32 %v884_v29, %v530_v3  ;;  %v742_v38 = vand.u32 %v889_v32, %v530_v3 }
 0x129   :  { %v364_v40 = vsub.f32 %v1167_v35, %v338_v26  ;;  %v363_v41 = vsub.f32 %v1165_v34, %v335_v39  ;;  %v341_v42 = vpop.xlane.xlu0 %340 }
 0x12a   :  { %v365_v43 = vsub.f32 %v1169_v36, %v341_v42  ;;  %721 = vmatpush.bf16.msrb.mxu2 %v712_v33  ;;  %751 = vmatpush.bf16.msrb.mxu3 %v742_v38  ;;  %v873_v42 = vld [vmem:[%s1395_s2 + $0x20] sm:$0xf] }
 0x12b   :  { %v1233_v44 = vpop.eup %936  ;;  %v390_v45 = vmul.f32 1.442695, %v364_v40  ;;  %v388_v46 = vmul.f32 1.442695, %v363_v41 }
 0x12c   :  { %v1235_v47 = vpop.eup %938  ;;  %v392_v48 = vmul.f32 1.442695, %v365_v43  ;;  %v444_v35 = vsel %vm304_vm1, %v1233_v44, 0.0  ;;  %v911_v43 = vld [vmem:[%s1395_s2 + $0x20] sm:$0x10] }
 0x12d   :  { %v1237_v49 = vpop.eup %940  ;;  %942 = vpow2.f32 %v390_v45  ;;  %v447_v50 = vsel %vm308_vm2, %v1235_v47, 0.0  ;;  %v878_v45 = vld [vmem:[%s1395_s2 + $0x28] sm:$0xf] }
 0x12e   :  { %944 = vpow2.f32 %v388_v46  ;;  %448 = vadd.xlane.f32.xlu0 %v447_v50  ;;  %445 = vadd.xlane.f32.xlu2 %v444_v35  ;;  %v441_v34 = vsel %vm308_vm2, %v1237_v49, 0.0  ;;  %v912_v50 = vld [vmem:[%s1395_s2 + $0x28] sm:$0x10] }
 0x12f   :  { %946 = vpow2.f32 %v392_v48  ;;  %442 = vadd.xlane.f32.xlu1 %v441_v34  ;;  %v874_v48 = vor.u32 %v911_v43, %v873_v42  ;;  %v879_v34 = vor.u32 %v912_v50, %v878_v45 }
 0x131   :  { %v682_v58 = vand.u32 %v879_v34, %v530_v3 }
 0x133   :  { %v1245_v36 = vpop.eup %942  ;;  %691 = vmatpush.bf16.msrb.mxu1 %v682_v58 }
 0x134   :  { %v1247_v52 = vpop.eup %944  ;;  %v432_v53 = vsel %vm304_vm1, %v1245_v36, 0.0 }
 0x135   :  { %v1251_v55 = vpop.eup %946  ;;  %v429_v56 = vsel %vm308_vm2, %v1247_v52, 0.0 }
 0x136   :  { %433 = vadd.xlane.f32.xlu0 %v432_v53  ;;  %v435_v57 = vsel %vm308_vm2, %v1251_v55, 0.0  ;;  %430 = vadd.xlane.f32.xlu2 %v429_v56  ;;  %v652_v56 = vand.u32 %v874_v48, %v530_v3 }
 0x137   :  { %436 = vadd.xlane.f32.xlu1 %v435_v57 }
 0x138   :  { %661 = vmatpush.bf16.msrb.mxu0 %v652_v56 }
 0x180   :  { %v404_v16 = vpop.xlane.xlu2 %403 }
 0x181   :  { %v410_v12 = vpop.xlane.xlu1 %409  ;;  %948 = vrcp.f32 %v404_v16 }
 0x187   :  { %v949_v28 = vpop.eup %948 }
 0x188   :  { %v422_v15 = vpop.xlane.xlu0 %421  ;;  %v466_v46 = vmul.f32 %v949_v28, %v1181_v51 }
 0x189   :  { %v416_v21 = vpop.xlane.xlu1 %415 }
 0x18a   :  { %950 = vrcp.f32 %v416_v21  ;;  %v482_v60 = vpack.c.bf16 %v466_v46, %v466_v46 }
 0x18b   :  { %952 = vrcp.f32 %v422_v15 }
 0x18c   :  { %v516_v9 = vunpack.c.l.b16 %v482_v60 }
 0x190   :  { %v407_v24 = vpop.xlane.xlu0 %406  ;;  %v951_v40 = vpop.eup %950 }
 0x191   :  { %954 = vrcp.f32 %v407_v24  ;;  %v419_v26 = vpop.xlane.xlu2 %418  ;;  %v425_v39 = vpop.xlane.xlu1 %424  ;;  %v470_v35 = vmul.f32 %v951_v40, %v1194_v1 }
 0x192   :  { %956 = vrcp.f32 %v419_v26  ;;  %v953_v41 = vpop.eup %952 }
 0x193   :  { %958 = vrcp.f32 %v425_v39  ;;  %v472_v53 = vmul.f32 %v953_v41, %v1192_v63  ;;  %v486_v0 = vpack.c.bf16 %v470_v35, %v470_v35 }
 0x194   :  { %960 = vrcp.f32 %v410_v12 }
 0x195   :  { %v488_v6 = vpack.c.bf16 %v472_v53, %v472_v53  ;;  %v580_v12 = vunpack.c.l.b16 %v486_v0 }
 0x197   :  { %v955_v57 = vpop.eup %954  ;;  %v610_v19 = vunpack.c.l.b16 %v488_v6 }
 0x198   :  { %v957_v59 = vpop.eup %956  ;;  %v467_v61 = vmul.f32 %v955_v57, %v1201_v8  ;;  %v440_v62 = vpop.xlane.xlu0 %439 }
 0x199   :  { %v959_v51 = vpop.eup %958  ;;  %v471_v2 = vmul.f32 %v957_v59, %v1207_v17  ;;  %v413_v4 = vpop.xlane.xlu2 %412 }
 0x19a   :  { %v428_v5 = vpop.xlane.xlu1 %427  ;;  %v961_v1 = vpop.eup %960  ;;  %v483_v7 = vpack.c.bf16 %v467_v61, %v467_v61  ;;  %v473_v63 = vmul.f32 %v959_v51, %v1205_v13  ;;  %962 = vrcp.f32 %v413_v4 }
 0x19b   :  { %v487_v3 = vpack.c.bf16 %v471_v2, %v471_v2  ;;  %v468_v8 = vmul.f32 %v961_v1, %v1184_v54  ;;  %964 = vrcp.f32 %v440_v62 }
 0x19c   :  { %v517_v10 = vunpack.c.l.b16 %v483_v7  ;;  %v489_v11 = vpack.c.bf16 %v473_v63, %v473_v63 }
 0x19d   :  { %v581_v14 = vunpack.c.l.b16 %v487_v3  ;;  %v484_v21 = vpack.c.bf16 %v468_v8, %v468_v8 }
 0x19e   :  { %v518_v20 = vpack.c.b16 %v517_v10, %v516_v9  ;;  %v611_v17 = vunpack.c.l.b16 %v489_v11 }
 0x19f   :  { %v582_v18 = vpack.c.b16 %v581_v14, %v580_v12  ;;  %v550_v31 = vunpack.c.l.b16 %v484_v21 }
 0x1a0   :  { %v963_v16 = vpop.eup %962  ;;  %v612_v15 = vpack.c.b16 %v611_v17, %v610_v19  ;;  %855 = vmatmul.msk.bf16.vlgmr.msra.gmra.mxu0 %vm304_vm1, %v518_v20 }
 0x1a1   :  { %v469_v13 = vmul.f32 %v963_v16, %v1220_v30  ;;  %v449_v22 = vpop.xlane.xlu0 %448  ;;  %v446_v23 = vpop.xlane.xlu2 %445  ;;  %865 = vmatmul.msk.bf16.vlgmr.msra.gmra.mxu2 %vm304_vm1, %v582_v18 }
 0x1a2   :  { %966 = vrcp.f32 %v449_v22  ;;  %870 = vmatmul.msk.bf16.vlgmr.msra.gmra.mxu3 %vm304_vm1, %v612_v15  ;;  %v443_v54 = vpop.xlane.xlu1 %442  ;;  %v965_v29 = vpop.eup %964 }
 0x1a3   :  { %v485_v25 = vpack.c.bf16 %v469_v13, %v469_v13  ;;  %968 = vrcp.f32 %v446_v23  ;;  %v478_v33 = vmul.f32 %v965_v29, %v1217_v27 }
 0x1a4   :  { %970 = vrcp.f32 %v443_v54 }
 0x1a5   :  { %v551_v32 = vunpack.c.l.b16 %v485_v25  ;;  %972 = vrcp.f32 %v428_v5  ;;  %v494_v45 = vpack.c.bf16 %v478_v33, %v478_v33 }
 0x1a7   :  { %v552_v38 = vpack.c.b16 %v551_v32, %v550_v31  ;;  %v700_v53 = vunpack.c.l.b16 %v494_v45 }
 0x1a8   :  { %v967_v24 = vpop.eup %966 }
 0x1a9   :  { %v969_v30 = vpop.eup %968  ;;  %v481_v28 = vmul.f32 %v967_v24, %v1235_v47  ;;  %v434_v26 = vpop.xlane.xlu0 %433  ;;  %860 = vmatmul.msk.bf16.vlgmr.msra.gmra.mxu1 %vm304_vm1, %v552_v38 }
 0x1aa   :  { %v431_v39 = vpop.xlane.xlu2 %430  ;;  %v971_v40 = vpop.eup %970  ;;  %v480_v41 = vmul.f32 %v969_v30, %v1233_v44  ;;  %974 = vrcp.f32 %v434_v26 }
 0x1ab   :  { %v437_v42 = vpop.xlane.xlu1 %436  ;;  %v973_v43 = vpop.eup %972  ;;  %v497_v46 = vpack.c.bf16 %v481_v28, %v481_v28  ;;  %v479_v48 = vmul.f32 %v971_v40, %v1237_v49  ;;  %976 = vrcp.f32 %v431_v39 }
 0x1ac   :  { %v496_v27 = vpack.c.bf16 %v480_v41, %v480_v41  ;;  %978 = vrcp.f32 %v437_v42  ;;  %v474_v47 = vmul.f32 %v973_v43, %v1224_v37 }
 0x1ad   :  { %v495_v50 = vpack.c.bf16 %v479_v48, %v479_v48  ;;  %v731_v35 = vunpack.c.l.b16 %v497_v46 }
 0x1ae   :  { %v730_v34 = vunpack.c.l.b16 %v496_v27  ;;  %v490_v62 = vpack.c.bf16 %v474_v47, %v474_v47 }
 0x1af   :  { %v701_v56 = vunpack.c.l.b16 %v495_v50 }
 0x1b0   :  { %v975_v57 = vpop.eup %974  ;;  %v732_v58 = vpack.c.b16 %v731_v35, %v730_v34  ;;  %v640_v4 = vunpack.c.l.b16 %v490_v62 }
 0x1b1   :  { %v977_v44 = vpop.eup %976  ;;  %v702_v59 = vpack.c.b16 %v701_v56, %v700_v53  ;;  %v476_v60 = vmul.f32 %v975_v57, %v1245_v36 }
 0x1b2   :  { %v979_v61 = vpop.eup %978  ;;  %v475_v49 = vmul.f32 %v977_v44, %v1247_v52  ;;  %890 = vmatmul.msk.bf16.vlgmr.msrb.gmra.mxu3 %vm304_vm1, %v732_v58 }
 0x1b3   :  { %v492_v51 = vpack.c.bf16 %v476_v60, %v476_v60  ;;  %v477_v0 = vmul.f32 %v979_v61, %v1251_v55  ;;  %885 = vmatmul.msk.bf16.vlgmr.msrb.gmra.mxu2 %vm304_vm1, %v702_v59 }
 0x1b4   :  { %v491_v37 = vpack.c.bf16 %v475_v49, %v475_v49 }
 0x1b5   :  { %v493_v2 = vpack.c.bf16 %v477_v0, %v477_v0  ;;  %v670_v1 = vunpack.c.l.b16 %v492_v51 }
 0x1b6   :  { %v641_v5 = vunpack.c.l.b16 %v491_v37 }
 0x1b7   :  { %v671_v6 = vunpack.c.l.b16 %v493_v2 }
 0x1b8   :  { %v642_v7 = vpack.c.b16 %v641_v5, %v640_v4 }
 0x1b9   :  { %v672_v63 = vpack.c.b16 %v671_v6, %v670_v1 }
 0x1ba   :  { %875 = vmatmul.msk.bf16.vlgmr.msrb.gmra.mxu0 %vm304_vm1, %v642_v7 }
 0x1bb   :  { %880 = vmatmul.msk.bf16.vlgmr.msrb.gmra.mxu1 %vm304_vm1, %v672_v63 }
 0x21d   :  { %v543_v36 = vpop.f32.mrf.mxu0 }
 0x21e   :  { %758 = vst.msk [vmem:[%s1396_s3] sm:$0xff] %vm57_vm0, %v543_v36 }
 0x224   :  { %v603_v52 = vpop.f32.mrf.mxu2 }
 0x225   :  { %v545_v55 = vpop.f32.mrf.mxu0  ;;  %763 = vst.msk [vmem:[%s1396_s3 + $0x20] sm:$0xff] %vm57_vm0, %v603_v52  ;;  %v633_v3 = vpop.f32.mrf.mxu3 }
 0x226   :  { %760 = vst.msk [vmem:[%s1396_s3 + $0x8] sm:$0x1] %vm759_vm5, %v545_v55  ;;  %v573_v9 = vpop.f32.mrf.mxu1 }
 0x227   :  { %765 = vst.msk [vmem:[%s1396_s3 + $0x30] sm:$0xff] %vm57_vm0, %v633_v3 }
 0x228   :  { %761 = vst.msk [vmem:[%s1396_s3 + $0x10] sm:$0xff] %vm57_vm0, %v573_v9 }
 0x22c   :  { %v605_v10 = vpop.f32.mrf.mxu2 }
 0x22d   :  { %764 = vst.msk [vmem:[%s1396_s3 + $0x28] sm:$0x1] %vm759_vm5, %v605_v10  ;;  %v635_v11 = vpop.f32.mrf.mxu3 }
 0x22e   :  { %766 = vst.msk [vmem:[%s1396_s3 + $0x38] sm:$0x1] %vm759_vm5, %v635_v11  ;;  %v575_v8 = vpop.f32.mrf.mxu1 }
 0x22f   :  { %762 = vst.msk [vmem:[%s1396_s3 + $0x18] sm:$0x1] %vm759_vm5, %v575_v8 }
 0x235   :  { %v753_v12 = vpop.f32.mrf.mxu3 }
 0x236   :  { %v723_v14 = vpop.f32.mrf.mxu2  ;;  %773 = vst.msk [vmem:[%s1396_s3 + $0x70] sm:$0xff] %vm57_vm0, %v753_v12 }
 0x237   :  { %771 = vst.msk [vmem:[%s1396_s3 + $0x60] sm:$0xff] %vm57_vm0, %v723_v14  ;;  %v663_v19 = vpop.f32.mrf.mxu0 }
 0x238   :  { %767 = vst.msk [vmem:[%s1396_s3 + $0x40] sm:$0xff] %vm57_vm0, %v663_v19  ;;  %v693_v20 = vpop.f32.mrf.mxu1 }
 0x239   :  { %769 = vst.msk [vmem:[%s1396_s3 + $0x50] sm:$0xff] %vm57_vm0, %v693_v20 }
 0x23d   :  { %v755_v17 = vpop.f32.mrf.mxu3 }
 0x23e   :  { %v725_v18 = vpop.f32.mrf.mxu2  ;;  %774 = vst.msk [vmem:[%s1396_s3 + $0x78] sm:$0x1] %vm759_vm5, %v755_v17 }
 0x23f   :  { %772 = vst.msk [vmem:[%s1396_s3 + $0x68] sm:$0x1] %vm759_vm5, %v725_v18  ;;  %v665_v16 = vpop.f32.mrf.mxu0 }
 0x240   :  { %768 = vst.msk [vmem:[%s1396_s3 + $0x48] sm:$0x1] %vm759_vm5, %v665_v16  ;;  %v695_v15 = vpop.f32.mrf.mxu1 }
 0x241   :  { %770 = vst.msk [vmem:[%s1396_s3 + $0x58] sm:$0x1] %vm759_vm5, %v695_v15 }

// kernel: forward.43
= control target key start
LH: loop header
LB: loop body
LE: loop exit
PB: predicated region body
PF: predicated region fallthrough
CT: control target
= control target key end

     0   :  { %vm62_vm0 = vcmask 523264   ;;  %vm87_vm1 = vcmask 261120   ;;  %vm90_vm2 = vcmask 254976   ;;  %s178_s1 = inlined_call_operand.vmem [shape: bf16[64,32], index: 1, kind: input, shape index: {}]   ;;  %s179_s2 = inlined_call_operand.vmem [shape: f32[1,32], index: 2, kind: input, shape index: {}]   ;;  %s180_s0 = inlined_call_operand.vmem [shape: bf16[18,64], index: 0, kind: input, shape index: {}]   ;;  %s181_s3 = inlined_call_operand.vmem [shape: f32[18,32], index: 3, kind: output, shape index: {}]  }
   0x1   :  { %v122_v0 = vld [vmem:[%s178_s1 + $0x18] sm:$0xff]  ;;  %v121_v1 = vld [vmem:[%s178_s1 + $0x10] sm:$0xff]  ;;  %v120_v2 = vld [vmem:[%s178_s1 + $0x8] sm:$0xff] }
   0x2   :  { %73 = vmatpush.bf16.msra.mxu0 %v122_v0  ;;  %123 = vmatpush.bf16.msra.mxu1 %v122_v0  ;;  %v17_v3 = vld [vmem:[%s180_s0 + $0x8] sm:$0x1]  ;;  %v119_v5 = vld [vmem:[%s178_s1] sm:$0xff] }
   0x3   :  { %v35_v4 = vunpack.c.l.b16 %v17_v3  ;;  %v118_v6 = vld [vmem:[%s180_s0] sm:$0xff] }
   0x4   :  { %v127_v8 = vld [vmem:[%s179_s2] ss:$0 sm:$0xff] }
   0x5   :  { %v37_v7 = vpack.c.b16 %v35_v4, %v35_v4 }
   0x6   :  { %74 = vmatpush.bf16.msra.mxu0 %v121_v1  ;;  %124 = vmatpush.bf16.msra.mxu1 %v121_v1 }
   0xa   :  { %75 = vmatpush.bf16.msra.mxu0 %v120_v2  ;;  %125 = vmatpush.bf16.msra.mxu1 %v120_v2 }
   0xe   :  { %76 = vmatpush.bf16.msra.mxu0 %v119_v5  ;;  %126 = vmatpush.bf16.msra.mxu1 %v119_v5 }
  0x11   :  { %116 = vmatmul.msk.bf16.vlgmr.msra.gmra.mxu0 %vm62_vm0, %v118_v6  ;;  %117 = vmatmul.msk.bf16.vlgmr.msra.gmra.mxu1 %vm62_vm0, %v37_v7 }
  0x8e   :  { %v78_v9 = vpop.f32.mrf.mxu0  ;;  %v83_v10 = vpop.f32.mrf.mxu1 }
  0x8f   :  { %v79_v11 = vadd.f32 %v127_v8, %v78_v9  ;;  %v84_v12 = vadd.f32 %v127_v8, %v83_v10 }
  0x91   :  { %88 = vst.msk [vmem:[%s181_s3] sm:$0xff] %vm87_vm1, %v79_v11 }
  0x92   :  { %91 = vst.msk [vmem:[%s181_s3 + $0x10] sm:$0x3] %vm90_vm2, %v84_v12 }
  0x96   :  { %v80_v13 = vpop.f32.mrf.mxu0  ;;  %v85_v14 = vpop.f32.mrf.mxu1 }
  0x97   :  { %v81_v15 = vadd.f32 %v127_v8, %v80_v13 }
  0x99   :  { %89 = vst.msk [vmem:[%s181_s3 + $0x8] sm:$0xff] %vm87_vm1, %v81_v15 }

</bundles_post_ra>
